<compile_context>
chip_gen: v6e
topology: v6e:2x2x1
jax: 0.10.0
libtpu: 0.0.40
codegen_flags: <defaults>
</compile_context>

<pallas_src>
import functools

import numpy as np
import jax
import jax.numpy as jnp
from jax.experimental import pallas as pl
from jax.experimental.pallas import tpu as pltpu


# ----------------------------------------------------------------------------
# Tiled, pipelined matmul kernel (bias + optional activation fused at finalize)
# ----------------------------------------------------------------------------
def _matmul_kernel(a_ref, b_ref, bias_ref, o_ref, acc_ref, *, act):
    @pl.when(pl.program_id(2) == 0)
    def _():
        acc_ref[...] = jnp.zeros_like(acc_ref)

    acc_ref[...] += jnp.dot(a_ref[...], b_ref[...],
                            preferred_element_type=jnp.float32)

    @pl.when(pl.program_id(2) == pl.num_programs(2) - 1)
    def _():
        acc = acc_ref[...] + bias_ref[...]
        if act == "leaky":
            acc = jnp.where(acc >= 0, acc, 0.1 * acc)
        elif act == "relu":
            acc = jnp.maximum(acc, 0.0)
        o_ref[...] = acc.astype(o_ref.dtype)


def _round_up(x, m):
    return ((x + m - 1) // m) * m


def _pick_tile(dim, unit, max_tile):
    """Pad `dim` to a multiple of `unit`, pick the largest tile <= max_tile
    (a multiple of `unit`) that evenly divides the padded dim."""
    padded = _round_up(max(dim, 1), unit)
    q = padded // unit
    best = 1
    for d in range(1, max_tile // unit + 1):
        if q % d == 0:
            best = d
    return padded, best * unit


def matmul_bias_act(a, b, bias, act=None, out_dtype=jnp.bfloat16):
    """(M,K) @ (K,N) + bias[N] with optional activation.

    bf16 MXU inputs, f32 accumulation, tiled 3-D grid with double-buffered
    BlockSpec pipelining and an f32 VMEM accumulator."""
    M, K = a.shape
    K2, N = b.shape
    assert K == K2
    a = a.astype(jnp.bfloat16)
    b = b.astype(jnp.bfloat16)

    Mp, tm = _pick_tile(M, 16, 128)    # sublane-friendly for bf16
    Np, tn = _pick_tile(N, 128, 256)   # lane-dense output tiles
    Kp, tk = _pick_tile(K, 128, 512)

    if (Mp, Kp) != (M, K):
        a = jnp.pad(a, ((0, Mp - M), (0, Kp - K)))
    if (Kp, Np) != (K, N):
        b = jnp.pad(b, ((0, Kp - K), (0, Np - N)))
    bias_p = jnp.pad(bias.astype(jnp.float32), (0, Np - N)).reshape(1, Np)

    grid = (Mp // tm, Np // tn, Kp // tk)
    kernel = functools.partial(_matmul_kernel, act=act)
    out = pl.pallas_call(
        kernel,
        out_shape=jax.ShapeDtypeStruct((Mp, Np), out_dtype),
        grid_spec=pltpu.PrefetchScalarGridSpec(
            num_scalar_prefetch=0,
            grid=grid,
            in_specs=[
                pl.BlockSpec((tm, tk), lambda i, j, k: (i, k)),
                pl.BlockSpec((tk, tn), lambda i, j, k: (k, j)),
                pl.BlockSpec((1, tn), lambda i, j, k: (0, j)),
            ],
            out_specs=pl.BlockSpec((tm, tn), lambda i, j, k: (i, j)),
            scratch_shapes=[pltpu.VMEM((tm, tn), jnp.float32)],
        ),
        compiler_params=pltpu.CompilerParams(
            dimension_semantics=("parallel", "parallel", "arbitrary")),
    )(a, b, bias_p)
    if (Mp, Np) != (M, N):
        out = out[:M, :N]
    return out


# ----------------------------------------------------------------------------
# Self-attention kernel (SAGAN style), NHWC, fused QKV projection
# ----------------------------------------------------------------------------
def _attn_kernel(q_ref, k_ref, v_ref, x_ref, gamma_ref, o_ref):
    gamma = gamma_ref[0]
    B = q_ref.shape[0]
    for b in range(B):  # B is small and static -> unrolled
        q = q_ref[b].astype(jnp.float32)          # (N, Cq)
        k = k_ref[b].astype(jnp.float32)          # (N, Cq)
        v = v_ref[b].astype(jnp.float32)          # (N, C)
        # energy[i, j] = q_i . k_j  (transposed contraction: no in-kernel .T)
        energy = jax.lax.dot_general(q, k, (((1,), (1,)), ((), ())),
                                     preferred_element_type=jnp.float32)
        energy = energy - jnp.max(energy, axis=-1, keepdims=True)
        p = jnp.exp(energy)
        attn = p * pl.reciprocal(jnp.sum(p, axis=-1, keepdims=True), approx=True)
        out = jnp.dot(attn, v, preferred_element_type=jnp.float32)   # (N, C)
        o_ref[b] = (gamma * out + x_ref[b].astype(jnp.float32)).astype(o_ref.dtype)


def self_attention(x, p):
    """x: (B, H, W, C) NHWC bf16."""
    B, H, W, C = x.shape
    N = H * W
    Cq = (p["wqkv"].shape[1] - C) // 2
    x_flat = x.reshape(B * N, C)
    qkv = matmul_bias_act(x_flat, p["wqkv"], p["bqkv"])        # (B*N, 2Cq+C)
    q = qkv[:, :Cq].reshape(B, N, Cq)
    k = qkv[:, Cq:2 * Cq].reshape(B, N, Cq)
    v = qkv[:, 2 * Cq:].reshape(B, N, C)
    x3 = x.reshape(B, N, C)

    out = pl.pallas_call(
        _attn_kernel,
        out_shape=jax.ShapeDtypeStruct((B, N, C), x.dtype),
        grid=(1,),
        in_specs=[
            pl.BlockSpec((B, N, Cq), lambda i: (0, 0, 0)),
            pl.BlockSpec((B, N, Cq), lambda i: (0, 0, 0)),
            pl.BlockSpec((B, N, C), lambda i: (0, 0, 0)),
            pl.BlockSpec((B, N, C), lambda i: (0, 0, 0)),
            pl.BlockSpec(memory_space=pltpu.MemorySpace.SMEM),
        ],
        out_specs=pl.BlockSpec((B, N, C), lambda i: (0, 0, 0)),
    )(q, k, v, x3, p["gamma"])
    return out.reshape(B, H, W, C)


# ----------------------------------------------------------------------------
# Conv helpers (NHWC im2col glue + Pallas matmul hot path)
# ----------------------------------------------------------------------------
def im2col(x, kh, kw, stride, pad):
    # TODO(synk): cols are still materialized in HBM; fusing the strided window
    # gather into the matmul (implicit GEMM) is not expressible with a plain
    # BlockSpec index_map and is left to a manual-DMA rewrite.
    B, H, W, C = x.shape
    if pad:
        x = jnp.pad(x, ((0, 0), (pad, pad), (pad, pad), (0, 0)))
    OH = (H + 2 * pad - kh) // stride + 1
    OW = (W + 2 * pad - kw) // stride + 1
    patches = []
    for i in range(kh):
        for j in range(kw):
            patches.append(x[:, i:i + stride * OH:stride, j:j + stride * OW:stride, :])
    cols = jnp.concatenate(patches, axis=-1)            # (B, OH, OW, kh*kw*C)
    return cols.reshape(B * OH * OW, kh * kw * C), OH, OW


def conv2d(x, layer, *, k, stride, pad, act=None):
    """x: (B, H, W, Cin) NHWC; layer['wmat']: (k*k*Cin, Cout)."""
    B = x.shape[0]
    cols, OH, OW = im2col(x, k, k, stride, pad)
    out = matmul_bias_act(cols, layer["wmat"], layer["b"], act=act)
    Cout = layer["wmat"].shape[1]
    return out.reshape(B, OH, OW, Cout)


def conv_transpose2d(x, layer):
    """ConvTranspose2d(k=4, stride=2, pad=1) via sub-pixel decomposition:
    4 stride-1 2x2 sub-convs on the *undilated* input, interleaved at the end."""
    B, H, W, Cin = x.shape
    Cout = layer["wmats"].shape[-1]
    subs = []
    idx = 0
    for py in (0, 1):
        for px in (0, 1):
            pad_r = (1, 0) if py == 0 else (0, 1)
            pad_c = (1, 0) if px == 0 else (0, 1)
            xp = jnp.pad(x, ((0, 0), pad_r, pad_c, (0, 0)))
            cols, OH, OW = im2col(xp, 2, 2, 1, 0)        # OH=H, OW=W
            out = matmul_bias_act(cols, layer["wmats"][idx], layer["b"])
            subs.append(out.reshape(B, H, W, Cout))
            idx += 1
    y = jnp.stack(subs, axis=0).reshape(2, 2, B, H, W, Cout)
    y = jnp.transpose(y, (2, 3, 0, 4, 1, 5)).reshape(B, 2 * H, 2 * W, Cout)
    return y


def stddev_norm(x, layer):
    # TODO(synk): StdDevNorm class definition not provided in the reference file;
    # implemented as minibatch-stddev channel concat + 1x1 restore conv to C channels.
    B, H, W, C = x.shape
    xf = x.astype(jnp.float32)
    std = jnp.mean(jnp.sqrt(jnp.var(xf, axis=0) + 1e-8))
    std_map = jnp.full((B, H, W, 1), std, x.dtype)
    cols = jnp.concatenate([x, std_map], axis=-1).reshape(B * H * W, C + 1)
    out = matmul_bias_act(cols, layer["wmat"], layer["b"])
    return out.reshape(B, H, W, C)


# ----------------------------------------------------------------------------
# Parameter construction (deterministic, synthetic)
# ----------------------------------------------------------------------------
def spectral_normalize(w, key, n_iter=3, eps=1e-12):
    wm = w.reshape(w.shape[0], -1)
    u = jax.random.normal(key, (wm.shape[0],), jnp.float32)
    u = u / (jnp.linalg.norm(u) + eps)
    v = None
    for _ in range(n_iter):
        v = wm.T @ u
        v = v / (jnp.linalg.norm(v) + eps)
        u = wm @ v
        u = u / (jnp.linalg.norm(u) + eps)
    sigma = u @ (wm @ v)
    return w / sigma


def _prep_conv(w, b):
    """PyTorch conv weight (Cout, Cin, kh, kw) -> channels-last matmul weight."""
    Cout, Cin, kh, kw = w.shape
    wmat = jnp.transpose(w, (2, 3, 1, 0)).reshape(kh * kw * Cin, Cout)
    return {"wmat": wmat.astype(jnp.bfloat16), "b": b.astype(jnp.float32)}


def _prep_convtranspose(w, b):
    """PyTorch ConvTranspose2d weight (Cin, Cout, 4, 4) -> 4 sub-pixel 2x2 kernels."""
    Cin, Cout = w.shape[0], w.shape[1]
    wmats = []
    for py in (0, 1):
        ky = (3, 1) if py == 0 else (2, 0)
        for px in (0, 1):
            kx = (3, 1) if px == 0 else (2, 0)
            we = jnp.stack(
                [jnp.stack([w[:, :, ky[dy], kx[dx]] for dx in (0, 1)], axis=0)
                 for dy in (0, 1)], axis=0)               # (2, 2, Cin, Cout)
            wmats.append(we.reshape(2 * 2 * Cin, Cout))
    return {"wmats": jnp.stack(wmats, axis=0).astype(jnp.bfloat16),
            "b": b.astype(jnp.float32)}


def init_params(key, img_size=32, conv_dim=64):
    kit = iter(jax.random.split(key, 64))

    def randn(shape, fan_in):
        return jax.random.normal(next(kit), shape, jnp.float32) / np.sqrt(fan_in)

    def zeros(n):
        return jnp.zeros((n,), jnp.float32)

    cd = conv_dim
    p = {}

    def conv_layer(cout, cin, k):
        w = spectral_normalize(randn((cout, cin, k, k), cin * k * k), next(kit))
        return _prep_conv(w, zeros(cout))

    p["l1"] = conv_layer(cd, 3, 4)
    p["l2"] = conv_layer(2 * cd, cd, 4)
    p["l3"] = conv_layer(4 * cd, 2 * cd, 4)
    p["l4"] = conv_layer(8 * cd, 4 * cd, 4)

    def attn_layer(dim):
        cq = dim // 8
        wq = randn((cq, dim), dim)
        wk = randn((cq, dim), dim)
        wv = randn((dim, dim), dim)
        return {
            "wqkv": jnp.concatenate([wq.T, wk.T, wv.T], axis=1).astype(jnp.bfloat16),
            "bqkv": jnp.zeros((2 * cq + dim,), jnp.float32),
            # gamma != 0 so the attention math is actually exercised by the test
            "gamma": jnp.full((1,), 0.1, jnp.float32),
        }

    p["a1"] = attn_layer(4 * cd)
    p["a2"] = attn_layer(8 * cd)

    w_std = randn((8 * cd, 8 * cd + 1, 1, 1), 8 * cd + 1)
    p["std"] = {
        "wmat": jnp.transpose(w_std, (2, 3, 1, 0)).reshape(8 * cd + 1, 8 * cd).astype(jnp.bfloat16),
        "b": zeros(8 * cd),
    }

    ks = img_size // 16
    w_last = randn((1, 8 * cd, ks, ks), 8 * cd * ks * ks)
    p["last_wmat"] = jnp.transpose(w_last, (2, 3, 1, 0)).reshape(ks * ks * 8 * cd, 1)
    p["last_b"] = zeros(1)

    p["mlp1_w"] = randn((256, 1), 1)
    p["mlp1_b"] = zeros(256)
    p["mlp2_w"] = randn((64, 256), 256)
    p["mlp2_b"] = zeros(64)

    p["up1"] = _prep_convtranspose(randn((512, 256, 4, 4), 512 * 16), zeros(256))
    p["up2"] = _prep_convtranspose(randn((256, 128, 4, 4), 256 * 16), zeros(128))
    p["up3"] = _prep_convtranspose(randn((128, 64, 4, 4), 128 * 16), zeros(64))

    p["w_w"] = randn((4, 64), 64)
    p["w_b"] = zeros(4)
    return p


# ----------------------------------------------------------------------------
# Forward pass (matches FeatureMatchPatchDiscriminator.forward, flag=None path)
# ----------------------------------------------------------------------------
def forward(params, X):
    B = X.shape[0]
    # single NCHW -> NHWC transpose at the boundary; bf16 activations internally
    x = jnp.transpose(X, (0, 2, 3, 1)).astype(jnp.bfloat16)

    f1 = conv2d(x, params["l1"], k=4, stride=2, pad=1, act="leaky")
    f2 = conv2d(f1, params["l2"], k=4, stride=2, pad=1, act="leaky")
    h = conv2d(f2, params["l3"], k=4, stride=2, pad=1, act="leaky")
    f3 = self_attention(h, params["a1"])
    h = conv2d(f3, params["l4"], k=4, stride=2, pad=1, act="leaky")
    f4 = self_attention(h, params["a2"])

    out = stddev_norm(f4, params["std"])

    # tiny tail ops (N=1 conv, MLP 1->256->64, 64->4 head): plain XLA, not Pallas
    out5 = out.astype(jnp.float32).reshape(B, -1) @ params["last_wmat"] + params["last_b"]
    hmlp = jax.nn.relu(out5 @ params["mlp1_w"].T + params["mlp1_b"])
    out6 = hmlp @ params["mlp2_w"].T + params["mlp2_b"]

    f4_up = conv_transpose2d(f4, params["up1"])
    f3c = f3 + f4_up
    f3_up = conv_transpose2d(f3c, params["up2"])
    f2c = f2 + f3_up
    f2_up = conv_transpose2d(f2c, params["up3"])
    f1c = f1 + f2_up

    feature_avg = jnp.mean(f1c.astype(jnp.float32), axis=(1, 2))     # AdaptiveAvgPool2d(1)
    fa = jax.nn.softmax(feature_avg @ params["w_w"].T + params["w_b"], axis=-1)

    feats = [
        jnp.transpose(f1, (0, 3, 1, 2)).astype(jnp.float32),
        jnp.transpose(f2, (0, 3, 1, 2)).astype(jnp.float32),
        jnp.transpose(f3, (0, 3, 1, 2)).astype(jnp.float32),
        jnp.transpose(f4, (0, 3, 1, 2)).astype(jnp.float32),
        out5,
        out6,
    ]
    for i in range(fa.shape[1]):
        att = fa[:, i].reshape(B, 1, 1, 1)
        feats[i] = feats[i] * att
    return feats


# ----------------------------------------------------------------------------
if __name__ == "__main__":
    IMG = 32          # small spatial size (must be divisible by 16)
    CONV_DIM = 64     # module default (Upsample channels are hard-coded to it)
    B = 2

    key = jax.random.PRNGKey(0)
    k_param, k_x = jax.random.split(key)
    params = init_params(k_param, img_size=IMG, conv_dim=CONV_DIM)
    X = jax.random.normal(k_x, (B, 3, IMG, IMG), jnp.float32)

    feats = jax.jit(forward)(params, X)
    feats = jax.block_until_ready(feats)

    expected = [
        (B, 64, 16, 16),
        (B, 128, 8, 8),
        (B, 256, 4, 4),
        (B, 512, 2, 2),
        (B, 1),
        (B, 64),
    ]
    assert [tuple(f.shape) for f in feats] == expected, [f.shape for f in feats]
    assert all(bool(jnp.all(jnp.isfinite(f))) for f in feats)
    print("KERNEL_OK")
</pallas_src>

<mosaic_0001>
module attributes {stable_mosaic.version = 11 : i64} {
  func.func @_matmul_kernel(%arg0: i32, %arg1: i32, %arg2: i32, %arg3: memref<128x128xbf16, #tpu.memory_space<vmem>>, %arg4: memref<128x128xbf16, #tpu.memory_space<vmem>>, %arg5: memref<1x128xf32, #tpu.memory_space<vmem>>, %arg6: memref<128x128xbf16, #tpu.memory_space<vmem>>, %arg7: memref<128x128xf32, #tpu.memory_space<vmem>>) attributes {dimension_semantics = [#tpu.dimension_semantics<parallel>, #tpu.dimension_semantics<parallel>, #tpu.dimension_semantics<arbitrary>], iteration_bounds = array<i64: 4, 1, 1>, scalar_prefetch = 0 : i64, scratch_operands = 1 : i64, tpu.core_type = #tpu.core_type<tc>, window_params = [{transform_indices = @transform_0, window_bounds = array<i64: 128, 128>}, {transform_indices = @transform_1, window_bounds = array<i64: 128, 128>}, {transform_indices = @transform_2, window_bounds = array<i64: 1, 128>}, {transform_indices = @transform_3, window_bounds = array<i64: 128, 128>}]} {
    %c0_i32 = arith.constant 0 : i32
    %0 = arith.cmpi eq, %arg2, %c0_i32 : i32
    %1 = arith.extui %0 : i1 to i32
    %c0_i32_0 = arith.constant 0 : i32
    %2 = arith.cmpi ne, %1, %c0_i32_0 : i32
    scf.if %2 {
      %cst_10 = arith.constant 0.000000e+00 : f32
      %12 = vector.broadcast %cst_10 : f32 to vector<128x128xf32>
      %c0_11 = arith.constant 0 : index
      %c0_12 = arith.constant 0 : index
      %13 = vector.load %arg7[%c0_11, %c0_12] : memref<128x128xf32, #tpu.memory_space<vmem>>, vector<128x128xf32>
      tpu.vector_store %arg7[%c0_11, %c0_12], %12 {strides = array<i32>} : memref<128x128xf32, #tpu.memory_space<vmem>>, vector<128x128xf32>,
    } else {
    }
    %c0 = arith.constant 0 : index
    %c0_1 = arith.constant 0 : index
    %3 = vector.load %arg7[%c0, %c0_1] : memref<128x128xf32, #tpu.memory_space<vmem>>, vector<128x128xf32>
    %c0_2 = arith.constant 0 : index
    %c0_3 = arith.constant 0 : index
    %4 = vector.load %arg3[%c0_2, %c0_3] : memref<128x128xbf16, #tpu.memory_space<vmem>>, vector<128x128xbf16>
    %c0_4 = arith.constant 0 : index
    %c0_5 = arith.constant 0 : index
    %5 = vector.load %arg4[%c0_4, %c0_5] : memref<128x128xbf16, #tpu.memory_space<vmem>>, vector<128x128xbf16>
    %cst = arith.constant dense<0.000000e+00> : vector<128x128xf32>
    %6 = tpu.matmul %4, %5, %cst {dimension_numbers = #tpu.dot_dimension_numbers<[1], [0], [0], [1], [0, 0, 1, 1], [], []>} : vector<128x128xbf16>, vector<128x128xbf16>, vector<128x128xf32> -> vector<128x128xf32>
    %7 = arith.addf %3, %6 : vector<128x128xf32>
    %c0_6 = arith.constant 0 : index
    %c0_7 = arith.constant 0 : index
    %8 = vector.load %arg7[%c0_6, %c0_7] : memref<128x128xf32, #tpu.memory_space<vmem>>, vector<128x128xf32>
    tpu.vector_store %arg7[%c0_6, %c0_7], %7 {strides = array<i32>} : memref<128x128xf32, #tpu.memory_space<vmem>>, vector<128x128xf32>,
    %c0_i32_8 = arith.constant 0 : i32
    %9 = arith.cmpi eq, %arg2, %c0_i32_8 : i32
    %10 = arith.extui %9 : i1 to i32
    %c0_i32_9 = arith.constant 0 : i32
    %11 = arith.cmpi ne, %10, %c0_i32_9 : i32
    scf.if %11 {
      %c0_10 = arith.constant 0 : index
      %c0_11 = arith.constant 0 : index
      %12 = vector.load %arg7[%c0_10, %c0_11] : memref<128x128xf32, #tpu.memory_space<vmem>>, vector<128x128xf32>
      %c0_12 = arith.constant 0 : index
      %c0_13 = arith.constant 0 : index
      %13 = vector.load %arg5[%c0_12, %c0_13] : memref<1x128xf32, #tpu.memory_space<vmem>>, vector<1x128xf32>
      %14 = vector.broadcast %13 : vector<1x128xf32> to vector<128x128xf32>
      %15 = arith.addf %12, %14 : vector<128x128xf32>
      %cst_14 = arith.constant 0.000000e+00 : f32
      %16 = vector.broadcast %cst_14 : f32 to vector<128x128xf32>
      %17 = arith.cmpf oge, %15, %16 : vector<128x128xf32>
      %cst_15 = arith.constant 1.000000e-01 : f32
      %18 = vector.broadcast %cst_15 : f32 to vector<128x128xf32>
      %19 = arith.mulf %18, %15 : vector<128x128xf32>
      %20 = arith.select %17, %15, %19 : vector<128x128xi1>, vector<128x128xf32>
      %21 = arith.truncf %20 : vector<128x128xf32> to vector<128x128xbf16>
      %c0_16 = arith.constant 0 : index
      %c0_17 = arith.constant 0 : index
      %22 = vector.load %arg6[%c0_16, %c0_17] : memref<128x128xbf16, #tpu.memory_space<vmem>>, vector<128x128xbf16>
      tpu.vector_store %arg6[%c0_16, %c0_17], %21 {strides = array<i32>} : memref<128x128xbf16, #tpu.memory_space<vmem>>, vector<128x128xbf16>,
    } else {
    }
    return
  }
  func.func @transform_0(%arg0: i32, %arg1: i32, %arg2: i32) -> (i32, i32) {
    %c0_i32 = arith.constant 0 : i32
    return %arg0, %arg2 : i32, i32
  }
  func.func @transform_1(%arg0: i32, %arg1: i32, %arg2: i32) -> (i32, i32) {
    %c0_i32 = arith.constant 0 : i32
    return %arg2, %arg1 : i32, i32
  }
  func.func @transform_2(%arg0: i32, %arg1: i32, %arg2: i32) -> (i32, i32) {
    %c0_i32 = arith.constant 0 : i32
    %c0_i32_0 = arith.constant 0 : i32
    return %c0_i32, %arg1 : i32, i32
  }
  func.func @transform_3(%arg0: i32, %arg1: i32, %arg2: i32) -> (i32, i32) {
    %c0_i32 = arith.constant 0 : i32
    return %arg0, %arg1 : i32, i32
  }
}

module attributes {stable_mosaic.version = 11 : i64} {
  func.func @_matmul_kernel(%arg0: i32, %arg1: i32, %arg2: i32, %arg3: memref<128x512xbf16, #tpu.memory_space<vmem>>, %arg4: memref<512x128xbf16, #tpu.memory_space<vmem>>, %arg5: memref<1x128xf32, #tpu.memory_space<vmem>>, %arg6: memref<128x128xbf16, #tpu.memory_space<vmem>>, %arg7: memref<128x128xf32, #tpu.memory_space<vmem>>) attributes {dimension_semantics = [#tpu.dimension_semantics<parallel>, #tpu.dimension_semantics<parallel>, #tpu.dimension_semantics<arbitrary>], iteration_bounds = array<i64: 1, 1, 2>, scalar_prefetch = 0 : i64, scratch_operands = 1 : i64, tpu.core_type = #tpu.core_type<tc>, window_params = [{transform_indices = @transform_0, window_bounds = array<i64: 128, 512>}, {transform_indices = @transform_1, window_bounds = array<i64: 512, 128>}, {transform_indices = @transform_2, window_bounds = array<i64: 1, 128>}, {transform_indices = @transform_3, window_bounds = array<i64: 128, 128>}]} {
    %c0_i32 = arith.constant 0 : i32
    %0 = arith.cmpi eq, %arg2, %c0_i32 : i32
    %1 = arith.extui %0 : i1 to i32
    %c0_i32_0 = arith.constant 0 : i32
    %2 = arith.cmpi ne, %1, %c0_i32_0 : i32
    scf.if %2 {
      %cst_9 = arith.constant 0.000000e+00 : f32
      %12 = vector.broadcast %cst_9 : f32 to vector<128x128xf32>
      %c0_10 = arith.constant 0 : index
      %c0_11 = arith.constant 0 : index
      %13 = vector.load %arg7[%c0_10, %c0_11] : memref<128x128xf32, #tpu.memory_space<vmem>>, vector<128x128xf32>
      tpu.vector_store %arg7[%c0_10, %c0_11], %12 {strides = array<i32>} : memref<128x128xf32, #tpu.memory_space<vmem>>, vector<128x128xf32>,
    } else {
    }
    %c0 = arith.constant 0 : index
    %c0_1 = arith.constant 0 : index
    %3 = vector.load %arg7[%c0, %c0_1] : memref<128x128xf32, #tpu.memory_space<vmem>>, vector<128x128xf32>
    %c0_2 = arith.constant 0 : index
    %c0_3 = arith.constant 0 : index
    %4 = vector.load %arg3[%c0_2, %c0_3] : memref<128x512xbf16, #tpu.memory_space<vmem>>, vector<128x512xbf16>
    %c0_4 = arith.constant 0 : index
    %c0_5 = arith.constant 0 : index
    %5 = vector.load %arg4[%c0_4, %c0_5] : memref<512x128xbf16, #tpu.memory_space<vmem>>, vector<512x128xbf16>
    %cst = arith.constant dense<0.000000e+00> : vector<128x128xf32>
    %6 = tpu.matmul %4, %5, %cst {dimension_numbers = #tpu.dot_dimension_numbers<[1], [0], [0], [1], [0, 0, 1, 1], [], []>} : vector<128x512xbf16>, vector<512x128xbf16>, vector<128x128xf32> -> vector<128x128xf32>
    %7 = arith.addf %3, %6 : vector<128x128xf32>
    %c0_6 = arith.constant 0 : index
    %c0_7 = arith.constant 0 : index
    %8 = vector.load %arg7[%c0_6, %c0_7] : memref<128x128xf32, #tpu.memory_space<vmem>>, vector<128x128xf32>
    tpu.vector_store %arg7[%c0_6, %c0_7], %7 {strides = array<i32>} : memref<128x128xf32, #tpu.memory_space<vmem>>, vector<128x128xf32>,
    %c1_i32 = arith.constant 1 : i32
    %9 = arith.cmpi eq, %arg2, %c1_i32 : i32
    %10 = arith.extui %9 : i1 to i32
    %c0_i32_8 = arith.constant 0 : i32
    %11 = arith.cmpi ne, %10, %c0_i32_8 : i32
    scf.if %11 {
      %c0_9 = arith.constant 0 : index
      %c0_10 = arith.constant 0 : index
      %12 = vector.load %arg7[%c0_9, %c0_10] : memref<128x128xf32, #tpu.memory_space<vmem>>, vector<128x128xf32>
      %c0_11 = arith.constant 0 : index
      %c0_12 = arith.constant 0 : index
      %13 = vector.load %arg5[%c0_11, %c0_12] : memref<1x128xf32, #tpu.memory_space<vmem>>, vector<1x128xf32>
      %14 = vector.broadcast %13 : vector<1x128xf32> to vector<128x128xf32>
      %15 = arith.addf %12, %14 : vector<128x128xf32>
      %cst_13 = arith.constant 0.000000e+00 : f32
      %16 = vector.broadcast %cst_13 : f32 to vector<128x128xf32>
      %17 = arith.cmpf oge, %15, %16 : vector<128x128xf32>
      %cst_14 = arith.constant 1.000000e-01 : f32
      %18 = vector.broadcast %cst_14 : f32 to vector<128x128xf32>
      %19 = arith.mulf %18, %15 : vector<128x128xf32>
      %20 = arith.select %17, %15, %19 : vector<128x128xi1>, vector<128x128xf32>
      %21 = arith.truncf %20 : vector<128x128xf32> to vector<128x128xbf16>
      %c0_15 = arith.constant 0 : index
      %c0_16 = arith.constant 0 : index
      %22 = vector.load %arg6[%c0_15, %c0_16] : memref<128x128xbf16, #tpu.memory_space<vmem>>, vector<128x128xbf16>
      tpu.vector_store %arg6[%c0_15, %c0_16], %21 {strides = array<i32>} : memref<128x128xbf16, #tpu.memory_space<vmem>>, vector<128x128xbf16>,
    } else {
    }
    return
  }
  func.func @transform_0(%arg0: i32, %arg1: i32, %arg2: i32) -> (i32, i32) {
    %c0_i32 = arith.constant 0 : i32
    return %arg0, %arg2 : i32, i32
  }
  func.func @transform_1(%arg0: i32, %arg1: i32, %arg2: i32) -> (i32, i32) {
    %c0_i32 = arith.constant 0 : i32
    return %arg2, %arg1 : i32, i32
  }
  func.func @transform_2(%arg0: i32, %arg1: i32, %arg2: i32) -> (i32, i32) {
    %c0_i32 = arith.constant 0 : i32
    %c0_i32_0 = arith.constant 0 : i32
    return %c0_i32, %arg1 : i32, i32
  }
  func.func @transform_3(%arg0: i32, %arg1: i32, %arg2: i32) -> (i32, i32) {
    %c0_i32 = arith.constant 0 : i32
    return %arg0, %arg1 : i32, i32
  }
}

module attributes {stable_mosaic.version = 11 : i64} {
  func.func @_matmul_kernel(%arg0: i32, %arg1: i32, %arg2: i32, %arg3: memref<32x512xbf16, #tpu.memory_space<vmem>>, %arg4: memref<512x256xbf16, #tpu.memory_space<vmem>>, %arg5: memref<1x256xf32, #tpu.memory_space<vmem>>, %arg6: memref<32x256xbf16, #tpu.memory_space<vmem>>, %arg7: memref<32x256xf32, #tpu.memory_space<vmem>>) attributes {dimension_semantics = [#tpu.dimension_semantics<parallel>, #tpu.dimension_semantics<parallel>, #tpu.dimension_semantics<arbitrary>], iteration_bounds = array<i64: 1, 1, 4>, scalar_prefetch = 0 : i64, scratch_operands = 1 : i64, tpu.core_type = #tpu.core_type<tc>, window_params = [{transform_indices = @transform_0, window_bounds = array<i64: 32, 512>}, {transform_indices = @transform_1, window_bounds = array<i64: 512, 256>}, {transform_indices = @transform_2, window_bounds = array<i64: 1, 256>}, {transform_indices = @transform_3, window_bounds = array<i64: 32, 256>}]} {
    %c0_i32 = arith.constant 0 : i32
    %0 = arith.cmpi eq, %arg2, %c0_i32 : i32
    %1 = arith.extui %0 : i1 to i32
    %c0_i32_0 = arith.constant 0 : i32
    %2 = arith.cmpi ne, %1, %c0_i32_0 : i32
    scf.if %2 {
      %cst_9 = arith.constant 0.000000e+00 : f32
      %12 = vector.broadcast %cst_9 : f32 to vector<32x256xf32>
      %c0_10 = arith.constant 0 : index
      %c0_11 = arith.constant 0 : index
      %13 = vector.load %arg7[%c0_10, %c0_11] : memref<32x256xf32, #tpu.memory_space<vmem>>, vector<32x256xf32>
      tpu.vector_store %arg7[%c0_10, %c0_11], %12 {strides = array<i32>} : memref<32x256xf32, #tpu.memory_space<vmem>>, vector<32x256xf32>,
    } else {
    }
    %c0 = arith.constant 0 : index
    %c0_1 = arith.constant 0 : index
    %3 = vector.load %arg7[%c0, %c0_1] : memref<32x256xf32, #tpu.memory_space<vmem>>, vector<32x256xf32>
    %c0_2 = arith.constant 0 : index
    %c0_3 = arith.constant 0 : index
    %4 = vector.load %arg3[%c0_2, %c0_3] : memref<32x512xbf16, #tpu.memory_space<vmem>>, vector<32x512xbf16>
    %c0_4 = arith.constant 0 : index
    %c0_5 = arith.constant 0 : index
    %5 = vector.load %arg4[%c0_4, %c0_5] : memref<512x256xbf16, #tpu.memory_space<vmem>>, vector<512x256xbf16>
    %cst = arith.constant dense<0.000000e+00> : vector<32x256xf32>
    %6 = tpu.matmul %4, %5, %cst {dimension_numbers = #tpu.dot_dimension_numbers<[1], [0], [0], [1], [0, 0, 1, 1], [], []>} : vector<32x512xbf16>, vector<512x256xbf16>, vector<32x256xf32> -> vector<32x256xf32>
    %7 = arith.addf %3, %6 : vector<32x256xf32>
    %c0_6 = arith.constant 0 : index
    %c0_7 = arith.constant 0 : index
    %8 = vector.load %arg7[%c0_6, %c0_7] : memref<32x256xf32, #tpu.memory_space<vmem>>, vector<32x256xf32>
    tpu.vector_store %arg7[%c0_6, %c0_7], %7 {strides = array<i32>} : memref<32x256xf32, #tpu.memory_space<vmem>>, vector<32x256xf32>,
    %c3_i32 = arith.constant 3 : i32
    %9 = arith.cmpi eq, %arg2, %c3_i32 : i32
    %10 = arith.extui %9 : i1 to i32
    %c0_i32_8 = arith.constant 0 : i32
    %11 = arith.cmpi ne, %10, %c0_i32_8 : i32
    scf.if %11 {
      %c0_9 = arith.constant 0 : index
      %c0_10 = arith.constant 0 : index
      %12 = vector.load %arg7[%c0_9, %c0_10] : memref<32x256xf32, #tpu.memory_space<vmem>>, vector<32x256xf32>
      %c0_11 = arith.constant 0 : index
      %c0_12 = arith.constant 0 : index
      %13 = vector.load %arg5[%c0_11, %c0_12] : memref<1x256xf32, #tpu.memory_space<vmem>>, vector<1x256xf32>
      %14 = vector.broadcast %13 : vector<1x256xf32> to vector<32x256xf32>
      %15 = arith.addf %12, %14 : vector<32x256xf32>
      %cst_13 = arith.constant 0.000000e+00 : f32
      %16 = vector.broadcast %cst_13 : f32 to vector<32x256xf32>
      %17 = arith.cmpf oge, %15, %16 : vector<32x256xf32>
      %cst_14 = arith.constant 1.000000e-01 : f32
      %18 = vector.broadcast %cst_14 : f32 to vector<32x256xf32>
      %19 = arith.mulf %18, %15 : vector<32x256xf32>
      %20 = arith.select %17, %15, %19 : vector<32x256xi1>, vector<32x256xf32>
      %21 = arith.truncf %20 : vector<32x256xf32> to vector<32x256xbf16>
      %c0_15 = arith.constant 0 : index
      %c0_16 = arith.constant 0 : index
      %22 = vector.load %arg6[%c0_15, %c0_16] : memref<32x256xbf16, #tpu.memory_space<vmem>>, vector<32x256xbf16>
      tpu.vector_store %arg6[%c0_15, %c0_16], %21 {strides = array<i32>} : memref<32x256xbf16, #tpu.memory_space<vmem>>, vector<32x256xbf16>,
    } else {
    }
    return
  }
  func.func @transform_0(%arg0: i32, %arg1: i32, %arg2: i32) -> (i32, i32) {
    %c0_i32 = arith.constant 0 : i32
    return %arg0, %arg2 : i32, i32
  }
  func.func @transform_1(%arg0: i32, %arg1: i32, %arg2: i32) -> (i32, i32) {
    %c0_i32 = arith.constant 0 : i32
    return %arg2, %arg1 : i32, i32
  }
  func.func @transform_2(%arg0: i32, %arg1: i32, %arg2: i32) -> (i32, i32) {
    %c0_i32 = arith.constant 0 : i32
    %c0_i32_0 = arith.constant 0 : i32
    return %c0_i32, %arg1 : i32, i32
  }
  func.func @transform_3(%arg0: i32, %arg1: i32, %arg2: i32) -> (i32, i32) {
    %c0_i32 = arith.constant 0 : i32
    return %arg0, %arg1 : i32, i32
  }
}

module attributes {stable_mosaic.version = 11 : i64} {
  func.func @_attn_kernel(%arg0: i32, %arg1: memref<2x16x32xbf16, #tpu.memory_space<vmem>>, %arg2: memref<2x16x32xbf16, #tpu.memory_space<vmem>>, %arg3: memref<2x16x256xbf16, #tpu.memory_space<vmem>>, %arg4: memref<2x16x256xbf16, #tpu.memory_space<vmem>>, %arg5: memref<1xf32, #tpu.memory_space<smem>>, %arg6: memref<2x16x256xbf16, #tpu.memory_space<vmem>>) attributes {dimension_semantics = [#tpu.dimension_semantics<arbitrary>], iteration_bounds = array<i64: 1>, scalar_prefetch = 0 : i64, scratch_operands = 0 : i64, tpu.core_type = #tpu.core_type<tc>, window_params = [{pipeline_mode = #tpu.pipeline_mode<synchronous>, transform_indices = @transform_0, window_bounds = array<i64: 2, 16, 32>}, {pipeline_mode = #tpu.pipeline_mode<synchronous>, transform_indices = @transform_1, window_bounds = array<i64: 2, 16, 32>}, {pipeline_mode = #tpu.pipeline_mode<synchronous>, transform_indices = @transform_2, window_bounds = array<i64: 2, 16, 256>}, {pipeline_mode = #tpu.pipeline_mode<synchronous>, transform_indices = @transform_3, window_bounds = array<i64: 2, 16, 256>}, {transform_indices = @transform_4, window_bounds = array<i64: 1>}, {pipeline_mode = #tpu.pipeline_mode<synchronous>, transform_indices = @transform_5, window_bounds = array<i64: 2, 16, 256>}]} {
    %c0 = arith.constant 0 : index
    %0 = memref.load %arg5[%c0] : memref<1xf32, #tpu.memory_space<smem>>
    %c0_0 = arith.constant 0 : index
    %c0_1 = arith.constant 0 : index
    %c0_2 = arith.constant 0 : index
    %1 = vector.load %arg1[%c0_0, %c0_1, %c0_2] : memref<2x16x32xbf16, #tpu.memory_space<vmem>>, vector<1x16x32xbf16>
    %2 = vector.shape_cast %1 : vector<1x16x32xbf16> to vector<16x32xbf16>
    %3 = arith.extf %2 : vector<16x32xbf16> to vector<16x32xf32>
    %c0_3 = arith.constant 0 : index
    %c0_4 = arith.constant 0 : index
    %c0_5 = arith.constant 0 : index
    %4 = vector.load %arg2[%c0_3, %c0_4, %c0_5] : memref<2x16x32xbf16, #tpu.memory_space<vmem>>, vector<1x16x32xbf16>
    %5 = vector.shape_cast %4 : vector<1x16x32xbf16> to vector<16x32xbf16>
    %6 = arith.extf %5 : vector<16x32xbf16> to vector<16x32xf32>
    %c0_6 = arith.constant 0 : index
    %c0_7 = arith.constant 0 : index
    %c0_8 = arith.constant 0 : index
    %7 = vector.load %arg3[%c0_6, %c0_7, %c0_8] : memref<2x16x256xbf16, #tpu.memory_space<vmem>>, vector<1x16x256xbf16>
    %8 = vector.shape_cast %7 : vector<1x16x256xbf16> to vector<16x256xbf16>
    %9 = arith.extf %8 : vector<16x256xbf16> to vector<16x256xf32>
    %cst = arith.constant dense<0.000000e+00> : vector<16x16xf32>
    %10 = tpu.matmul %3, %6, %cst {dimension_numbers = #tpu.dot_dimension_numbers<[1], [1], [0], [0], [0, 0, 1, 0], [], []>} : vector<16x32xf32>, vector<16x32xf32>, vector<16x16xf32> -> vector<16x16xf32>
    %cst_9 = arith.constant dense<0xFF800000> : vector<16xf32>
    %11 = vector.multi_reduction <maximumf>, %10, %cst_9 [1] : vector<16x16xf32> to vector<16xf32>
    %12 = vector.shape_cast %11 : vector<16xf32> to vector<16x1xf32>
    %13 = vector.broadcast %12 : vector<16x1xf32> to vector<16x16xf32>
    %14 = arith.subf %10, %13 : vector<16x16xf32>
    %15 = math.exp %14 : vector<16x16xf32>
    %cst_10 = arith.constant dense<0.000000e+00> : vector<16xf32>
    %16 = vector.multi_reduction <add>, %15, %cst_10 [1] : vector<16x16xf32> to vector<16xf32>
    %17 = vector.shape_cast %16 : vector<16xf32> to vector<16x1xf32>
    %18 = tpu.reciprocal %17 {approx = true} : vector<16x1xf32> -> vector<16x1xf32>
    %19 = vector.broadcast %18 : vector<16x1xf32> to vector<16x16xf32>
    %20 = arith.mulf %15, %19 : vector<16x16xf32>
    %cst_11 = arith.constant dense<0.000000e+00> : vector<16x256xf32>
    %21 = tpu.matmul %20, %9, %cst_11 {dimension_numbers = #tpu.dot_dimension_numbers<[1], [0], [0], [1], [0, 0, 1, 1], [], []>} : vector<16x16xf32>, vector<16x256xf32>, vector<16x256xf32> -> vector<16x256xf32>
    %22 = vector.broadcast %0 : f32 to vector<16x256xf32>
    %23 = arith.mulf %22, %21 : vector<16x256xf32>
    %c0_12 = arith.constant 0 : index
    %c0_13 = arith.constant 0 : index
    %c0_14 = arith.constant 0 : index
    %24 = vector.load %arg4[%c0_12, %c0_13, %c0_14] : memref<2x16x256xbf16, #tpu.memory_space<vmem>>, vector<1x16x256xbf16>
    %25 = vector.shape_cast %24 : vector<1x16x256xbf16> to vector<16x256xbf16>
    %26 = arith.extf %25 : vector<16x256xbf16> to vector<16x256xf32>
    %27 = arith.addf %23, %26 : vector<16x256xf32>
    %28 = arith.truncf %27 : vector<16x256xf32> to vector<16x256xbf16>
    %c0_15 = arith.constant 0 : index
    %c0_16 = arith.constant 0 : index
    %c0_17 = arith.constant 0 : index
    %29 = vector.load %arg6[%c0_15, %c0_16, %c0_17] : memref<2x16x256xbf16, #tpu.memory_space<vmem>>, vector<1x16x256xbf16>
    %30 = vector.shape_cast %29 : vector<1x16x256xbf16> to vector<16x256xbf16>
    %31 = vector.shape_cast %28 : vector<16x256xbf16> to vector<1x16x256xbf16>
    tpu.vector_store %arg6[%c0_15, %c0_16, %c0_17], %31 {strides = array<i32>} : memref<2x16x256xbf16, #tpu.memory_space<vmem>>, vector<1x16x256xbf16>,
    %c1 = arith.constant 1 : index
    %c0_18 = arith.constant 0 : index
    %c0_19 = arith.constant 0 : index
    %32 = vector.load %arg1[%c1, %c0_18, %c0_19] : memref<2x16x32xbf16, #tpu.memory_space<vmem>>, vector<1x16x32xbf16>
    %33 = vector.shape_cast %32 : vector<1x16x32xbf16> to vector<16x32xbf16>
    %34 = arith.extf %33 : vector<16x32xbf16> to vector<16x32xf32>
    %c1_20 = arith.constant 1 : index
    %c0_21 = arith.constant 0 : index
    %c0_22 = arith.constant 0 : index
    %35 = vector.load %arg2[%c1_20, %c0_21, %c0_22] : memref<2x16x32xbf16, #tpu.memory_space<vmem>>, vector<1x16x32xbf16>
    %36 = vector.shape_cast %35 : vector<1x16x32xbf16> to vector<16x32xbf16>
    %37 = arith.extf %36 : vector<16x32xbf16> to vector<16x32xf32>
    %c1_23 = arith.constant 1 : index
    %c0_24 = arith.constant 0 : index
    %c0_25 = arith.constant 0 : index
    %38 = vector.load %arg3[%c1_23, %c0_24, %c0_25] : memref<2x16x256xbf16, #tpu.memory_space<vmem>>, vector<1x16x256xbf16>
    %39 = vector.shape_cast %38 : vector<1x16x256xbf16> to vector<16x256xbf16>
    %40 = arith.extf %39 : vector<16x256xbf16> to vector<16x256xf32>
    %cst_26 = arith.constant dense<0.000000e+00> : vector<16x16xf32>
    %41 = tpu.matmul %34, %37, %cst_26 {dimension_numbers = #tpu.dot_dimension_numbers<[1], [1], [0], [0], [0, 0, 1, 0], [], []>} : vector<16x32xf32>, vector<16x32xf32>, vector<16x16xf32> -> vector<16x16xf32>
    %cst_27 = arith.constant dense<0xFF800000> : vector<16xf32>
    %42 = vector.multi_reduction <maximumf>, %41, %cst_27 [1] : vector<16x16xf32> to vector<16xf32>
    %43 = vector.shape_cast %42 : vector<16xf32> to vector<16x1xf32>
    %44 = vector.broadcast %43 : vector<16x1xf32> to vector<16x16xf32>
    %45 = arith.subf %41, %44 : vector<16x16xf32>
    %46 = math.exp %45 : vector<16x16xf32>
    %cst_28 = arith.constant dense<0.000000e+00> : vector<16xf32>
    %47 = vector.multi_reduction <add>, %46, %cst_28 [1] : vector<16x16xf32> to vector<16xf32>
    %48 = vector.shape_cast %47 : vector<16xf32> to vector<16x1xf32>
    %49 = tpu.reciprocal %48 {approx = true} : vector<16x1xf32> -> vector<16x1xf32>
    %50 = vector.broadcast %49 : vector<16x1xf32> to vector<16x16xf32>
    %51 = arith.mulf %46, %50 : vector<16x16xf32>
    %cst_29 = arith.constant dense<0.000000e+00> : vector<16x256xf32>
    %52 = tpu.matmul %51, %40, %cst_29 {dimension_numbers = #tpu.dot_dimension_numbers<[1], [0], [0], [1], [0, 0, 1, 1], [], []>} : vector<16x16xf32>, vector<16x256xf32>, vector<16x256xf32> -> vector<16x256xf32>
    %53 = vector.broadcast %0 : f32 to vector<16x256xf32>
    %54 = arith.mulf %53, %52 : vector<16x256xf32>
    %c1_30 = arith.constant 1 : index
    %c0_31 = arith.constant 0 : index
    %c0_32 = arith.constant 0 : index
    %55 = vector.load %arg4[%c1_30, %c0_31, %c0_32] : memref<2x16x256xbf16, #tpu.memory_space<vmem>>, vector<1x16x256xbf16>
    %56 = vector.shape_cast %55 : vector<1x16x256xbf16> to vector<16x256xbf16>
    %57 = arith.extf %56 : vector<16x256xbf16> to vector<16x256xf32>
    %58 = arith.addf %54, %57 : vector<16x256xf32>
    %59 = arith.truncf %58 : vector<16x256xf32> to vector<16x256xbf16>
    %c1_33 = arith.constant 1 : index
    %c0_34 = arith.constant 0 : index
    %c0_35 = arith.constant 0 : index
    %60 = vector.load %arg6[%c1_33, %c0_34, %c0_35] : memref<2x16x256xbf16, #tpu.memory_space<vmem>>, vector<1x16x256xbf16>
    %61 = vector.shape_cast %60 : vector<1x16x256xbf16> to vector<16x256xbf16>
    %62 = vector.shape_cast %59 : vector<16x256xbf16> to vector<1x16x256xbf16>
    tpu.vector_store %arg6[%c1_33, %c0_34, %c0_35], %62 {strides = array<i32>} : memref<2x16x256xbf16, #tpu.memory_space<vmem>>, vector<1x16x256xbf16>,
    return
  }
  func.func @transform_0(%arg0: i32) -> (i32, i32, i32) {
    %c0_i32 = arith.constant 0 : i32
    %c0_i32_0 = arith.constant 0 : i32
    %c0_i32_1 = arith.constant 0 : i32
    %c0_i32_2 = arith.constant 0 : i32
    return %c0_i32, %c0_i32_0, %c0_i32_1 : i32, i32, i32
  }
  func.func @transform_1(%arg0: i32) -> (i32, i32, i32) {
    %c0_i32 = arith.constant 0 : i32
    %c0_i32_0 = arith.constant 0 : i32
    %c0_i32_1 = arith.constant 0 : i32
    %c0_i32_2 = arith.constant 0 : i32
    return %c0_i32, %c0_i32_0, %c0_i32_1 : i32, i32, i32
  }
  func.func @transform_2(%arg0: i32) -> (i32, i32, i32) {
    %c0_i32 = arith.constant 0 : i32
    %c0_i32_0 = arith.constant 0 : i32
    %c0_i32_1 = arith.constant 0 : i32
    %c0_i32_2 = arith.constant 0 : i32
    return %c0_i32, %c0_i32_0, %c0_i32_1 : i32, i32, i32
  }
  func.func @transform_3(%arg0: i32) -> (i32, i32, i32) {
    %c0_i32 = arith.constant 0 : i32
    %c0_i32_0 = arith.constant 0 : i32
    %c0_i32_1 = arith.constant 0 : i32
    %c0_i32_2 = arith.constant 0 : i32
    return %c0_i32, %c0_i32_0, %c0_i32_1 : i32, i32, i32
  }
  func.func @transform_4(%arg0: i32) -> i32 {
    %c0_i32 = arith.constant 0 : i32
    %c0_i32_0 = arith.constant 0 : i32
    return %c0_i32 : i32
  }
  func.func @transform_5(%arg0: i32) -> (i32, i32, i32) {
    %c0_i32 = arith.constant 0 : i32
    %c0_i32_0 = arith.constant 0 : i32
    %c0_i32_1 = arith.constant 0 : i32
    %c0_i32_2 = arith.constant 0 : i32
    return %c0_i32, %c0_i32_0, %c0_i32_1 : i32, i32, i32
  }
}

module attributes {stable_mosaic.version = 11 : i64} {
  func.func @_matmul_kernel(%arg0: i32, %arg1: i32, %arg2: i32, %arg3: memref<32x256xbf16, #tpu.memory_space<vmem>>, %arg4: memref<256x128xbf16, #tpu.memory_space<vmem>>, %arg5: memref<1x128xf32, #tpu.memory_space<vmem>>, %arg6: memref<32x128xbf16, #tpu.memory_space<vmem>>, %arg7: memref<32x128xf32, #tpu.memory_space<vmem>>) attributes {dimension_semantics = [#tpu.dimension_semantics<parallel>, #tpu.dimension_semantics<parallel>, #tpu.dimension_semantics<arbitrary>], iteration_bounds = array<i64: 1, 3, 1>, scalar_prefetch = 0 : i64, scratch_operands = 1 : i64, tpu.core_type = #tpu.core_type<tc>, window_params = [{transform_indices = @transform_0, window_bounds = array<i64: 32, 256>}, {transform_indices = @transform_1, window_bounds = array<i64: 256, 128>}, {transform_indices = @transform_2, window_bounds = array<i64: 1, 128>}, {transform_indices = @transform_3, window_bounds = array<i64: 32, 128>}]} {
    %c0_i32 = arith.constant 0 : i32
    %0 = arith.cmpi eq, %arg2, %c0_i32 : i32
    %1 = arith.extui %0 : i1 to i32
    %c0_i32_0 = arith.constant 0 : i32
    %2 = arith.cmpi ne, %1, %c0_i32_0 : i32
    scf.if %2 {
      %cst_10 = arith.constant 0.000000e+00 : f32
      %12 = vector.broadcast %cst_10 : f32 to vector<32x128xf32>
      %c0_11 = arith.constant 0 : index
      %c0_12 = arith.constant 0 : index
      %13 = vector.load %arg7[%c0_11, %c0_12] : memref<32x128xf32, #tpu.memory_space<vmem>>, vector<32x128xf32>
      tpu.vector_store %arg7[%c0_11, %c0_12], %12 {strides = array<i32>} : memref<32x128xf32, #tpu.memory_space<vmem>>, vector<32x128xf32>,
    } else {
    }
    %c0 = arith.constant 0 : index
    %c0_1 = arith.constant 0 : index
    %3 = vector.load %arg7[%c0, %c0_1] : memref<32x128xf32, #tpu.memory_space<vmem>>, vector<32x128xf32>
    %c0_2 = arith.constant 0 : index
    %c0_3 = arith.constant 0 : index
    %4 = vector.load %arg3[%c0_2, %c0_3] : memref<32x256xbf16, #tpu.memory_space<vmem>>, vector<32x256xbf16>
    %c0_4 = arith.constant 0 : index
    %c0_5 = arith.constant 0 : index
    %5 = vector.load %arg4[%c0_4, %c0_5] : memref<256x128xbf16, #tpu.memory_space<vmem>>, vector<256x128xbf16>
    %cst = arith.constant dense<0.000000e+00> : vector<32x128xf32>
    %6 = tpu.matmul %4, %5, %cst {dimension_numbers = #tpu.dot_dimension_numbers<[1], [0], [0], [1], [0, 0, 1, 1], [], []>} : vector<32x256xbf16>, vector<256x128xbf16>, vector<32x128xf32> -> vector<32x128xf32>
    %7 = arith.addf %3, %6 : vector<32x128xf32>
    %c0_6 = arith.constant 0 : index
    %c0_7 = arith.constant 0 : index
    %8 = vector.load %arg7[%c0_6, %c0_7] : memref<32x128xf32, #tpu.memory_space<vmem>>, vector<32x128xf32>
    tpu.vector_store %arg7[%c0_6, %c0_7], %7 {strides = array<i32>} : memref<32x128xf32, #tpu.memory_space<vmem>>, vector<32x128xf32>,
    %c0_i32_8 = arith.constant 0 : i32
    %9 = arith.cmpi eq, %arg2, %c0_i32_8 : i32
    %10 = arith.extui %9 : i1 to i32
    %c0_i32_9 = arith.constant 0 : i32
    %11 = arith.cmpi ne, %10, %c0_i32_9 : i32
    scf.if %11 {
      %c0_10 = arith.constant 0 : index
      %c0_11 = arith.constant 0 : index
      %12 = vector.load %arg7[%c0_10, %c0_11] : memref<32x128xf32, #tpu.memory_space<vmem>>, vector<32x128xf32>
      %c0_12 = arith.constant 0 : index
      %c0_13 = arith.constant 0 : index
      %13 = vector.load %arg5[%c0_12, %c0_13] : memref<1x128xf32, #tpu.memory_space<vmem>>, vector<1x128xf32>
      %14 = vector.broadcast %13 : vector<1x128xf32> to vector<32x128xf32>
      %15 = arith.addf %12, %14 : vector<32x128xf32>
      %16 = arith.truncf %15 : vector<32x128xf32> to vector<32x128xbf16>
      %c0_14 = arith.constant 0 : index
      %c0_15 = arith.constant 0 : index
      %17 = vector.load %arg6[%c0_14, %c0_15] : memref<32x128xbf16, #tpu.memory_space<vmem>>, vector<32x128xbf16>
      tpu.vector_store %arg6[%c0_14, %c0_15], %16 {strides = array<i32>} : memref<32x128xbf16, #tpu.memory_space<vmem>>, vector<32x128xbf16>,
    } else {
    }
    return
  }
  func.func @transform_0(%arg0: i32, %arg1: i32, %arg2: i32) -> (i32, i32) {
    %c0_i32 = arith.constant 0 : i32
    return %arg0, %arg2 : i32, i32
  }
  func.func @transform_1(%arg0: i32, %arg1: i32, %arg2: i32) -> (i32, i32) {
    %c0_i32 = arith.constant 0 : i32
    return %arg2, %arg1 : i32, i32
  }
  func.func @transform_2(%arg0: i32, %arg1: i32, %arg2: i32) -> (i32, i32) {
    %c0_i32 = arith.constant 0 : i32
    %c0_i32_0 = arith.constant 0 : i32
    return %c0_i32, %arg1 : i32, i32
  }
  func.func @transform_3(%arg0: i32, %arg1: i32, %arg2: i32) -> (i32, i32) {
    %c0_i32 = arith.constant 0 : i32
    return %arg0, %arg1 : i32, i32
  }
}

module attributes {stable_mosaic.version = 11 : i64} {
  func.func @_matmul_kernel(%arg0: i32, %arg1: i32, %arg2: i32, %arg3: memref<16x512xbf16, #tpu.memory_space<vmem>>, %arg4: memref<512x256xbf16, #tpu.memory_space<vmem>>, %arg5: memref<1x256xf32, #tpu.memory_space<vmem>>, %arg6: memref<16x256xbf16, #tpu.memory_space<vmem>>, %arg7: memref<16x256xf32, #tpu.memory_space<vmem>>) attributes {dimension_semantics = [#tpu.dimension_semantics<parallel>, #tpu.dimension_semantics<parallel>, #tpu.dimension_semantics<arbitrary>], iteration_bounds = array<i64: 1, 2, 8>, scalar_prefetch = 0 : i64, scratch_operands = 1 : i64, tpu.core_type = #tpu.core_type<tc>, window_params = [{transform_indices = @transform_0, window_bounds = array<i64: 16, 512>}, {transform_indices = @transform_1, window_bounds = array<i64: 512, 256>}, {transform_indices = @transform_2, window_bounds = array<i64: 1, 256>}, {transform_indices = @transform_3, window_bounds = array<i64: 16, 256>}]} {
    %c0_i32 = arith.constant 0 : i32
    %0 = arith.cmpi eq, %arg2, %c0_i32 : i32
    %1 = arith.extui %0 : i1 to i32
    %c0_i32_0 = arith.constant 0 : i32
    %2 = arith.cmpi ne, %1, %c0_i32_0 : i32
    scf.if %2 {
      %cst_9 = arith.constant 0.000000e+00 : f32
      %12 = vector.broadcast %cst_9 : f32 to vector<16x256xf32>
      %c0_10 = arith.constant 0 : index
      %c0_11 = arith.constant 0 : index
      %13 = vector.load %arg7[%c0_10, %c0_11] : memref<16x256xf32, #tpu.memory_space<vmem>>, vector<16x256xf32>
      tpu.vector_store %arg7[%c0_10, %c0_11], %12 {strides = array<i32>} : memref<16x256xf32, #tpu.memory_space<vmem>>, vector<16x256xf32>,
    } else {
    }
    %c0 = arith.constant 0 : index
    %c0_1 = arith.constant 0 : index
    %3 = vector.load %arg7[%c0, %c0_1] : memref<16x256xf32, #tpu.memory_space<vmem>>, vector<16x256xf32>
    %c0_2 = arith.constant 0 : index
    %c0_3 = arith.constant 0 : index
    %4 = vector.load %arg3[%c0_2, %c0_3] : memref<16x512xbf16, #tpu.memory_space<vmem>>, vector<16x512xbf16>
    %c0_4 = arith.constant 0 : index
    %c0_5 = arith.constant 0 : index
    %5 = vector.load %arg4[%c0_4, %c0_5] : memref<512x256xbf16, #tpu.memory_space<vmem>>, vector<512x256xbf16>
    %cst = arith.constant dense<0.000000e+00> : vector<16x256xf32>
    %6 = tpu.matmul %4, %5, %cst {dimension_numbers = #tpu.dot_dimension_numbers<[1], [0], [0], [1], [0, 0, 1, 1], [], []>} : vector<16x512xbf16>, vector<512x256xbf16>, vector<16x256xf32> -> vector<16x256xf32>
    %7 = arith.addf %3, %6 : vector<16x256xf32>
    %c0_6 = arith.constant 0 : index
    %c0_7 = arith.constant 0 : index
    %8 = vector.load %arg7[%c0_6, %c0_7] : memref<16x256xf32, #tpu.memory_space<vmem>>, vector<16x256xf32>
    tpu.vector_store %arg7[%c0_6, %c0_7], %7 {strides = array<i32>} : memref<16x256xf32, #tpu.memory_space<vmem>>, vector<16x256xf32>,
    %c7_i32 = arith.constant 7 : i32
    %9 = arith.cmpi eq, %arg2, %c7_i32 : i32
    %10 = arith.extui %9 : i1 to i32
    %c0_i32_8 = arith.constant 0 : i32
    %11 = arith.cmpi ne, %10, %c0_i32_8 : i32
    scf.if %11 {
      %c0_9 = arith.constant 0 : index
      %c0_10 = arith.constant 0 : index
      %12 = vector.load %arg7[%c0_9, %c0_10] : memref<16x256xf32, #tpu.memory_space<vmem>>, vector<16x256xf32>
      %c0_11 = arith.constant 0 : index
      %c0_12 = arith.constant 0 : index
      %13 = vector.load %arg5[%c0_11, %c0_12] : memref<1x256xf32, #tpu.memory_space<vmem>>, vector<1x256xf32>
      %14 = vector.broadcast %13 : vector<1x256xf32> to vector<16x256xf32>
      %15 = arith.addf %12, %14 : vector<16x256xf32>
      %cst_13 = arith.constant 0.000000e+00 : f32
      %16 = vector.broadcast %cst_13 : f32 to vector<16x256xf32>
      %17 = arith.cmpf oge, %15, %16 : vector<16x256xf32>
      %cst_14 = arith.constant 1.000000e-01 : f32
      %18 = vector.broadcast %cst_14 : f32 to vector<16x256xf32>
      %19 = arith.mulf %18, %15 : vector<16x256xf32>
      %20 = arith.select %17, %15, %19 : vector<16x256xi1>, vector<16x256xf32>
      %21 = arith.truncf %20 : vector<16x256xf32> to vector<16x256xbf16>
      %c0_15 = arith.constant 0 : index
      %c0_16 = arith.constant 0 : index
      %22 = vector.load %arg6[%c0_15, %c0_16] : memref<16x256xbf16, #tpu.memory_space<vmem>>, vector<16x256xbf16>
      tpu.vector_store %arg6[%c0_15, %c0_16], %21 {strides = array<i32>} : memref<16x256xbf16, #tpu.memory_space<vmem>>, vector<16x256xbf16>,
    } else {
    }
    return
  }
  func.func @transform_0(%arg0: i32, %arg1: i32, %arg2: i32) -> (i32, i32) {
    %c0_i32 = arith.constant 0 : i32
    return %arg0, %arg2 : i32, i32
  }
  func.func @transform_1(%arg0: i32, %arg1: i32, %arg2: i32) -> (i32, i32) {
    %c0_i32 = arith.constant 0 : i32
    return %arg2, %arg1 : i32, i32
  }
  func.func @transform_2(%arg0: i32, %arg1: i32, %arg2: i32) -> (i32, i32) {
    %c0_i32 = arith.constant 0 : i32
    %c0_i32_0 = arith.constant 0 : i32
    return %c0_i32, %arg1 : i32, i32
  }
  func.func @transform_3(%arg0: i32, %arg1: i32, %arg2: i32) -> (i32, i32) {
    %c0_i32 = arith.constant 0 : i32
    return %arg0, %arg1 : i32, i32
  }
}

module attributes {stable_mosaic.version = 11 : i64} {
  func.func @_matmul_kernel(%arg0: i32, %arg1: i32, %arg2: i32, %arg3: memref<16x512xbf16, #tpu.memory_space<vmem>>, %arg4: memref<512x128xbf16, #tpu.memory_space<vmem>>, %arg5: memref<1x128xf32, #tpu.memory_space<vmem>>, %arg6: memref<16x128xbf16, #tpu.memory_space<vmem>>, %arg7: memref<16x128xf32, #tpu.memory_space<vmem>>) attributes {dimension_semantics = [#tpu.dimension_semantics<parallel>, #tpu.dimension_semantics<parallel>, #tpu.dimension_semantics<arbitrary>], iteration_bounds = array<i64: 1, 5, 1>, scalar_prefetch = 0 : i64, scratch_operands = 1 : i64, tpu.core_type = #tpu.core_type<tc>, window_params = [{transform_indices = @transform_0, window_bounds = array<i64: 16, 512>}, {transform_indices = @transform_1, window_bounds = array<i64: 512, 128>}, {transform_indices = @transform_2, window_bounds = array<i64: 1, 128>}, {transform_indices = @transform_3, window_bounds = array<i64: 16, 128>}]} {
    %c0_i32 = arith.constant 0 : i32
    %0 = arith.cmpi eq, %arg2, %c0_i32 : i32
    %1 = arith.extui %0 : i1 to i32
    %c0_i32_0 = arith.constant 0 : i32
    %2 = arith.cmpi ne, %1, %c0_i32_0 : i32
    scf.if %2 {
      %cst_10 = arith.constant 0.000000e+00 : f32
      %12 = vector.broadcast %cst_10 : f32 to vector<16x128xf32>
      %c0_11 = arith.constant 0 : index
      %c0_12 = arith.constant 0 : index
      %13 = vector.load %arg7[%c0_11, %c0_12] : memref<16x128xf32, #tpu.memory_space<vmem>>, vector<16x128xf32>
      tpu.vector_store %arg7[%c0_11, %c0_12], %12 {strides = array<i32>} : memref<16x128xf32, #tpu.memory_space<vmem>>, vector<16x128xf32>,
    } else {
    }
    %c0 = arith.constant 0 : index
    %c0_1 = arith.constant 0 : index
    %3 = vector.load %arg7[%c0, %c0_1] : memref<16x128xf32, #tpu.memory_space<vmem>>, vector<16x128xf32>
    %c0_2 = arith.constant 0 : index
    %c0_3 = arith.constant 0 : index
    %4 = vector.load %arg3[%c0_2, %c0_3] : memref<16x512xbf16, #tpu.memory_space<vmem>>, vector<16x512xbf16>
    %c0_4 = arith.constant 0 : index
    %c0_5 = arith.constant 0 : index
    %5 = vector.load %arg4[%c0_4, %c0_5] : memref<512x128xbf16, #tpu.memory_space<vmem>>, vector<512x128xbf16>
    %cst = arith.constant dense<0.000000e+00> : vector<16x128xf32>
    %6 = tpu.matmul %4, %5, %cst {dimension_numbers = #tpu.dot_dimension_numbers<[1], [0], [0], [1], [0, 0, 1, 1], [], []>} : vector<16x512xbf16>, vector<512x128xbf16>, vector<16x128xf32> -> vector<16x128xf32>
    %7 = arith.addf %3, %6 : vector<16x128xf32>
    %c0_6 = arith.constant 0 : index
    %c0_7 = arith.constant 0 : index
    %8 = vector.load %arg7[%c0_6, %c0_7] : memref<16x128xf32, #tpu.memory_space<vmem>>, vector<16x128xf32>
    tpu.vector_store %arg7[%c0_6, %c0_7], %7 {strides = array<i32>} : memref<16x128xf32, #tpu.memory_space<vmem>>, vector<16x128xf32>,
    %c0_i32_8 = arith.constant 0 : i32
    %9 = arith.cmpi eq, %arg2, %c0_i32_8 : i32
    %10 = arith.extui %9 : i1 to i32
    %c0_i32_9 = arith.constant 0 : i32
    %11 = arith.cmpi ne, %10, %c0_i32_9 : i32
    scf.if %11 {
      %c0_10 = arith.constant 0 : index
      %c0_11 = arith.constant 0 : index
      %12 = vector.load %arg7[%c0_10, %c0_11] : memref<16x128xf32, #tpu.memory_space<vmem>>, vector<16x128xf32>
      %c0_12 = arith.constant 0 : index
      %c0_13 = arith.constant 0 : index
      %13 = vector.load %arg5[%c0_12, %c0_13] : memref<1x128xf32, #tpu.memory_space<vmem>>, vector<1x128xf32>
      %14 = vector.broadcast %13 : vector<1x128xf32> to vector<16x128xf32>
      %15 = arith.addf %12, %14 : vector<16x128xf32>
      %16 = arith.truncf %15 : vector<16x128xf32> to vector<16x128xbf16>
      %c0_14 = arith.constant 0 : index
      %c0_15 = arith.constant 0 : index
      %17 = vector.load %arg6[%c0_14, %c0_15] : memref<16x128xbf16, #tpu.memory_space<vmem>>, vector<16x128xbf16>
      tpu.vector_store %arg6[%c0_14, %c0_15], %16 {strides = array<i32>} : memref<16x128xbf16, #tpu.memory_space<vmem>>, vector<16x128xbf16>,
    } else {
    }
    return
  }
  func.func @transform_0(%arg0: i32, %arg1: i32, %arg2: i32) -> (i32, i32) {
    %c0_i32 = arith.constant 0 : i32
    return %arg0, %arg2 : i32, i32
  }
  func.func @transform_1(%arg0: i32, %arg1: i32, %arg2: i32) -> (i32, i32) {
    %c0_i32 = arith.constant 0 : i32
    return %arg2, %arg1 : i32, i32
  }
  func.func @transform_2(%arg0: i32, %arg1: i32, %arg2: i32) -> (i32, i32) {
    %c0_i32 = arith.constant 0 : i32
    %c0_i32_0 = arith.constant 0 : i32
    return %c0_i32, %arg1 : i32, i32
  }
  func.func @transform_3(%arg0: i32, %arg1: i32, %arg2: i32) -> (i32, i32) {
    %c0_i32 = arith.constant 0 : i32
    return %arg0, %arg1 : i32, i32
  }
}

module attributes {stable_mosaic.version = 11 : i64} {
  func.func @_attn_kernel(%arg0: i32, %arg1: memref<2x4x64xbf16, #tpu.memory_space<vmem>>, %arg2: memref<2x4x64xbf16, #tpu.memory_space<vmem>>, %arg3: memref<2x4x512xbf16, #tpu.memory_space<vmem>>, %arg4: memref<2x4x512xbf16, #tpu.memory_space<vmem>>, %arg5: memref<1xf32, #tpu.memory_space<smem>>, %arg6: memref<2x4x512xbf16, #tpu.memory_space<vmem>>) attributes {dimension_semantics = [#tpu.dimension_semantics<arbitrary>], iteration_bounds = array<i64: 1>, scalar_prefetch = 0 : i64, scratch_operands = 0 : i64, tpu.core_type = #tpu.core_type<tc>, window_params = [{pipeline_mode = #tpu.pipeline_mode<synchronous>, transform_indices = @transform_0, window_bounds = array<i64: 2, 4, 64>}, {pipeline_mode = #tpu.pipeline_mode<synchronous>, transform_indices = @transform_1, window_bounds = array<i64: 2, 4, 64>}, {pipeline_mode = #tpu.pipeline_mode<synchronous>, transform_indices = @transform_2, window_bounds = array<i64: 2, 4, 512>}, {pipeline_mode = #tpu.pipeline_mode<synchronous>, transform_indices = @transform_3, window_bounds = array<i64: 2, 4, 512>}, {transform_indices = @transform_4, window_bounds = array<i64: 1>}, {pipeline_mode = #tpu.pipeline_mode<synchronous>, transform_indices = @transform_5, window_bounds = array<i64: 2, 4, 512>}]} {
    %c0 = arith.constant 0 : index
    %0 = memref.load %arg5[%c0] : memref<1xf32, #tpu.memory_space<smem>>
    %c0_0 = arith.constant 0 : index
    %c0_1 = arith.constant 0 : index
    %c0_2 = arith.constant 0 : index
    %1 = vector.load %arg1[%c0_0, %c0_1, %c0_2] : memref<2x4x64xbf16, #tpu.memory_space<vmem>>, vector<1x4x64xbf16>
    %2 = vector.shape_cast %1 : vector<1x4x64xbf16> to vector<4x64xbf16>
    %3 = arith.extf %2 : vector<4x64xbf16> to vector<4x64xf32>
    %c0_3 = arith.constant 0 : index
    %c0_4 = arith.constant 0 : index
    %c0_5 = arith.constant 0 : index
    %4 = vector.load %arg2[%c0_3, %c0_4, %c0_5] : memref<2x4x64xbf16, #tpu.memory_space<vmem>>, vector<1x4x64xbf16>
    %5 = vector.shape_cast %4 : vector<1x4x64xbf16> to vector<4x64xbf16>
    %6 = arith.extf %5 : vector<4x64xbf16> to vector<4x64xf32>
    %c0_6 = arith.constant 0 : index
    %c0_7 = arith.constant 0 : index
    %c0_8 = arith.constant 0 : index
    %7 = vector.load %arg3[%c0_6, %c0_7, %c0_8] : memref<2x4x512xbf16, #tpu.memory_space<vmem>>, vector<1x4x512xbf16>
    %8 = vector.shape_cast %7 : vector<1x4x512xbf16> to vector<4x512xbf16>
    %9 = arith.extf %8 : vector<4x512xbf16> to vector<4x512xf32>
    %cst = arith.constant dense<0.000000e+00> : vector<4x4xf32>
    %10 = tpu.matmul %3, %6, %cst {dimension_numbers = #tpu.dot_dimension_numbers<[1], [1], [0], [0], [0, 0, 1, 0], [], []>} : vector<4x64xf32>, vector<4x64xf32>, vector<4x4xf32> -> vector<4x4xf32>
    %cst_9 = arith.constant dense<0xFF800000> : vector<4xf32>
    %11 = vector.multi_reduction <maximumf>, %10, %cst_9 [1] : vector<4x4xf32> to vector<4xf32>
    %12 = vector.shape_cast %11 : vector<4xf32> to vector<4x1xf32>
    %13 = vector.broadcast %12 : vector<4x1xf32> to vector<4x4xf32>
    %14 = arith.subf %10, %13 : vector<4x4xf32>
    %15 = math.exp %14 : vector<4x4xf32>
    %cst_10 = arith.constant dense<0.000000e+00> : vector<4xf32>
    %16 = vector.multi_reduction <add>, %15, %cst_10 [1] : vector<4x4xf32> to vector<4xf32>
    %17 = vector.shape_cast %16 : vector<4xf32> to vector<4x1xf32>
    %18 = tpu.reciprocal %17 {approx = true} : vector<4x1xf32> -> vector<4x1xf32>
    %19 = vector.broadcast %18 : vector<4x1xf32> to vector<4x4xf32>
    %20 = arith.mulf %15, %19 : vector<4x4xf32>
    %cst_11 = arith.constant dense<0.000000e+00> : vector<4x512xf32>
    %21 = tpu.matmul %20, %9, %cst_11 {dimension_numbers = #tpu.dot_dimension_numbers<[1], [0], [0], [1], [0, 0, 1, 1], [], []>} : vector<4x4xf32>, vector<4x512xf32>, vector<4x512xf32> -> vector<4x512xf32>
    %22 = vector.broadcast %0 : f32 to vector<4x512xf32>
    %23 = arith.mulf %22, %21 : vector<4x512xf32>
    %c0_12 = arith.constant 0 : index
    %c0_13 = arith.constant 0 : index
    %c0_14 = arith.constant 0 : index
    %24 = vector.load %arg4[%c0_12, %c0_13, %c0_14] : memref<2x4x512xbf16, #tpu.memory_space<vmem>>, vector<1x4x512xbf16>
    %25 = vector.shape_cast %24 : vector<1x4x512xbf16> to vector<4x512xbf16>
    %26 = arith.extf %25 : vector<4x512xbf16> to vector<4x512xf32>
    %27 = arith.addf %23, %26 : vector<4x512xf32>
    %28 = arith.truncf %27 : vector<4x512xf32> to vector<4x512xbf16>
    %c0_15 = arith.constant 0 : index
    %c0_16 = arith.constant 0 : index
    %c0_17 = arith.constant 0 : index
    %29 = vector.load %arg6[%c0_15, %c0_16, %c0_17] : memref<2x4x512xbf16, #tpu.memory_space<vmem>>, vector<1x4x512xbf16>
    %30 = vector.shape_cast %29 : vector<1x4x512xbf16> to vector<4x512xbf16>
    %31 = vector.shape_cast %28 : vector<4x512xbf16> to vector<1x4x512xbf16>
    tpu.vector_store %arg6[%c0_15, %c0_16, %c0_17], %31 {strides = array<i32>} : memref<2x4x512xbf16, #tpu.memory_space<vmem>>, vector<1x4x512xbf16>,
    %c1 = arith.constant 1 : index
    %c0_18 = arith.constant 0 : index
    %c0_19 = arith.constant 0 : index
    %32 = vector.load %arg1[%c1, %c0_18, %c0_19] : memref<2x4x64xbf16, #tpu.memory_space<vmem>>, vector<1x4x64xbf16>
    %33 = vector.shape_cast %32 : vector<1x4x64xbf16> to vector<4x64xbf16>
    %34 = arith.extf %33 : vector<4x64xbf16> to vector<4x64xf32>
    %c1_20 = arith.constant 1 : index
    %c0_21 = arith.constant 0 : index
    %c0_22 = arith.constant 0 : index
    %35 = vector.load %arg2[%c1_20, %c0_21, %c0_22] : memref<2x4x64xbf16, #tpu.memory_space<vmem>>, vector<1x4x64xbf16>
    %36 = vector.shape_cast %35 : vector<1x4x64xbf16> to vector<4x64xbf16>
    %37 = arith.extf %36 : vector<4x64xbf16> to vector<4x64xf32>
    %c1_23 = arith.constant 1 : index
    %c0_24 = arith.constant 0 : index
    %c0_25 = arith.constant 0 : index
    %38 = vector.load %arg3[%c1_23, %c0_24, %c0_25] : memref<2x4x512xbf16, #tpu.memory_space<vmem>>, vector<1x4x512xbf16>
    %39 = vector.shape_cast %38 : vector<1x4x512xbf16> to vector<4x512xbf16>
    %40 = arith.extf %39 : vector<4x512xbf16> to vector<4x512xf32>
    %cst_26 = arith.constant dense<0.000000e+00> : vector<4x4xf32>
    %41 = tpu.matmul %34, %37, %cst_26 {dimension_numbers = #tpu.dot_dimension_numbers<[1], [1], [0], [0], [0, 0, 1, 0], [], []>} : vector<4x64xf32>, vector<4x64xf32>, vector<4x4xf32> -> vector<4x4xf32>
    %cst_27 = arith.constant dense<0xFF800000> : vector<4xf32>
    %42 = vector.multi_reduction <maximumf>, %41, %cst_27 [1] : vector<4x4xf32> to vector<4xf32>
    %43 = vector.shape_cast %42 : vector<4xf32> to vector<4x1xf32>
    %44 = vector.broadcast %43 : vector<4x1xf32> to vector<4x4xf32>
    %45 = arith.subf %41, %44 : vector<4x4xf32>
    %46 = math.exp %45 : vector<4x4xf32>
    %cst_28 = arith.constant dense<0.000000e+00> : vector<4xf32>
    %47 = vector.multi_reduction <add>, %46, %cst_28 [1] : vector<4x4xf32> to vector<4xf32>
    %48 = vector.shape_cast %47 : vector<4xf32> to vector<4x1xf32>
    %49 = tpu.reciprocal %48 {approx = true} : vector<4x1xf32> -> vector<4x1xf32>
    %50 = vector.broadcast %49 : vector<4x1xf32> to vector<4x4xf32>
    %51 = arith.mulf %46, %50 : vector<4x4xf32>
    %cst_29 = arith.constant dense<0.000000e+00> : vector<4x512xf32>
    %52 = tpu.matmul %51, %40, %cst_29 {dimension_numbers = #tpu.dot_dimension_numbers<[1], [0], [0], [1], [0, 0, 1, 1], [], []>} : vector<4x4xf32>, vector<4x512xf32>, vector<4x512xf32> -> vector<4x512xf32>
    %53 = vector.broadcast %0 : f32 to vector<4x512xf32>
    %54 = arith.mulf %53, %52 : vector<4x512xf32>
    %c1_30 = arith.constant 1 : index
    %c0_31 = arith.constant 0 : index
    %c0_32 = arith.constant 0 : index
    %55 = vector.load %arg4[%c1_30, %c0_31, %c0_32] : memref<2x4x512xbf16, #tpu.memory_space<vmem>>, vector<1x4x512xbf16>
    %56 = vector.shape_cast %55 : vector<1x4x512xbf16> to vector<4x512xbf16>
    %57 = arith.extf %56 : vector<4x512xbf16> to vector<4x512xf32>
    %58 = arith.addf %54, %57 : vector<4x512xf32>
    %59 = arith.truncf %58 : vector<4x512xf32> to vector<4x512xbf16>
    %c1_33 = arith.constant 1 : index
    %c0_34 = arith.constant 0 : index
    %c0_35 = arith.constant 0 : index
    %60 = vector.load %arg6[%c1_33, %c0_34, %c0_35] : memref<2x4x512xbf16, #tpu.memory_space<vmem>>, vector<1x4x512xbf16>
    %61 = vector.shape_cast %60 : vector<1x4x512xbf16> to vector<4x512xbf16>
    %62 = vector.shape_cast %59 : vector<4x512xbf16> to vector<1x4x512xbf16>
    tpu.vector_store %arg6[%c1_33, %c0_34, %c0_35], %62 {strides = array<i32>} : memref<2x4x512xbf16, #tpu.memory_space<vmem>>, vector<1x4x512xbf16>,
    return
  }
  func.func @transform_0(%arg0: i32) -> (i32, i32, i32) {
    %c0_i32 = arith.constant 0 : i32
    %c0_i32_0 = arith.constant 0 : i32
    %c0_i32_1 = arith.constant 0 : i32
    %c0_i32_2 = arith.constant 0 : i32
    return %c0_i32, %c0_i32_0, %c0_i32_1 : i32, i32, i32
  }
  func.func @transform_1(%arg0: i32) -> (i32, i32, i32) {
    %c0_i32 = arith.constant 0 : i32
    %c0_i32_0 = arith.constant 0 : i32
    %c0_i32_1 = arith.constant 0 : i32
    %c0_i32_2 = arith.constant 0 : i32
    return %c0_i32, %c0_i32_0, %c0_i32_1 : i32, i32, i32
  }
  func.func @transform_2(%arg0: i32) -> (i32, i32, i32) {
    %c0_i32 = arith.constant 0 : i32
    %c0_i32_0 = arith.constant 0 : i32
    %c0_i32_1 = arith.constant 0 : i32
    %c0_i32_2 = arith.constant 0 : i32
    return %c0_i32, %c0_i32_0, %c0_i32_1 : i32, i32, i32
  }
  func.func @transform_3(%arg0: i32) -> (i32, i32, i32) {
    %c0_i32 = arith.constant 0 : i32
    %c0_i32_0 = arith.constant 0 : i32
    %c0_i32_1 = arith.constant 0 : i32
    %c0_i32_2 = arith.constant 0 : i32
    return %c0_i32, %c0_i32_0, %c0_i32_1 : i32, i32, i32
  }
  func.func @transform_4(%arg0: i32) -> i32 {
    %c0_i32 = arith.constant 0 : i32
    %c0_i32_0 = arith.constant 0 : i32
    return %c0_i32 : i32
  }
  func.func @transform_5(%arg0: i32) -> (i32, i32, i32) {
    %c0_i32 = arith.constant 0 : i32
    %c0_i32_0 = arith.constant 0 : i32
    %c0_i32_1 = arith.constant 0 : i32
    %c0_i32_2 = arith.constant 0 : i32
    return %c0_i32, %c0_i32_0, %c0_i32_1 : i32, i32, i32
  }
}

module attributes {stable_mosaic.version = 11 : i64} {
  func.func @_matmul_kernel(%arg0: i32, %arg1: i32, %arg2: i32, %arg3: memref<16x128xbf16, #tpu.memory_space<vmem>>, %arg4: memref<128x256xbf16, #tpu.memory_space<vmem>>, %arg5: memref<1x256xf32, #tpu.memory_space<vmem>>, %arg6: memref<16x256xbf16, #tpu.memory_space<vmem>>, %arg7: memref<16x256xf32, #tpu.memory_space<vmem>>) attributes {dimension_semantics = [#tpu.dimension_semantics<parallel>, #tpu.dimension_semantics<parallel>, #tpu.dimension_semantics<arbitrary>], iteration_bounds = array<i64: 1, 2, 5>, scalar_prefetch = 0 : i64, scratch_operands = 1 : i64, tpu.core_type = #tpu.core_type<tc>, window_params = [{transform_indices = @transform_0, window_bounds = array<i64: 16, 128>}, {transform_indices = @transform_1, window_bounds = array<i64: 128, 256>}, {transform_indices = @transform_2, window_bounds = array<i64: 1, 256>}, {transform_indices = @transform_3, window_bounds = array<i64: 16, 256>}]} {
    %c0_i32 = arith.constant 0 : i32
    %0 = arith.cmpi eq, %arg2, %c0_i32 : i32
    %1 = arith.extui %0 : i1 to i32
    %c0_i32_0 = arith.constant 0 : i32
    %2 = arith.cmpi ne, %1, %c0_i32_0 : i32
    scf.if %2 {
      %cst_9 = arith.constant 0.000000e+00 : f32
      %12 = vector.broadcast %cst_9 : f32 to vector<16x256xf32>
      %c0_10 = arith.constant 0 : index
      %c0_11 = arith.constant 0 : index
      %13 = vector.load %arg7[%c0_10, %c0_11] : memref<16x256xf32, #tpu.memory_space<vmem>>, vector<16x256xf32>
      tpu.vector_store %arg7[%c0_10, %c0_11], %12 {strides = array<i32>} : memref<16x256xf32, #tpu.memory_space<vmem>>, vector<16x256xf32>,
    } else {
    }
    %c0 = arith.constant 0 : index
    %c0_1 = arith.constant 0 : index
    %3 = vector.load %arg7[%c0, %c0_1] : memref<16x256xf32, #tpu.memory_space<vmem>>, vector<16x256xf32>
    %c0_2 = arith.constant 0 : index
    %c0_3 = arith.constant 0 : index
    %4 = vector.load %arg3[%c0_2, %c0_3] : memref<16x128xbf16, #tpu.memory_space<vmem>>, vector<16x128xbf16>
    %c0_4 = arith.constant 0 : index
    %c0_5 = arith.constant 0 : index
    %5 = vector.load %arg4[%c0_4, %c0_5] : memref<128x256xbf16, #tpu.memory_space<vmem>>, vector<128x256xbf16>
    %cst = arith.constant dense<0.000000e+00> : vector<16x256xf32>
    %6 = tpu.matmul %4, %5, %cst {dimension_numbers = #tpu.dot_dimension_numbers<[1], [0], [0], [1], [0, 0, 1, 1], [], []>} : vector<16x128xbf16>, vector<128x256xbf16>, vector<16x256xf32> -> vector<16x256xf32>
    %7 = arith.addf %3, %6 : vector<16x256xf32>
    %c0_6 = arith.constant 0 : index
    %c0_7 = arith.constant 0 : index
    %8 = vector.load %arg7[%c0_6, %c0_7] : memref<16x256xf32, #tpu.memory_space<vmem>>, vector<16x256xf32>
    tpu.vector_store %arg7[%c0_6, %c0_7], %7 {strides = array<i32>} : memref<16x256xf32, #tpu.memory_space<vmem>>, vector<16x256xf32>,
    %c4_i32 = arith.constant 4 : i32
    %9 = arith.cmpi eq, %arg2, %c4_i32 : i32
    %10 = arith.extui %9 : i1 to i32
    %c0_i32_8 = arith.constant 0 : i32
    %11 = arith.cmpi ne, %10, %c0_i32_8 : i32
    scf.if %11 {
      %c0_9 = arith.constant 0 : index
      %c0_10 = arith.constant 0 : index
      %12 = vector.load %arg7[%c0_9, %c0_10] : memref<16x256xf32, #tpu.memory_space<vmem>>, vector<16x256xf32>
      %c0_11 = arith.constant 0 : index
      %c0_12 = arith.constant 0 : index
      %13 = vector.load %arg5[%c0_11, %c0_12] : memref<1x256xf32, #tpu.memory_space<vmem>>, vector<1x256xf32>
      %14 = vector.broadcast %13 : vector<1x256xf32> to vector<16x256xf32>
      %15 = arith.addf %12, %14 : vector<16x256xf32>
      %16 = arith.truncf %15 : vector<16x256xf32> to vector<16x256xbf16>
      %c0_13 = arith.constant 0 : index
      %c0_14 = arith.constant 0 : index
      %17 = vector.load %arg6[%c0_13, %c0_14] : memref<16x256xbf16, #tpu.memory_space<vmem>>, vector<16x256xbf16>
      tpu.vector_store %arg6[%c0_13, %c0_14], %16 {strides = array<i32>} : memref<16x256xbf16, #tpu.memory_space<vmem>>, vector<16x256xbf16>,
    } else {
    }
    return
  }
  func.func @transform_0(%arg0: i32, %arg1: i32, %arg2: i32) -> (i32, i32) {
    %c0_i32 = arith.constant 0 : i32
    return %arg0, %arg2 : i32, i32
  }
  func.func @transform_1(%arg0: i32, %arg1: i32, %arg2: i32) -> (i32, i32) {
    %c0_i32 = arith.constant 0 : i32
    return %arg2, %arg1 : i32, i32
  }
  func.func @transform_2(%arg0: i32, %arg1: i32, %arg2: i32) -> (i32, i32) {
    %c0_i32 = arith.constant 0 : i32
    %c0_i32_0 = arith.constant 0 : i32
    return %c0_i32, %arg1 : i32, i32
  }
  func.func @transform_3(%arg0: i32, %arg1: i32, %arg2: i32) -> (i32, i32) {
    %c0_i32 = arith.constant 0 : i32
    return %arg0, %arg1 : i32, i32
  }
}

module attributes {stable_mosaic.version = 11 : i64} {
  func.func @_matmul_kernel(%arg0: i32, %arg1: i32, %arg2: i32, %arg3: memref<16x512xbf16, #tpu.memory_space<vmem>>, %arg4: memref<512x256xbf16, #tpu.memory_space<vmem>>, %arg5: memref<1x256xf32, #tpu.memory_space<vmem>>, %arg6: memref<16x256xbf16, #tpu.memory_space<vmem>>, %arg7: memref<16x256xf32, #tpu.memory_space<vmem>>) attributes {dimension_semantics = [#tpu.dimension_semantics<parallel>, #tpu.dimension_semantics<parallel>, #tpu.dimension_semantics<arbitrary>], iteration_bounds = array<i64: 1, 1, 4>, scalar_prefetch = 0 : i64, scratch_operands = 1 : i64, tpu.core_type = #tpu.core_type<tc>, window_params = [{transform_indices = @transform_0, window_bounds = array<i64: 16, 512>}, {transform_indices = @transform_1, window_bounds = array<i64: 512, 256>}, {transform_indices = @transform_2, window_bounds = array<i64: 1, 256>}, {transform_indices = @transform_3, window_bounds = array<i64: 16, 256>}]} {
    %c0_i32 = arith.constant 0 : i32
    %0 = arith.cmpi eq, %arg2, %c0_i32 : i32
    %1 = arith.extui %0 : i1 to i32
    %c0_i32_0 = arith.constant 0 : i32
    %2 = arith.cmpi ne, %1, %c0_i32_0 : i32
    scf.if %2 {
      %cst_9 = arith.constant 0.000000e+00 : f32
      %12 = vector.broadcast %cst_9 : f32 to vector<16x256xf32>
      %c0_10 = arith.constant 0 : index
      %c0_11 = arith.constant 0 : index
      %13 = vector.load %arg7[%c0_10, %c0_11] : memref<16x256xf32, #tpu.memory_space<vmem>>, vector<16x256xf32>
      tpu.vector_store %arg7[%c0_10, %c0_11], %12 {strides = array<i32>} : memref<16x256xf32, #tpu.memory_space<vmem>>, vector<16x256xf32>,
    } else {
    }
    %c0 = arith.constant 0 : index
    %c0_1 = arith.constant 0 : index
    %3 = vector.load %arg7[%c0, %c0_1] : memref<16x256xf32, #tpu.memory_space<vmem>>, vector<16x256xf32>
    %c0_2 = arith.constant 0 : index
    %c0_3 = arith.constant 0 : index
    %4 = vector.load %arg3[%c0_2, %c0_3] : memref<16x512xbf16, #tpu.memory_space<vmem>>, vector<16x512xbf16>
    %c0_4 = arith.constant 0 : index
    %c0_5 = arith.constant 0 : index
    %5 = vector.load %arg4[%c0_4, %c0_5] : memref<512x256xbf16, #tpu.memory_space<vmem>>, vector<512x256xbf16>
    %cst = arith.constant dense<0.000000e+00> : vector<16x256xf32>
    %6 = tpu.matmul %4, %5, %cst {dimension_numbers = #tpu.dot_dimension_numbers<[1], [0], [0], [1], [0, 0, 1, 1], [], []>} : vector<16x512xbf16>, vector<512x256xbf16>, vector<16x256xf32> -> vector<16x256xf32>
    %7 = arith.addf %3, %6 : vector<16x256xf32>
    %c0_6 = arith.constant 0 : index
    %c0_7 = arith.constant 0 : index
    %8 = vector.load %arg7[%c0_6, %c0_7] : memref<16x256xf32, #tpu.memory_space<vmem>>, vector<16x256xf32>
    tpu.vector_store %arg7[%c0_6, %c0_7], %7 {strides = array<i32>} : memref<16x256xf32, #tpu.memory_space<vmem>>, vector<16x256xf32>,
    %c3_i32 = arith.constant 3 : i32
    %9 = arith.cmpi eq, %arg2, %c3_i32 : i32
    %10 = arith.extui %9 : i1 to i32
    %c0_i32_8 = arith.constant 0 : i32
    %11 = arith.cmpi ne, %10, %c0_i32_8 : i32
    scf.if %11 {
      %c0_9 = arith.constant 0 : index
      %c0_10 = arith.constant 0 : index
      %12 = vector.load %arg7[%c0_9, %c0_10] : memref<16x256xf32, #tpu.memory_space<vmem>>, vector<16x256xf32>
      %c0_11 = arith.constant 0 : index
      %c0_12 = arith.constant 0 : index
      %13 = vector.load %arg5[%c0_11, %c0_12] : memref<1x256xf32, #tpu.memory_space<vmem>>, vector<1x256xf32>
      %14 = vector.broadcast %13 : vector<1x256xf32> to vector<16x256xf32>
      %15 = arith.addf %12, %14 : vector<16x256xf32>
      %16 = arith.truncf %15 : vector<16x256xf32> to vector<16x256xbf16>
      %c0_13 = arith.constant 0 : index
      %c0_14 = arith.constant 0 : index
      %17 = vector.load %arg6[%c0_13, %c0_14] : memref<16x256xbf16, #tpu.memory_space<vmem>>, vector<16x256xbf16>
      tpu.vector_store %arg6[%c0_13, %c0_14], %16 {strides = array<i32>} : memref<16x256xbf16, #tpu.memory_space<vmem>>, vector<16x256xbf16>,
    } else {
    }
    return
  }
  func.func @transform_0(%arg0: i32, %arg1: i32, %arg2: i32) -> (i32, i32) {
    %c0_i32 = arith.constant 0 : i32
    return %arg0, %arg2 : i32, i32
  }
  func.func @transform_1(%arg0: i32, %arg1: i32, %arg2: i32) -> (i32, i32) {
    %c0_i32 = arith.constant 0 : i32
    return %arg2, %arg1 : i32, i32
  }
  func.func @transform_2(%arg0: i32, %arg1: i32, %arg2: i32) -> (i32, i32) {
    %c0_i32 = arith.constant 0 : i32
    %c0_i32_0 = arith.constant 0 : i32
    return %c0_i32, %arg1 : i32, i32
  }
  func.func @transform_3(%arg0: i32, %arg1: i32, %arg2: i32) -> (i32, i32) {
    %c0_i32 = arith.constant 0 : i32
    return %arg0, %arg1 : i32, i32
  }
}

module attributes {stable_mosaic.version = 11 : i64} {
  func.func @_matmul_kernel(%arg0: i32, %arg1: i32, %arg2: i32, %arg3: memref<32x512xbf16, #tpu.memory_space<vmem>>, %arg4: memref<512x128xbf16, #tpu.memory_space<vmem>>, %arg5: memref<1x128xf32, #tpu.memory_space<vmem>>, %arg6: memref<32x128xbf16, #tpu.memory_space<vmem>>, %arg7: memref<32x128xf32, #tpu.memory_space<vmem>>) attributes {dimension_semantics = [#tpu.dimension_semantics<parallel>, #tpu.dimension_semantics<parallel>, #tpu.dimension_semantics<arbitrary>], iteration_bounds = array<i64: 1, 1, 2>, scalar_prefetch = 0 : i64, scratch_operands = 1 : i64, tpu.core_type = #tpu.core_type<tc>, window_params = [{transform_indices = @transform_0, window_bounds = array<i64: 32, 512>}, {transform_indices = @transform_1, window_bounds = array<i64: 512, 128>}, {transform_indices = @transform_2, window_bounds = array<i64: 1, 128>}, {transform_indices = @transform_3, window_bounds = array<i64: 32, 128>}]} {
    %c0_i32 = arith.constant 0 : i32
    %0 = arith.cmpi eq, %arg2, %c0_i32 : i32
    %1 = arith.extui %0 : i1 to i32
    %c0_i32_0 = arith.constant 0 : i32
    %2 = arith.cmpi ne, %1, %c0_i32_0 : i32
    scf.if %2 {
      %cst_9 = arith.constant 0.000000e+00 : f32
      %12 = vector.broadcast %cst_9 : f32 to vector<32x128xf32>
      %c0_10 = arith.constant 0 : index
      %c0_11 = arith.constant 0 : index
      %13 = vector.load %arg7[%c0_10, %c0_11] : memref<32x128xf32, #tpu.memory_space<vmem>>, vector<32x128xf32>
      tpu.vector_store %arg7[%c0_10, %c0_11], %12 {strides = array<i32>} : memref<32x128xf32, #tpu.memory_space<vmem>>, vector<32x128xf32>,
    } else {
    }
    %c0 = arith.constant 0 : index
    %c0_1 = arith.constant 0 : index
    %3 = vector.load %arg7[%c0, %c0_1] : memref<32x128xf32, #tpu.memory_space<vmem>>, vector<32x128xf32>
    %c0_2 = arith.constant 0 : index
    %c0_3 = arith.constant 0 : index
    %4 = vector.load %arg3[%c0_2, %c0_3] : memref<32x512xbf16, #tpu.memory_space<vmem>>, vector<32x512xbf16>
    %c0_4 = arith.constant 0 : index
    %c0_5 = arith.constant 0 : index
    %5 = vector.load %arg4[%c0_4, %c0_5] : memref<512x128xbf16, #tpu.memory_space<vmem>>, vector<512x128xbf16>
    %cst = arith.constant dense<0.000000e+00> : vector<32x128xf32>
    %6 = tpu.matmul %4, %5, %cst {dimension_numbers = #tpu.dot_dimension_numbers<[1], [0], [0], [1], [0, 0, 1, 1], [], []>} : vector<32x512xbf16>, vector<512x128xbf16>, vector<32x128xf32> -> vector<32x128xf32>
    %7 = arith.addf %3, %6 : vector<32x128xf32>
    %c0_6 = arith.constant 0 : index
    %c0_7 = arith.constant 0 : index
    %8 = vector.load %arg7[%c0_6, %c0_7] : memref<32x128xf32, #tpu.memory_space<vmem>>, vector<32x128xf32>
    tpu.vector_store %arg7[%c0_6, %c0_7], %7 {strides = array<i32>} : memref<32x128xf32, #tpu.memory_space<vmem>>, vector<32x128xf32>,
    %c1_i32 = arith.constant 1 : i32
    %9 = arith.cmpi eq, %arg2, %c1_i32 : i32
    %10 = arith.extui %9 : i1 to i32
    %c0_i32_8 = arith.constant 0 : i32
    %11 = arith.cmpi ne, %10, %c0_i32_8 : i32
    scf.if %11 {
      %c0_9 = arith.constant 0 : index
      %c0_10 = arith.constant 0 : index
      %12 = vector.load %arg7[%c0_9, %c0_10] : memref<32x128xf32, #tpu.memory_space<vmem>>, vector<32x128xf32>
      %c0_11 = arith.constant 0 : index
      %c0_12 = arith.constant 0 : index
      %13 = vector.load %arg5[%c0_11, %c0_12] : memref<1x128xf32, #tpu.memory_space<vmem>>, vector<1x128xf32>
      %14 = vector.broadcast %13 : vector<1x128xf32> to vector<32x128xf32>
      %15 = arith.addf %12, %14 : vector<32x128xf32>
      %16 = arith.truncf %15 : vector<32x128xf32> to vector<32x128xbf16>
      %c0_13 = arith.constant 0 : index
      %c0_14 = arith.constant 0 : index
      %17 = vector.load %arg6[%c0_13, %c0_14] : memref<32x128xbf16, #tpu.memory_space<vmem>>, vector<32x128xbf16>
      tpu.vector_store %arg6[%c0_13, %c0_14], %16 {strides = array<i32>} : memref<32x128xbf16, #tpu.memory_space<vmem>>, vector<32x128xbf16>,
    } else {
    }
    return
  }
  func.func @transform_0(%arg0: i32, %arg1: i32, %arg2: i32) -> (i32, i32) {
    %c0_i32 = arith.constant 0 : i32
    return %arg0, %arg2 : i32, i32
  }
  func.func @transform_1(%arg0: i32, %arg1: i32, %arg2: i32) -> (i32, i32) {
    %c0_i32 = arith.constant 0 : i32
    return %arg2, %arg1 : i32, i32
  }
  func.func @transform_2(%arg0: i32, %arg1: i32, %arg2: i32) -> (i32, i32) {
    %c0_i32 = arith.constant 0 : i32
    %c0_i32_0 = arith.constant 0 : i32
    return %c0_i32, %arg1 : i32, i32
  }
  func.func @transform_3(%arg0: i32, %arg1: i32, %arg2: i32) -> (i32, i32) {
    %c0_i32 = arith.constant 0 : i32
    return %arg0, %arg1 : i32, i32
  }
}

module attributes {stable_mosaic.version = 11 : i64} {
  func.func @_matmul_kernel(%arg0: i32, %arg1: i32, %arg2: i32, %arg3: memref<128x512xbf16, #tpu.memory_space<vmem>>, %arg4: memref<512x128xbf16, #tpu.memory_space<vmem>>, %arg5: memref<1x128xf32, #tpu.memory_space<vmem>>, %arg6: memref<128x128xbf16, #tpu.memory_space<vmem>>, %arg7: memref<128x128xf32, #tpu.memory_space<vmem>>) attributes {dimension_semantics = [#tpu.dimension_semantics<parallel>, #tpu.dimension_semantics<parallel>, #tpu.dimension_semantics<arbitrary>], iteration_bounds = array<i64: 1, 1, 1>, scalar_prefetch = 0 : i64, scratch_operands = 1 : i64, tpu.core_type = #tpu.core_type<tc>, window_params = [{transform_indices = @transform_0, window_bounds = array<i64: 128, 512>}, {transform_indices = @transform_1, window_bounds = array<i64: 512, 128>}, {transform_indices = @transform_2, window_bounds = array<i64: 1, 128>}, {transform_indices = @transform_3, window_bounds = array<i64: 128, 128>}]} {
    %c0_i32 = arith.constant 0 : i32
    %0 = arith.cmpi eq, %arg2, %c0_i32 : i32
    %1 = arith.extui %0 : i1 to i32
    %c0_i32_0 = arith.constant 0 : i32
    %2 = arith.cmpi ne, %1, %c0_i32_0 : i32
    scf.if %2 {
      %cst_10 = arith.constant 0.000000e+00 : f32
      %12 = vector.broadcast %cst_10 : f32 to vector<128x128xf32>
      %c0_11 = arith.constant 0 : index
      %c0_12 = arith.constant 0 : index
      %13 = vector.load %arg7[%c0_11, %c0_12] : memref<128x128xf32, #tpu.memory_space<vmem>>, vector<128x128xf32>
      tpu.vector_store %arg7[%c0_11, %c0_12], %12 {strides = array<i32>} : memref<128x128xf32, #tpu.memory_space<vmem>>, vector<128x128xf32>,
    } else {
    }
    %c0 = arith.constant 0 : index
    %c0_1 = arith.constant 0 : index
    %3 = vector.load %arg7[%c0, %c0_1] : memref<128x128xf32, #tpu.memory_space<vmem>>, vector<128x128xf32>
    %c0_2 = arith.constant 0 : index
    %c0_3 = arith.constant 0 : index
    %4 = vector.load %arg3[%c0_2, %c0_3] : memref<128x512xbf16, #tpu.memory_space<vmem>>, vector<128x512xbf16>
    %c0_4 = arith.constant 0 : index
    %c0_5 = arith.constant 0 : index
    %5 = vector.load %arg4[%c0_4, %c0_5] : memref<512x128xbf16, #tpu.memory_space<vmem>>, vector<512x128xbf16>
    %cst = arith.constant dense<0.000000e+00> : vector<128x128xf32>
    %6 = tpu.matmul %4, %5, %cst {dimension_numbers = #tpu.dot_dimension_numbers<[1], [0], [0], [1], [0, 0, 1, 1], [], []>} : vector<128x512xbf16>, vector<512x128xbf16>, vector<128x128xf32> -> vector<128x128xf32>
    %7 = arith.addf %3, %6 : vector<128x128xf32>
    %c0_6 = arith.constant 0 : index
    %c0_7 = arith.constant 0 : index
    %8 = vector.load %arg7[%c0_6, %c0_7] : memref<128x128xf32, #tpu.memory_space<vmem>>, vector<128x128xf32>
    tpu.vector_store %arg7[%c0_6, %c0_7], %7 {strides = array<i32>} : memref<128x128xf32, #tpu.memory_space<vmem>>, vector<128x128xf32>,
    %c0_i32_8 = arith.constant 0 : i32
    %9 = arith.cmpi eq, %arg2, %c0_i32_8 : i32
    %10 = arith.extui %9 : i1 to i32
    %c0_i32_9 = arith.constant 0 : i32
    %11 = arith.cmpi ne, %10, %c0_i32_9 : i32
    scf.if %11 {
      %c0_10 = arith.constant 0 : index
      %c0_11 = arith.constant 0 : index
      %12 = vector.load %arg7[%c0_10, %c0_11] : memref<128x128xf32, #tpu.memory_space<vmem>>, vector<128x128xf32>
      %c0_12 = arith.constant 0 : index
      %c0_13 = arith.constant 0 : index
      %13 = vector.load %arg5[%c0_12, %c0_13] : memref<1x128xf32, #tpu.memory_space<vmem>>, vector<1x128xf32>
      %14 = vector.broadcast %13 : vector<1x128xf32> to vector<128x128xf32>
      %15 = arith.addf %12, %14 : vector<128x128xf32>
      %16 = arith.truncf %15 : vector<128x128xf32> to vector<128x128xbf16>
      %c0_14 = arith.constant 0 : index
      %c0_15 = arith.constant 0 : index
      %17 = vector.load %arg6[%c0_14, %c0_15] : memref<128x128xbf16, #tpu.memory_space<vmem>>, vector<128x128xbf16>
      tpu.vector_store %arg6[%c0_14, %c0_15], %16 {strides = array<i32>} : memref<128x128xbf16, #tpu.memory_space<vmem>>, vector<128x128xbf16>,
    } else {
    }
    return
  }
  func.func @transform_0(%arg0: i32, %arg1: i32, %arg2: i32) -> (i32, i32) {
    %c0_i32 = arith.constant 0 : i32
    return %arg0, %arg2 : i32, i32
  }
  func.func @transform_1(%arg0: i32, %arg1: i32, %arg2: i32) -> (i32, i32) {
    %c0_i32 = arith.constant 0 : i32
    return %arg2, %arg1 : i32, i32
  }
  func.func @transform_2(%arg0: i32, %arg1: i32, %arg2: i32) -> (i32, i32) {
    %c0_i32 = arith.constant 0 : i32
    %c0_i32_0 = arith.constant 0 : i32
    return %c0_i32, %arg1 : i32, i32
  }
  func.func @transform_3(%arg0: i32, %arg1: i32, %arg2: i32) -> (i32, i32) {
    %c0_i32 = arith.constant 0 : i32
    return %arg0, %arg1 : i32, i32
  }
}

</mosaic_0001>

<bundles_post_ra>
// kernel: forward.21
= control target key start
LH: loop header
LB: loop body
LE: loop exit
PB: predicated region body
PF: predicated region fallthrough
CT: control target
= control target key end

     0   :  { %s1091_s12 = smov 0   ;;  %s1093_s13 = smov 0   ;;  %s1202_s0 = inlined_call_operand.vmem [shape: bf16[512,128], index: 0, kind: input, shape index: {}]   ;;  %s1203_s1 = inlined_call_operand.vmem [shape: bf16[128,128], index: 1, kind: input, shape index: {}]   ;;  %s1204_s2 = inlined_call_operand.vmem [shape: f32[1,128], index: 2, kind: input, shape index: {}]   ;;  %s1205_s3 = inlined_call_operand.vmem [shape: bf16[512,128], index: 3, kind: output, shape index: {}]  }
   0x1   :  { %s1095_s14 = smov 0  }
   0x2 LB: > { %s32_s15 = sadd.s32 1, %s1065_s13  ;;  %p840_p0 = scmp.ge.s32.totalorder %s1069_s14, 1  ;;  %s1069_s14 = sphi %s1095_s14, %s13_s14   ;;  %s1065_s13 = sphi %s1093_s13, %s1207_s13   ;;  %s1061_s12 = sphi %s1091_s12, %s1206_s12  }
   0x3   : > { %p34_p1 = scmp.ge.s32.totalorder %s32_s15, 4  ;;  %p188_p2 = scmp.lt.s32.totalorder %s1069_s14, 5 }
   0x5   : > { %s1209_s15 = smov (%p34_p1, %s32_s15), 0  ;;  %p189_p3 = pnand %p840_p0, %p188_p2 }
   0x6   : > { %s841_s18 = sshll.u32 (!%p189_p3), %s1061_s12, 4 }
   0x7   : > { %192 = sbr.rel (%p189_p3) target bundleno = 261 (0x105), region = 32  ;;  %p230_p4 = scmp.lt.s32.totalorder (!%p189_p3), %s841_s18, 63 }
   0xc   : > { %v1031_v0 = vld [vmem:[%s1203_s1 + $0x38] sm:$0xff]   ;;  %v1032_v1 = vld [vmem:[%s1203_s1 + $0x30] sm:$0xff]   ;;  %s1211_s18 = smov (!%p230_p4, %s841_s18), 63  ;;  %v1033_v2 = vld [vmem:[%s1203_s1 + $0x28] sm:$0xff]  }
   0xd   : > { %959 = vmatprep.subr.bf16.mxu0 %v1031_v0  ;;  %991 = vmatprep.subr.bf16.mxu1 %v1031_v0  ;;  %s842_s23 = sshll.u32 %s1211_s18, 2  ;;  %v1034_v3 = vld [vmem:[%s1203_s1 + $0x20] sm:$0xff]   ;;  %v1035_v6 = vld [vmem:[%s1203_s1 + $0x18] sm:$0xff]   ;;  %v1036_v7 = vld [vmem:[%s1203_s1 + $0x10] sm:$0xff]  }
   0xe   : > { %960 = vmatpush3.bf16.msra.mxu0 %v1031_v0  ;;  %999 = vmatpush3.bf16.msra.mxu1 %v1031_v0  ;;  %s1126_s26 = scalar_lea.vmem %s1202_s0, %s842_s23  ;;  %v1037_v8 = vld [vmem:[%s1203_s1 + $0x8] sm:$0xff]   ;;  %v1038_v9 = vld [vmem:[%s1203_s1] sm:$0xff]   ;;  %s1169_s17 = scalar_lea.vmem %s1205_s3, %s842_s23 }
   0xf   : > { %961 = vmatprep.subr.bf16.mxu0 %v1032_v1  ;;  %992 = vmatprep.subr.bf16.mxu1 %v1032_v1  ;;  %v1039_v4 = vld [vmem:[%s1126_s26] sm:$0xff]   ;;  %v1041_v10 = vld [vmem:[%s1126_s26 + $0x8] sm:$0xff]   ;;  %v1043_v12 = vld [vmem:[%s1126_s26 + $0x10] sm:$0xff]  }
  0x10   : > { %v1040_v5 = vld [vmem:[%s1126_s26 + $0x20] sm:$0xff]   ;;  %975 = vmatprep.mubr.bf16.mxu0 %v1039_v4  ;;  %v1042_v11 = vld [vmem:[%s1126_s26 + $0x28] sm:$0xff]   ;;  %v1044_v13 = vld [vmem:[%s1126_s26 + $0x30] sm:$0xff]  }
  0x11   : > { %983 = vmatprep.mubr.bf16.mxu1 %v1040_v5  ;;  %v1045_v14 = vld [vmem:[%s1126_s26 + $0x18] sm:$0xff]   ;;  %v1154_v16 = vld [vmem:[%s1204_s2] ss:$0 sm:$0xff] }
  0x12   : > { %962 = vmatpush3.bf16.msra.mxu0 %v1032_v1  ;;  %1000 = vmatpush3.bf16.msra.mxu1 %v1032_v1  ;;  %v1046_v15 = vld [vmem:[%s1126_s26 + $0x38] sm:$0xff]  }
  0x13   : > { %963 = vmatprep.subr.bf16.mxu0 %v1033_v2  ;;  %993 = vmatprep.subr.bf16.mxu1 %v1033_v2 }
  0x16   : > { %964 = vmatpush3.bf16.msra.mxu0 %v1033_v2  ;;  %1001 = vmatpush3.bf16.msra.mxu1 %v1033_v2 }
  0x17   : > { %965 = vmatprep.subr.bf16.mxu0 %v1034_v3  ;;  %994 = vmatprep.subr.bf16.mxu1 %v1034_v3 }
  0x1a   : > { %966 = vmatpush3.bf16.msra.mxu0 %v1034_v3  ;;  %1002 = vmatpush3.bf16.msra.mxu1 %v1034_v3 }
  0x1b   : > { %967 = vmatprep.subr.bf16.mxu0 %v1035_v6  ;;  %995 = vmatprep.subr.bf16.mxu1 %v1035_v6 }
  0x1e   : > { %968 = vmatpush3.bf16.msra.mxu0 %v1035_v6  ;;  %1003 = vmatpush3.bf16.msra.mxu1 %v1035_v6 }
  0x1f   : > { %969 = vmatprep.subr.bf16.mxu0 %v1036_v7  ;;  %996 = vmatprep.subr.bf16.mxu1 %v1036_v7 }
  0x22   : > { %970 = vmatpush3.bf16.msra.mxu0 %v1036_v7  ;;  %1004 = vmatpush3.bf16.msra.mxu1 %v1036_v7 }
  0x23   : > { %971 = vmatprep.subr.bf16.mxu0 %v1037_v8  ;;  %997 = vmatprep.subr.bf16.mxu1 %v1037_v8 }
  0x26   : > { %972 = vmatpush3.bf16.msra.mxu0 %v1037_v8  ;;  %1005 = vmatpush3.bf16.msra.mxu1 %v1037_v8 }
  0x27   : > { %973 = vmatprep.subr.bf16.mxu0 %v1038_v9  ;;  %998 = vmatprep.subr.bf16.mxu1 %v1038_v9 }
  0x2a   : > { %974 = vmatpush3.bf16.msra.mxu0 %v1038_v9  ;;  %1006 = vmatpush3.bf16.msra.mxu1 %v1038_v9 }
  0x2d   : > { %976 = vmatmul.mubr.bf16.vlgmr.msra.gmra.mxu0 %v1041_v10  ;;  %984 = vmatmul.mubr.bf16.vlgmr.msra.gmra.mxu1 %v1042_v11 }
  0x2e   : > { %979 = vmatprep.mubr.bf16.mxu0 %v1043_v12  ;;  %987 = vmatprep.mubr.bf16.mxu1 %v1044_v13 }
  0x35   : > { %980 = vmatmul.mubr.bf16.gmra.mxu0 %v1045_v14  ;;  %988 = vmatmul.mubr.bf16.gmra.mxu1 %v1046_v15 }
  0xed   : > { %v977_v17 = vpop.f32.mrf.mxu0  ;;  %v985_v18 = vpop.f32.mrf.mxu1 }
  0xee   : > { %v581_v19 = vadd.f32 %v977_v17, %v1154_v16  ;;  %v589_v20 = vadd.f32 %v985_v18, %v1154_v16 }
  0xef   : > { %v458_v21 = vpop.f32.mrf.mxu0  ;;  %v490_v22 = vpop.f32.mrf.mxu1 }
  0xf0   : > { %vm597_vm0 = vcmp.ge.f32.partialorder %v581_v19, 0.0  ;;  %v613_v23 = vmul.f32 0.1, %v581_v19  ;;  %vm605_vm1 = vcmp.ge.f32.partialorder %v589_v20, 0.0  ;;  %v621_v24 = vmul.f32 0.1, %v589_v20 }
  0xf1   : > { %v579_v25 = vadd.f32 %v1154_v16, %v458_v21  ;;  %v587_v26 = vadd.f32 %v1154_v16, %v490_v22  ;;  %v978_v27 = vpop.f32.mrf.mxu0  ;;  %v986_v28 = vpop.f32.mrf.mxu1 }
  0xf2   : > { %v582_v29 = vadd.f32 %v978_v27, %v1154_v16  ;;  %v590_v30 = vadd.f32 %v986_v28, %v1154_v16  ;;  %v629_v31 = vsel %vm597_vm0, %v581_v19, %v613_v23  ;;  %v637_v32 = vsel %vm605_vm1, %v589_v20, %v621_v24 }
  0xf3   : > { %vm595_vm2 = vcmp.ge.f32.partialorder %v579_v25, 0.0  ;;  %v611_v33 = vmul.f32 0.1, %v579_v25  ;;  %v461_v34 = vpop.f32.mrf.mxu0  ;;  %v493_v35 = vpop.f32.mrf.mxu1  ;;  %vm603_vm5 = vcmp.ge.f32.partialorder %v587_v26, 0.0  ;;  %v619_v38 = vmul.f32 0.1, %v587_v26 }
  0xf4   : > { %vm598_vm3 = vcmp.ge.f32.partialorder %v582_v29, 0.0  ;;  %v614_v36 = vmul.f32 0.1, %v582_v29  ;;  %vm606_vm4 = vcmp.ge.f32.partialorder %v590_v30, 0.0  ;;  %v622_v37 = vmul.f32 0.1, %v590_v30 }
  0xf5   : > { %v580_v39 = vadd.f32 %v1154_v16, %v461_v34  ;;  %v588_v40 = vadd.f32 %v1154_v16, %v493_v35  ;;  %v981_v41 = vpop.f32.mrf.mxu0  ;;  %v989_v42 = vpop.f32.mrf.mxu1  ;;  %v627_v53 = vsel %vm595_vm2, %v579_v25, %v611_v33  ;;  %v635_v58 = vsel %vm603_vm5, %v587_v26, %v619_v38 }
  0xf6   : > { %v630_v43 = vsel %vm598_vm3, %v582_v29, %v614_v36  ;;  %v638_v44 = vsel %vm606_vm4, %v590_v30, %v622_v37  ;;  %v585_v45 = vadd.f32 %v981_v41, %v1154_v16  ;;  %v593_v46 = vadd.f32 %v989_v42, %v1154_v16 }
  0xf7   : > { %v904_v47 = vpack.c.bf16 %v630_v43, %v629_v31  ;;  %v924_v48 = vpack.c.bf16 %v638_v44, %v637_v32  ;;  %vm596_vm6 = vcmp.ge.f32.partialorder %v580_v39, 0.0  ;;  %v612_v49 = vmul.f32 0.1, %v580_v39  ;;  %v474_v50 = vpop.f32.mrf.mxu0  ;;  %v506_v51 = vpop.f32.mrf.mxu1 }
  0xf8   : > { %vm604_vm7 = vcmp.ge.f32.partialorder %v588_v40, 0.0  ;;  %v620_v52 = vmul.f32 0.1, %v588_v40  ;;  %v583_v55 = vadd.f32 %v1154_v16, %v474_v50  ;;  %v591_v61 = vadd.f32 %v1154_v16, %v506_v51 }
  0xf9   : > { %936 = vst [vmem:[%s1169_s17 + $0x8] sm:$0xff] %v904_v47   ;;  %940 = vst [vmem:[%s1169_s17 + $0x28] sm:$0xff] %v924_v48   ;;  %v628_v54 = vsel %vm596_vm6, %v580_v39, %v612_v49  ;;  %v982_v56 = vpop.f32.mrf.mxu0  ;;  %v990_v57 = vpop.f32.mrf.mxu1  ;;  %vm601_vm8 = vcmp.ge.f32.partialorder %v585_v45, 0.0  ;;  %v617_v63 = vmul.f32 0.1, %v585_v45  ;;  %vm609_vm9 = vcmp.ge.f32.partialorder %v593_v46, 0.0 }
  0xfa   : > { %v899_v59 = vpack.c.bf16 %v628_v54, %v627_v53  ;;  %v636_v60 = vsel %vm604_vm7, %v588_v40, %v620_v52  ;;  %v625_v2 = vmul.f32 0.1, %v593_v46  ;;  %vm599_vm10 = vcmp.ge.f32.partialorder %v583_v55, 0.0 }
  0xfb   : > { %v919_v62 = vpack.c.bf16 %v636_v60, %v635_v58  ;;  %v477_v0 = vpop.f32.mrf.mxu0  ;;  %v509_v1 = vpop.f32.mrf.mxu1  ;;  %v586_v3 = vadd.f32 %v982_v56, %v1154_v16  ;;  %v594_v4 = vadd.f32 %v990_v57, %v1154_v16  ;;  %v615_v5 = vmul.f32 0.1, %v583_v55 }
  0xfc   : > { %900 = vst [vmem:[%s1169_s17] sm:$0xff] %v899_v59   ;;  %vm607_vm11 = vcmp.ge.f32.partialorder %v591_v61, 0.0  ;;  %v584_v6 = vadd.f32 %v1154_v16, %v477_v0  ;;  %v592_v7 = vadd.f32 %v1154_v16, %v509_v1  ;;  %v623_v8 = vmul.f32 0.1, %v591_v61 }
  0xfd   : > { %939 = vst [vmem:[%s1169_s17 + $0x20] sm:$0xff] %v919_v62   ;;  %vm602_vm12 = vcmp.ge.f32.partialorder %v586_v3, 0.0  ;;  %v618_v9 = vmul.f32 0.1, %v586_v3  ;;  %vm610_vm13 = vcmp.ge.f32.partialorder %v594_v4, 0.0  ;;  %v633_v12 = vsel %vm601_vm8, %v585_v45, %v617_v63 }
  0xfe   : > { %v626_v10 = vmul.f32 0.1, %v594_v4  ;;  %vm600_vm14 = vcmp.ge.f32.partialorder %v584_v6, 0.0  ;;  %v616_v11 = vmul.f32 0.1, %v584_v6  ;;  %vm608_vm15 = vcmp.ge.f32.partialorder %v592_v7, 0.0 }
  0xff   : > { %v641_v13 = vsel %vm609_vm9, %v593_v46, %v625_v2  ;;  %v634_v14 = vsel %vm602_vm12, %v586_v3, %v618_v9  ;;  %v624_v15 = vmul.f32 0.1, %v592_v7  ;;  %v631_v16 = vsel %vm599_vm10, %v583_v55, %v615_v5 }
 0x100   : > { %v914_v17 = vpack.c.bf16 %v634_v14, %v633_v12  ;;  %v642_v18 = vsel %vm610_vm13, %v594_v4, %v626_v10  ;;  %v632_v19 = vsel %vm600_vm14, %v584_v6, %v616_v11  ;;  %v639_v20 = vsel %vm607_vm11, %v591_v61, %v623_v8 }
 0x101   : > { %v934_v21 = vpack.c.bf16 %v642_v18, %v641_v13  ;;  %v909_v22 = vpack.c.bf16 %v632_v19, %v631_v16  ;;  %v640_v23 = vsel %vm608_vm15, %v592_v7, %v624_v15 }
 0x102   : > { %938 = vst [vmem:[%s1169_s17 + $0x18] sm:$0xff] %v914_v17   ;;  %v929_v24 = vpack.c.bf16 %v640_v23, %v639_v20 }
 0x103   : > { %942 = vst [vmem:[%s1169_s17 + $0x38] sm:$0xff] %v934_v21   ;;  %937 = vst [vmem:[%s1169_s17 + $0x10] sm:$0xff] %v909_v22  }
 0x104   : > { %941 = vst [vmem:[%s1169_s17 + $0x30] sm:$0xff] %v929_v24  }
 0x105 PF: > { %s13_s14 = sadd.s32 1, %s1069_s14   ;;  %s1206_s12 = smov %s1065_s13 }
 0x106   : > { %p10_p5 = scmp.ge.s32.totalorder %s13_s14, 6   ;;  %s1207_s13 = smov %s1209_s15 }
 0x108   :  { %12 = sbr.rel (!%p10_p5) target bundleno = 2 (0x2), region = 76 }

// kernel: forward.22
= control target key start
LH: loop header
LB: loop body
LE: loop exit
PB: predicated region body
PF: predicated region fallthrough
CT: control target
= control target key end

     0   :  { %s1800_s12 = smov 0   ;;  %s1802_s13 = smov 0   ;;  %s2048_s0 = inlined_call_operand.vmem [shape: bf16[128,1024], index: 0, kind: input, shape index: {}]   ;;  %s2049_s1 = inlined_call_operand.vmem [shape: bf16[1024,128], index: 1, kind: input, shape index: {}]   ;;  %s2050_s2 = inlined_call_operand.vmem [shape: f32[1,128], index: 2, kind: input, shape index: {}]   ;;  %s2051_s3 = inlined_call_operand.vmem [shape: bf16[128,128], index: 3, kind: output, shape index: {}]  }
   0x1   :  { %s1804_s14 = smov 0   ;;  %s1806_s15 = smov 0  }
   0x2   :  { %s1808_s16 = smov 0  }
   0x3 LB: > { %s25_s17 = sadd.s32 1, %s1773_s15  ;;  %p48_p1 = scmp.ne.s32.totalorder %s1765_s13, %s1761_s12  ;;  %s1777_s16 = sphi %s1808_s16, %s13_s16   ;;  %s1773_s15 = sphi %s1806_s15, %s2055_s15   ;;  %s1769_s14 = sphi %s1804_s14, %s2054_s14   ;;  %s1765_s13 = sphi %s1802_s13, %s2053_s13   ;;  %s1761_s12 = sphi %s1800_s12, %s2052_s12  }
   0x4   : > { %p26_p0 = scmp.ge.s32.totalorder %s25_s17, 2  ;;  %p49_p2 = scmp.eq.s32.totalorder %s1777_s16, 0 }
   0x5   : > { %s41_s19 = sadd.s32 1, %s1765_s13  ;;  %p1331_p5 = scmp.ge.s32.totalorder %s1777_s16, 2 }
   0x6   : > { %s2057_s17 = smov (%p26_p0, %s25_s17), 0  ;;  %p50_p3 = por %p49_p2, %p48_p1 }
   0x7   : > { %s37_s18 = ssub.s32 %s1773_s15, %s2057_s17  ;;  %162 = sbr.rel (%p1331_p5) target bundleno = 32 (0x20), region = 20 }
   0x8   : > { %p39_p4 = scmp.eq.s32.totalorder %s37_s18, 0 }
   0xa   : > { %s1835_s20 = scalar_select %p39_p4, %s1765_s13, %s41_s19  }
   0xc   : > { %165 = sbr.rel (!%p50_p3) target bundleno = 32 (0x20), region = 24  ;;  %s167_s21 = sand.u32 (%p50_p3), 1, %s1765_s13  }
   0xd   : > { %s1426_s22 = sshll.u32 (%p50_p3), %s1773_s15, 4  ;;  %s1332_s23 = sshll.u32 (%p50_p3), %s167_s21, 8 }
   0xe   : > { %s1843_s26 = scalar_lea.vmem (%p50_p3), %s2048_s0, %s1426_s22  ;;  %s1848_s27 = scalar_lea.vmem (%p50_p3), [#allocation3], %s1332_s23 }
   0xf   : > { %v188_v0 = vld [vmem:[%s1843_s26] sm:$0xff] (%p50_p3)  ;;  %v190_v1 = vld [vmem:[%s1843_s26 + $0x8] sm:$0xff] (%p50_p3) }
  0x10   : > { %v192_v2 = vld [vmem:[%s1843_s26 + $0x20] sm:$0xff] (%p50_p3)  ;;  %189 = vst [vmem:[%s1848_s27] sm:$0xff] (%p50_p3), %v188_v0  ;;  %191 = vst [vmem:[%s1848_s27 + $0x8] sm:$0xff] (%p50_p3), %v190_v1  ;;  %v194_v3 = vld [vmem:[%s1843_s26 + $0x28] sm:$0xff] (%p50_p3) }
  0x11   : > { %193 = vst [vmem:[%s1848_s27 + $0x10] sm:$0xff] %v192_v2  ;;  %v196_v4 = vld [vmem:[%s1843_s26 + $0x40] sm:$0xff]  ;;  %v198_v5 = vld [vmem:[%s1843_s26 + $0x48] sm:$0xff]  ;;  %195 = vst [vmem:[%s1848_s27 + $0x18] sm:$0xff] %v194_v3 }
  0x12   : > { %197 = vst [vmem:[%s1848_s27 + $0x20] sm:$0xff] %v196_v4  ;;  %199 = vst [vmem:[%s1848_s27 + $0x28] sm:$0xff] %v198_v5  ;;  %v200_v6 = vld [vmem:[%s1843_s26 + $0x60] sm:$0xff]  ;;  %v202_v7 = vld [vmem:[%s1843_s26 + $0x68] sm:$0xff] }
  0x13   : > { %v204_v8 = vld [vmem:[%s1843_s26 + $0x80] sm:$0xff]  ;;  %201 = vst [vmem:[%s1848_s27 + $0x30] sm:$0xff] %v200_v6  ;;  %203 = vst [vmem:[%s1848_s27 + $0x38] sm:$0xff] %v202_v7  ;;  %v206_v9 = vld [vmem:[%s1843_s26 + $0x88] sm:$0xff] }
  0x14   : > { %205 = vst [vmem:[%s1848_s27 + $0x40] sm:$0xff] %v204_v8  ;;  %v208_v10 = vld [vmem:[%s1843_s26 + $0xa0] sm:$0xff]  ;;  %v210_v11 = vld [vmem:[%s1843_s26 + $0xa8] sm:$0xff]  ;;  %207 = vst [vmem:[%s1848_s27 + $0x48] sm:$0xff] %v206_v9 }
  0x15   : > { %209 = vst [vmem:[%s1848_s27 + $0x50] sm:$0xff] %v208_v10  ;;  %211 = vst [vmem:[%s1848_s27 + $0x58] sm:$0xff] %v210_v11  ;;  %v212_v12 = vld [vmem:[%s1843_s26 + $0xc0] sm:$0xff]  ;;  %v214_v13 = vld [vmem:[%s1843_s26 + $0xc8] sm:$0xff] }
  0x16   : > { %v216_v14 = vld [vmem:[%s1843_s26 + $0xe0] sm:$0xff]  ;;  %213 = vst [vmem:[%s1848_s27 + $0x60] sm:$0xff] %v212_v12  ;;  %215 = vst [vmem:[%s1848_s27 + $0x68] sm:$0xff] %v214_v13  ;;  %v218_v15 = vld [vmem:[%s1843_s26 + $0xe8] sm:$0xff] }
  0x17   : > { %217 = vst [vmem:[%s1848_s27 + $0x70] sm:$0xff] %v216_v14  ;;  %v220_v16 = vld [vmem:[%s1843_s26 + $0x100] sm:$0xff]  ;;  %v222_v17 = vld [vmem:[%s1843_s26 + $0x108] sm:$0xff]  ;;  %219 = vst [vmem:[%s1848_s27 + $0x78] sm:$0xff] %v218_v15 }
  0x18   : > { %221 = vst [vmem:[%s1848_s27 + $0x80] sm:$0xff] %v220_v16  ;;  %223 = vst [vmem:[%s1848_s27 + $0x88] sm:$0xff] %v222_v17  ;;  %v224_v18 = vld [vmem:[%s1843_s26 + $0x120] sm:$0xff]  ;;  %v226_v19 = vld [vmem:[%s1843_s26 + $0x128] sm:$0xff] }
  0x19   : > { %v228_v20 = vld [vmem:[%s1843_s26 + $0x140] sm:$0xff]  ;;  %225 = vst [vmem:[%s1848_s27 + $0x90] sm:$0xff] %v224_v18  ;;  %227 = vst [vmem:[%s1848_s27 + $0x98] sm:$0xff] %v226_v19  ;;  %v230_v21 = vld [vmem:[%s1843_s26 + $0x148] sm:$0xff] }
  0x1a   : > { %229 = vst [vmem:[%s1848_s27 + $0xa0] sm:$0xff] %v228_v20  ;;  %v232_v22 = vld [vmem:[%s1843_s26 + $0x160] sm:$0xff]  ;;  %v234_v23 = vld [vmem:[%s1843_s26 + $0x168] sm:$0xff]  ;;  %231 = vst [vmem:[%s1848_s27 + $0xa8] sm:$0xff] %v230_v21 }
  0x1b   : > { %233 = vst [vmem:[%s1848_s27 + $0xb0] sm:$0xff] %v232_v22  ;;  %235 = vst [vmem:[%s1848_s27 + $0xb8] sm:$0xff] %v234_v23  ;;  %v236_v24 = vld [vmem:[%s1843_s26 + $0x180] sm:$0xff]  ;;  %v238_v25 = vld [vmem:[%s1843_s26 + $0x188] sm:$0xff] }
  0x1c   : > { %v240_v26 = vld [vmem:[%s1843_s26 + $0x1a0] sm:$0xff]  ;;  %237 = vst [vmem:[%s1848_s27 + $0xc0] sm:$0xff] %v236_v24  ;;  %239 = vst [vmem:[%s1848_s27 + $0xc8] sm:$0xff] %v238_v25  ;;  %v242_v27 = vld [vmem:[%s1843_s26 + $0x1a8] sm:$0xff] }
  0x1d   : > { %241 = vst [vmem:[%s1848_s27 + $0xd0] sm:$0xff] %v240_v26  ;;  %v244_v28 = vld [vmem:[%s1843_s26 + $0x1c0] sm:$0xff]  ;;  %v246_v29 = vld [vmem:[%s1843_s26 + $0x1c8] sm:$0xff]  ;;  %243 = vst [vmem:[%s1848_s27 + $0xd8] sm:$0xff] %v242_v27 }
  0x1e   : > { %245 = vst [vmem:[%s1848_s27 + $0xe0] sm:$0xff] %v244_v28  ;;  %247 = vst [vmem:[%s1848_s27 + $0xe8] sm:$0xff] %v246_v29  ;;  %v248_v30 = vld [vmem:[%s1843_s26 + $0x1e0] sm:$0xff]  ;;  %v250_v31 = vld [vmem:[%s1843_s26 + $0x1e8] sm:$0xff] }
  0x1f   : > { %249 = vst [vmem:[%s1848_s27 + $0xf0] sm:$0xff] %v248_v30  ;;  %251 = vst [vmem:[%s1848_s27 + $0xf8] sm:$0xff] %v250_v31 }
  0x20 PF: > { %p1335_p6 = scmp.ge.s32.totalorder %s1777_s16, 1  ;;  %p268_p7 = scmp.lt.s32.totalorder %s1777_s16, 3 }
  0x22   : > { %p269_p8 = pnand %p1335_p6, %p268_p7 }
  0x23   : > { %s275_s28 = sand.u32 (!%p269_p8), 1, %s1761_s12   ;;  %s1337_s29 = sshll.u32 (!%p269_p8), %s1769_s14, 6 }
  0x24   : > { %272 = sbr.rel (%p269_p8) target bundleno = 376 (0x178), region = 51  ;;  %s1336_s30 = sshll.u32 (!%p269_p8), %s275_s28, 8 }
  0x25   : > { %p315_p9 = scmp.lt.s32.totalorder (!%p269_p8), %s1337_s29, 127  ;;  %s1920_s8 = scalar_lea.vmem (!%p269_p8), [#allocation3], %s1336_s30 }
  0x26   : > { %p1339_p10 = scmp.ne.s32.totalorder (!%p269_p8), %s1769_s14, 0 }
  0x29   : > { %s2059_s29 = smov (!%p315_p9, %s1337_s29), 127  ;;  %339 = sbr.rel (%p1339_p10) target bundleno = 55 (0x37), region = 59 }
  0x2a   : > { %s1338_s4 = sshll.u32 %s2059_s29, 2 }
  0x2b   : > { %s1918_s7 = scalar_lea.vmem %s2049_s1, %s1338_s4 }
  0x2e   : > { %v1779_v32 = vmov 0.0  }
  0x2f   : > { %340 = vst [vmem:[#allocation2 + $0x30] sm:$0xff] %v1779_v32  ;;  %341 = vst [vmem:[#allocation2] sm:$0xff] %v1779_v32 }
  0x30   : > { %342 = vst [vmem:[#allocation2 + $0x58] sm:$0xff] %v1779_v32  ;;  %343 = vst [vmem:[#allocation2 + $0x18] sm:$0xff] %v1779_v32 }
  0x31   : > { %344 = vst [vmem:[#allocation2 + $0x50] sm:$0xff] %v1779_v32  ;;  %345 = vst [vmem:[#allocation2 + $0x68] sm:$0xff] %v1779_v32 }
  0x32   : > { %346 = vst [vmem:[#allocation2 + $0x8] sm:$0xff] %v1779_v32  ;;  %347 = vst [vmem:[#allocation2 + $0x48] sm:$0xff] %v1779_v32 }
  0x33   : > { %348 = vst [vmem:[#allocation2 + $0x40] sm:$0xff] %v1779_v32  ;;  %349 = vst [vmem:[#allocation2 + $0x20] sm:$0xff] %v1779_v32 }
  0x34   : > { %350 = vst [vmem:[#allocation2 + $0x10] sm:$0xff] %v1779_v32  ;;  %351 = vst [vmem:[#allocation2 + $0x38] sm:$0xff] %v1779_v32 }
  0x35   : > { %352 = vst [vmem:[#allocation2 + $0x60] sm:$0xff] %v1779_v32  ;;  %353 = vst [vmem:[#allocation2 + $0x70] sm:$0xff] %v1779_v32 }
  0x36   : > { %354 = vst [vmem:[#allocation2 + $0x78] sm:$0xff] %v1779_v32  ;;  %355 = vst [vmem:[#allocation2 + $0x28] sm:$0xff] %v1779_v32 }
  0x37 PF: > { %v1659_v33 = vld [vmem:[%s1918_s7 + $0x78] sm:$0xff]   ;;  %v1663_v37 = vld [vmem:[%s1918_s7 + $0x70] sm:$0xff]   ;;  %v1667_v41 = vld [vmem:[%s1918_s7 + $0x68] sm:$0xff]   ;;  %p1404_p11 = scmp.ne.s32.totalorder %s1769_s14, 1 }
  0x38   : > { %v1660_v34 = vld [vmem:[%s1918_s7 + $0xf8] sm:$0xff]   ;;  %1490 = vmatprep.subr.bf16.mxu0 %v1659_v33  ;;  %v1664_v38 = vld [vmem:[%s1918_s7 + $0xf0] sm:$0xff]   ;;  %v1668_v42 = vld [vmem:[%s1918_s7 + $0xe8] sm:$0xff]  }
  0x39   : > { %v1661_v35 = vld [vmem:[%s1918_s7 + $0x38] sm:$0xff]   ;;  %1554 = vmatprep.subr.bf16.mxu1 %v1660_v34  ;;  %v1665_v39 = vld [vmem:[%s1918_s7 + $0x30] sm:$0xff]   ;;  %v1669_v43 = vld [vmem:[%s1918_s7 + $0x28] sm:$0xff]  }
  0x3a   : > { %v1662_v36 = vld [vmem:[%s1918_s7 + $0xb8] sm:$0xff]   ;;  %1491 = vmatpush3.bf16.msra.mxu0 %v1661_v35  ;;  %v1666_v40 = vld [vmem:[%s1918_s7 + $0xb0] sm:$0xff]   ;;  %v1670_v44 = vld [vmem:[%s1918_s7 + $0xa8] sm:$0xff]  }
  0x3b   : > { %1555 = vmatpush3.bf16.msra.mxu1 %v1662_v36  ;;  %1492 = vmatprep.subr.bf16.mxu0 %v1663_v37  ;;  %v1671_v45 = vld [vmem:[%s1918_s7 + $0x60] sm:$0xff]   ;;  %v1675_v49 = vld [vmem:[%s1918_s7 + $0x58] sm:$0xff]   ;;  %v1679_v53 = vld [vmem:[%s1918_s7 + $0x50] sm:$0xff]  }
  0x3c   : > { %1556 = vmatprep.subr.bf16.mxu1 %v1664_v38  ;;  %v1672_v46 = vld [vmem:[%s1918_s7 + $0xe0] sm:$0xff]   ;;  %v1676_v50 = vld [vmem:[%s1918_s7 + $0xd8] sm:$0xff]   ;;  %v1680_v54 = vld [vmem:[%s1918_s7 + $0xd0] sm:$0xff]  }
  0x3d   : > { %v1673_v47 = vld [vmem:[%s1918_s7 + $0x20] sm:$0xff]   ;;  %v1677_v51 = vld [vmem:[%s1918_s7 + $0x18] sm:$0xff]   ;;  %v1681_v55 = vld [vmem:[%s1918_s7 + $0x10] sm:$0xff]  }
  0x3e   : > { %1493 = vmatpush3.bf16.msra.mxu0 %v1665_v39  ;;  %v1674_v48 = vld [vmem:[%s1918_s7 + $0xa0] sm:$0xff]   ;;  %v1678_v52 = vld [vmem:[%s1918_s7 + $0x98] sm:$0xff]   ;;  %v1682_v56 = vld [vmem:[%s1918_s7 + $0x90] sm:$0xff]  }
  0x3f   : > { %1557 = vmatpush3.bf16.msra.mxu1 %v1666_v40  ;;  %1494 = vmatprep.subr.bf16.mxu0 %v1667_v41  ;;  %v1683_v57 = vld [vmem:[%s1918_s7 + $0x48] sm:$0xff]   ;;  %v1687_v61 = vld [vmem:[%s1918_s7 + $0x40] sm:$0xff]   ;;  %v356_v40 = vld [vmem:[#allocation2 + $0x30] sm:$0xff] }
  0x40   : > { %1558 = vmatprep.subr.bf16.mxu1 %v1668_v42  ;;  %v1684_v58 = vld [vmem:[%s1918_s7 + $0xc8] sm:$0xff]   ;;  %v1688_v62 = vld [vmem:[%s1918_s7 + $0xc0] sm:$0xff]  }
  0x41   : > { %v1685_v59 = vld [vmem:[%s1918_s7 + $0x8] sm:$0xff]   ;;  %v1689_v63 = vld [vmem:[%s1918_s7] sm:$0xff]  }
  0x42   : > { %1495 = vmatpush3.bf16.msra.mxu0 %v1669_v43  ;;  %v1686_v60 = vld [vmem:[%s1918_s7 + $0x88] sm:$0xff]   ;;  %v1690_v0 = vld [vmem:[%s1918_s7 + $0x80] sm:$0xff]  }
  0x43   : > { %1559 = vmatpush3.bf16.msra.mxu1 %v1670_v44  ;;  %1496 = vmatprep.subr.bf16.mxu0 %v1671_v45  ;;  %v1691_v1 = vld [vmem:[%s1920_s8] ss:$16 sps:$4 sm:$0xff]   ;;  %v1693_v2 = vld [vmem:[%s1920_s8 + $0x4] ss:$16 sps:$4 sm:$0xff]   ;;  %v1694_v3 = vld [vmem:[%s1920_s8 + $0x8] ss:$16 sps:$4 sm:$0xff]  }
  0x44   : > { %1560 = vmatprep.subr.bf16.mxu1 %v1672_v46  ;;  %v1696_v4 = vld [vmem:[%s1920_s8 + $0xc] ss:$16 sps:$4 sm:$0xff]   ;;  %852 = vmatprep.mubr.bf16.mxu0 %v1693_v2  ;;  %v1697_v5 = vld [vmem:[%s1920_s8 + $0x24] ss:$16 sps:$4 sm:$0xff]   ;;  %v1701_v7 = vld [vmem:[%s1920_s8 + $0x20] ss:$16 sps:$4 sm:$0xff]  }
  0x45   : > { %949 = vmatprep.mubr.bf16.mxu1 %v1696_v4  ;;  %v1699_v6 = vld [vmem:[%s1920_s8 + $0x2c] ss:$16 sps:$4 sm:$0xff]   ;;  %v1702_v8 = vld [vmem:[%s1920_s8 + $0x28] ss:$16 sps:$4 sm:$0xff]   ;;  %v1703_v9 = vld [vmem:[%s1920_s8 + $0x44] ss:$16 sps:$4 sm:$0xff]  }
  0x46   : > { %1497 = vmatpush3.bf16.msra.mxu0 %v1673_v47  ;;  %v1705_v10 = vld [vmem:[%s1920_s8 + $0x4c] ss:$16 sps:$4 sm:$0xff]   ;;  %v1707_v11 = vld [vmem:[%s1920_s8 + $0x40] ss:$16 sps:$4 sm:$0xff]   ;;  %v1708_v12 = vld [vmem:[%s1920_s8 + $0x48] ss:$16 sps:$4 sm:$0xff]  }
  0x47   : > { %1561 = vmatpush3.bf16.msra.mxu1 %v1674_v48  ;;  %1498 = vmatprep.subr.bf16.mxu0 %v1675_v49  ;;  %v1709_v13 = vld [vmem:[%s1920_s8 + $0x64] ss:$16 sps:$4 sm:$0xff]   ;;  %v1711_v14 = vld [vmem:[%s1920_s8 + $0x6c] ss:$16 sps:$4 sm:$0xff]   ;;  %v1713_v15 = vld [vmem:[%s1920_s8 + $0x60] ss:$16 sps:$4 sm:$0xff]  }
  0x48   : > { %1562 = vmatprep.subr.bf16.mxu1 %v1676_v50  ;;  %v1714_v16 = vld [vmem:[%s1920_s8 + $0x68] ss:$16 sps:$4 sm:$0xff]   ;;  %v1715_v17 = vld [vmem:[%s1920_s8 + $0x84] ss:$16 sps:$4 sm:$0xff]   ;;  %v1717_v18 = vld [vmem:[%s1920_s8 + $0x8c] ss:$16 sps:$4 sm:$0xff]  }
  0x49   : > { %v1719_v19 = vld [vmem:[%s1920_s8 + $0x80] ss:$16 sps:$4 sm:$0xff]   ;;  %v1720_v20 = vld [vmem:[%s1920_s8 + $0x88] ss:$16 sps:$4 sm:$0xff]   ;;  %v1721_v21 = vld [vmem:[%s1920_s8 + $0xa4] ss:$16 sps:$4 sm:$0xff]  }
  0x4a   : > { %1499 = vmatpush3.bf16.msra.mxu0 %v1677_v51  ;;  %v1723_v22 = vld [vmem:[%s1920_s8 + $0xac] ss:$16 sps:$4 sm:$0xff]   ;;  %v1725_v23 = vld [vmem:[%s1920_s8 + $0xa0] ss:$16 sps:$4 sm:$0xff]   ;;  %v1726_v24 = vld [vmem:[%s1920_s8 + $0xa8] ss:$16 sps:$4 sm:$0xff]  }
  0x4b   : > { %1563 = vmatpush3.bf16.msra.mxu1 %v1678_v52  ;;  %1500 = vmatprep.subr.bf16.mxu0 %v1679_v53  ;;  %v1727_v25 = vld [vmem:[%s1920_s8 + $0xc4] ss:$16 sps:$4 sm:$0xff]   ;;  %v1729_v26 = vld [vmem:[%s1920_s8 + $0xcc] ss:$16 sps:$4 sm:$0xff]   ;;  %v1731_v27 = vld [vmem:[%s1920_s8 + $0xc0] ss:$16 sps:$4 sm:$0xff]  }
  0x4c   : > { %1564 = vmatprep.subr.bf16.mxu1 %v1680_v54  ;;  %v1732_v28 = vld [vmem:[%s1920_s8 + $0xc8] ss:$16 sps:$4 sm:$0xff]   ;;  %v1733_v29 = vld [vmem:[%s1920_s8 + $0xe4] ss:$16 sps:$4 sm:$0xff]   ;;  %v1735_v30 = vld [vmem:[%s1920_s8 + $0xec] ss:$16 sps:$4 sm:$0xff]  }
  0x4d   : > { %v1737_v31 = vld [vmem:[%s1920_s8 + $0xe0] ss:$16 sps:$4 sm:$0xff]   ;;  %v1738_v32 = vld [vmem:[%s1920_s8 + $0xe8] ss:$16 sps:$4 sm:$0xff]  }
  0x4e   : > { %1501 = vmatpush3.bf16.msra.mxu0 %v1681_v55  ;;  %v357_v49 = vld [vmem:[#allocation2] sm:$0xff] }
  0x4f   : > { %1565 = vmatpush3.bf16.msra.mxu1 %v1682_v56  ;;  %1502 = vmatprep.subr.bf16.mxu0 %v1683_v57 }
  0x50   : > { %1566 = vmatprep.subr.bf16.mxu1 %v1684_v58  ;;  %v358_v58 = vld [vmem:[#allocation2 + $0x58] sm:$0xff] }
  0x52   : > { %1503 = vmatpush3.bf16.msra.mxu0 %v1685_v59 }
  0x53   : > { %1567 = vmatpush3.bf16.msra.mxu1 %v1686_v60  ;;  %1504 = vmatprep.subr.bf16.mxu0 %v1687_v61 }
  0x54   : > { %1568 = vmatprep.subr.bf16.mxu1 %v1688_v62 }
  0x56   : > { %1505 = vmatpush3.bf16.msra.mxu0 %v1689_v63 }
  0x57   : > { %1569 = vmatpush3.bf16.msra.mxu1 %v1690_v0 }
  0x59   : > { %853 = vmatmul.mubr.bf16.vlgmr.msra.gmra.mxu0 %v1691_v1 }
  0x5a   : > { %950 = vmatmul.mubr.bf16.vlgmr.msra.gmra.mxu1 %v1694_v3  ;;  %860 = vmatprep.mubr.bf16.mxu0 %v1697_v5  ;;  %v359_v3 = vld [vmem:[#allocation2 + $0x18] sm:$0xff] }
  0x5b   : > { %957 = vmatprep.mubr.bf16.mxu1 %v1699_v6 }
  0x61   : > { %861 = vmatmul.mubr.bf16.gmra.mxu0 %v1701_v7 }
  0x62   : > { %958 = vmatmul.mubr.bf16.gmra.mxu1 %v1702_v8  ;;  %868 = vmatprep.mubr.bf16.mxu0 %v1703_v9 }
  0x63   : > { %965 = vmatprep.mubr.bf16.mxu1 %v1705_v10 }
  0x69   : > { %869 = vmatmul.mubr.bf16.gmra.mxu0 %v1707_v11 }
  0x6a   : > { %966 = vmatmul.mubr.bf16.gmra.mxu1 %v1708_v12  ;;  %876 = vmatprep.mubr.bf16.mxu0 %v1709_v13  ;;  %v360_v12 = vld [vmem:[#allocation2 + $0x50] sm:$0xff] }
  0x6b   : > { %973 = vmatprep.mubr.bf16.mxu1 %v1711_v14 }
  0x71   : > { %877 = vmatmul.mubr.bf16.gmra.mxu0 %v1713_v15 }
  0x72   : > { %974 = vmatmul.mubr.bf16.gmra.mxu1 %v1714_v16  ;;  %884 = vmatprep.mubr.bf16.mxu0 %v1715_v17 }
  0x73   : > { %981 = vmatprep.mubr.bf16.mxu1 %v1717_v18 }
  0x79   : > { %885 = vmatmul.mubr.bf16.gmra.mxu0 %v1719_v19 }
  0x7a   : > { %982 = vmatmul.mubr.bf16.gmra.mxu1 %v1720_v20  ;;  %892 = vmatprep.mubr.bf16.mxu0 %v1721_v21  ;;  %v361_v21 = vld [vmem:[#allocation2 + $0x68] sm:$0xff] }
  0x7b   : > { %989 = vmatprep.mubr.bf16.mxu1 %v1723_v22 }
  0x81   : > { %893 = vmatmul.mubr.bf16.gmra.mxu0 %v1725_v23 }
  0x82   : > { %990 = vmatmul.mubr.bf16.gmra.mxu1 %v1726_v24  ;;  %900 = vmatprep.mubr.bf16.mxu0 %v1727_v25 }
  0x83   : > { %997 = vmatprep.mubr.bf16.mxu1 %v1729_v26 }
  0x89   : > { %901 = vmatmul.mubr.bf16.gmra.mxu0 %v1731_v27 }
  0x8a   : > { %998 = vmatmul.mubr.bf16.gmra.mxu1 %v1732_v28  ;;  %908 = vmatprep.mubr.bf16.mxu0 %v1733_v29 }
  0x8b   : > { %1005 = vmatprep.mubr.bf16.mxu1 %v1735_v30  ;;  %v362_v30 = vld [vmem:[#allocation2 + $0x8] sm:$0xff] }
  0x91   : > { %909 = vmatmul.mubr.bf16.gmra.mxu0 %v1737_v31 }
  0x92   : > { %1006 = vmatmul.mubr.bf16.gmra.mxu1 %v1738_v32 }
 0x119   : > { %v1506_v33 = vpop.f32.mrf.mxu0 }
 0x11a   : > { %v1570_v34 = vpop.f32.mrf.mxu1 }
 0x11b   : > { %v1507_v35 = vpop.f32.mrf.mxu0 }
 0x11c   : > { %v1508_v36 = vadd.f32 %v1507_v35, %v1506_v33  ;;  %v1571_v37 = vpop.f32.mrf.mxu1 }
 0x11d   : > { %v1572_v38 = vadd.f32 %v1571_v37, %v1570_v34  ;;  %v1509_v39 = vpop.f32.mrf.mxu0 }
 0x11e   : > { %v1573_v41 = vpop.f32.mrf.mxu1 }
 0x11f   : > { %v952_v42 = vadd.f32 %v1572_v38, %v1508_v36  ;;  %v1510_v43 = vpop.f32.mrf.mxu0 }
 0x120   : > { %v1511_v44 = vadd.f32 %v1510_v43, %v1509_v39  ;;  %v1574_v45 = vpop.f32.mrf.mxu1  ;;  %v363_v39 = vld [vmem:[#allocation2 + $0x48] sm:$0xff] }
 0x121   : > { %v1014_v46 = vadd.f32 %v952_v42, %v356_v40  ;;  %v1575_v47 = vadd.f32 %v1574_v45, %v1573_v41  ;;  %v1512_v48 = vpop.f32.mrf.mxu0 }
 0x122   : > { %v1576_v50 = vpop.f32.mrf.mxu1 }
 0x123   : > { %1030 = vst [vmem:[#allocation2 + $0x30] sm:$0xff] %v1014_v46  ;;  %v955_v51 = vadd.f32 %v1575_v47, %v1511_v44  ;;  %v1513_v52 = vpop.f32.mrf.mxu0 }
 0x124   : > { %v1514_v53 = vadd.f32 %v1513_v52, %v1512_v48  ;;  %v1577_v54 = vpop.f32.mrf.mxu1  ;;  %v364_v48 = vld [vmem:[#allocation2 + $0x40] sm:$0xff] }
 0x125   : > { %v1015_v55 = vadd.f32 %v955_v51, %v357_v49  ;;  %v1578_v56 = vadd.f32 %v1577_v54, %v1576_v50  ;;  %v1515_v57 = vpop.f32.mrf.mxu0 }
 0x126   : > { %v1579_v59 = vpop.f32.mrf.mxu1 }
 0x127   : > { %1031 = vst [vmem:[#allocation2] sm:$0xff] %v1015_v55  ;;  %v960_v60 = vadd.f32 %v1578_v56, %v1514_v53  ;;  %v1516_v61 = vpop.f32.mrf.mxu0 }
 0x128   : > { %v1517_v62 = vadd.f32 %v1516_v61, %v1515_v57  ;;  %v1580_v63 = vpop.f32.mrf.mxu1  ;;  %v365_v57 = vld [vmem:[#allocation2 + $0x20] sm:$0xff] }
 0x129   : > { %v1016_v0 = vadd.f32 %v960_v60, %v358_v58  ;;  %v1581_v1 = vadd.f32 %v1580_v63, %v1579_v59  ;;  %v1518_v2 = vpop.f32.mrf.mxu0 }
 0x12a   : > { %v1582_v4 = vpop.f32.mrf.mxu1 }
 0x12b   : > { %1032 = vst [vmem:[#allocation2 + $0x58] sm:$0xff] %v1016_v0  ;;  %v963_v5 = vadd.f32 %v1581_v1, %v1517_v62  ;;  %v1519_v6 = vpop.f32.mrf.mxu0 }
 0x12c   : > { %v1520_v7 = vadd.f32 %v1519_v6, %v1518_v2  ;;  %v1583_v8 = vpop.f32.mrf.mxu1  ;;  %v366_v2 = vld [vmem:[#allocation2 + $0x10] sm:$0xff] }
 0x12d   : > { %v1017_v9 = vadd.f32 %v963_v5, %v359_v3  ;;  %v1584_v10 = vadd.f32 %v1583_v8, %v1582_v4  ;;  %v1521_v11 = vpop.f32.mrf.mxu0 }
 0x12e   : > { %v1585_v13 = vpop.f32.mrf.mxu1 }
 0x12f   : > { %1033 = vst [vmem:[#allocation2 + $0x18] sm:$0xff] %v1017_v9  ;;  %v968_v14 = vadd.f32 %v1584_v10, %v1520_v7  ;;  %v1522_v15 = vpop.f32.mrf.mxu0 }
 0x130   : > { %v1523_v16 = vadd.f32 %v1522_v15, %v1521_v11  ;;  %v1586_v17 = vpop.f32.mrf.mxu1  ;;  %v367_v11 = vld [vmem:[#allocation2 + $0x38] sm:$0xff] }
 0x131   : > { %v1018_v18 = vadd.f32 %v968_v14, %v360_v12  ;;  %v1587_v19 = vadd.f32 %v1586_v17, %v1585_v13  ;;  %v1524_v20 = vpop.f32.mrf.mxu0 }
 0x132   : > { %v1588_v22 = vpop.f32.mrf.mxu1 }
 0x133   : > { %1034 = vst [vmem:[#allocation2 + $0x50] sm:$0xff] %v1018_v18  ;;  %v971_v23 = vadd.f32 %v1587_v19, %v1523_v16  ;;  %v1525_v24 = vpop.f32.mrf.mxu0 }
 0x134   : > { %v1526_v25 = vadd.f32 %v1525_v24, %v1524_v20  ;;  %v1589_v26 = vpop.f32.mrf.mxu1  ;;  %v368_v20 = vld [vmem:[#allocation2 + $0x60] sm:$0xff] }
 0x135   : > { %v1019_v27 = vadd.f32 %v971_v23, %v361_v21  ;;  %v1590_v28 = vadd.f32 %v1589_v26, %v1588_v22  ;;  %v1527_v29 = vpop.f32.mrf.mxu0 }
 0x136   : > { %v1591_v31 = vpop.f32.mrf.mxu1 }
 0x137   : > { %1035 = vst [vmem:[#allocation2 + $0x68] sm:$0xff] %v1019_v27  ;;  %v976_v32 = vadd.f32 %v1590_v28, %v1526_v25  ;;  %v1528_v33 = vpop.f32.mrf.mxu0 }
 0x138   : > { %v1529_v34 = vadd.f32 %v1528_v33, %v1527_v29  ;;  %v1592_v35 = vpop.f32.mrf.mxu1  ;;  %v369_v29 = vld [vmem:[#allocation2 + $0x70] sm:$0xff] }
 0x139   : > { %v1020_v36 = vadd.f32 %v976_v32, %v362_v30  ;;  %v1593_v37 = vadd.f32 %v1592_v35, %v1591_v31  ;;  %v1530_v38 = vpop.f32.mrf.mxu0 }
 0x13a   : > { %v1594_v40 = vpop.f32.mrf.mxu1 }
 0x13b   : > { %1036 = vst [vmem:[#allocation2 + $0x8] sm:$0xff] %v1020_v36  ;;  %v979_v41 = vadd.f32 %v1593_v37, %v1529_v34  ;;  %v1531_v42 = vpop.f32.mrf.mxu0 }
 0x13c   : > { %v1532_v43 = vadd.f32 %v1531_v42, %v1530_v38  ;;  %v1595_v44 = vpop.f32.mrf.mxu1  ;;  %v370_v38 = vld [vmem:[#allocation2 + $0x78] sm:$0xff] }
 0x13d   : > { %v1021_v45 = vadd.f32 %v979_v41, %v363_v39  ;;  %v1596_v46 = vadd.f32 %v1595_v44, %v1594_v40  ;;  %v1533_v47 = vpop.f32.mrf.mxu0 }
 0x13e   : > { %v1597_v49 = vpop.f32.mrf.mxu1 }
 0x13f   : > { %1037 = vst [vmem:[#allocation2 + $0x48] sm:$0xff] %v1021_v45  ;;  %v984_v50 = vadd.f32 %v1596_v46, %v1532_v43  ;;  %v1534_v51 = vpop.f32.mrf.mxu0  ;;  %v371_v46 = vld [vmem:[#allocation2 + $0x28] sm:$0xff] }
 0x140   : > { %v1535_v52 = vadd.f32 %v1534_v51, %v1533_v47  ;;  %v1598_v53 = vpop.f32.mrf.mxu1 }
 0x141   : > { %v1022_v54 = vadd.f32 %v984_v50, %v364_v48  ;;  %v1599_v55 = vadd.f32 %v1598_v53, %v1597_v49  ;;  %v1536_v56 = vpop.f32.mrf.mxu0 }
 0x142   : > { %v1600_v58 = vpop.f32.mrf.mxu1 }
 0x143   : > { %1038 = vst [vmem:[#allocation2 + $0x40] sm:$0xff] %v1022_v54  ;;  %v987_v59 = vadd.f32 %v1599_v55, %v1535_v52  ;;  %v1537_v60 = vpop.f32.mrf.mxu0 }
 0x144   : > { %v1538_v61 = vadd.f32 %v1537_v60, %v1536_v56  ;;  %v1601_v62 = vpop.f32.mrf.mxu1 }
 0x145   : > { %v1023_v63 = vadd.f32 %v987_v59, %v365_v57  ;;  %v1602_v0 = vadd.f32 %v1601_v62, %v1600_v58  ;;  %v1539_v1 = vpop.f32.mrf.mxu0 }
 0x146   : > { %v1603_v3 = vpop.f32.mrf.mxu1 }
 0x147   : > { %1039 = vst [vmem:[#allocation2 + $0x20] sm:$0xff] %v1023_v63  ;;  %v992_v4 = vadd.f32 %v1602_v0, %v1538_v61  ;;  %v1540_v5 = vpop.f32.mrf.mxu0 }
 0x148   : > { %v1541_v6 = vadd.f32 %v1540_v5, %v1539_v1  ;;  %v1604_v7 = vpop.f32.mrf.mxu1 }
 0x149   : > { %v1024_v8 = vadd.f32 %v992_v4, %v366_v2  ;;  %v1605_v9 = vadd.f32 %v1604_v7, %v1603_v3  ;;  %v1542_v10 = vpop.f32.mrf.mxu0 }
 0x14a   : > { %v1606_v12 = vpop.f32.mrf.mxu1 }
 0x14b   : > { %1040 = vst [vmem:[#allocation2 + $0x10] sm:$0xff] %v1024_v8  ;;  %v995_v13 = vadd.f32 %v1605_v9, %v1541_v6  ;;  %v1543_v14 = vpop.f32.mrf.mxu0 }
 0x14c   : > { %v1544_v15 = vadd.f32 %v1543_v14, %v1542_v10  ;;  %v1607_v16 = vpop.f32.mrf.mxu1 }
 0x14d   : > { %v1025_v17 = vadd.f32 %v995_v13, %v367_v11  ;;  %v1608_v18 = vadd.f32 %v1607_v16, %v1606_v12  ;;  %v1545_v19 = vpop.f32.mrf.mxu0 }
 0x14e   : > { %v1609_v21 = vpop.f32.mrf.mxu1 }
 0x14f   : > { %1041 = vst [vmem:[#allocation2 + $0x38] sm:$0xff] %v1025_v17  ;;  %v1000_v22 = vadd.f32 %v1608_v18, %v1544_v15  ;;  %v1546_v23 = vpop.f32.mrf.mxu0 }
 0x150   : > { %v1547_v24 = vadd.f32 %v1546_v23, %v1545_v19  ;;  %v1610_v25 = vpop.f32.mrf.mxu1 }
 0x151   : > { %v1026_v26 = vadd.f32 %v1000_v22, %v368_v20  ;;  %v1611_v27 = vadd.f32 %v1610_v25, %v1609_v21  ;;  %v1548_v28 = vpop.f32.mrf.mxu0 }
 0x152   : > { %v1612_v30 = vpop.f32.mrf.mxu1 }
 0x153   : > { %1042 = vst [vmem:[#allocation2 + $0x60] sm:$0xff] %v1026_v26  ;;  %v1003_v31 = vadd.f32 %v1611_v27, %v1547_v24  ;;  %v1549_v32 = vpop.f32.mrf.mxu0 }
 0x154   : > { %v1550_v33 = vadd.f32 %v1549_v32, %v1548_v28  ;;  %v1613_v34 = vpop.f32.mrf.mxu1 }
 0x155   : > { %v1027_v35 = vadd.f32 %v1003_v31, %v369_v29  ;;  %v1614_v36 = vadd.f32 %v1613_v34, %v1612_v30  ;;  %v1551_v37 = vpop.f32.mrf.mxu0 }
 0x156   : > { %v1615_v39 = vpop.f32.mrf.mxu1 }
 0x157   : > { %1043 = vst [vmem:[#allocation2 + $0x70] sm:$0xff] %v1027_v35  ;;  %v1008_v40 = vadd.f32 %v1614_v36, %v1550_v33  ;;  %v1552_v41 = vpop.f32.mrf.mxu0 }
 0x158   : > { %v1553_v42 = vadd.f32 %v1552_v41, %v1551_v37  ;;  %v1616_v43 = vpop.f32.mrf.mxu1 }
 0x159   : > { %v1028_v44 = vadd.f32 %v1008_v40, %v370_v38  ;;  %v1617_v45 = vadd.f32 %v1616_v43, %v1615_v39 }
 0x15b   : > { %1044 = vst [vmem:[#allocation2 + $0x78] sm:$0xff] %v1028_v44  ;;  %v1011_v47 = vadd.f32 %v1617_v45, %v1553_v42  ;;  %1049 = sbr.rel (%p1404_p11) target bundleno = 376 (0x178), region = 63 }
 0x15d   : > { %v1029_v48 = vadd.f32 %v1011_v47, %v371_v46 }
 0x15f   : > { %1045 = vst [vmem:[#allocation2 + $0x28] sm:$0xff] %v1029_v48 }
 0x160   : > { %v1050_v49 = vld [vmem:[#allocation2 + $0x30] sm:$0xff]  ;;  %v1051_v50 = vld [vmem:[#allocation2] sm:$0xff]  ;;  %v1052_v54 = vld [vmem:[#allocation2 + $0x58] sm:$0xff] }
 0x161   : > { %v1991_v51 = vld [vmem:[%s2050_s2] ss:$0 sm:$0xff]  ;;  %v1053_v55 = vld [vmem:[#allocation2 + $0x18] sm:$0xff]  ;;  %v1054_v56 = vld [vmem:[#allocation2 + $0x50] sm:$0xff] }
 0x162   : > { %v1073_v52 = vadd.f32 %v1991_v51, %v1050_v49  ;;  %v1074_v53 = vadd.f32 %v1991_v51, %v1051_v50  ;;  %v1075_v57 = vadd.f32 %v1991_v51, %v1052_v54  ;;  %v1076_v58 = vadd.f32 %v1991_v51, %v1053_v55  ;;  %v1055_v59 = vld [vmem:[#allocation2 + $0x68] sm:$0xff]  ;;  %v1058_v6 = vld [vmem:[#allocation2 + $0x40] sm:$0xff]  ;;  %v1060_v12 = vld [vmem:[#allocation2 + $0x10] sm:$0xff] }
 0x163   : > { %v1077_v60 = vadd.f32 %v1991_v51, %v1054_v56  ;;  %v1056_v61 = vld [vmem:[#allocation2 + $0x8] sm:$0xff]  ;;  %v1078_v4 = vadd.f32 %v1991_v51, %v1055_v59  ;;  %v1059_v7 = vld [vmem:[#allocation2 + $0x20] sm:$0xff]  ;;  %v1081_v18 = vadd.f32 %v1991_v51, %v1058_v6  ;;  %v1061_v22 = vld [vmem:[#allocation2 + $0x38] sm:$0xff]  ;;  %v1083_v23 = vadd.f32 %v1991_v51, %v1060_v12 }
 0x164   : > { %vm1089_vm0 = vcmp.ge.f32.partialorder %v1073_v52, 0.0  ;;  %vm1090_vm1 = vcmp.ge.f32.partialorder %v1074_v53, 0.0  ;;  %v1105_v62 = vmul.f32 0.1, %v1073_v52  ;;  %v1106_v63 = vmul.f32 0.1, %v1074_v53 }
 0x165   : > { %vm1091_vm2 = vcmp.ge.f32.partialorder %v1075_v57, 0.0  ;;  %vm1092_vm3 = vcmp.ge.f32.partialorder %v1076_v58, 0.0  ;;  %v1107_v0 = vmul.f32 0.1, %v1075_v57  ;;  %v1108_v1 = vmul.f32 0.1, %v1076_v58 }
 0x166   : > { %v1121_v2 = vsel %vm1089_vm0, %v1073_v52, %v1105_v62  ;;  %v1122_v3 = vsel %vm1090_vm1, %v1074_v53, %v1106_v63  ;;  %vm1093_vm4 = vcmp.ge.f32.partialorder %v1077_v60, 0.0  ;;  %v1057_v5 = vld [vmem:[#allocation2 + $0x48] sm:$0xff]  ;;  %v1109_v11 = vmul.f32 0.1, %v1077_v60  ;;  %v1062_v26 = vld [vmem:[#allocation2 + $0x60] sm:$0xff]  ;;  %v1063_v33 = vld [vmem:[#allocation2 + $0x70] sm:$0xff] }
 0x167   : > { %v1446_v8 = vpack.c.bf16 %v1122_v3, %v1121_v2  ;;  %v1123_v9 = vsel %vm1091_vm2, %v1075_v57, %v1107_v0  ;;  %v1124_v10 = vsel %vm1092_vm3, %v1076_v58, %v1108_v1  ;;  %vm1094_vm5 = vcmp.ge.f32.partialorder %v1078_v4, 0.0  ;;  %v1064_v34 = vld [vmem:[#allocation2 + $0x78] sm:$0xff]  ;;  %v1065_v39 = vld [vmem:[#allocation2 + $0x28] sm:$0xff] }
 0x168   : > { %v1451_v13 = vpack.c.bf16 %v1124_v10, %v1123_v9  ;;  %v1110_v14 = vmul.f32 0.1, %v1078_v4  ;;  %v1079_v15 = vadd.f32 %v1991_v51, %v1056_v61  ;;  %v1125_v16 = vsel %vm1093_vm4, %v1077_v60, %v1109_v11 }
 0x169   : > { %1447 = vst [vmem:[%s2051_s3] sm:$0xff] %v1446_v8   ;;  %v1080_v17 = vadd.f32 %v1991_v51, %v1057_v5  ;;  %v1082_v19 = vadd.f32 %v1991_v51, %v1059_v7  ;;  %vm1097_vm8 = vcmp.ge.f32.partialorder %v1081_v18, 0.0  ;;  %v1113_v28 = vmul.f32 0.1, %v1081_v18 }
 0x16a   : > { %1483 = vst [vmem:[%s2051_s3 + $0x8] sm:$0xff] %v1451_v13   ;;  %v1126_v20 = vsel %vm1094_vm5, %v1078_v4, %v1110_v14  ;;  %vm1095_vm6 = vcmp.ge.f32.partialorder %v1079_v15, 0.0  ;;  %v1111_v21 = vmul.f32 0.1, %v1079_v15  ;;  %v1084_v31 = vadd.f32 %v1991_v51, %v1061_v22 }
 0x16b   : > { %v1456_v24 = vpack.c.bf16 %v1126_v20, %v1125_v16  ;;  %vm1096_vm7 = vcmp.ge.f32.partialorder %v1080_v17, 0.0  ;;  %v1112_v25 = vmul.f32 0.1, %v1080_v17  ;;  %vm1098_vm9 = vcmp.ge.f32.partialorder %v1082_v19, 0.0 }
 0x16c   : > { %v1127_v27 = vsel %vm1095_vm6, %v1079_v15, %v1111_v21  ;;  %v1114_v29 = vmul.f32 0.1, %v1082_v19  ;;  %vm1099_vm10 = vcmp.ge.f32.partialorder %v1083_v23, 0.0  ;;  %v1115_v32 = vmul.f32 0.1, %v1083_v23 }
 0x16d   : > { %1484 = vst [vmem:[%s2051_s3 + $0x10] sm:$0xff] %v1456_v24   ;;  %v1128_v30 = vsel %vm1096_vm7, %v1080_v17, %v1112_v25  ;;  %v1129_v36 = vsel %vm1097_vm8, %v1081_v18, %v1113_v28  ;;  %v1085_v38 = vadd.f32 %v1991_v51, %v1062_v26  ;;  %vm1100_vm11 = vcmp.ge.f32.partialorder %v1084_v31, 0.0 }
 0x16e   : > { %v1461_v35 = vpack.c.bf16 %v1128_v30, %v1127_v27  ;;  %v1130_v37 = vsel %vm1098_vm9, %v1082_v19, %v1114_v29  ;;  %v1116_v41 = vmul.f32 0.1, %v1084_v31  ;;  %v1131_v42 = vsel %vm1099_vm10, %v1083_v23, %v1115_v32 }
 0x16f   : > { %v1466_v40 = vpack.c.bf16 %v1130_v37, %v1129_v36  ;;  %v1086_v43 = vadd.f32 %v1991_v51, %v1063_v33  ;;  %vm1101_vm12 = vcmp.ge.f32.partialorder %v1085_v38, 0.0  ;;  %v1117_v44 = vmul.f32 0.1, %v1085_v38 }
 0x170   : > { %1485 = vst [vmem:[%s2051_s3 + $0x18] sm:$0xff] %v1461_v35   ;;  %v1087_v45 = vadd.f32 %v1991_v51, %v1064_v34  ;;  %v1132_v46 = vsel %vm1100_vm11, %v1084_v31, %v1116_v41  ;;  %v1088_v47 = vadd.f32 %v1991_v51, %v1065_v39 }
 0x171   : > { %1486 = vst [vmem:[%s2051_s3 + $0x20] sm:$0xff] %v1466_v40   ;;  %v1471_v48 = vpack.c.bf16 %v1132_v46, %v1131_v42  ;;  %vm1102_vm13 = vcmp.ge.f32.partialorder %v1086_v43, 0.0  ;;  %v1118_v49 = vmul.f32 0.1, %v1086_v43  ;;  %v1133_v50 = vsel %vm1101_vm12, %v1085_v38, %v1117_v44 }
 0x172   : > { %vm1103_vm14 = vcmp.ge.f32.partialorder %v1087_v45, 0.0  ;;  %vm1104_vm15 = vcmp.ge.f32.partialorder %v1088_v47, 0.0  ;;  %v1119_v52 = vmul.f32 0.1, %v1087_v45  ;;  %v1120_v53 = vmul.f32 0.1, %v1088_v47 }
 0x173   : > { %1487 = vst [vmem:[%s2051_s3 + $0x28] sm:$0xff] %v1471_v48   ;;  %v1134_v54 = vsel %vm1102_vm13, %v1086_v43, %v1118_v49 }
 0x174   : > { %v1476_v55 = vpack.c.bf16 %v1134_v54, %v1133_v50  ;;  %v1135_v56 = vsel %vm1103_vm14, %v1087_v45, %v1119_v52  ;;  %v1136_v57 = vsel %vm1104_vm15, %v1088_v47, %v1120_v53 }
 0x175   : > { %v1481_v58 = vpack.c.bf16 %v1136_v57, %v1135_v56 }
 0x176   : > { %1488 = vst [vmem:[%s2051_s3 + $0x30] sm:$0xff] %v1476_v55  }
 0x177   : > { %1489 = vst [vmem:[%s2051_s3 + $0x38] sm:$0xff] %v1481_v58  }
 0x178 PF: > { %s13_s16 = sadd.s32 1, %s1777_s16   ;;  %s2052_s12 = smov %s1765_s13 }
 0x179   : > { %p10_p12 = scmp.ge.s32.totalorder %s13_s16, 4   ;;  %s2053_s13 = smov %s1835_s20 }
 0x17a   : > { %s2054_s14 = smov %s1773_s15  ;;  %s2055_s15 = smov %s2057_s17 }
 0x17b   :  { %12 = sbr.rel (!%p10_p12) target bundleno = 3 (0x3), region = 104 }

// kernel: forward.23
= control target key start
LH: loop header
LB: loop body
LE: loop exit
PB: predicated region body
PF: predicated region fallthrough
CT: control target
= control target key end

     0   :  { %s1396_s12 = smov 0   ;;  %s1398_s13 = smov 0   ;;  %s1554_s0 = inlined_call_operand.vmem [shape: bf16[32,2048], index: 0, kind: input, shape index: {}]   ;;  %s1555_s1 = inlined_call_operand.vmem [shape: bf16[2048,256], index: 1, kind: input, shape index: {}]   ;;  %s1556_s2 = inlined_call_operand.vmem [shape: f32[1,256], index: 2, kind: input, shape index: {}]   ;;  %s1557_s3 = inlined_call_operand.vmem [shape: bf16[32,256], index: 3, kind: output, shape index: {}]  }
   0x1   :  { %s1400_s14 = smov 0   ;;  %s1402_s15 = smov 0  }
   0x2   :  { %s1404_s16 = smov 0  }
   0x3 LB: > { %s25_s17 = sadd.s32 1, %s1369_s15  ;;  %p48_p1 = scmp.ne.s32.totalorder %s1361_s13, %s1357_s12  ;;  %s1373_s16 = sphi %s1404_s16, %s13_s16   ;;  %s1369_s15 = sphi %s1402_s15, %s1561_s15   ;;  %s1365_s14 = sphi %s1400_s14, %s1560_s14   ;;  %s1361_s13 = sphi %s1398_s13, %s1559_s13   ;;  %s1357_s12 = sphi %s1396_s12, %s1558_s12  }
   0x4   : > { %p26_p0 = scmp.ge.s32.totalorder %s25_s17, 4  ;;  %p49_p2 = scmp.eq.s32.totalorder %s1373_s16, 0 }
   0x5   : > { %s41_s19 = sadd.s32 1, %s1361_s13  ;;  %p1089_p5 = scmp.ge.s32.totalorder %s1373_s16, 4 }
   0x6   : > { %s1563_s17 = smov (%p26_p0, %s25_s17), 0  ;;  %p50_p3 = por %p49_p2, %p48_p1 }
   0x7   : > { %s37_s18 = ssub.s32 %s1369_s15, %s1563_s17  ;;  %164 = sbr.rel (%p1089_p5) target bundleno = 20 (0x14), region = 20 }
   0x8   : > { %p39_p4 = scmp.eq.s32.totalorder %s37_s18, 0 }
   0xa   : > { %s1431_s20 = scalar_select %p39_p4, %s1361_s13, %s41_s19  }
   0xc   : > { %167 = sbr.rel (!%p50_p3) target bundleno = 20 (0x14), region = 24  ;;  %s169_s21 = sand.u32 (%p50_p3), 1, %s1361_s13  }
   0xd   : > { %s1180_s22 = sshll.u32 (%p50_p3), %s1369_s15, 4  ;;  %s1090_s23 = sshll.u32 (%p50_p3), %s169_s21, 6 }
   0xe   : > { %s177_s26 = scalar_lea.vmem (%p50_p3), %s1554_s0, %s1180_s22  ;;  %s171_s27 = scalar_lea.vmem (%p50_p3), [#allocation3], %s1090_s23 }
   0xf   : > { %v190_v0 = vld [vmem:[%s177_s26] sm:$0xff] (%p50_p3)  ;;  %v192_v1 = vld [vmem:[%s177_s26 + $0x8] sm:$0xff] (%p50_p3) }
  0x10   : > { %v194_v2 = vld [vmem:[%s177_s26 + $0x40] sm:$0xff] (%p50_p3)  ;;  %191 = vst [vmem:[%s171_s27] sm:$0xff] (%p50_p3), %v190_v0  ;;  %193 = vst [vmem:[%s171_s27 + $0x8] sm:$0xff] (%p50_p3), %v192_v1  ;;  %v196_v3 = vld [vmem:[%s177_s26 + $0x48] sm:$0xff] (%p50_p3) }
  0x11   : > { %195 = vst [vmem:[%s171_s27 + $0x10] sm:$0xff] %v194_v2  ;;  %v198_v4 = vld [vmem:[%s177_s26 + $0x80] sm:$0xff]  ;;  %v200_v5 = vld [vmem:[%s177_s26 + $0x88] sm:$0xff]  ;;  %197 = vst [vmem:[%s171_s27 + $0x18] sm:$0xff] %v196_v3 }
  0x12   : > { %199 = vst [vmem:[%s171_s27 + $0x20] sm:$0xff] %v198_v4  ;;  %201 = vst [vmem:[%s171_s27 + $0x28] sm:$0xff] %v200_v5  ;;  %v202_v6 = vld [vmem:[%s177_s26 + $0xc0] sm:$0xff]  ;;  %v204_v7 = vld [vmem:[%s177_s26 + $0xc8] sm:$0xff] }
  0x13   : > { %203 = vst [vmem:[%s171_s27 + $0x30] sm:$0xff] %v202_v6  ;;  %205 = vst [vmem:[%s171_s27 + $0x38] sm:$0xff] %v204_v7 }
  0x14 PF: > { %p1093_p6 = scmp.ge.s32.totalorder %s1373_s16, 1  ;;  %p225_p7 = scmp.lt.s32.totalorder %s1373_s16, 5 }
  0x16   : > { %p226_p8 = pnand %p1093_p6, %p225_p7 }
  0x17   : > { %s232_s28 = sand.u32 (!%p226_p8), 1, %s1357_s12   ;;  %s1095_s29 = sshll.u32 (!%p226_p8), %s1365_s14, 6 }
  0x18   : > { %229 = sbr.rel (%p226_p8) target bundleno = 338 (0x152), region = 51  ;;  %s1094_s30 = sshll.u32 (!%p226_p8), %s232_s28, 6 }
  0x19   : > { %p278_p9 = scmp.lt.s32.totalorder (!%p226_p8), %s1095_s29, 255  ;;  %s1448_s8 = scalar_lea.vmem (!%p226_p8), [#allocation3], %s1094_s30 }
  0x1a   : > { %p1098_p10 = scmp.ne.s32.totalorder (!%p226_p8), %s1365_s14, 0 }
  0x1d   : > { %s1565_s29 = smov (!%p278_p9, %s1095_s29), 255  ;;  %308 = sbr.rel (%p1098_p10) target bundleno = 39 (0x27), region = 59 }
  0x1e   : > { %s1181_s4 = sshll.u32 %s1565_s29, 3 }
  0x1f   : > { %s1446_s7 = scalar_lea.vmem %s1555_s1, %s1181_s4 }
  0x22   : > { %v1375_v8 = vmov 0.0  }
  0x23   : > { %309 = vst [vmem:[#allocation2 + $0x30] sm:$0xff] %v1375_v8  ;;  %310 = vst [vmem:[#allocation2] sm:$0xff] %v1375_v8 }
  0x24   : > { %311 = vst [vmem:[#allocation2 + $0x18] sm:$0xff] %v1375_v8  ;;  %312 = vst [vmem:[#allocation2 + $0x10] sm:$0xff] %v1375_v8 }
  0x25   : > { %313 = vst [vmem:[#allocation2 + $0x8] sm:$0xff] %v1375_v8  ;;  %314 = vst [vmem:[#allocation2 + $0x20] sm:$0xff] %v1375_v8 }
  0x26   : > { %315 = vst [vmem:[#allocation2 + $0x28] sm:$0xff] %v1375_v8  ;;  %316 = vst [vmem:[#allocation2 + $0x38] sm:$0xff] %v1375_v8 }
  0x27 PF: > { %v1227_v9 = vld [vmem:[%s1446_s7 + $0x74] ss:$8 sps:$4 sm:$0xff]   ;;  %v1231_v11 = vld [vmem:[%s1446_s7 + $0x70] ss:$8 sps:$4 sm:$0xff]   ;;  %v1233_v13 = vld [vmem:[%s1446_s7 + $0x64] ss:$8 sps:$4 sm:$0xff]  }
  0x28   : > { %v1229_v10 = vld [vmem:[%s1446_s7 + $0x174] ss:$8 sps:$4 sm:$0xff]   ;;  %757 = vmatprep.subr.bf16.mxu0 %v1227_v9  ;;  %v1232_v12 = vld [vmem:[%s1446_s7 + $0x170] ss:$8 sps:$4 sm:$0xff]   ;;  %v1235_v14 = vld [vmem:[%s1446_s7 + $0x164] ss:$8 sps:$4 sm:$0xff]  }
  0x29   : > { %810 = vmatprep.subr.bf16.mxu1 %v1229_v10  ;;  %758 = vmatpush1.bf16.msra.mxu0 %v1231_v11  ;;  %v1237_v15 = vld [vmem:[%s1446_s7 + $0x60] ss:$8 sps:$4 sm:$0xff]   ;;  %v1239_v17 = vld [vmem:[%s1446_s7 + $0x54] ss:$8 sps:$4 sm:$0xff]   ;;  %v1243_v19 = vld [vmem:[%s1446_s7 + $0x50] ss:$8 sps:$4 sm:$0xff]  }
  0x2a   : > { %811 = vmatpush1.bf16.msra.mxu1 %v1232_v12  ;;  %759 = vmatprep.subr.bf16.mxu0 %v1233_v13  ;;  %v1238_v16 = vld [vmem:[%s1446_s7 + $0x160] ss:$8 sps:$4 sm:$0xff]   ;;  %v1241_v18 = vld [vmem:[%s1446_s7 + $0x154] ss:$8 sps:$4 sm:$0xff]   ;;  %v1244_v20 = vld [vmem:[%s1446_s7 + $0x150] ss:$8 sps:$4 sm:$0xff]  }
  0x2b   : > { %812 = vmatprep.subr.bf16.mxu1 %v1235_v14  ;;  %v1245_v21 = vld [vmem:[%s1446_s7 + $0x44] ss:$8 sps:$4 sm:$0xff]   ;;  %v1249_v23 = vld [vmem:[%s1446_s7 + $0x40] ss:$8 sps:$4 sm:$0xff]   ;;  %v1251_v25 = vld [vmem:[%s1446_s7 + $0x34] ss:$8 sps:$4 sm:$0xff]  }
  0x2c   : > { %v1247_v22 = vld [vmem:[%s1446_s7 + $0x144] ss:$8 sps:$4 sm:$0xff]   ;;  %v1250_v24 = vld [vmem:[%s1446_s7 + $0x140] ss:$8 sps:$4 sm:$0xff]   ;;  %v1253_v26 = vld [vmem:[%s1446_s7 + $0x134] ss:$8 sps:$4 sm:$0xff]  }
  0x2d   : > { %760 = vmatpush1.bf16.msra.mxu0 %v1237_v15  ;;  %v1255_v27 = vld [vmem:[%s1446_s7 + $0x30] ss:$8 sps:$4 sm:$0xff]   ;;  %v1257_v29 = vld [vmem:[%s1446_s7 + $0x24] ss:$8 sps:$4 sm:$0xff]   ;;  %v1261_v31 = vld [vmem:[%s1446_s7 + $0x20] ss:$8 sps:$4 sm:$0xff]  }
  0x2e   : > { %813 = vmatpush1.bf16.msra.mxu1 %v1238_v16  ;;  %761 = vmatprep.subr.bf16.mxu0 %v1239_v17  ;;  %v1256_v28 = vld [vmem:[%s1446_s7 + $0x130] ss:$8 sps:$4 sm:$0xff]   ;;  %v1259_v30 = vld [vmem:[%s1446_s7 + $0x124] ss:$8 sps:$4 sm:$0xff]   ;;  %v1262_v32 = vld [vmem:[%s1446_s7 + $0x120] ss:$8 sps:$4 sm:$0xff]  }
  0x2f   : > { %814 = vmatprep.subr.bf16.mxu1 %v1241_v18  ;;  %v1263_v33 = vld [vmem:[%s1446_s7 + $0x14] ss:$8 sps:$4 sm:$0xff]   ;;  %v1267_v35 = vld [vmem:[%s1446_s7 + $0x10] ss:$8 sps:$4 sm:$0xff]   ;;  %v1269_v37 = vld [vmem:[%s1446_s7 + $0x4] ss:$8 sps:$4 sm:$0xff]  }
  0x30   : > { %v1265_v34 = vld [vmem:[%s1446_s7 + $0x114] ss:$8 sps:$4 sm:$0xff]   ;;  %v1268_v36 = vld [vmem:[%s1446_s7 + $0x110] ss:$8 sps:$4 sm:$0xff]   ;;  %v1271_v38 = vld [vmem:[%s1446_s7 + $0x104] ss:$8 sps:$4 sm:$0xff]  }
  0x31   : > { %762 = vmatpush1.bf16.msra.mxu0 %v1243_v19  ;;  %v1273_v39 = vld [vmem:[%s1446_s7] ss:$8 sps:$4 sm:$0xff]   ;;  %v1275_v41 = vld [vmem:[%s1446_s7 + $0xf4] ss:$8 sps:$4 sm:$0xff]   ;;  %v1279_v43 = vld [vmem:[%s1446_s7 + $0xf0] ss:$8 sps:$4 sm:$0xff]  }
  0x32   : > { %815 = vmatpush1.bf16.msra.mxu1 %v1244_v20  ;;  %763 = vmatprep.subr.bf16.mxu0 %v1245_v21  ;;  %v1274_v40 = vld [vmem:[%s1446_s7 + $0x100] ss:$8 sps:$4 sm:$0xff]   ;;  %v1277_v42 = vld [vmem:[%s1446_s7 + $0x1f4] ss:$8 sps:$4 sm:$0xff]   ;;  %v1280_v44 = vld [vmem:[%s1446_s7 + $0x1f0] ss:$8 sps:$4 sm:$0xff]  }
  0x33   : > { %816 = vmatprep.subr.bf16.mxu1 %v1247_v22  ;;  %v1281_v45 = vld [vmem:[%s1446_s7 + $0xe4] ss:$8 sps:$4 sm:$0xff]   ;;  %v1285_v47 = vld [vmem:[%s1446_s7 + $0xe0] ss:$8 sps:$4 sm:$0xff]   ;;  %v1287_v49 = vld [vmem:[%s1446_s7 + $0xd4] ss:$8 sps:$4 sm:$0xff]  }
  0x34   : > { %v1283_v46 = vld [vmem:[%s1446_s7 + $0x1e4] ss:$8 sps:$4 sm:$0xff]   ;;  %v1286_v48 = vld [vmem:[%s1446_s7 + $0x1e0] ss:$8 sps:$4 sm:$0xff]   ;;  %v1289_v50 = vld [vmem:[%s1446_s7 + $0x1d4] ss:$8 sps:$4 sm:$0xff]  }
  0x35   : > { %764 = vmatpush1.bf16.msra.mxu0 %v1249_v23  ;;  %v1291_v51 = vld [vmem:[%s1446_s7 + $0xd0] ss:$8 sps:$4 sm:$0xff]   ;;  %v1293_v53 = vld [vmem:[%s1446_s7 + $0xc4] ss:$8 sps:$4 sm:$0xff]   ;;  %v1297_v55 = vld [vmem:[%s1446_s7 + $0xc0] ss:$8 sps:$4 sm:$0xff]  }
  0x36   : > { %817 = vmatpush1.bf16.msra.mxu1 %v1250_v24  ;;  %765 = vmatprep.subr.bf16.mxu0 %v1251_v25  ;;  %v1292_v52 = vld [vmem:[%s1446_s7 + $0x1d0] ss:$8 sps:$4 sm:$0xff]   ;;  %v1295_v54 = vld [vmem:[%s1446_s7 + $0x1c4] ss:$8 sps:$4 sm:$0xff]   ;;  %v1298_v56 = vld [vmem:[%s1446_s7 + $0x1c0] ss:$8 sps:$4 sm:$0xff]  }
  0x37   : > { %818 = vmatprep.subr.bf16.mxu1 %v1253_v26  ;;  %v1299_v57 = vld [vmem:[%s1446_s7 + $0xb4] ss:$8 sps:$4 sm:$0xff]   ;;  %v1303_v61 = vld [vmem:[%s1446_s7 + $0xb0] ss:$8 sps:$4 sm:$0xff]   ;;  %v1305_v63 = vld [vmem:[%s1446_s7 + $0xa4] ss:$8 sps:$4 sm:$0xff]  }
  0x38   : > { %v1325_v58 = vld [vmem:[%s1448_s8 + $0x4] ss:$16 sps:$4 sm:$0xff]   ;;  %v1328_v60 = vld [vmem:[%s1448_s8 + $0xc] ss:$16 sps:$4 sm:$0xff]   ;;  %v1304_v62 = vld [vmem:[%s1446_s7 + $0x1b0] ss:$8 sps:$4 sm:$0xff]  }
  0x39   : > { %766 = vmatpush1.bf16.msra.mxu0 %v1255_v27  ;;  %v1301_v59 = vld [vmem:[%s1446_s7 + $0x1b4] ss:$8 sps:$4 sm:$0xff]   ;;  %789 = vmatprep.mubr.bf16.mxu0 %v1325_v58  ;;  %v1307_v0 = vld [vmem:[%s1446_s7 + $0x1a4] ss:$8 sps:$4 sm:$0xff]   ;;  %v1309_v1 = vld [vmem:[%s1446_s7 + $0xa0] ss:$8 sps:$4 sm:$0xff]  }
  0x3a   : > { %819 = vmatpush1.bf16.msra.mxu1 %v1256_v28  ;;  %767 = vmatprep.subr.bf16.mxu0 %v1257_v29  ;;  %v1310_v2 = vld [vmem:[%s1446_s7 + $0x1a0] ss:$8 sps:$4 sm:$0xff]   ;;  %v1311_v3 = vld [vmem:[%s1446_s7 + $0x94] ss:$8 sps:$4 sm:$0xff]   ;;  %v1315_v5 = vld [vmem:[%s1446_s7 + $0x90] ss:$8 sps:$4 sm:$0xff]  }
  0x3b   : > { %820 = vmatprep.subr.bf16.mxu1 %v1259_v30  ;;  %842 = vmatprep.mubr.bf16.mxu1 %v1328_v60  ;;  %v1313_v4 = vld [vmem:[%s1446_s7 + $0x194] ss:$8 sps:$4 sm:$0xff]   ;;  %v1316_v6 = vld [vmem:[%s1446_s7 + $0x190] ss:$8 sps:$4 sm:$0xff]   ;;  %v1317_v7 = vld [vmem:[%s1446_s7 + $0x84] ss:$8 sps:$4 sm:$0xff]  }
  0x3c   : > { %v1319_v8 = vld [vmem:[%s1446_s7 + $0x184] ss:$8 sps:$4 sm:$0xff]   ;;  %v1321_v9 = vld [vmem:[%s1446_s7 + $0x80] ss:$8 sps:$4 sm:$0xff]   ;;  %v317_v18 = vld [vmem:[#allocation2 + $0x30] sm:$0xff]  ;;  %p1171_p11 = scmp.ne.s32.totalorder %s1365_s14, 3 }
  0x3d   : > { %768 = vmatpush1.bf16.msra.mxu0 %v1261_v31  ;;  %v1322_v10 = vld [vmem:[%s1446_s7 + $0x180] ss:$8 sps:$4 sm:$0xff]   ;;  %v1329_v13 = vld [vmem:[%s1448_s8 + $0x24] ss:$16 sps:$4 sm:$0xff]   ;;  %v1331_v14 = vld [vmem:[%s1448_s8 + $0x2c] ss:$16 sps:$4 sm:$0xff]  }
  0x3e   : > { %821 = vmatpush1.bf16.msra.mxu1 %v1262_v32  ;;  %769 = vmatprep.subr.bf16.mxu0 %v1263_v33  ;;  %v1323_v11 = vld [vmem:[%s1448_s8] ss:$16 sps:$4 sm:$0xff]   ;;  %v1326_v12 = vld [vmem:[%s1448_s8 + $0x8] ss:$16 sps:$4 sm:$0xff]  }
  0x3f   : > { %822 = vmatprep.subr.bf16.mxu1 %v1265_v34  ;;  %v1333_v15 = vld [vmem:[%s1448_s8 + $0x20] ss:$16 sps:$4 sm:$0xff]   ;;  %v1334_v16 = vld [vmem:[%s1448_s8 + $0x28] ss:$16 sps:$4 sm:$0xff]  }
  0x40   : > { %v318_v22 = vld [vmem:[#allocation2] sm:$0xff]  ;;  %v319_v27 = vld [vmem:[#allocation2 + $0x18] sm:$0xff]  ;;  %v320_v32 = vld [vmem:[#allocation2 + $0x10] sm:$0xff] }
  0x41   : > { %770 = vmatpush1.bf16.msra.mxu0 %v1267_v35 }
  0x42   : > { %823 = vmatpush1.bf16.msra.mxu1 %v1268_v36  ;;  %771 = vmatprep.subr.bf16.mxu0 %v1269_v37  ;;  %v321_v37 = vld [vmem:[#allocation2 + $0x8] sm:$0xff] }
  0x43   : > { %824 = vmatprep.subr.bf16.mxu1 %v1271_v38 }
  0x45   : > { %772 = vmatpush1.bf16.msra.mxu0 %v1273_v39 }
  0x46   : > { %825 = vmatpush1.bf16.msra.mxu1 %v1274_v40  ;;  %773 = vmatprep.subr.bf16.mxu0 %v1275_v41 }
  0x47   : > { %826 = vmatprep.subr.bf16.mxu1 %v1277_v42  ;;  %v322_v42 = vld [vmem:[#allocation2 + $0x20] sm:$0xff] }
  0x49   : > { %774 = vmatpush2.bf16.msra.mxu0 %v1279_v43 }
  0x4a   : > { %827 = vmatpush2.bf16.msra.mxu1 %v1280_v44  ;;  %775 = vmatprep.subr.bf16.mxu0 %v1281_v45 }
  0x4b   : > { %828 = vmatprep.subr.bf16.mxu1 %v1283_v46 }
  0x4d   : > { %776 = vmatpush2.bf16.msra.mxu0 %v1285_v47  ;;  %v323_v47 = vld [vmem:[#allocation2 + $0x28] sm:$0xff] }
  0x4e   : > { %829 = vmatpush2.bf16.msra.mxu1 %v1286_v48  ;;  %777 = vmatprep.subr.bf16.mxu0 %v1287_v49 }
  0x4f   : > { %830 = vmatprep.subr.bf16.mxu1 %v1289_v50 }
  0x51   : > { %778 = vmatpush2.bf16.msra.mxu0 %v1291_v51 }
  0x52   : > { %831 = vmatpush2.bf16.msra.mxu1 %v1292_v52  ;;  %779 = vmatprep.subr.bf16.mxu0 %v1293_v53  ;;  %v324_v52 = vld [vmem:[#allocation2 + $0x38] sm:$0xff] }
  0x53   : > { %832 = vmatprep.subr.bf16.mxu1 %v1295_v54 }
  0x55   : > { %780 = vmatpush2.bf16.msra.mxu0 %v1297_v55 }
  0x56   : > { %833 = vmatpush2.bf16.msra.mxu1 %v1298_v56  ;;  %781 = vmatprep.subr.bf16.mxu0 %v1299_v57 }
  0x57   : > { %834 = vmatprep.subr.bf16.mxu1 %v1301_v59 }
  0x59   : > { %782 = vmatpush2.bf16.msra.mxu0 %v1303_v61 }
  0x5a   : > { %835 = vmatpush2.bf16.msra.mxu1 %v1304_v62  ;;  %783 = vmatprep.subr.bf16.mxu0 %v1305_v63 }
  0x5b   : > { %836 = vmatprep.subr.bf16.mxu1 %v1307_v0 }
  0x5d   : > { %784 = vmatpush2.bf16.msra.mxu0 %v1309_v1 }
  0x5e   : > { %837 = vmatpush2.bf16.msra.mxu1 %v1310_v2  ;;  %785 = vmatprep.subr.bf16.mxu0 %v1311_v3 }
  0x5f   : > { %838 = vmatprep.subr.bf16.mxu1 %v1313_v4 }
  0x61   : > { %786 = vmatpush2.bf16.msra.mxu0 %v1315_v5 }
  0x62   : > { %839 = vmatpush2.bf16.msra.mxu1 %v1316_v6  ;;  %787 = vmatprep.subr.bf16.mxu0 %v1317_v7 }
  0x63   : > { %840 = vmatprep.subr.bf16.mxu1 %v1319_v8 }
  0x65   : > { %788 = vmatpush2.bf16.msra.mxu0 %v1321_v9 }
  0x66   : > { %841 = vmatpush2.bf16.msra.mxu1 %v1322_v10 }
  0x68   : > { %790 = vmatmul.mubr.bf16.vlgmr.msra.gmra.mxu0 %v1323_v11 }
  0x69   : > { %843 = vmatmul.mubr.bf16.vlgmr.msra.gmra.mxu1 %v1326_v12  ;;  %799 = vmatprep.mubr.bf16.mxu0 %v1329_v13 }
  0x6a   : > { %852 = vmatprep.mubr.bf16.mxu1 %v1331_v14 }
  0x70   : > { %800 = vmatmul.mubr.bf16.gmra.mxu0 %v1333_v15 }
  0x71   : > { %853 = vmatmul.mubr.bf16.gmra.mxu1 %v1334_v16 }
 0x128   : > { %v791_v17 = vpop.f32.mrf.mxu0 }
 0x129   : > { %v844_v19 = vpop.f32.mrf.mxu1 }
 0x12a   : > { %v845_v20 = vadd.f32 %v844_v19, %v791_v17  ;;  %v793_v21 = vpop.f32.mrf.mxu0 }
 0x12b   : > { %v846_v23 = vpop.f32.mrf.mxu1 }
 0x12c   : > { %v863_v24 = vadd.f32 %v845_v20, %v317_v18  ;;  %v847_v25 = vadd.f32 %v846_v23, %v793_v21  ;;  %v795_v26 = vpop.f32.mrf.mxu0 }
 0x12d   : > { %v848_v28 = vpop.f32.mrf.mxu1 }
 0x12e   : > { %871 = vst [vmem:[#allocation2 + $0x30] sm:$0xff] %v863_v24  ;;  %v864_v29 = vadd.f32 %v847_v25, %v318_v22  ;;  %v849_v30 = vadd.f32 %v848_v28, %v795_v26  ;;  %v797_v31 = vpop.f32.mrf.mxu0 }
 0x12f   : > { %v850_v33 = vpop.f32.mrf.mxu1 }
 0x130   : > { %872 = vst [vmem:[#allocation2] sm:$0xff] %v864_v29  ;;  %v865_v34 = vadd.f32 %v849_v30, %v319_v27  ;;  %v851_v35 = vadd.f32 %v850_v33, %v797_v31  ;;  %v801_v36 = vpop.f32.mrf.mxu0 }
 0x131   : > { %v854_v38 = vpop.f32.mrf.mxu1 }
 0x132   : > { %873 = vst [vmem:[#allocation2 + $0x18] sm:$0xff] %v865_v34  ;;  %v866_v39 = vadd.f32 %v851_v35, %v320_v32  ;;  %v855_v40 = vadd.f32 %v854_v38, %v801_v36  ;;  %v803_v41 = vpop.f32.mrf.mxu0 }
 0x133   : > { %v856_v43 = vpop.f32.mrf.mxu1 }
 0x134   : > { %874 = vst [vmem:[#allocation2 + $0x10] sm:$0xff] %v866_v39  ;;  %v867_v44 = vadd.f32 %v855_v40, %v321_v37  ;;  %v857_v45 = vadd.f32 %v856_v43, %v803_v41  ;;  %v805_v46 = vpop.f32.mrf.mxu0 }
 0x135   : > { %v858_v48 = vpop.f32.mrf.mxu1 }
 0x136   : > { %875 = vst [vmem:[#allocation2 + $0x8] sm:$0xff] %v867_v44  ;;  %v868_v49 = vadd.f32 %v857_v45, %v322_v42  ;;  %v859_v50 = vadd.f32 %v858_v48, %v805_v46  ;;  %v807_v51 = vpop.f32.mrf.mxu0 }
 0x137   : > { %v860_v53 = vpop.f32.mrf.mxu1 }
 0x138   : > { %876 = vst [vmem:[#allocation2 + $0x20] sm:$0xff] %v868_v49  ;;  %v869_v54 = vadd.f32 %v859_v50, %v323_v47  ;;  %v861_v55 = vadd.f32 %v860_v53, %v807_v51  ;;  %882 = sbr.rel (%p1171_p11) target bundleno = 338 (0x152), region = 63 }
 0x13a   : > { %877 = vst [vmem:[#allocation2 + $0x28] sm:$0xff] %v869_v54  ;;  %v870_v56 = vadd.f32 %v861_v55, %v324_v52 }
 0x13c   : > { %878 = vst [vmem:[#allocation2 + $0x38] sm:$0xff] %v870_v56 }
 0x13d   : > { %v893_v57 = vlaneseq  ;;  %v891_v59 = vld [vmem:[%s1556_s2] sm:$0x3]  ;;  %v883_v60 = vld [vmem:[#allocation2 + $0x30] sm:$0xff]  ;;  %v885_v0 = vld [vmem:[#allocation2 + $0x18] sm:$0xff] }
 0x13e   : > { %v884_v61 = vld [vmem:[#allocation2] sm:$0xff]  ;;  %v886_v1 = vld [vmem:[#allocation2 + $0x10] sm:$0xff]  ;;  %v887_v2 = vld [vmem:[#allocation2 + $0x8] sm:$0xff] }
 0x13f   : > { %v894_v58 = vshrl.u32 %v893_v57, 7  ;;  %v888_v5 = vld [vmem:[#allocation2 + $0x20] sm:$0xff] }
 0x141   : > { %v895_v62 = vsub.s32 0, %v894_v58  ;;  %v899_v63 = vsub.s32 1, %v894_v58  ;;  %v889_v6 = vld [vmem:[#allocation2 + $0x28] sm:$0xff] }
 0x143   : > { %v896_v3 = vrot.slane %v891_v59, %v895_v62  ;;  %v900_v4 = vrot.slane %v891_v59, %v899_v63  ;;  %v890_v7 = vld [vmem:[#allocation2 + $0x38] sm:$0xff] }
 0x145   : > { %v903_v8 = vadd.f32 %v896_v3, %v883_v60  ;;  %v904_v9 = vadd.f32 %v900_v4, %v884_v61  ;;  %v905_v10 = vadd.f32 %v896_v3, %v885_v0  ;;  %v906_v11 = vadd.f32 %v900_v4, %v886_v1 }
 0x146   : > { %v907_v12 = vadd.f32 %v896_v3, %v887_v2  ;;  %v908_v13 = vadd.f32 %v900_v4, %v888_v5  ;;  %v909_v14 = vadd.f32 %v896_v3, %v889_v6  ;;  %v910_v15 = vadd.f32 %v900_v4, %v890_v7 }
 0x147   : > { %vm911_vm0 = vcmp.ge.f32.partialorder %v903_v8, 0.0  ;;  %vm912_vm1 = vcmp.ge.f32.partialorder %v904_v9, 0.0  ;;  %v919_v16 = vmul.f32 0.1, %v903_v8  ;;  %v920_v17 = vmul.f32 0.1, %v904_v9 }
 0x148   : > { %vm913_vm2 = vcmp.ge.f32.partialorder %v905_v10, 0.0  ;;  %vm914_vm3 = vcmp.ge.f32.partialorder %v906_v11, 0.0  ;;  %v921_v18 = vmul.f32 0.1, %v905_v10  ;;  %v922_v19 = vmul.f32 0.1, %v906_v11 }
 0x149   : > { %v927_v20 = vsel %vm911_vm0, %v903_v8, %v919_v16  ;;  %v928_v21 = vsel %vm912_vm1, %v904_v9, %v920_v17  ;;  %vm915_vm4 = vcmp.ge.f32.partialorder %v907_v12, 0.0  ;;  %vm916_vm5 = vcmp.ge.f32.partialorder %v908_v13, 0.0 }
 0x14a   : > { %v1182_v22 = vpack.c.bf16 %v928_v21, %v927_v20  ;;  %v929_v23 = vsel %vm913_vm2, %v905_v10, %v921_v18  ;;  %v930_v24 = vsel %vm914_vm3, %v906_v11, %v922_v19  ;;  %v923_v25 = vmul.f32 0.1, %v907_v12 }
 0x14b   : > { %v1183_v26 = vpack.c.bf16 %v930_v24, %v929_v23  ;;  %v924_v27 = vmul.f32 0.1, %v908_v13  ;;  %vm917_vm6 = vcmp.ge.f32.partialorder %v909_v14, 0.0  ;;  %vm918_vm7 = vcmp.ge.f32.partialorder %v910_v15, 0.0 }
 0x14c   : > { %959 = vst [vmem:[%s1557_s3] sm:$0xff] %v1182_v22  ;;  %v931_v28 = vsel %vm915_vm4, %v907_v12, %v923_v25  ;;  %v925_v29 = vmul.f32 0.1, %v909_v14  ;;  %v926_v30 = vmul.f32 0.1, %v910_v15 }
 0x14d   : > { %960 = vst [vmem:[%s1557_s3 + $0x8] sm:$0xff] %v1183_v26  ;;  %v932_v31 = vsel %vm916_vm5, %v908_v13, %v924_v27 }
 0x14e   : > { %v1184_v32 = vpack.c.bf16 %v932_v31, %v931_v28  ;;  %v933_v33 = vsel %vm917_vm6, %v909_v14, %v925_v29  ;;  %v934_v34 = vsel %vm918_vm7, %v910_v15, %v926_v30 }
 0x14f   : > { %v1185_v35 = vpack.c.bf16 %v934_v34, %v933_v33 }
 0x150   : > { %961 = vst [vmem:[%s1557_s3 + $0x10] sm:$0xff] %v1184_v32 }
 0x151   : > { %962 = vst [vmem:[%s1557_s3 + $0x18] sm:$0xff] %v1185_v35 }
 0x152 PF: > { %s13_s16 = sadd.s32 1, %s1373_s16   ;;  %s1558_s12 = smov %s1361_s13 }
 0x153   : > { %p10_p12 = scmp.ge.s32.totalorder %s13_s16, 6   ;;  %s1559_s13 = smov %s1431_s20 }
 0x154   : > { %s1560_s14 = smov %s1369_s15  ;;  %s1561_s15 = smov %s1563_s17 }
 0x155   :  { %12 = sbr.rel (!%p10_p12) target bundleno = 3 (0x3), region = 104 }

// kernel: forward.24
= control target key start
LH: loop header
LB: loop body
LE: loop exit
PB: predicated region body
PF: predicated region fallthrough
CT: control target
= control target key end

     0   :  { %s1062_s12 = smov 0   ;;  %s1064_s13 = smov 0   ;;  %s1241_s0 = inlined_call_operand.vmem [shape: bf16[32,256], index: 0, kind: input, shape index: {}]   ;;  %s1242_s1 = inlined_call_operand.vmem [shape: bf16[256,384], index: 1, kind: input, shape index: {}]   ;;  %s1243_s2 = inlined_call_operand.vmem [shape: f32[1,384], index: 2, kind: input, shape index: {}]   ;;  %s1244_s3 = inlined_call_operand.vmem [shape: bf16[32,384], index: 3, kind: output, shape index: {}]  }
   0x1   :  { %s1066_s14 = smov 0   ;;  %s1068_s15 = smov 0  }
   0x2   :  { %s1070_s16 = smov 0  }
   0x3 LB: > { %s28_s17 = sadd.s32 1, %s1036_s15  ;;  %s842_s18 = sadd.s32 4294967295, %s1040_s16   ;;  %s1040_s16 = sphi %s1070_s16, %s13_s16   ;;  %s1036_s15 = sphi %s1068_s15, %s1249_s15   ;;  %s1032_s14 = sphi %s1066_s14, %s1248_s14   ;;  %s1028_s13 = sphi %s1064_s13, %s1247_s13   ;;  %s1024_s12 = sphi %s1062_s12, %s1246_s12  }
   0x4   : > { %p30_p0 = scmp.ge.s32.totalorder %s28_s17, 3  ;;  %p76_p1 = scmp.ne.s32.totalorder %s1028_s13, %s1024_s12 }
   0x5   : > { %p77_p2 = scmp.eq.s32.totalorder %s1040_s16, 0  ;;  %p134_p4 = scmp.eq.s32.totalorder %s842_s18, 2 }
   0x6   : > { %s1251_s17 = smov (%p30_p0, %s28_s17), 0  ;;  %s69_s20 = sadd.s32 1, %s1028_s13 }
   0x7   : > { %p78_p3 = por %p77_p2, %p76_p1  ;;  %s65_s19 = ssub.s32 %s1036_s15, %s1251_s17 }
   0x8   : > { %p67_p5 = scmp.eq.s32.totalorder %s65_s19, 0  ;;  %p1097_p6 = por %p134_p4, %p76_p1 }
   0x9   : > { %p846_p7 = scmp.ge.s32.totalorder %s1040_s16, 3 }
   0xa   : > { %s1102_s22 = scalar_select %p67_p5, %s1028_s13, %s69_s20  }
   0xb   : > { %171 = sbr.rel (%p846_p7) target bundleno = 41 (0x29), region = 20 }
  0x10   : > { %174 = sbr.rel (!%p78_p3) target bundleno = 41 (0x29), region = 24  ;;  %s176_s23 = sand.u32 (%p78_p3), 1, %s1028_s13  }
  0x11   : > { %s848_s24 = sshll.u32 (%p78_p3), %s1036_s15, 2  ;;  %s847_s25 = sshll.u32 (%p78_p3), %s176_s23, 7 }
  0x12   : > { %s1110_s28 = scalar_lea.vmem (%p78_p3), %s1242_s1, %s848_s24  ;;  %s1114_s29 = scalar_lea.vmem (%p78_p3), [#allocation3], %s847_s25 }
  0x13   : > { %v200_v0 = vld [vmem:[%s1110_s28] sm:$0xf] (%p78_p3)  ;;  %v202_v1 = vld [vmem:[%s1110_s28 + $0xc] sm:$0xf] (%p78_p3)  ;;  %v204_v2 = vld [vmem:[%s1110_s28 + $0x18] sm:$0xf] (%p78_p3) }
  0x14   : > { %201 = vst [vmem:[%s1114_s29] sm:$0xf] (%p78_p3), %v200_v0  ;;  %203 = vst [vmem:[%s1114_s29 + $0x4] sm:$0xf] (%p78_p3), %v202_v1  ;;  %v206_v3 = vld [vmem:[%s1110_s28 + $0x24] sm:$0xf] (%p78_p3) }
  0x15   : > { %v208_v4 = vld [vmem:[%s1110_s28 + $0x30] sm:$0xf]  ;;  %205 = vst [vmem:[%s1114_s29 + $0x8] sm:$0xf] %v204_v2  ;;  %207 = vst [vmem:[%s1114_s29 + $0xc] sm:$0xf] %v206_v3 }
  0x16   : > { %209 = vst [vmem:[%s1114_s29 + $0x10] sm:$0xf] %v208_v4  ;;  %v210_v5 = vld [vmem:[%s1110_s28 + $0x3c] sm:$0xf]  ;;  %v212_v6 = vld [vmem:[%s1110_s28 + $0x48] sm:$0xf] }
  0x17   : > { %v214_v7 = vld [vmem:[%s1110_s28 + $0x54] sm:$0xf]  ;;  %211 = vst [vmem:[%s1114_s29 + $0x14] sm:$0xf] %v210_v5  ;;  %213 = vst [vmem:[%s1114_s29 + $0x18] sm:$0xf] %v212_v6 }
  0x18   : > { %215 = vst [vmem:[%s1114_s29 + $0x1c] sm:$0xf] %v214_v7  ;;  %v216_v8 = vld [vmem:[%s1110_s28 + $0x60] sm:$0xf]  ;;  %v218_v9 = vld [vmem:[%s1110_s28 + $0x6c] sm:$0xf] }
  0x19   : > { %v220_v10 = vld [vmem:[%s1110_s28 + $0x78] sm:$0xf]  ;;  %217 = vst [vmem:[%s1114_s29 + $0x20] sm:$0xf] %v216_v8  ;;  %219 = vst [vmem:[%s1114_s29 + $0x24] sm:$0xf] %v218_v9 }
  0x1a   : > { %221 = vst [vmem:[%s1114_s29 + $0x28] sm:$0xf] %v220_v10  ;;  %v222_v11 = vld [vmem:[%s1110_s28 + $0x84] sm:$0xf]  ;;  %v224_v12 = vld [vmem:[%s1110_s28 + $0x90] sm:$0xf] }
  0x1b   : > { %v226_v13 = vld [vmem:[%s1110_s28 + $0x9c] sm:$0xf]  ;;  %223 = vst [vmem:[%s1114_s29 + $0x2c] sm:$0xf] %v222_v11  ;;  %225 = vst [vmem:[%s1114_s29 + $0x30] sm:$0xf] %v224_v12 }
  0x1c   : > { %227 = vst [vmem:[%s1114_s29 + $0x34] sm:$0xf] %v226_v13  ;;  %v228_v14 = vld [vmem:[%s1110_s28 + $0xa8] sm:$0xf]  ;;  %v230_v15 = vld [vmem:[%s1110_s28 + $0xb4] sm:$0xf] }
  0x1d   : > { %v232_v16 = vld [vmem:[%s1110_s28 + $0xc0] sm:$0xf]  ;;  %229 = vst [vmem:[%s1114_s29 + $0x38] sm:$0xf] %v228_v14  ;;  %231 = vst [vmem:[%s1114_s29 + $0x3c] sm:$0xf] %v230_v15 }
  0x1e   : > { %233 = vst [vmem:[%s1114_s29 + $0x40] sm:$0xf] %v232_v16  ;;  %v234_v17 = vld [vmem:[%s1110_s28 + $0xcc] sm:$0xf]  ;;  %v236_v18 = vld [vmem:[%s1110_s28 + $0xd8] sm:$0xf] }
  0x1f   : > { %v238_v19 = vld [vmem:[%s1110_s28 + $0xe4] sm:$0xf]  ;;  %235 = vst [vmem:[%s1114_s29 + $0x44] sm:$0xf] %v234_v17  ;;  %237 = vst [vmem:[%s1114_s29 + $0x48] sm:$0xf] %v236_v18 }
  0x20   : > { %239 = vst [vmem:[%s1114_s29 + $0x4c] sm:$0xf] %v238_v19  ;;  %v240_v20 = vld [vmem:[%s1110_s28 + $0xf0] sm:$0xf]  ;;  %v242_v21 = vld [vmem:[%s1110_s28 + $0xfc] sm:$0xf] }
  0x21   : > { %v244_v22 = vld [vmem:[%s1110_s28 + $0x108] sm:$0xf]  ;;  %241 = vst [vmem:[%s1114_s29 + $0x50] sm:$0xf] %v240_v20  ;;  %243 = vst [vmem:[%s1114_s29 + $0x54] sm:$0xf] %v242_v21 }
  0x22   : > { %245 = vst [vmem:[%s1114_s29 + $0x58] sm:$0xf] %v244_v22  ;;  %v246_v23 = vld [vmem:[%s1110_s28 + $0x114] sm:$0xf]  ;;  %v248_v24 = vld [vmem:[%s1110_s28 + $0x120] sm:$0xf] }
  0x23   : > { %v250_v25 = vld [vmem:[%s1110_s28 + $0x12c] sm:$0xf]  ;;  %247 = vst [vmem:[%s1114_s29 + $0x5c] sm:$0xf] %v246_v23  ;;  %249 = vst [vmem:[%s1114_s29 + $0x60] sm:$0xf] %v248_v24 }
  0x24   : > { %251 = vst [vmem:[%s1114_s29 + $0x64] sm:$0xf] %v250_v25  ;;  %v252_v26 = vld [vmem:[%s1110_s28 + $0x138] sm:$0xf]  ;;  %v254_v27 = vld [vmem:[%s1110_s28 + $0x144] sm:$0xf] }
  0x25   : > { %v256_v28 = vld [vmem:[%s1110_s28 + $0x150] sm:$0xf]  ;;  %253 = vst [vmem:[%s1114_s29 + $0x68] sm:$0xf] %v252_v26  ;;  %255 = vst [vmem:[%s1114_s29 + $0x6c] sm:$0xf] %v254_v27 }
  0x26   : > { %257 = vst [vmem:[%s1114_s29 + $0x70] sm:$0xf] %v256_v28  ;;  %v258_v29 = vld [vmem:[%s1110_s28 + $0x15c] sm:$0xf]  ;;  %v260_v30 = vld [vmem:[%s1110_s28 + $0x168] sm:$0xf] }
  0x27   : > { %v262_v31 = vld [vmem:[%s1110_s28 + $0x174] sm:$0xf]  ;;  %259 = vst [vmem:[%s1114_s29 + $0x74] sm:$0xf] %v258_v29  ;;  %261 = vst [vmem:[%s1114_s29 + $0x78] sm:$0xf] %v260_v30 }
  0x28   : > { %263 = vst [vmem:[%s1114_s29 + $0x7c] sm:$0xf] %v262_v31 }
  0x29 PF: > { %p849_p8 = scmp.ge.s32.totalorder %s1040_s16, 1  ;;  %p356_p9 = scmp.lt.s32.totalorder %s1040_s16, 4 }
  0x2b   : > { %p357_p10 = pnand %p849_p8, %p356_p9 }
  0x2c   : > { %s363_s30 = sand.u32 (!%p357_p10), 1, %s1024_s12   ;;  %p411_p11 = scmp.lt.s32.totalorder (!%p357_p10), %s1032_s14, 2 }
  0x2d   : > { %360 = sbr.rel (%p357_p10) target bundleno = 299 (0x12b), region = 69  ;;  %s850_s4 = sshll.u32 (!%p357_p10), %s363_s30, 7 }
  0x2e   : > { %s1189_s9 = scalar_lea.vmem (!%p357_p10), [#allocation3], %s850_s4  ;;  %s851_s26 = sshll.u32 (!%p357_p10), %s363_s30, 4 }
  0x2f   : > { %s397_s27 = scalar_lea.vmem (!%p357_p10), [#allocation4], %s851_s26 }
  0x32   : > { %v998_v32 = vld [vmem:[%s1241_s0 + $0x4] ss:$8 sps:$4 sm:$0xff]   ;;  %v1001_v33 = vld [vmem:[%s1241_s0 + $0x14] ss:$8 sps:$4 sm:$0xff]   ;;  %v996_v50 = vld [vmem:[%s1241_s0] ss:$8 sps:$4 sm:$0xff]  }
  0x33   : > { %v980_v34 = vld [vmem:[%s1189_s9 + $0x78] sm:$0xff]   ;;  %612 = vmatprep.mubr.bf16.mxu0 %v998_v32  ;;  %620 = vmatprep.mubr.bf16.mxu1 %v1001_v33  ;;  %v982_v36 = vld [vmem:[%s1189_s9 + $0x70] sm:$0xff]   ;;  %v984_v38 = vld [vmem:[%s1189_s9 + $0x68] sm:$0xff]   ;;  %s412_s20 = scalar_select %p411_p11, %s1032_s14, 2 }
  0x34   : > { %v981_v35 = vld [vmem:[%s1189_s9 + $0x38] sm:$0xff]   ;;  %896 = vmatprep.subr.bf16.mxu0 %v980_v34  ;;  %924 = vmatprep.subr.bf16.mxu1 %v980_v34  ;;  %v983_v37 = vld [vmem:[%s1189_s9 + $0x30] sm:$0xff]   ;;  %v985_v39 = vld [vmem:[%s1189_s9 + $0x28] sm:$0xff]   ;;  %s878_s28 = sshll.u32 (%p1097_p6), %s1032_s14, 2 }
  0x35   : > { %897 = vmatpush3.bf16.msra.mxu0 %v981_v35  ;;  %932 = vmatpush3.bf16.msra.mxu1 %v981_v35  ;;  %v986_v40 = vld [vmem:[%s1189_s9 + $0x60] sm:$0xff]   ;;  %v988_v42 = vld [vmem:[%s1189_s9 + $0x58] sm:$0xff]   ;;  %v990_v44 = vld [vmem:[%s1189_s9 + $0x50] sm:$0xff]   ;;  %s413_s25 = scalar_lea.vmem %s1243_s2, %s412_s20  ;;  %s686_s30 = scalar_lea.vmem (%p1097_p6), %s1244_s3, %s878_s28 }
  0x36   : > { %898 = vmatprep.subr.bf16.mxu0 %v982_v36  ;;  %925 = vmatprep.subr.bf16.mxu1 %v982_v36  ;;  %v987_v41 = vld [vmem:[%s1189_s9 + $0x20] sm:$0xff]   ;;  %v989_v43 = vld [vmem:[%s1189_s9 + $0x18] sm:$0xff]   ;;  %v991_v45 = vld [vmem:[%s1189_s9 + $0x10] sm:$0xff]  }
  0x37   : > { %v992_v46 = vld [vmem:[%s1189_s9 + $0x48] sm:$0xff]   ;;  %v994_v48 = vld [vmem:[%s1189_s9 + $0x40] sm:$0xff]   ;;  %v999_v51 = vld [vmem:[%s1241_s0 + $0x10] ss:$8 sps:$4 sm:$0xff]  }
  0x38   : > { %v993_v47 = vld [vmem:[%s1189_s9 + $0x8] sm:$0xff]   ;;  %v995_v49 = vld [vmem:[%s1189_s9] sm:$0xff]  }
  0x39   : > { %899 = vmatpush3.bf16.msra.mxu0 %v983_v37  ;;  %933 = vmatpush3.bf16.msra.mxu1 %v983_v37  ;;  %v872_v60 = vld [vmem:[%s413_s25] ss:$0 sm:$0xff] }
  0x3a   : > { %900 = vmatprep.subr.bf16.mxu0 %v984_v38  ;;  %926 = vmatprep.subr.bf16.mxu1 %v984_v38 }
  0x3d   : > { %901 = vmatpush3.bf16.msra.mxu0 %v985_v39  ;;  %934 = vmatpush3.bf16.msra.mxu1 %v985_v39 }
  0x3e   : > { %902 = vmatprep.subr.bf16.mxu0 %v986_v40  ;;  %927 = vmatprep.subr.bf16.mxu1 %v986_v40 }
  0x41   : > { %903 = vmatpush3.bf16.msra.mxu0 %v987_v41  ;;  %935 = vmatpush3.bf16.msra.mxu1 %v987_v41 }
  0x42   : > { %904 = vmatprep.subr.bf16.mxu0 %v988_v42  ;;  %928 = vmatprep.subr.bf16.mxu1 %v988_v42 }
  0x45   : > { %905 = vmatpush3.bf16.msra.mxu0 %v989_v43  ;;  %936 = vmatpush3.bf16.msra.mxu1 %v989_v43 }
  0x46   : > { %906 = vmatprep.subr.bf16.mxu0 %v990_v44  ;;  %929 = vmatprep.subr.bf16.mxu1 %v990_v44 }
  0x49   : > { %907 = vmatpush3.bf16.msra.mxu0 %v991_v45  ;;  %937 = vmatpush3.bf16.msra.mxu1 %v991_v45 }
  0x4a   : > { %908 = vmatprep.subr.bf16.mxu0 %v992_v46  ;;  %930 = vmatprep.subr.bf16.mxu1 %v992_v46 }
  0x4d   : > { %909 = vmatpush3.bf16.msra.mxu0 %v993_v47  ;;  %938 = vmatpush3.bf16.msra.mxu1 %v993_v47 }
  0x4e   : > { %910 = vmatprep.subr.bf16.mxu0 %v994_v48  ;;  %931 = vmatprep.subr.bf16.mxu1 %v994_v48 }
  0x51   : > { %911 = vmatpush3.bf16.msra.mxu0 %v995_v49  ;;  %939 = vmatpush3.bf16.msra.mxu1 %v995_v49 }
  0x54   : > { %613 = vmatmul.mubr.bf16.vlgmr.msra.gmra.mxu0 %v996_v50  ;;  %621 = vmatmul.mubr.bf16.vlgmr.msra.gmra.mxu1 %v999_v51 }
 0x114   : > { %v912_v52 = vpop.f32.mrf.mxu0  ;;  %v918_v53 = vpop.f32.mrf.mxu1 }
 0x116   : > { %v913_v54 = vpop.f32.mrf.mxu0  ;;  %v919_v55 = vpop.f32.mrf.mxu1 }
 0x117   : > { %v914_v58 = vadd.f32 %v913_v54, %v912_v52  ;;  %v920_v59 = vadd.f32 %v919_v55, %v918_v53 }
 0x118   : > { %v915_v56 = vpop.f32.mrf.mxu0  ;;  %v921_v57 = vpop.f32.mrf.mxu1 }
 0x119   : > { %v651_v1 = vadd.f32 %v914_v58, %v872_v60  ;;  %v653_v2 = vadd.f32 %v920_v59, %v872_v60 }
 0x11a   : > { %v916_v61 = vpop.f32.mrf.mxu0  ;;  %v922_v62 = vpop.f32.mrf.mxu1 }
 0x11b   : > { %v917_v63 = vadd.f32 %v916_v61, %v915_v56  ;;  %v923_v0 = vadd.f32 %v922_v62, %v921_v57 }
 0x11d   : > { %v652_v3 = vadd.f32 %v917_v63, %v872_v60  ;;  %v654_v4 = vadd.f32 %v923_v0, %v872_v60  ;;  %681 = sbr.rel (!%p1097_p6) target bundleno = 299 (0x12b), region = 85 }
 0x11f   : > { %v888_v5 = vpack.c.bf16 %v652_v3, %v651_v1  ;;  %v893_v6 = vpack.c.bf16 %v654_v4, %v653_v2 }
 0x121   : > { %889 = vst [vmem:[%s397_s27] sm:$0xff] %v888_v5   ;;  %895 = vst [vmem:[%s397_s27 + $0x8] sm:$0xff] %v893_v6  }
 0x128   : > { %v703_v7 = vld [vmem:[%s397_s27] sm:$0xf]  ;;  %v705_v8 = vld [vmem:[%s397_s27 + $0x4] sm:$0xf]  ;;  %v707_v9 = vld [vmem:[%s397_s27 + $0x8] sm:$0xf] }
 0x129   : > { %v709_v10 = vld [vmem:[%s397_s27 + $0xc] sm:$0xf]  ;;  %704 = vst [vmem:[%s686_s30] sm:$0xf] %v703_v7  ;;  %706 = vst [vmem:[%s686_s30 + $0xc] sm:$0xf] %v705_v8 }
 0x12a   : > { %708 = vst [vmem:[%s686_s30 + $0x18] sm:$0xf] %v707_v9  ;;  %710 = vst [vmem:[%s686_s30 + $0x24] sm:$0xf] %v709_v10 }
 0x12b PF: > { %s13_s16 = sadd.s32 1, %s1040_s16   ;;  %s1246_s12 = smov %s1028_s13 }
 0x12c   : > { %p10_p12 = scmp.ge.s32.totalorder %s13_s16, 5   ;;  %s1247_s13 = smov %s1102_s22 }
 0x12d   : > { %s1248_s14 = smov %s1036_s15  ;;  %s1249_s15 = smov %s1251_s17 }
 0x12e   :  { %12 = sbr.rel (!%p10_p12) target bundleno = 3 (0x3), region = 163 }

// kernel: forward.25
= control target key start
LH: loop header
LB: loop body
LE: loop exit
PB: predicated region body
PF: predicated region fallthrough
CT: control target
= control target key end

     0   :  { %vm36_vm0 = vcmask 261120   ;;  %vm124_vm1 = vcmask 130048   ;;  %v589_v23 = vmov 0.0   ;;  %s709_s1 = inlined_call_operand.vmem [shape: bf16[2,16,32], index: 1, kind: input, shape index: {}]   ;;  %s710_s0 = inlined_call_operand.vmem [shape: bf16[2,16,32], index: 0, kind: input, shape index: {}]   ;;  %s711_s2 = inlined_call_operand.vmem [shape: bf16[2,16,256], index: 2, kind: input, shape index: {}]   ;;  %s712_s3 = inlined_call_operand.vmem [shape: bf16[2,16,256], index: 3, kind: input, shape index: {}]   ;;  %s713_s4 = inlined_call_operand.<no memory space> [shape: f32[1], index: 4, kind: input, shape index: {}]   ;;  %s714_s5 = inlined_call_operand.vmem [shape: bf16[2,16,256], index: 5, kind: output, shape index: {}]  }
   0x1   :  { %v537_v0 = vld [vmem:[%s709_s1] sm:$0xff]   ;;  %v549_v20 = vld [vmem:[%s709_s1 + $0x8] sm:$0xff]   ;;  %217 = vmatprep.mubr.f32.mxu1 %v589_v23  ;;  %v662_v39 = vstv %s713_s4 }
   0x2   :  { %v533_v1 = vld [vmem:[%s710_s0] sm:$0xff]   ;;  %v538_v2 = vunpack.c.l.bf16 %v537_v0  ;;  %v539_v3 = vunpack.c.h.bf16 %v537_v0  ;;  %v31_v21 = vld [vmem:[%s711_s2 + $0x8] sm:$0xff]  ;;  %v547_v28 = vunpack.c.h.bf16 %v549_v20  ;;  %v546_v32 = vunpack.c.l.bf16 %v549_v20 }
   0x3   :  { %v534_v4 = vunpack.c.l.bf16 %v533_v1  ;;  %v535_v5 = vunpack.c.h.bf16 %v533_v1  ;;  %v30_v22 = vld [vmem:[%s711_s2] sm:$0xff]  ;;  %v35_v24 = vunpack.c.h.bf16 %v31_v21  ;;  %v34_v25 = vunpack.c.l.bf16 %v31_v21  ;;  %v548_v33 = vld [vmem:[%s710_s0 + $0x8] sm:$0xff]  }
   0x4   :  { %558 = vmatprep.subr.msk.mxu0 %vm36_vm0, %v539_v3  ;;  %v33_v26 = vunpack.c.h.bf16 %v30_v22  ;;  %v32_v27 = vunpack.c.l.bf16 %v30_v22  ;;  %v542_v36 = vunpack.c.l.bf16 %v548_v33  ;;  %v543_v38 = vunpack.c.h.bf16 %v548_v33  ;;  %v235_v40 = vld [vmem:[%s712_s3] sm:$0xff]  ;;  %v236_v45 = vld [vmem:[%s712_s3 + $0x8] sm:$0xff]  ;;  %v522_v22 = vld [vmem:[%s712_s3 + $0x10] sm:$0xff] }
   0x5   :  { %559 = vmatpush3.xpose.msk.msra.mxu0 %vm36_vm0, %v539_v3  ;;  %562 = vmatprep.mubr.msk.f32.mxu0 %vm36_vm0, %v534_v4  ;;  %v237_v43 = vunpack.c.l.bf16 %v235_v40  ;;  %v238_v44 = vunpack.c.h.bf16 %v235_v40  ;;  %v239_v49 = vunpack.c.l.bf16 %v236_v45  ;;  %v240_v53 = vunpack.c.h.bf16 %v236_v45 }
   0x6   :  { %560 = vmatprep.subr.msk.mxu0 %vm36_vm0, %v538_v2  ;;  %181 = vmatprep.subr.mxu1 %v35_v24 }
   0x7   :  { %182 = vmatpush1.msra.mxu1 %v34_v25 }
   0x8   :  { %183 = vmatprep.subr.mxu1 %v33_v26  ;;  %v475_v26 = vunpack.c.l.bf16 %v522_v22 }
   0x9   :  { %561 = vmatpush3.xpose.msk.msra.mxu0 %vm36_vm0, %v538_v2  ;;  %184 = vmatpush1.msra.mxu1 %v32_v27  ;;  %v476_v27 = vunpack.c.h.bf16 %v522_v22 }
   0xa   :  { %565 = vmatprep.subr.msk.mxu1 %vm36_vm0, %v547_v28 }
   0xc   :  { %563 = vmatmul.mubr.msk.f32.vlgmr.msra.gmra.mxu0 %vm36_vm0, %v535_v5 }
   0xd   :  { %455 = vmatprep.mubr.f32.mxu0 %v589_v23 }
  0xcc   :  { %v564_v6 = vpop.f32.mrf.mxu0 }
  0xcd   :  { %v128_v9 = vsel %vm124_vm1, %v564_v6, -inf }
  0xce   :  { %v115_v7 = vpop.f32.mrf.mxu0 }
  0xcf   :  { %v125_v8 = vsel %vm124_vm1, %v115_v7, -inf }
  0xd0   :  { %126 = vmax.xlane.f32.xlu0 %v125_v8 }
  0xd4   :  { %129 = vmax.xlane.f32.xlu0 %v128_v9 }
 0x159   :  { %v127_v10 = vpop.xlane.xlu0 %126 }
 0x15a   :  { %v131_v11 = vsub.f32 %v115_v7, %v127_v10  ;;  %v515_v10 = vld [vmem:[%s711_s2 + $0x18] sm:$0xff] }
 0x15c   :  { %v133_v12 = vmul.f32 1.442695, %v131_v11  ;;  %v514_v11 = vld [vmem:[%s711_s2 + $0x10] sm:$0xff] }
 0x15d   :  { %v130_v13 = vpop.xlane.xlu0 %129 }
 0x15e   :  { %573 = vpow2.f32 %v133_v12  ;;  %v132_v14 = vsub.f32 %v564_v6, %v130_v13  ;;  %v274_v12 = vunpack.c.l.bf16 %v515_v10  ;;  %v275_v13 = vunpack.c.h.bf16 %v515_v10 }
 0x160   :  { %v135_v15 = vmul.f32 1.442695, %v132_v14  ;;  %v273_v14 = vunpack.c.h.bf16 %v514_v11  ;;  %419 = vmatprep.subr.mxu0 %v275_v13 }
 0x161   :  { %420 = vmatpush1.msra.mxu0 %v274_v12 }
 0x162   :  { %575 = vpow2.f32 %v135_v15  ;;  %v272_v15 = vunpack.c.l.bf16 %v514_v11  ;;  %421 = vmatprep.subr.mxu0 %v273_v14 }
 0x164   :  { %422 = vmatpush1.msra.mxu0 %v272_v15 }
 0x16b   :  { %v574_v16 = vpop.eup %573 }
 0x16c   :  { %v137_v17 = vsel %vm124_vm1, %v574_v16, 0.0 }
 0x16d   :  { %138 = vadd.xlane.f32.xlu1 %v137_v17 }
 0x16f   :  { %v576_v18 = vpop.eup %575 }
 0x170   :  { %v140_v19 = vsel %vm124_vm1, %v576_v18, 0.0 }
 0x171   :  { %141 = vadd.xlane.f32.xlu1 %v140_v19 }
 0x1f6   :  { %v139_v29 = vpop.xlane.xlu1 %138 }
 0x1f7   :  { %577 = vrcp.f32 %v139_v29 }
 0x1fa   :  { %v142_v30 = vpop.xlane.xlu1 %141 }
 0x1fb   :  { %579 = vrcp.f32 %v142_v30 }
 0x204   :  { %v578_v31 = vpop.eup %577 }
 0x205   :  { %v145_v34 = vmul.f32 %v578_v31, %v574_v16 }
 0x207   :  { %506 = vmatmul.mubr.msk.f32.vlgmr.msra.gmra.mxu1 %vm124_vm1, %v145_v34 }
 0x208   :  { %v580_v35 = vpop.eup %579  ;;  %566 = vmatpush3.xpose.msk.msra.mxu1 %vm36_vm0, %v547_v28  ;;  %223 = vmatprep.mubr.f32.mxu1 %v589_v23  ;;  %v523_v28 = vld [vmem:[%s712_s3 + $0x18] sm:$0xff] }
 0x209   :  { %567 = vmatprep.subr.msk.mxu1 %vm36_vm0, %v546_v32  ;;  %v146_v37 = vmul.f32 %v580_v35, %v576_v18  ;;  %v477_v31 = vunpack.c.l.bf16 %v523_v28  ;;  %v478_v35 = vunpack.c.h.bf16 %v523_v28 }
 0x20b   :  { %507 = vmatmul.mubr.msk.f32.gmra.mxu1 %vm124_vm1, %v146_v37 }
 0x20c   :  { %568 = vmatpush3.xpose.msk.msra.mxu1 %vm36_vm0, %v546_v32  ;;  %569 = vmatprep.mubr.msk.f32.mxu1 %vm36_vm0, %v542_v36 }
 0x20f   :  { %570 = vmatmul.mubr.msk.f32.vlgmr.msra.gmra.mxu1 %vm36_vm0, %v543_v38 }
 0x2c7   :  { %v219_v41 = vpop.f32.mrf.mxu1 }
 0x2c8   :  { %v231_v42 = vmul.f32 %v662_v39, %v219_v41 }
 0x2c9   :  { %v221_v46 = vpop.f32.mrf.mxu1 }
 0x2ca   :  { %v232_v47 = vmul.f32 %v662_v39, %v221_v46  ;;  %v241_v50 = vadd.f32 %v237_v43, %v231_v42 }
 0x2cb   :  { %v225_v48 = vpop.f32.mrf.mxu1 }
 0x2cc   :  { %v242_v51 = vadd.f32 %v238_v44, %v232_v47  ;;  %v233_v52 = vmul.f32 %v662_v39, %v225_v48 }
 0x2cd   :  { %v227_v54 = vpop.f32.mrf.mxu1 }
 0x2ce   :  { %v528_v55 = vpack.c.bf16 %v242_v51, %v241_v50  ;;  %v234_v56 = vmul.f32 %v662_v39, %v227_v54  ;;  %v243_v58 = vadd.f32 %v239_v49, %v233_v52 }
 0x2cf   :  { %v571_v57 = vpop.f32.mrf.mxu1 }
 0x2d0   :  { %257 = vst [vmem:[%s714_s5] sm:$0xff] %v528_v55  ;;  %v244_v59 = vadd.f32 %v240_v53, %v234_v56  ;;  %v366_v60 = vsel %vm124_vm1, %v571_v57, -inf }
 0x2d1   :  { %367 = vmax.xlane.f32.xlu1 %v366_v60  ;;  %v354_v61 = vpop.f32.mrf.mxu1 }
 0x2d2   :  { %v529_v62 = vpack.c.bf16 %v244_v59, %v243_v58  ;;  %v363_v63 = vsel %vm124_vm1, %v354_v61, -inf }
 0x2d3   :  { %364 = vmax.xlane.f32.xlu0 %v363_v63 }
 0x2d4   :  { %258 = vst [vmem:[%s714_s5 + $0x8] sm:$0xff] %v529_v62 }
 0x35a   :  { %v368_v0 = vpop.xlane.xlu1 %367 }
 0x35b   :  { %v370_v1 = vsub.f32 %v571_v57, %v368_v0 }
 0x35c   :  { %v365_v2 = vpop.xlane.xlu0 %364 }
 0x35d   :  { %v373_v3 = vmul.f32 1.442695, %v370_v1  ;;  %v369_v4 = vsub.f32 %v354_v61, %v365_v2 }
 0x35f   :  { %581 = vpow2.f32 %v373_v3  ;;  %v371_v5 = vmul.f32 1.442695, %v369_v4 }
 0x361   :  { %583 = vpow2.f32 %v371_v5 }
 0x36c   :  { %v582_v6 = vpop.eup %581 }
 0x36d   :  { %v378_v7 = vsel %vm124_vm1, %v582_v6, 0.0 }
 0x36e   :  { %v584_v8 = vpop.eup %583  ;;  %379 = vadd.xlane.f32.xlu1 %v378_v7 }
 0x36f   :  { %v375_v9 = vsel %vm124_vm1, %v584_v8, 0.0 }
 0x370   :  { %376 = vadd.xlane.f32.xlu0 %v375_v9 }
 0x3f7   :  { %v380_v16 = vpop.xlane.xlu1 %379 }
 0x3f9   :  { %v377_v17 = vpop.xlane.xlu0 %376 }
 0x3fa   :  { %585 = vrcp.f32 %v377_v17 }
 0x3fb   :  { %587 = vrcp.f32 %v380_v16 }
 0x407   :  { %v586_v18 = vpop.eup %585 }
 0x408   :  { %v383_v19 = vmul.f32 %v586_v18, %v584_v8  ;;  %v588_v20 = vpop.eup %587 }
 0x409   :  { %v384_v21 = vmul.f32 %v588_v20, %v582_v6 }
 0x40a   :  { %520 = vmatmul.mubr.msk.f32.vlgmr.msra.gmra.mxu0 %vm124_vm1, %v383_v19 }
 0x40b   :  { %461 = vmatprep.mubr.f32.mxu0 %v589_v23 }
 0x40e   :  { %521 = vmatmul.mubr.msk.f32.gmra.mxu0 %vm124_vm1, %v384_v21 }
 0x4ca   :  { %v457_v24 = vpop.f32.mrf.mxu0 }
 0x4cb   :  { %v468_v25 = vmul.f32 %v457_v24, %v662_v39 }
 0x4cc   :  { %v459_v29 = vpop.f32.mrf.mxu0 }
 0x4cd   :  { %v469_v30 = vmul.f32 %v459_v29, %v662_v39  ;;  %v479_v32 = vadd.f32 %v475_v26, %v468_v25 }
 0x4ce   :  { %v463_v23 = vpop.f32.mrf.mxu0 }
 0x4cf   :  { %v480_v33 = vadd.f32 %v476_v27, %v469_v30  ;;  %v470_v34 = vmul.f32 %v463_v23, %v662_v39 }
 0x4d0   :  { %v465_v36 = vpop.f32.mrf.mxu0 }
 0x4d1   :  { %v530_v37 = vpack.c.bf16 %v480_v33, %v479_v32  ;;  %v471_v38 = vmul.f32 %v465_v36, %v662_v39  ;;  %v481_v40 = vadd.f32 %v477_v31, %v470_v34 }
 0x4d3   :  { %526 = vst [vmem:[%s714_s5 + $0x10] sm:$0xff] %v530_v37  ;;  %v482_v41 = vadd.f32 %v478_v35, %v471_v38 }
 0x4d5   :  { %v531_v42 = vpack.c.bf16 %v482_v41, %v481_v40 }
 0x4d7   :  { %527 = vst [vmem:[%s714_s5 + $0x18] sm:$0xff] %v531_v42 }

// kernel: forward.27
= control target key start
LH: loop header
LB: loop body
LE: loop exit
PB: predicated region body
PF: predicated region fallthrough
CT: control target
= control target key end

     0   :  { %s1343_s12 = smov 0   ;;  %s1345_s13 = smov 0   ;;  %s1602_s0 = inlined_call_operand.vmem [shape: bf16[16,512], index: 0, kind: input, shape index: {}]   ;;  %s1603_s1 = inlined_call_operand.vmem [shape: bf16[512,640], index: 1, kind: input, shape index: {}]   ;;  %s1604_s2 = inlined_call_operand.vmem [shape: f32[1,640], index: 2, kind: input, shape index: {}]   ;;  %s1605_s3 = inlined_call_operand.vmem [shape: bf16[16,640], index: 3, kind: output, shape index: {}]  }
   0x1   :  { %s1347_s14 = smov 0   ;;  %s1349_s15 = smov 0  }
   0x2   :  { %s1351_s16 = smov 0  }
   0x3 LB: > { %s28_s17 = sadd.s32 1, %s1317_s15  ;;  %s1101_s18 = sadd.s32 4294967295, %s1321_s16   ;;  %s1321_s16 = sphi %s1351_s16, %s13_s16   ;;  %s1317_s15 = sphi %s1349_s15, %s1610_s15   ;;  %s1313_s14 = sphi %s1347_s14, %s1609_s14   ;;  %s1309_s13 = sphi %s1345_s13, %s1608_s13   ;;  %s1305_s12 = sphi %s1343_s12, %s1607_s12  }
   0x4   : > { %p30_p0 = scmp.ge.s32.totalorder %s28_s17, 5  ;;  %p76_p1 = scmp.ne.s32.totalorder %s1309_s13, %s1305_s12 }
   0x5   : > { %p77_p2 = scmp.eq.s32.totalorder %s1321_s16, 0  ;;  %p134_p4 = scmp.eq.s32.totalorder %s1101_s18, 4 }
   0x6   : > { %s1612_s17 = smov (%p30_p0, %s28_s17), 0  ;;  %s69_s20 = sadd.s32 1, %s1309_s13 }
   0x7   : > { %p78_p3 = por %p77_p2, %p76_p1  ;;  %s65_s19 = ssub.s32 %s1317_s15, %s1612_s17 }
   0x8   : > { %p67_p5 = scmp.eq.s32.totalorder %s65_s19, 0  ;;  %p1378_p6 = por %p134_p4, %p76_p1 }
   0x9   : > { %p1105_p7 = scmp.ge.s32.totalorder %s1321_s16, 5 }
   0xa   : > { %s1383_s22 = scalar_select %p67_p5, %s1309_s13, %s69_s20  }
   0xb   : > { %171 = sbr.rel (%p1105_p7) target bundleno = 62 (0x3e), region = 20 }
  0x10   : > { %174 = sbr.rel (!%p78_p3) target bundleno = 62 (0x3e), region = 24  ;;  %s176_s23 = sand.u32 (%p78_p3), 1, %s1309_s13  }
  0x11   : > { %s1107_s24 = sshll.u32 (%p78_p3), %s1317_s15, 2  ;;  %s1106_s25 = sshll.u32 (%p78_p3), %s176_s23, 8 }
  0x12   : > { %s1391_s28 = scalar_lea.vmem (%p78_p3), %s1603_s1, %s1107_s24  ;;  %s1395_s29 = scalar_lea.vmem (%p78_p3), [#allocation3], %s1106_s25 }
  0x13   : > { %v200_v0 = vld [vmem:[%s1391_s28] sm:$0xf] (%p78_p3)  ;;  %v202_v1 = vld [vmem:[%s1391_s28 + $0x14] sm:$0xf] (%p78_p3)  ;;  %v204_v2 = vld [vmem:[%s1391_s28 + $0x28] sm:$0xf] (%p78_p3) }
  0x14   : > { %201 = vst [vmem:[%s1395_s29] sm:$0xf] (%p78_p3), %v200_v0  ;;  %203 = vst [vmem:[%s1395_s29 + $0x4] sm:$0xf] (%p78_p3), %v202_v1  ;;  %v206_v3 = vld [vmem:[%s1391_s28 + $0x3c] sm:$0xf] (%p78_p3) }
  0x15   : > { %v208_v4 = vld [vmem:[%s1391_s28 + $0x50] sm:$0xf]  ;;  %205 = vst [vmem:[%s1395_s29 + $0x8] sm:$0xf] %v204_v2  ;;  %207 = vst [vmem:[%s1395_s29 + $0xc] sm:$0xf] %v206_v3 }
  0x16   : > { %209 = vst [vmem:[%s1395_s29 + $0x10] sm:$0xf] %v208_v4  ;;  %v210_v5 = vld [vmem:[%s1391_s28 + $0x64] sm:$0xf]  ;;  %v212_v6 = vld [vmem:[%s1391_s28 + $0x78] sm:$0xf] }
  0x17   : > { %v214_v7 = vld [vmem:[%s1391_s28 + $0x8c] sm:$0xf]  ;;  %211 = vst [vmem:[%s1395_s29 + $0x14] sm:$0xf] %v210_v5  ;;  %213 = vst [vmem:[%s1395_s29 + $0x18] sm:$0xf] %v212_v6 }
  0x18   : > { %215 = vst [vmem:[%s1395_s29 + $0x1c] sm:$0xf] %v214_v7  ;;  %v216_v8 = vld [vmem:[%s1391_s28 + $0xa0] sm:$0xf]  ;;  %v218_v9 = vld [vmem:[%s1391_s28 + $0xb4] sm:$0xf] }
  0x19   : > { %v220_v10 = vld [vmem:[%s1391_s28 + $0xc8] sm:$0xf]  ;;  %217 = vst [vmem:[%s1395_s29 + $0x20] sm:$0xf] %v216_v8  ;;  %219 = vst [vmem:[%s1395_s29 + $0x24] sm:$0xf] %v218_v9 }
  0x1a   : > { %221 = vst [vmem:[%s1395_s29 + $0x28] sm:$0xf] %v220_v10  ;;  %v222_v11 = vld [vmem:[%s1391_s28 + $0xdc] sm:$0xf]  ;;  %v224_v12 = vld [vmem:[%s1391_s28 + $0xf0] sm:$0xf] }
  0x1b   : > { %v226_v13 = vld [vmem:[%s1391_s28 + $0x104] sm:$0xf]  ;;  %223 = vst [vmem:[%s1395_s29 + $0x2c] sm:$0xf] %v222_v11  ;;  %225 = vst [vmem:[%s1395_s29 + $0x30] sm:$0xf] %v224_v12 }
  0x1c   : > { %227 = vst [vmem:[%s1395_s29 + $0x34] sm:$0xf] %v226_v13  ;;  %v228_v14 = vld [vmem:[%s1391_s28 + $0x118] sm:$0xf]  ;;  %v230_v15 = vld [vmem:[%s1391_s28 + $0x12c] sm:$0xf] }
  0x1d   : > { %v232_v16 = vld [vmem:[%s1391_s28 + $0x140] sm:$0xf]  ;;  %229 = vst [vmem:[%s1395_s29 + $0x38] sm:$0xf] %v228_v14  ;;  %231 = vst [vmem:[%s1395_s29 + $0x3c] sm:$0xf] %v230_v15 }
  0x1e   : > { %233 = vst [vmem:[%s1395_s29 + $0x40] sm:$0xf] %v232_v16  ;;  %v234_v17 = vld [vmem:[%s1391_s28 + $0x154] sm:$0xf]  ;;  %v236_v18 = vld [vmem:[%s1391_s28 + $0x168] sm:$0xf] }
  0x1f   : > { %v238_v19 = vld [vmem:[%s1391_s28 + $0x17c] sm:$0xf]  ;;  %235 = vst [vmem:[%s1395_s29 + $0x44] sm:$0xf] %v234_v17  ;;  %237 = vst [vmem:[%s1395_s29 + $0x48] sm:$0xf] %v236_v18 }
  0x20   : > { %239 = vst [vmem:[%s1395_s29 + $0x4c] sm:$0xf] %v238_v19  ;;  %v240_v20 = vld [vmem:[%s1391_s28 + $0x190] sm:$0xf]  ;;  %v242_v21 = vld [vmem:[%s1391_s28 + $0x1a4] sm:$0xf] }
  0x21   : > { %v244_v22 = vld [vmem:[%s1391_s28 + $0x1b8] sm:$0xf]  ;;  %241 = vst [vmem:[%s1395_s29 + $0x50] sm:$0xf] %v240_v20  ;;  %243 = vst [vmem:[%s1395_s29 + $0x54] sm:$0xf] %v242_v21 }
  0x22   : > { %245 = vst [vmem:[%s1395_s29 + $0x58] sm:$0xf] %v244_v22  ;;  %v246_v23 = vld [vmem:[%s1391_s28 + $0x1cc] sm:$0xf]  ;;  %v248_v24 = vld [vmem:[%s1391_s28 + $0x1e0] sm:$0xf] }
  0x23   : > { %v250_v25 = vld [vmem:[%s1391_s28 + $0x1f4] sm:$0xf]  ;;  %247 = vst [vmem:[%s1395_s29 + $0x5c] sm:$0xf] %v246_v23  ;;  %249 = vst [vmem:[%s1395_s29 + $0x60] sm:$0xf] %v248_v24 }
  0x24   : > { %251 = vst [vmem:[%s1395_s29 + $0x64] sm:$0xf] %v250_v25  ;;  %v252_v26 = vld [vmem:[%s1391_s28 + $0x208] sm:$0xf]  ;;  %v254_v27 = vld [vmem:[%s1391_s28 + $0x21c] sm:$0xf] }
  0x25   : > { %v256_v28 = vld [vmem:[%s1391_s28 + $0x230] sm:$0xf]  ;;  %253 = vst [vmem:[%s1395_s29 + $0x68] sm:$0xf] %v252_v26  ;;  %255 = vst [vmem:[%s1395_s29 + $0x6c] sm:$0xf] %v254_v27 }
  0x26   : > { %257 = vst [vmem:[%s1395_s29 + $0x70] sm:$0xf] %v256_v28  ;;  %v258_v29 = vld [vmem:[%s1391_s28 + $0x244] sm:$0xf]  ;;  %v260_v30 = vld [vmem:[%s1391_s28 + $0x258] sm:$0xf] }
  0x27   : > { %v262_v31 = vld [vmem:[%s1391_s28 + $0x26c] sm:$0xf]  ;;  %259 = vst [vmem:[%s1395_s29 + $0x74] sm:$0xf] %v258_v29  ;;  %261 = vst [vmem:[%s1395_s29 + $0x78] sm:$0xf] %v260_v30 }
  0x28   : > { %263 = vst [vmem:[%s1395_s29 + $0x7c] sm:$0xf] %v262_v31  ;;  %v264_v32 = vld [vmem:[%s1391_s28 + $0x280] sm:$0xf]  ;;  %v266_v33 = vld [vmem:[%s1391_s28 + $0x294] sm:$0xf] }
  0x29   : > { %v268_v34 = vld [vmem:[%s1391_s28 + $0x2a8] sm:$0xf]  ;;  %265 = vst [vmem:[%s1395_s29 + $0x80] sm:$0xf] %v264_v32  ;;  %267 = vst [vmem:[%s1395_s29 + $0x84] sm:$0xf] %v266_v33 }
  0x2a   : > { %269 = vst [vmem:[%s1395_s29 + $0x88] sm:$0xf] %v268_v34  ;;  %v270_v35 = vld [vmem:[%s1391_s28 + $0x2bc] sm:$0xf]  ;;  %v272_v36 = vld [vmem:[%s1391_s28 + $0x2d0] sm:$0xf] }
  0x2b   : > { %v274_v37 = vld [vmem:[%s1391_s28 + $0x2e4] sm:$0xf]  ;;  %271 = vst [vmem:[%s1395_s29 + $0x8c] sm:$0xf] %v270_v35  ;;  %273 = vst [vmem:[%s1395_s29 + $0x90] sm:$0xf] %v272_v36 }
  0x2c   : > { %275 = vst [vmem:[%s1395_s29 + $0x94] sm:$0xf] %v274_v37  ;;  %v276_v38 = vld [vmem:[%s1391_s28 + $0x2f8] sm:$0xf]  ;;  %v278_v39 = vld [vmem:[%s1391_s28 + $0x30c] sm:$0xf] }
  0x2d   : > { %v280_v40 = vld [vmem:[%s1391_s28 + $0x320] sm:$0xf]  ;;  %277 = vst [vmem:[%s1395_s29 + $0x98] sm:$0xf] %v276_v38  ;;  %279 = vst [vmem:[%s1395_s29 + $0x9c] sm:$0xf] %v278_v39 }
  0x2e   : > { %281 = vst [vmem:[%s1395_s29 + $0xa0] sm:$0xf] %v280_v40  ;;  %v282_v41 = vld [vmem:[%s1391_s28 + $0x334] sm:$0xf]  ;;  %v284_v42 = vld [vmem:[%s1391_s28 + $0x348] sm:$0xf] }
  0x2f   : > { %v286_v43 = vld [vmem:[%s1391_s28 + $0x35c] sm:$0xf]  ;;  %283 = vst [vmem:[%s1395_s29 + $0xa4] sm:$0xf] %v282_v41  ;;  %285 = vst [vmem:[%s1395_s29 + $0xa8] sm:$0xf] %v284_v42 }
  0x30   : > { %287 = vst [vmem:[%s1395_s29 + $0xac] sm:$0xf] %v286_v43  ;;  %v288_v44 = vld [vmem:[%s1391_s28 + $0x370] sm:$0xf]  ;;  %v290_v45 = vld [vmem:[%s1391_s28 + $0x384] sm:$0xf] }
  0x31   : > { %v292_v46 = vld [vmem:[%s1391_s28 + $0x398] sm:$0xf]  ;;  %289 = vst [vmem:[%s1395_s29 + $0xb0] sm:$0xf] %v288_v44  ;;  %291 = vst [vmem:[%s1395_s29 + $0xb4] sm:$0xf] %v290_v45 }
  0x32   : > { %293 = vst [vmem:[%s1395_s29 + $0xb8] sm:$0xf] %v292_v46  ;;  %v294_v47 = vld [vmem:[%s1391_s28 + $0x3ac] sm:$0xf]  ;;  %v296_v48 = vld [vmem:[%s1391_s28 + $0x3c0] sm:$0xf] }
  0x33   : > { %v298_v49 = vld [vmem:[%s1391_s28 + $0x3d4] sm:$0xf]  ;;  %295 = vst [vmem:[%s1395_s29 + $0xbc] sm:$0xf] %v294_v47  ;;  %297 = vst [vmem:[%s1395_s29 + $0xc0] sm:$0xf] %v296_v48 }
  0x34   : > { %299 = vst [vmem:[%s1395_s29 + $0xc4] sm:$0xf] %v298_v49  ;;  %v300_v50 = vld [vmem:[%s1391_s28 + $0x3e8] sm:$0xf]  ;;  %v302_v51 = vld [vmem:[%s1391_s28 + $0x3fc] sm:$0xf] }
  0x35   : > { %v304_v52 = vld [vmem:[%s1391_s28 + $0x410] sm:$0xf]  ;;  %301 = vst [vmem:[%s1395_s29 + $0xc8] sm:$0xf] %v300_v50  ;;  %303 = vst [vmem:[%s1395_s29 + $0xcc] sm:$0xf] %v302_v51 }
  0x36   : > { %305 = vst [vmem:[%s1395_s29 + $0xd0] sm:$0xf] %v304_v52  ;;  %v306_v53 = vld [vmem:[%s1391_s28 + $0x424] sm:$0xf]  ;;  %v308_v54 = vld [vmem:[%s1391_s28 + $0x438] sm:$0xf] }
  0x37   : > { %v310_v55 = vld [vmem:[%s1391_s28 + $0x44c] sm:$0xf]  ;;  %307 = vst [vmem:[%s1395_s29 + $0xd4] sm:$0xf] %v306_v53  ;;  %309 = vst [vmem:[%s1395_s29 + $0xd8] sm:$0xf] %v308_v54 }
  0x38   : > { %311 = vst [vmem:[%s1395_s29 + $0xdc] sm:$0xf] %v310_v55  ;;  %v312_v56 = vld [vmem:[%s1391_s28 + $0x460] sm:$0xf]  ;;  %v314_v57 = vld [vmem:[%s1391_s28 + $0x474] sm:$0xf] }
  0x39   : > { %v316_v58 = vld [vmem:[%s1391_s28 + $0x488] sm:$0xf]  ;;  %313 = vst [vmem:[%s1395_s29 + $0xe0] sm:$0xf] %v312_v56  ;;  %315 = vst [vmem:[%s1395_s29 + $0xe4] sm:$0xf] %v314_v57 }
  0x3a   : > { %317 = vst [vmem:[%s1395_s29 + $0xe8] sm:$0xf] %v316_v58  ;;  %v318_v59 = vld [vmem:[%s1391_s28 + $0x49c] sm:$0xf]  ;;  %v320_v60 = vld [vmem:[%s1391_s28 + $0x4b0] sm:$0xf] }
  0x3b   : > { %v322_v61 = vld [vmem:[%s1391_s28 + $0x4c4] sm:$0xf]  ;;  %319 = vst [vmem:[%s1395_s29 + $0xec] sm:$0xf] %v318_v59  ;;  %321 = vst [vmem:[%s1395_s29 + $0xf0] sm:$0xf] %v320_v60 }
  0x3c   : > { %323 = vst [vmem:[%s1395_s29 + $0xf4] sm:$0xf] %v322_v61  ;;  %v324_v62 = vld [vmem:[%s1391_s28 + $0x4d8] sm:$0xf]  ;;  %v326_v63 = vld [vmem:[%s1391_s28 + $0x4ec] sm:$0xf] }
  0x3d   : > { %325 = vst [vmem:[%s1395_s29 + $0xf8] sm:$0xf] %v324_v62  ;;  %327 = vst [vmem:[%s1395_s29 + $0xfc] sm:$0xf] %v326_v63 }
  0x3e PF: > { %p1108_p8 = scmp.ge.s32.totalorder %s1321_s16, 1  ;;  %p484_p9 = scmp.lt.s32.totalorder %s1321_s16, 6 }
  0x40   : > { %p485_p10 = pnand %p1108_p8, %p484_p9 }
  0x41   : > { %s491_s30 = sand.u32 (!%p485_p10), 1, %s1305_s12   ;;  %p539_p11 = scmp.lt.s32.totalorder (!%p485_p10), %s1313_s14, 4 }
  0x42   : > { %488 = sbr.rel (%p485_p10) target bundleno = 323 (0x143), region = 69  ;;  %s1109_s4 = sshll.u32 (!%p485_p10), %s491_s30, 8 }
  0x43   : > { %s1534_s9 = scalar_lea.vmem (!%p485_p10), [#allocation3], %s1109_s4  ;;  %s1110_s26 = sshll.u32 (!%p485_p10), %s491_s30, 3 }
  0x44   : > { %s525_s27 = scalar_lea.vmem (!%p485_p10), [#allocation4], %s1110_s26 }
  0x47   : > { %v1279_v0 = vld [vmem:[%s1602_s0 + $0x4] ss:$16 sps:$4 sm:$0xff]   ;;  %v1282_v1 = vld [vmem:[%s1602_s0 + $0xc] ss:$16 sps:$4 sm:$0xff]   ;;  %v1277_v32 = vld [vmem:[%s1602_s0] ss:$16 sps:$4 sm:$0xff]  }
  0x48   : > { %v1245_v2 = vld [vmem:[%s1534_s9 + $0x78] sm:$0xff]   ;;  %864 = vmatprep.mubr.bf16.mxu0 %v1279_v0  ;;  %905 = vmatprep.mubr.bf16.mxu1 %v1282_v1  ;;  %v1249_v6 = vld [vmem:[%s1534_s9 + $0x70] sm:$0xff]   ;;  %v1253_v10 = vld [vmem:[%s1534_s9 + $0x68] sm:$0xff]   ;;  %s540_s20 = scalar_select %p539_p11, %s1313_s14, 4 }
  0x49   : > { %v1246_v3 = vld [vmem:[%s1534_s9 + $0xf8] sm:$0xff]   ;;  %1161 = vmatprep.subr.bf16.mxu0 %v1245_v2  ;;  %v1250_v7 = vld [vmem:[%s1534_s9 + $0xf0] sm:$0xff]   ;;  %v1254_v11 = vld [vmem:[%s1534_s9 + $0xe8] sm:$0xff]   ;;  %s1151_s28 = sshll.u32 (%p1378_p6), %s1313_s14, 2 }
  0x4a   : > { %v1247_v4 = vld [vmem:[%s1534_s9 + $0x38] sm:$0xff]   ;;  %1183 = vmatprep.subr.bf16.mxu1 %v1246_v3  ;;  %v1251_v8 = vld [vmem:[%s1534_s9 + $0x30] sm:$0xff]   ;;  %v1255_v12 = vld [vmem:[%s1534_s9 + $0x28] sm:$0xff]   ;;  %s541_s25 = scalar_lea.vmem %s1604_s2, %s540_s20  ;;  %s953_s5 = scalar_lea.vmem (%p1378_p6), %s1605_s3, %s1151_s28 }
  0x4b   : > { %v1248_v5 = vld [vmem:[%s1534_s9 + $0xb8] sm:$0xff]   ;;  %1162 = vmatpush3.bf16.msra.mxu0 %v1247_v4  ;;  %v1252_v9 = vld [vmem:[%s1534_s9 + $0xb0] sm:$0xff]   ;;  %v1256_v13 = vld [vmem:[%s1534_s9 + $0xa8] sm:$0xff]  }
  0x4c   : > { %1184 = vmatpush3.bf16.msra.mxu1 %v1248_v5  ;;  %1163 = vmatprep.subr.bf16.mxu0 %v1249_v6  ;;  %v1257_v14 = vld [vmem:[%s1534_s9 + $0x60] sm:$0xff]   ;;  %v1261_v18 = vld [vmem:[%s1534_s9 + $0x58] sm:$0xff]   ;;  %v1265_v22 = vld [vmem:[%s1534_s9 + $0x50] sm:$0xff]  }
  0x4d   : > { %1185 = vmatprep.subr.bf16.mxu1 %v1250_v7  ;;  %v1258_v15 = vld [vmem:[%s1534_s9 + $0xe0] sm:$0xff]   ;;  %v1262_v19 = vld [vmem:[%s1534_s9 + $0xd8] sm:$0xff]   ;;  %v1266_v23 = vld [vmem:[%s1534_s9 + $0xd0] sm:$0xff]  }
  0x4e   : > { %v1259_v16 = vld [vmem:[%s1534_s9 + $0x20] sm:$0xff]   ;;  %v1263_v20 = vld [vmem:[%s1534_s9 + $0x18] sm:$0xff]   ;;  %v1267_v24 = vld [vmem:[%s1534_s9 + $0x10] sm:$0xff]  }
  0x4f   : > { %1164 = vmatpush3.bf16.msra.mxu0 %v1251_v8  ;;  %v1260_v17 = vld [vmem:[%s1534_s9 + $0xa0] sm:$0xff]   ;;  %v1264_v21 = vld [vmem:[%s1534_s9 + $0x98] sm:$0xff]   ;;  %v1268_v25 = vld [vmem:[%s1534_s9 + $0x90] sm:$0xff]  }
  0x50   : > { %1186 = vmatpush3.bf16.msra.mxu1 %v1252_v9  ;;  %1165 = vmatprep.subr.bf16.mxu0 %v1253_v10  ;;  %v1269_v26 = vld [vmem:[%s1534_s9 + $0x48] sm:$0xff]   ;;  %v1273_v30 = vld [vmem:[%s1534_s9 + $0x40] sm:$0xff]  }
  0x51   : > { %1187 = vmatprep.subr.bf16.mxu1 %v1254_v11  ;;  %v1270_v27 = vld [vmem:[%s1534_s9 + $0xc8] sm:$0xff]   ;;  %v1274_v31 = vld [vmem:[%s1534_s9 + $0xc0] sm:$0xff]  }
  0x52   : > { %v1271_v28 = vld [vmem:[%s1534_s9 + $0x8] sm:$0xff]   ;;  %v1275_v33 = vld [vmem:[%s1534_s9] sm:$0xff]  }
  0x53   : > { %1166 = vmatpush3.bf16.msra.mxu0 %v1255_v12  ;;  %v1272_v29 = vld [vmem:[%s1534_s9 + $0x88] sm:$0xff]   ;;  %v1276_v34 = vld [vmem:[%s1534_s9 + $0x80] sm:$0xff]  }
  0x54   : > { %1188 = vmatpush3.bf16.msra.mxu1 %v1256_v13  ;;  %1167 = vmatprep.subr.bf16.mxu0 %v1257_v14  ;;  %v1280_v35 = vld [vmem:[%s1602_s0 + $0x8] ss:$16 sps:$4 sm:$0xff]   ;;  %v1147_v49 = vld [vmem:[%s541_s25] ss:$0 sm:$0xff] }
  0x55   : > { %1189 = vmatprep.subr.bf16.mxu1 %v1258_v15 }
  0x57   : > { %1168 = vmatpush3.bf16.msra.mxu0 %v1259_v16 }
  0x58   : > { %1190 = vmatpush3.bf16.msra.mxu1 %v1260_v17  ;;  %1169 = vmatprep.subr.bf16.mxu0 %v1261_v18 }
  0x59   : > { %1191 = vmatprep.subr.bf16.mxu1 %v1262_v19 }
  0x5b   : > { %1170 = vmatpush3.bf16.msra.mxu0 %v1263_v20 }
  0x5c   : > { %1192 = vmatpush3.bf16.msra.mxu1 %v1264_v21  ;;  %1171 = vmatprep.subr.bf16.mxu0 %v1265_v22 }
  0x5d   : > { %1193 = vmatprep.subr.bf16.mxu1 %v1266_v23 }
  0x5f   : > { %1172 = vmatpush3.bf16.msra.mxu0 %v1267_v24 }
  0x60   : > { %1194 = vmatpush3.bf16.msra.mxu1 %v1268_v25  ;;  %1173 = vmatprep.subr.bf16.mxu0 %v1269_v26 }
  0x61   : > { %1195 = vmatprep.subr.bf16.mxu1 %v1270_v27 }
  0x63   : > { %1174 = vmatpush3.bf16.msra.mxu0 %v1271_v28 }
  0x64   : > { %1196 = vmatpush3.bf16.msra.mxu1 %v1272_v29  ;;  %1175 = vmatprep.subr.bf16.mxu0 %v1273_v30 }
  0x65   : > { %1197 = vmatprep.subr.bf16.mxu1 %v1274_v31 }
  0x67   : > { %1176 = vmatpush3.bf16.msra.mxu0 %v1275_v33 }
  0x68   : > { %1198 = vmatpush3.bf16.msra.mxu1 %v1276_v34 }
  0x6a   : > { %865 = vmatmul.mubr.bf16.vlgmr.msra.gmra.mxu0 %v1277_v32 }
  0x6b   : > { %906 = vmatmul.mubr.bf16.vlgmr.msra.gmra.mxu1 %v1280_v35 }
 0x12a   : > { %v1177_v36 = vpop.f32.mrf.mxu0 }
 0x12b   : > { %v1199_v37 = vpop.f32.mrf.mxu1 }
 0x12c   : > { %v1178_v38 = vpop.f32.mrf.mxu0 }
 0x12d   : > { %v1200_v39 = vpop.f32.mrf.mxu1  ;;  %v1179_v40 = vadd.f32 %v1178_v38, %v1177_v36 }
 0x12e   : > { %v1201_v41 = vadd.f32 %v1200_v39, %v1199_v37  ;;  %v1180_v42 = vpop.f32.mrf.mxu0 }
 0x12f   : > { %v1202_v43 = vpop.f32.mrf.mxu1 }
 0x130   : > { %v1181_v44 = vpop.f32.mrf.mxu0  ;;  %v908_v47 = vadd.f32 %v1201_v41, %v1179_v40 }
 0x131   : > { %v1182_v45 = vadd.f32 %v1181_v44, %v1180_v42  ;;  %v1203_v46 = vpop.f32.mrf.mxu1 }
 0x132   : > { %v1204_v48 = vadd.f32 %v1203_v46, %v1202_v43  ;;  %v930_v51 = vadd.f32 %v1147_v49, %v908_v47 }
 0x134   : > { %v911_v50 = vadd.f32 %v1204_v48, %v1182_v45 }
 0x136   : > { %v931_v52 = vadd.f32 %v1147_v49, %v911_v50  ;;  %948 = sbr.rel (!%p1378_p6) target bundleno = 323 (0x143), region = 85 }
 0x138   : > { %v1159_v53 = vpack.c.bf16 %v931_v52, %v930_v51 }
 0x13a   : > { %1160 = vst [vmem:[%s525_s27] sm:$0xff] %v1159_v53  }
 0x141   : > { %v970_v54 = vld [vmem:[%s525_s27] sm:$0xf]  ;;  %v972_v55 = vld [vmem:[%s525_s27 + $0x4] sm:$0xf] }
 0x142   : > { %971 = vst [vmem:[%s953_s5] sm:$0xf] %v970_v54  ;;  %973 = vst [vmem:[%s953_s5 + $0x14] sm:$0xf] %v972_v55 }
 0x143 PF: > { %s13_s16 = sadd.s32 1, %s1321_s16   ;;  %s1607_s12 = smov %s1309_s13 }
 0x144   : > { %p10_p12 = scmp.ge.s32.totalorder %s13_s16, 7   ;;  %s1608_s13 = smov %s1383_s22 }
 0x145   : > { %s1609_s14 = smov %s1317_s15  ;;  %s1610_s15 = smov %s1612_s17 }
 0x146   :  { %12 = sbr.rel (!%p10_p12) target bundleno = 3 (0x3), region = 163 }

// kernel: forward.26
= control target key start
LH: loop header
LB: loop body
LE: loop exit
PB: predicated region body
PF: predicated region fallthrough
CT: control target
= control target key end

     0   :  { %s2057_s0 = inlined_call_operand.vmem [shape: bf16[16,4096], index: 0, kind: input, shape index: {}]   ;;  %s2058_s1 = inlined_call_operand.vmem [shape: bf16[4096,512], index: 1, kind: input, shape index: {}]   ;;  %s2059_s2 = inlined_call_operand.vmem [shape: f32[1,512], index: 2, kind: input, shape index: {}]   ;;  %s2060_s3 = inlined_call_operand.vmem [shape: bf16[16,512], index: 3, kind: output, shape index: {}]  }
   0x1   :  { %2062 = sst [smem:[#allocation7_spill]] %s2057_s0 }
   0x2   :  { %2063 = sst [smem:[#allocation8_spill]] %s2058_s1 }
   0x3   :  { %s1675_s12 = smov 0   ;;  %s1677_s13 = smov 0  }
   0x4   :  { %s1679_s14 = smov 0   ;;  %s1681_s15 = smov 0  }
   0x5   :  { %s1683_s16 = smov 0   ;;  %s1685_s17 = smov 0  }
   0x6   :  { %s1687_s18 = smov 0   ;;  %s1689_s19 = smov 0  }
   0x7   :  { %s1691_s20 = smov 0   ;;  %s1693_s21 = smov 0  }
   0x8   :  { %s1695_s22 = smov 0  }
   0x9 LB: > { %s1276_s23 = sadd.s32 4294967295, %s1652_s22   ;;  %s25_s24 = sadd.s32 1, %s1644_s20  ;;  %s1652_s22 = sphi %s1695_s22, %s13_s22   ;;  %s1648_s21 = sphi %s1693_s21, %s2080_s21   ;;  %s1644_s20 = sphi %s1691_s20, %s2079_s20   ;;  %s1640_s19 = sphi %s1689_s19, %s2078_s19   ;;  %s1636_s18 = sphi %s1687_s18, %s2077_s18   ;;  %s1632_s17 = sphi %s1685_s17, %s2076_s17   ;;  %s1628_s16 = sphi %s1683_s16, %s2075_s16   ;;  %s1624_s15 = sphi %s1681_s15, %s2074_s15   ;;  %s1620_s14 = sphi %s1679_s14, %s2073_s14   ;;  %s1616_s13 = sphi %s1677_s13, %s2072_s13   ;;  %s1612_s12 = sphi %s1675_s12, %s2071_s12  }
   0xa   : > { %p26_p0 = scmp.ge.s32.totalorder %s25_s24, 8  ;;  %s28_s25 = sadd.s32 1, %s1648_s21 }
   0xb   : > { %s41_s26 = sadd.s32 1, %s1632_s17  ;;  %p48_p1 = scmp.ne.s32.totalorder %s1632_s17, %s1628_s16 }
   0xc   : > { %s2082_s24 = smov (%p26_p0, %s25_s24), 0  ;;  %s2084_s25 = smov (!%p26_p0, %s28_s25), %s1648_s21 }
   0xd   : > { %s37_s27 = ssub.s32 %s1644_s20, %s2082_s24  ;;  %p49_p2 = scmp.eq.s32.totalorder %s1652_s22, 0 }
   0xe   : > { %p30_p3 = scmp.ge.s32.totalorder %s2084_s25, 2  ;;  %p39_p4 = scmp.eq.s32.totalorder %s37_s27, 0 }
   0xf   : > { %p1742_p5 = por %p49_p2, %p48_p1  ;;  %s69_s29 = sadd.s32 1, %s1624_s15 }
  0x10   : > { %s2086_s25 = smov (%p30_p3, %s2084_s25), 0  ;;  %p76_p6 = scmp.ne.s32.totalorder %s1624_s15, %s1620_s14 }
  0x11   : > { %2065 = sst [smem:[#allocation6_spill]] %s2086_s25  ;;  %s65_s4 = ssub.s32 %s1648_s21, %s2086_s25 }
  0x12   : > { %s1750_s30 = scalar_select %p39_p4, %s1632_s17, %s41_s26  }
  0x13   : > { %s66_s5 = sor.u32 %s65_s4, %s37_s27  ;;  %p121_p7 = scmp.eq.s32.totalorder %s65_s4, 0 }
  0x14   : > { %p67_p8 = scmp.eq.s32.totalorder %s66_s5, 0  ;;  %p1756_p9 = por %p76_p6, %p49_p2 }
  0x15   : > { %s123_s7 = sadd.s32 1, %s1616_s13  ;;  %p133_p10 = scmp.ne.s32.totalorder %s1616_s13, %s1612_s12 }
  0x16   : > { %s1764_s8 = scalar_select %p67_p8, %s1624_s15, %s69_s29  }
  0x17   : > { %s1767_s9 = scalar_select %p121_p7, %s1616_s13, %s123_s7  }
  0x18   : > { %p134_p11 = scmp.eq.s32.totalorder %s1276_s23, 15  ;;  %p1279_p13 = scmp.ge.s32.totalorder %s1652_s22, 16 }
  0x1a   : > { %p1769_p12 = por %p134_p11, %p133_p10  ;;  %156 = sbr.rel (%p1279_p13) target bundleno = 85 (0x55), region = 16 }
  0x1f   : > { %159 = sbr.rel (!%p1742_p5) target bundleno = 43 (0x2b), region = 20  ;;  %s161_s11 = sand.u32 (%p1742_p5), 1, %s1632_s17  }
  0x20   : > { %s1370_s26 = sshll.u32 (%p1742_p5), %s1644_s20, 4  ;;  %s1280_s27 = sshll.u32 (%p1742_p5), %s161_s11, 5 }
  0x21   : > { %s2068_s0 = sld [smem:[#allocation7_spill]] (%p1742_p5)  ;;  %s163_s23 = scalar_lea.vmem (%p1742_p5), [#allocation3], %s1280_s27 }
  0x27   : > { %s169_s5 = scalar_lea.vmem %s2068_s0, %s1370_s26 }
  0x28   : > { %v182_v0 = vld [vmem:[%s169_s5] sm:$0xff]  ;;  %v184_v1 = vld [vmem:[%s169_s5 + $0x8] sm:$0xff] }
  0x29   : > { %v186_v2 = vld [vmem:[%s169_s5 + $0x80] sm:$0xff]  ;;  %183 = vst [vmem:[%s163_s23] sm:$0xff] %v182_v0  ;;  %185 = vst [vmem:[%s163_s23 + $0x8] sm:$0xff] %v184_v1  ;;  %v188_v3 = vld [vmem:[%s169_s5 + $0x88] sm:$0xff] }
  0x2a   : > { %187 = vst [vmem:[%s163_s23 + $0x10] sm:$0xff] %v186_v2  ;;  %189 = vst [vmem:[%s163_s23 + $0x18] sm:$0xff] %v188_v3 }
  0x2b PF: > { %195 = sbr.rel (!%p1756_p9) target bundleno = 85 (0x55), region = 43  ;;  %s197_s28 = sand.u32 (%p1756_p9), 1, %s1624_s15  }
  0x2c   : > { %s1285_s7 = sshll.u32 (%p1756_p9), %s1648_s21, 1  ;;  %s1283_s11 = sshll.u32 (%p1756_p9), %s197_s28, 9 }
  0x2d   : > { %s1371_s26 = sshll.u32 (%p1756_p9), %s1644_s20, 8  ;;  %s2069_s1 = sld [smem:[#allocation8_spill]] (%p1756_p9) }
  0x2e   : > { %s203_s29 = sadd.s32 (%p1756_p9), %s1371_s26, %s1285_s7  ;;  %s1794_s6 = scalar_lea.vmem (%p1756_p9), [#allocation4], %s1283_s11 }
  0x2f   : > { %s1287_s4 = sshll.u32 (%p1756_p9), %s203_s29, 2 }
  0x33   : > { %s1789_s25 = scalar_lea.vmem %s2069_s1, %s1287_s4 }
  0x34   : > { %v360_v4 = vld [vmem:[%s1789_s25] sm:$0xff]  ;;  %v362_v5 = vld [vmem:[%s1789_s25 + $0x10] sm:$0xff] }
  0x35   : > { %v364_v6 = vld [vmem:[%s1789_s25 + $0x20] sm:$0xff]  ;;  %361 = vst [vmem:[%s1794_s6] sm:$0xff] %v360_v4  ;;  %363 = vst [vmem:[%s1794_s6 + $0x8] sm:$0xff] %v362_v5  ;;  %v366_v7 = vld [vmem:[%s1789_s25 + $0x30] sm:$0xff] }
  0x36   : > { %365 = vst [vmem:[%s1794_s6 + $0x10] sm:$0xff] %v364_v6  ;;  %v368_v8 = vld [vmem:[%s1789_s25 + $0x40] sm:$0xff]  ;;  %v370_v9 = vld [vmem:[%s1789_s25 + $0x50] sm:$0xff]  ;;  %367 = vst [vmem:[%s1794_s6 + $0x18] sm:$0xff] %v366_v7 }
  0x37   : > { %369 = vst [vmem:[%s1794_s6 + $0x20] sm:$0xff] %v368_v8  ;;  %371 = vst [vmem:[%s1794_s6 + $0x28] sm:$0xff] %v370_v9  ;;  %v372_v10 = vld [vmem:[%s1789_s25 + $0x60] sm:$0xff]  ;;  %v374_v11 = vld [vmem:[%s1789_s25 + $0x70] sm:$0xff] }
  0x38   : > { %v376_v12 = vld [vmem:[%s1789_s25 + $0x80] sm:$0xff]  ;;  %373 = vst [vmem:[%s1794_s6 + $0x30] sm:$0xff] %v372_v10  ;;  %375 = vst [vmem:[%s1794_s6 + $0x38] sm:$0xff] %v374_v11  ;;  %v378_v13 = vld [vmem:[%s1789_s25 + $0x90] sm:$0xff] }
  0x39   : > { %377 = vst [vmem:[%s1794_s6 + $0x40] sm:$0xff] %v376_v12  ;;  %v380_v14 = vld [vmem:[%s1789_s25 + $0xa0] sm:$0xff]  ;;  %v382_v15 = vld [vmem:[%s1789_s25 + $0xb0] sm:$0xff]  ;;  %379 = vst [vmem:[%s1794_s6 + $0x48] sm:$0xff] %v378_v13 }
  0x3a   : > { %381 = vst [vmem:[%s1794_s6 + $0x50] sm:$0xff] %v380_v14  ;;  %383 = vst [vmem:[%s1794_s6 + $0x58] sm:$0xff] %v382_v15  ;;  %v384_v16 = vld [vmem:[%s1789_s25 + $0xc0] sm:$0xff]  ;;  %v386_v17 = vld [vmem:[%s1789_s25 + $0xd0] sm:$0xff] }
  0x3b   : > { %v388_v18 = vld [vmem:[%s1789_s25 + $0xe0] sm:$0xff]  ;;  %385 = vst [vmem:[%s1794_s6 + $0x60] sm:$0xff] %v384_v16  ;;  %387 = vst [vmem:[%s1794_s6 + $0x68] sm:$0xff] %v386_v17  ;;  %v390_v19 = vld [vmem:[%s1789_s25 + $0xf0] sm:$0xff] }
  0x3c   : > { %389 = vst [vmem:[%s1794_s6 + $0x70] sm:$0xff] %v388_v18  ;;  %v392_v20 = vld [vmem:[%s1789_s25 + $0x100] sm:$0xff]  ;;  %v394_v21 = vld [vmem:[%s1789_s25 + $0x110] sm:$0xff]  ;;  %391 = vst [vmem:[%s1794_s6 + $0x78] sm:$0xff] %v390_v19 }
  0x3d   : > { %393 = vst [vmem:[%s1794_s6 + $0x80] sm:$0xff] %v392_v20  ;;  %395 = vst [vmem:[%s1794_s6 + $0x88] sm:$0xff] %v394_v21  ;;  %v396_v22 = vld [vmem:[%s1789_s25 + $0x120] sm:$0xff]  ;;  %v398_v23 = vld [vmem:[%s1789_s25 + $0x130] sm:$0xff] }
  0x3e   : > { %v400_v24 = vld [vmem:[%s1789_s25 + $0x140] sm:$0xff]  ;;  %397 = vst [vmem:[%s1794_s6 + $0x90] sm:$0xff] %v396_v22  ;;  %399 = vst [vmem:[%s1794_s6 + $0x98] sm:$0xff] %v398_v23  ;;  %v402_v25 = vld [vmem:[%s1789_s25 + $0x150] sm:$0xff] }
  0x3f   : > { %401 = vst [vmem:[%s1794_s6 + $0xa0] sm:$0xff] %v400_v24  ;;  %v404_v26 = vld [vmem:[%s1789_s25 + $0x160] sm:$0xff]  ;;  %v406_v27 = vld [vmem:[%s1789_s25 + $0x170] sm:$0xff]  ;;  %403 = vst [vmem:[%s1794_s6 + $0xa8] sm:$0xff] %v402_v25 }
  0x40   : > { %405 = vst [vmem:[%s1794_s6 + $0xb0] sm:$0xff] %v404_v26  ;;  %407 = vst [vmem:[%s1794_s6 + $0xb8] sm:$0xff] %v406_v27  ;;  %v408_v28 = vld [vmem:[%s1789_s25 + $0x180] sm:$0xff]  ;;  %v410_v29 = vld [vmem:[%s1789_s25 + $0x190] sm:$0xff] }
  0x41   : > { %v412_v30 = vld [vmem:[%s1789_s25 + $0x1a0] sm:$0xff]  ;;  %409 = vst [vmem:[%s1794_s6 + $0xc0] sm:$0xff] %v408_v28  ;;  %411 = vst [vmem:[%s1794_s6 + $0xc8] sm:$0xff] %v410_v29  ;;  %v414_v31 = vld [vmem:[%s1789_s25 + $0x1b0] sm:$0xff] }
  0x42   : > { %413 = vst [vmem:[%s1794_s6 + $0xd0] sm:$0xff] %v412_v30  ;;  %v416_v32 = vld [vmem:[%s1789_s25 + $0x1c0] sm:$0xff]  ;;  %v418_v33 = vld [vmem:[%s1789_s25 + $0x1d0] sm:$0xff]  ;;  %415 = vst [vmem:[%s1794_s6 + $0xd8] sm:$0xff] %v414_v31 }
  0x43   : > { %417 = vst [vmem:[%s1794_s6 + $0xe0] sm:$0xff] %v416_v32  ;;  %419 = vst [vmem:[%s1794_s6 + $0xe8] sm:$0xff] %v418_v33  ;;  %v420_v34 = vld [vmem:[%s1789_s25 + $0x1e0] sm:$0xff]  ;;  %v422_v35 = vld [vmem:[%s1789_s25 + $0x1f0] sm:$0xff] }
  0x44   : > { %v424_v36 = vld [vmem:[%s1789_s25 + $0x200] sm:$0xff]  ;;  %421 = vst [vmem:[%s1794_s6 + $0xf0] sm:$0xff] %v420_v34  ;;  %423 = vst [vmem:[%s1794_s6 + $0xf8] sm:$0xff] %v422_v35  ;;  %v426_v37 = vld [vmem:[%s1789_s25 + $0x210] sm:$0xff] }
  0x45   : > { %425 = vst [vmem:[%s1794_s6 + $0x100] sm:$0xff] %v424_v36  ;;  %v428_v38 = vld [vmem:[%s1789_s25 + $0x220] sm:$0xff]  ;;  %v430_v39 = vld [vmem:[%s1789_s25 + $0x230] sm:$0xff]  ;;  %427 = vst [vmem:[%s1794_s6 + $0x108] sm:$0xff] %v426_v37 }
  0x46   : > { %429 = vst [vmem:[%s1794_s6 + $0x110] sm:$0xff] %v428_v38  ;;  %431 = vst [vmem:[%s1794_s6 + $0x118] sm:$0xff] %v430_v39  ;;  %v432_v40 = vld [vmem:[%s1789_s25 + $0x240] sm:$0xff]  ;;  %v434_v41 = vld [vmem:[%s1789_s25 + $0x250] sm:$0xff] }
  0x47   : > { %v436_v42 = vld [vmem:[%s1789_s25 + $0x260] sm:$0xff]  ;;  %433 = vst [vmem:[%s1794_s6 + $0x120] sm:$0xff] %v432_v40  ;;  %435 = vst [vmem:[%s1794_s6 + $0x128] sm:$0xff] %v434_v41  ;;  %v438_v43 = vld [vmem:[%s1789_s25 + $0x270] sm:$0xff] }
  0x48   : > { %437 = vst [vmem:[%s1794_s6 + $0x130] sm:$0xff] %v436_v42  ;;  %v440_v44 = vld [vmem:[%s1789_s25 + $0x280] sm:$0xff]  ;;  %v442_v45 = vld [vmem:[%s1789_s25 + $0x290] sm:$0xff]  ;;  %439 = vst [vmem:[%s1794_s6 + $0x138] sm:$0xff] %v438_v43 }
  0x49   : > { %441 = vst [vmem:[%s1794_s6 + $0x140] sm:$0xff] %v440_v44  ;;  %443 = vst [vmem:[%s1794_s6 + $0x148] sm:$0xff] %v442_v45  ;;  %v444_v46 = vld [vmem:[%s1789_s25 + $0x2a0] sm:$0xff]  ;;  %v446_v47 = vld [vmem:[%s1789_s25 + $0x2b0] sm:$0xff] }
  0x4a   : > { %v448_v48 = vld [vmem:[%s1789_s25 + $0x2c0] sm:$0xff]  ;;  %445 = vst [vmem:[%s1794_s6 + $0x150] sm:$0xff] %v444_v46  ;;  %447 = vst [vmem:[%s1794_s6 + $0x158] sm:$0xff] %v446_v47  ;;  %v450_v49 = vld [vmem:[%s1789_s25 + $0x2d0] sm:$0xff] }
  0x4b   : > { %449 = vst [vmem:[%s1794_s6 + $0x160] sm:$0xff] %v448_v48  ;;  %v452_v50 = vld [vmem:[%s1789_s25 + $0x2e0] sm:$0xff]  ;;  %v454_v51 = vld [vmem:[%s1789_s25 + $0x2f0] sm:$0xff]  ;;  %451 = vst [vmem:[%s1794_s6 + $0x168] sm:$0xff] %v450_v49 }
  0x4c   : > { %453 = vst [vmem:[%s1794_s6 + $0x170] sm:$0xff] %v452_v50  ;;  %455 = vst [vmem:[%s1794_s6 + $0x178] sm:$0xff] %v454_v51  ;;  %v456_v52 = vld [vmem:[%s1789_s25 + $0x300] sm:$0xff]  ;;  %v458_v53 = vld [vmem:[%s1789_s25 + $0x310] sm:$0xff] }
  0x4d   : > { %v460_v54 = vld [vmem:[%s1789_s25 + $0x320] sm:$0xff]  ;;  %457 = vst [vmem:[%s1794_s6 + $0x180] sm:$0xff] %v456_v52  ;;  %459 = vst [vmem:[%s1794_s6 + $0x188] sm:$0xff] %v458_v53  ;;  %v462_v55 = vld [vmem:[%s1789_s25 + $0x330] sm:$0xff] }
  0x4e   : > { %461 = vst [vmem:[%s1794_s6 + $0x190] sm:$0xff] %v460_v54  ;;  %v464_v56 = vld [vmem:[%s1789_s25 + $0x340] sm:$0xff]  ;;  %v466_v57 = vld [vmem:[%s1789_s25 + $0x350] sm:$0xff]  ;;  %463 = vst [vmem:[%s1794_s6 + $0x198] sm:$0xff] %v462_v55 }
  0x4f   : > { %465 = vst [vmem:[%s1794_s6 + $0x1a0] sm:$0xff] %v464_v56  ;;  %467 = vst [vmem:[%s1794_s6 + $0x1a8] sm:$0xff] %v466_v57  ;;  %v468_v58 = vld [vmem:[%s1789_s25 + $0x360] sm:$0xff]  ;;  %v470_v59 = vld [vmem:[%s1789_s25 + $0x370] sm:$0xff] }
  0x50   : > { %v472_v60 = vld [vmem:[%s1789_s25 + $0x380] sm:$0xff]  ;;  %469 = vst [vmem:[%s1794_s6 + $0x1b0] sm:$0xff] %v468_v58  ;;  %471 = vst [vmem:[%s1794_s6 + $0x1b8] sm:$0xff] %v470_v59  ;;  %v474_v61 = vld [vmem:[%s1789_s25 + $0x390] sm:$0xff] }
  0x51   : > { %473 = vst [vmem:[%s1794_s6 + $0x1c0] sm:$0xff] %v472_v60  ;;  %v476_v62 = vld [vmem:[%s1789_s25 + $0x3a0] sm:$0xff]  ;;  %v478_v63 = vld [vmem:[%s1789_s25 + $0x3b0] sm:$0xff]  ;;  %475 = vst [vmem:[%s1794_s6 + $0x1c8] sm:$0xff] %v474_v61 }
  0x52   : > { %477 = vst [vmem:[%s1794_s6 + $0x1d0] sm:$0xff] %v476_v62  ;;  %479 = vst [vmem:[%s1794_s6 + $0x1d8] sm:$0xff] %v478_v63  ;;  %v480_v0 = vld [vmem:[%s1789_s25 + $0x3c0] sm:$0xff]  ;;  %v482_v1 = vld [vmem:[%s1789_s25 + $0x3d0] sm:$0xff] }
  0x53   : > { %v484_v2 = vld [vmem:[%s1789_s25 + $0x3e0] sm:$0xff]  ;;  %481 = vst [vmem:[%s1794_s6 + $0x1e0] sm:$0xff] %v480_v0  ;;  %483 = vst [vmem:[%s1794_s6 + $0x1e8] sm:$0xff] %v482_v1  ;;  %v486_v3 = vld [vmem:[%s1789_s25 + $0x3f0] sm:$0xff] }
  0x54   : > { %485 = vst [vmem:[%s1794_s6 + $0x1f0] sm:$0xff] %v484_v2  ;;  %487 = vst [vmem:[%s1794_s6 + $0x1f8] sm:$0xff] %v486_v3 }
  0x55 PF: > { %p1288_p0 = scmp.ge.s32.totalorder %s1652_s22, 1  ;;  %p500_p1 = scmp.lt.s32.totalorder %s1652_s22, 17 }
  0x57   : > { %p501_p2 = pnand %p1288_p0, %p500_p1 }
  0x58   : > { %s507_s0 = sand.u32 (!%p501_p2), 1, %s1628_s16   ;;  %s514_s5 = sand.u32 (!%p501_p2), 1, %s1620_s14  }
  0x59   : > { %504 = sbr.rel (%p501_p2) target bundleno = 399 (0x18f), region = 85  ;;  %s1289_s23 = sshll.u32 (!%p501_p2), %s507_s0, 5 }
  0x5a   : > { %s1290_s28 = sshll.u32 (!%p501_p2), %s514_s5, 9  ;;  %s541_s7 = sand.u32 (!%p501_p2), 1, %s1612_s12  }
  0x5b   : > { %s1292_s11 = sshll.u32 (!%p501_p2), %s1640_s19, 1  ;;  %s1291_s25 = sshll.u32 (!%p501_p2), %s541_s7, 4 }
  0x5c   : > { %p549_p3 = scmp.lt.s32.totalorder (!%p501_p2), %s1292_s11, 3  ;;  %s1933_s27 = scalar_lea.vmem (!%p501_p2), [#allocation3], %s1289_s23 }
  0x5d   : > { %s1935_s6 = scalar_lea.vmem (!%p501_p2), [#allocation4], %s1290_s28  ;;  %s1937_s1 = scalar_lea.vmem (!%p501_p2), [#allocation5], %s1291_s25 }
  0x5e   : > { %s2088_s11 = smov (!%p549_p3, %s1292_s11), 3  ;;  %p1293_p4 = scmp.ne.s32.totalorder %s1636_s18, 0 }
  0x5f   : > { %s551_s4 = scalar_lea.vmem %s2059_s2, %s2088_s11 }
  0x60   : > { %558 = sbr.rel (%p1293_p4) target bundleno = 104 (0x68), region = 97 }
  0x65   : > { %v1654_v4 = vmov 0.0  }
  0x66   : > { %559 = vst [vmem:[#allocation2 + $0x10] sm:$0xff] %v1654_v4  ;;  %560 = vst [vmem:[#allocation2] sm:$0xff] %v1654_v4 }
  0x67   : > { %561 = vst [vmem:[#allocation2 + $0x18] sm:$0xff] %v1654_v4  ;;  %562 = vst [vmem:[#allocation2 + $0x8] sm:$0xff] %v1654_v4 }
  0x68 PF: > { %v1464_v5 = vld [vmem:[%s1935_s6 + $0x74] ss:$8 sps:$4 sm:$0xff]   ;;  %v1468_v7 = vld [vmem:[%s1935_s6 + $0x70] ss:$8 sps:$4 sm:$0xff]   ;;  %v1470_v9 = vld [vmem:[%s1935_s6 + $0x64] ss:$8 sps:$4 sm:$0xff]  }
  0x69   : > { %v1466_v6 = vld [vmem:[%s1935_s6 + $0x174] ss:$8 sps:$4 sm:$0xff]   ;;  %975 = vmatprep.subr.bf16.mxu0 %v1464_v5  ;;  %v1469_v8 = vld [vmem:[%s1935_s6 + $0x170] ss:$8 sps:$4 sm:$0xff]   ;;  %v1472_v10 = vld [vmem:[%s1935_s6 + $0x164] ss:$8 sps:$4 sm:$0xff]  }
  0x6a   : > { %1018 = vmatprep.subr.bf16.mxu1 %v1466_v6  ;;  %976 = vmatpush1.bf16.msra.mxu0 %v1468_v7  ;;  %v1474_v11 = vld [vmem:[%s1935_s6 + $0x60] ss:$8 sps:$4 sm:$0xff]   ;;  %v1476_v13 = vld [vmem:[%s1935_s6 + $0x54] ss:$8 sps:$4 sm:$0xff]   ;;  %v1480_v15 = vld [vmem:[%s1935_s6 + $0x50] ss:$8 sps:$4 sm:$0xff]  }
  0x6b   : > { %1019 = vmatpush1.bf16.msra.mxu1 %v1469_v8  ;;  %977 = vmatprep.subr.bf16.mxu0 %v1470_v9  ;;  %v1475_v12 = vld [vmem:[%s1935_s6 + $0x160] ss:$8 sps:$4 sm:$0xff]   ;;  %v1478_v14 = vld [vmem:[%s1935_s6 + $0x154] ss:$8 sps:$4 sm:$0xff]   ;;  %v1481_v16 = vld [vmem:[%s1935_s6 + $0x150] ss:$8 sps:$4 sm:$0xff]  }
  0x6c   : > { %1020 = vmatprep.subr.bf16.mxu1 %v1472_v10  ;;  %v1482_v17 = vld [vmem:[%s1935_s6 + $0x44] ss:$8 sps:$4 sm:$0xff]   ;;  %v1486_v19 = vld [vmem:[%s1935_s6 + $0x40] ss:$8 sps:$4 sm:$0xff]   ;;  %v1488_v21 = vld [vmem:[%s1935_s6 + $0x34] ss:$8 sps:$4 sm:$0xff]  }
  0x6d   : > { %v1484_v18 = vld [vmem:[%s1935_s6 + $0x144] ss:$8 sps:$4 sm:$0xff]   ;;  %v1487_v20 = vld [vmem:[%s1935_s6 + $0x140] ss:$8 sps:$4 sm:$0xff]   ;;  %v1490_v22 = vld [vmem:[%s1935_s6 + $0x134] ss:$8 sps:$4 sm:$0xff]  }
  0x6e   : > { %978 = vmatpush1.bf16.msra.mxu0 %v1474_v11  ;;  %v1492_v23 = vld [vmem:[%s1935_s6 + $0x30] ss:$8 sps:$4 sm:$0xff]   ;;  %v1494_v25 = vld [vmem:[%s1935_s6 + $0x24] ss:$8 sps:$4 sm:$0xff]   ;;  %v1498_v27 = vld [vmem:[%s1935_s6 + $0x20] ss:$8 sps:$4 sm:$0xff]  }
  0x6f   : > { %1021 = vmatpush1.bf16.msra.mxu1 %v1475_v12  ;;  %979 = vmatprep.subr.bf16.mxu0 %v1476_v13  ;;  %v1493_v24 = vld [vmem:[%s1935_s6 + $0x130] ss:$8 sps:$4 sm:$0xff]   ;;  %v1496_v26 = vld [vmem:[%s1935_s6 + $0x124] ss:$8 sps:$4 sm:$0xff]   ;;  %v1499_v28 = vld [vmem:[%s1935_s6 + $0x120] ss:$8 sps:$4 sm:$0xff]  }
  0x70   : > { %1022 = vmatprep.subr.bf16.mxu1 %v1478_v14  ;;  %v1500_v29 = vld [vmem:[%s1935_s6 + $0x14] ss:$8 sps:$4 sm:$0xff]   ;;  %v1504_v31 = vld [vmem:[%s1935_s6 + $0x10] ss:$8 sps:$4 sm:$0xff]   ;;  %v1506_v33 = vld [vmem:[%s1935_s6 + $0x4] ss:$8 sps:$4 sm:$0xff]  }
  0x71   : > { %v1502_v30 = vld [vmem:[%s1935_s6 + $0x114] ss:$8 sps:$4 sm:$0xff]   ;;  %v1505_v32 = vld [vmem:[%s1935_s6 + $0x110] ss:$8 sps:$4 sm:$0xff]   ;;  %v1508_v34 = vld [vmem:[%s1935_s6 + $0x104] ss:$8 sps:$4 sm:$0xff]  }
  0x72   : > { %980 = vmatpush1.bf16.msra.mxu0 %v1480_v15  ;;  %v1510_v35 = vld [vmem:[%s1935_s6] ss:$8 sps:$4 sm:$0xff]   ;;  %v1512_v37 = vld [vmem:[%s1935_s6 + $0xf4] ss:$8 sps:$4 sm:$0xff]   ;;  %v1516_v39 = vld [vmem:[%s1935_s6 + $0xf0] ss:$8 sps:$4 sm:$0xff]  }
  0x73   : > { %1023 = vmatpush1.bf16.msra.mxu1 %v1481_v16  ;;  %981 = vmatprep.subr.bf16.mxu0 %v1482_v17  ;;  %v1511_v36 = vld [vmem:[%s1935_s6 + $0x100] ss:$8 sps:$4 sm:$0xff]   ;;  %v1514_v38 = vld [vmem:[%s1935_s6 + $0x1f4] ss:$8 sps:$4 sm:$0xff]   ;;  %v1517_v40 = vld [vmem:[%s1935_s6 + $0x1f0] ss:$8 sps:$4 sm:$0xff]  }
  0x74   : > { %1024 = vmatprep.subr.bf16.mxu1 %v1484_v18  ;;  %v1518_v41 = vld [vmem:[%s1935_s6 + $0xe4] ss:$8 sps:$4 sm:$0xff]   ;;  %v1522_v43 = vld [vmem:[%s1935_s6 + $0xe0] ss:$8 sps:$4 sm:$0xff]   ;;  %v1524_v45 = vld [vmem:[%s1935_s6 + $0xd4] ss:$8 sps:$4 sm:$0xff]  }
  0x75   : > { %v1520_v42 = vld [vmem:[%s1935_s6 + $0x1e4] ss:$8 sps:$4 sm:$0xff]   ;;  %v1523_v44 = vld [vmem:[%s1935_s6 + $0x1e0] ss:$8 sps:$4 sm:$0xff]   ;;  %v1526_v46 = vld [vmem:[%s1935_s6 + $0x1d4] ss:$8 sps:$4 sm:$0xff]  }
  0x76   : > { %982 = vmatpush1.bf16.msra.mxu0 %v1486_v19  ;;  %v1528_v47 = vld [vmem:[%s1935_s6 + $0xd0] ss:$8 sps:$4 sm:$0xff]   ;;  %v1530_v49 = vld [vmem:[%s1935_s6 + $0xc4] ss:$8 sps:$4 sm:$0xff]   ;;  %v1534_v51 = vld [vmem:[%s1935_s6 + $0xc0] ss:$8 sps:$4 sm:$0xff]  }
  0x77   : > { %1025 = vmatpush1.bf16.msra.mxu1 %v1487_v20  ;;  %983 = vmatprep.subr.bf16.mxu0 %v1488_v21  ;;  %v1529_v48 = vld [vmem:[%s1935_s6 + $0x1d0] ss:$8 sps:$4 sm:$0xff]   ;;  %v1532_v50 = vld [vmem:[%s1935_s6 + $0x1c4] ss:$8 sps:$4 sm:$0xff]   ;;  %v1535_v53 = vld [vmem:[%s1935_s6 + $0x1c0] ss:$8 sps:$4 sm:$0xff]  }
  0x78   : > { %1026 = vmatprep.subr.bf16.mxu1 %v1490_v22  ;;  %v1562_v52 = vld [vmem:[%s1933_s27 + $0x4] ss:$16 sps:$4 sm:$0xff]   ;;  %v1565_v56 = vld [vmem:[%s1933_s27 + $0xc] ss:$16 sps:$4 sm:$0xff]   ;;  %v1540_v57 = vld [vmem:[%s1935_s6 + $0xb0] ss:$8 sps:$4 sm:$0xff]  }
  0x79   : > { %v1536_v54 = vld [vmem:[%s1935_s6 + $0xb4] ss:$8 sps:$4 sm:$0xff]   ;;  %1007 = vmatprep.mubr.bf16.mxu0 %v1562_v52  ;;  %1050 = vmatprep.mubr.bf16.mxu1 %v1565_v56  ;;  %v1541_v58 = vld [vmem:[%s1935_s6 + $0x1b0] ss:$8 sps:$4 sm:$0xff]   ;;  %v1542_v59 = vld [vmem:[%s1935_s6 + $0xa4] ss:$8 sps:$4 sm:$0xff]  }
  0x7a   : > { %984 = vmatpush1.bf16.msra.mxu0 %v1492_v23  ;;  %v1538_v55 = vld [vmem:[%s1935_s6 + $0x1b4] ss:$8 sps:$4 sm:$0xff]   ;;  %v1544_v60 = vld [vmem:[%s1935_s6 + $0x1a4] ss:$8 sps:$4 sm:$0xff]   ;;  %v1546_v61 = vld [vmem:[%s1935_s6 + $0xa0] ss:$8 sps:$4 sm:$0xff]  }
  0x7b   : > { %1027 = vmatpush1.bf16.msra.mxu1 %v1493_v24  ;;  %985 = vmatprep.subr.bf16.mxu0 %v1494_v25  ;;  %v1547_v62 = vld [vmem:[%s1935_s6 + $0x1a0] ss:$8 sps:$4 sm:$0xff]   ;;  %v1548_v63 = vld [vmem:[%s1935_s6 + $0x94] ss:$8 sps:$4 sm:$0xff]   ;;  %v1552_v1 = vld [vmem:[%s1935_s6 + $0x90] ss:$8 sps:$4 sm:$0xff]  }
  0x7c   : > { %1028 = vmatprep.subr.bf16.mxu1 %v1496_v26  ;;  %v1550_v0 = vld [vmem:[%s1935_s6 + $0x194] ss:$8 sps:$4 sm:$0xff]   ;;  %v1553_v2 = vld [vmem:[%s1935_s6 + $0x190] ss:$8 sps:$4 sm:$0xff]   ;;  %v1554_v3 = vld [vmem:[%s1935_s6 + $0x84] ss:$8 sps:$4 sm:$0xff]  }
  0x7d   : > { %v1556_v4 = vld [vmem:[%s1935_s6 + $0x184] ss:$8 sps:$4 sm:$0xff]   ;;  %v1558_v5 = vld [vmem:[%s1935_s6 + $0x80] ss:$8 sps:$4 sm:$0xff]   ;;  %v563_v10 = vld [vmem:[#allocation2 + $0x10] sm:$0xff]  ;;  %p1362_p5 = scmp.ne.s32.totalorder %s1636_s18, 7 }
  0x7e   : > { %986 = vmatpush1.bf16.msra.mxu0 %v1498_v27  ;;  %v1559_v6 = vld [vmem:[%s1935_s6 + $0x180] ss:$8 sps:$4 sm:$0xff]   ;;  %v565_v19 = vld [vmem:[#allocation2 + $0x18] sm:$0xff] }
  0x7f   : > { %1029 = vmatpush1.bf16.msra.mxu1 %v1499_v28  ;;  %987 = vmatprep.subr.bf16.mxu0 %v1500_v29  ;;  %v1560_v7 = vld [vmem:[%s1933_s27] ss:$16 sps:$4 sm:$0xff]   ;;  %v1563_v8 = vld [vmem:[%s1933_s27 + $0x8] ss:$16 sps:$4 sm:$0xff]  }
  0x80   : > { %1030 = vmatprep.subr.bf16.mxu1 %v1502_v30  ;;  %v564_v14 = vld [vmem:[#allocation2] sm:$0xff]  ;;  %v566_v24 = vld [vmem:[#allocation2 + $0x8] sm:$0xff] }
  0x82   : > { %988 = vmatpush1.bf16.msra.mxu0 %v1504_v31 }
  0x83   : > { %1031 = vmatpush1.bf16.msra.mxu1 %v1505_v32  ;;  %989 = vmatprep.subr.bf16.mxu0 %v1506_v33 }
  0x84   : > { %1032 = vmatprep.subr.bf16.mxu1 %v1508_v34 }
  0x86   : > { %990 = vmatpush1.bf16.msra.mxu0 %v1510_v35 }
  0x87   : > { %1033 = vmatpush1.bf16.msra.mxu1 %v1511_v36  ;;  %991 = vmatprep.subr.bf16.mxu0 %v1512_v37 }
  0x88   : > { %1034 = vmatprep.subr.bf16.mxu1 %v1514_v38 }
  0x8a   : > { %992 = vmatpush2.bf16.msra.mxu0 %v1516_v39 }
  0x8b   : > { %1035 = vmatpush2.bf16.msra.mxu1 %v1517_v40  ;;  %993 = vmatprep.subr.bf16.mxu0 %v1518_v41 }
  0x8c   : > { %1036 = vmatprep.subr.bf16.mxu1 %v1520_v42 }
  0x8e   : > { %994 = vmatpush2.bf16.msra.mxu0 %v1522_v43 }
  0x8f   : > { %1037 = vmatpush2.bf16.msra.mxu1 %v1523_v44  ;;  %995 = vmatprep.subr.bf16.mxu0 %v1524_v45 }
  0x90   : > { %1038 = vmatprep.subr.bf16.mxu1 %v1526_v46 }
  0x92   : > { %996 = vmatpush2.bf16.msra.mxu0 %v1528_v47 }
  0x93   : > { %1039 = vmatpush2.bf16.msra.mxu1 %v1529_v48  ;;  %997 = vmatprep.subr.bf16.mxu0 %v1530_v49 }
  0x94   : > { %1040 = vmatprep.subr.bf16.mxu1 %v1532_v50 }
  0x96   : > { %998 = vmatpush2.bf16.msra.mxu0 %v1534_v51 }
  0x97   : > { %1041 = vmatpush2.bf16.msra.mxu1 %v1535_v53  ;;  %999 = vmatprep.subr.bf16.mxu0 %v1536_v54 }
  0x98   : > { %1042 = vmatprep.subr.bf16.mxu1 %v1538_v55 }
  0x9a   : > { %1000 = vmatpush2.bf16.msra.mxu0 %v1540_v57 }
  0x9b   : > { %1043 = vmatpush2.bf16.msra.mxu1 %v1541_v58  ;;  %1001 = vmatprep.subr.bf16.mxu0 %v1542_v59 }
  0x9c   : > { %1044 = vmatprep.subr.bf16.mxu1 %v1544_v60 }
  0x9e   : > { %1002 = vmatpush2.bf16.msra.mxu0 %v1546_v61 }
  0x9f   : > { %1045 = vmatpush2.bf16.msra.mxu1 %v1547_v62  ;;  %1003 = vmatprep.subr.bf16.mxu0 %v1548_v63 }
  0xa0   : > { %1046 = vmatprep.subr.bf16.mxu1 %v1550_v0 }
  0xa2   : > { %1004 = vmatpush2.bf16.msra.mxu0 %v1552_v1 }
  0xa3   : > { %1047 = vmatpush2.bf16.msra.mxu1 %v1553_v2  ;;  %1005 = vmatprep.subr.bf16.mxu0 %v1554_v3 }
  0xa4   : > { %1048 = vmatprep.subr.bf16.mxu1 %v1556_v4 }
  0xa6   : > { %1006 = vmatpush2.bf16.msra.mxu0 %v1558_v5 }
  0xa7   : > { %1049 = vmatpush2.bf16.msra.mxu1 %v1559_v6 }
  0xa9   : > { %1008 = vmatmul.mubr.bf16.vlgmr.msra.gmra.mxu0 %v1560_v7 }
  0xaa   : > { %1051 = vmatmul.mubr.bf16.vlgmr.msra.gmra.mxu1 %v1563_v8 }
 0x169   : > { %v1009_v9 = vpop.f32.mrf.mxu0 }
 0x16a   : > { %v1052_v11 = vpop.f32.mrf.mxu1 }
 0x16b   : > { %v1053_v12 = vadd.f32 %v1052_v11, %v1009_v9  ;;  %v1011_v13 = vpop.f32.mrf.mxu0 }
 0x16c   : > { %v1054_v15 = vpop.f32.mrf.mxu1 }
 0x16d   : > { %v1061_v16 = vadd.f32 %v1053_v12, %v563_v10  ;;  %v1055_v17 = vadd.f32 %v1054_v15, %v1011_v13  ;;  %v1013_v18 = vpop.f32.mrf.mxu0 }
 0x16e   : > { %v1056_v20 = vpop.f32.mrf.mxu1 }
 0x16f   : > { %1065 = vst [vmem:[#allocation2 + $0x10] sm:$0xff] %v1061_v16  ;;  %v1062_v21 = vadd.f32 %v1055_v17, %v564_v14  ;;  %v1057_v22 = vadd.f32 %v1056_v20, %v1013_v18  ;;  %v1015_v23 = vpop.f32.mrf.mxu0 }
 0x170   : > { %v1058_v25 = vpop.f32.mrf.mxu1 }
 0x171   : > { %1066 = vst [vmem:[#allocation2] sm:$0xff] %v1062_v21  ;;  %v1063_v26 = vadd.f32 %v1057_v22, %v565_v19  ;;  %v1059_v27 = vadd.f32 %v1058_v25, %v1015_v23  ;;  %1072 = sbr.rel (%p1362_p5) target bundleno = 391 (0x187), region = 101 }
 0x173   : > { %1067 = vst [vmem:[#allocation2 + $0x18] sm:$0xff] %v1063_v26  ;;  %v1064_v28 = vadd.f32 %v1059_v27, %v566_v24 }
 0x175   : > { %1068 = vst [vmem:[#allocation2 + $0x8] sm:$0xff] %v1064_v28 }
 0x176   : > { %v1079_v29 = vlaneseq  ;;  %v1077_v31 = vld [vmem:[%s551_s4] sm:$0x3]  ;;  %v1073_v32 = vld [vmem:[#allocation2 + $0x10] sm:$0xff] }
 0x178   : > { %v1080_v30 = vshrl.u32 %v1079_v29, 7  ;;  %v1074_v35 = vld [vmem:[#allocation2] sm:$0xff] }
 0x17a   : > { %v1081_v33 = vsub.s32 0, %v1080_v30  ;;  %v1085_v34 = vsub.s32 1, %v1080_v30  ;;  %v1075_v36 = vld [vmem:[#allocation2 + $0x18] sm:$0xff] }
 0x17c   : > { %v1076_v37 = vld [vmem:[#allocation2 + $0x8] sm:$0xff]  ;;  %v1082_v38 = vrot.slane %v1077_v31, %v1081_v33  ;;  %v1086_v39 = vrot.slane %v1077_v31, %v1085_v34 }
 0x17e   : > { %v1089_v40 = vadd.f32 %v1082_v38, %v1073_v32  ;;  %v1090_v41 = vadd.f32 %v1086_v39, %v1074_v35  ;;  %v1091_v42 = vadd.f32 %v1082_v38, %v1075_v36  ;;  %v1092_v43 = vadd.f32 %v1086_v39, %v1076_v37 }
 0x180   : > { %vm1093_vm0 = vcmp.ge.f32.partialorder %v1089_v40, 0.0  ;;  %vm1094_vm1 = vcmp.ge.f32.partialorder %v1090_v41, 0.0  ;;  %v1097_v44 = vmul.f32 0.1, %v1089_v40  ;;  %v1098_v45 = vmul.f32 0.1, %v1090_v41 }
 0x181   : > { %vm1095_vm2 = vcmp.ge.f32.partialorder %v1091_v42, 0.0  ;;  %vm1096_vm3 = vcmp.ge.f32.partialorder %v1092_v43, 0.0  ;;  %v1099_v46 = vmul.f32 0.1, %v1091_v42  ;;  %v1100_v47 = vmul.f32 0.1, %v1092_v43 }
 0x182   : > { %v1101_v48 = vsel %vm1093_vm0, %v1089_v40, %v1097_v44  ;;  %v1102_v49 = vsel %vm1094_vm1, %v1090_v41, %v1098_v45 }
 0x183   : > { %v1372_v50 = vpack.c.bf16 %v1102_v49, %v1101_v48  ;;  %v1103_v51 = vsel %vm1095_vm2, %v1091_v42, %v1099_v46  ;;  %v1104_v52 = vsel %vm1096_vm3, %v1092_v43, %v1100_v47 }
 0x184   : > { %v1373_v53 = vpack.c.bf16 %v1104_v52, %v1103_v51 }
 0x185   : > { %1117 = vst [vmem:[%s1937_s1] sm:$0xff] %v1372_v50 }
 0x186   : > { %1118 = vst [vmem:[%s1937_s1 + $0x8] sm:$0xff] %v1373_v53 }
 0x187 PF: > { %1125 = sbr.rel (!%p1769_p12) target bundleno = 399 (0x18f), region = 105  ;;  %s1374_s16 = sshll.u32 (%p1769_p12), %s1640_s19, 3 }
 0x188   : > { %s1131_s5 = scalar_lea.vmem (%p1769_p12), %s2060_s3, %s1374_s16 }
 0x18c   : > { %v1162_v54 = vld [vmem:[%s1937_s1] sm:$0xff] }
 0x18d   : > { %v1164_v55 = vld [vmem:[%s1937_s1 + $0x8] sm:$0xff]  ;;  %1163 = vst [vmem:[%s1131_s5] sm:$0xff] %v1162_v54 }
 0x18e   : > { %1165 = vst [vmem:[%s1131_s5 + $0x10] sm:$0xff] %v1164_v55 }
 0x18f PF: > { %s13_s22 = sadd.s32 1, %s1652_s22   ;;  %s2070_s1 = sld [smem:[#allocation6_spill]] }
 0x190   : > { %p10_p6 = scmp.ge.s32.totalorder %s13_s22, 18   ;;  %s2071_s12 = smov %s1616_s13 }
 0x191   : > { %s2072_s13 = smov %s1767_s9  ;;  %s2073_s14 = smov %s1624_s15 }
 0x192   : > { %s2074_s15 = smov %s1764_s8  ;;  %s2075_s16 = smov %s1632_s17 }
 0x193   : > { %s2076_s17 = smov %s1750_s30  ;;  %s2077_s18 = smov %s1644_s20 }
 0x194   : > { %s2078_s19 = smov %s1648_s21  ;;  %s2079_s20 = smov %s2082_s24 }
 0x195   : > { %s2080_s21 = smov %s2070_s1  ;;  %12 = sbr.rel (!%p10_p6) target bundleno = 9 (0x9), region = 185 }

// kernel: forward.28
= control target key start
LH: loop header
LB: loop body
LE: loop exit
PB: predicated region body
PF: predicated region fallthrough
CT: control target
= control target key end

     0   :  { %vm29_vm0 = vcmask 523264   ;;  %v676_v0 = vmov 0.0   ;;  %vm677_vm1 = vmmov 0   ;;  %vm106_vm2 = vcmask 27648   ;;  %s766_s1 = inlined_call_operand.vmem [shape: bf16[2,4,64], index: 1, kind: input, shape index: {}]   ;;  %s767_s0 = inlined_call_operand.vmem [shape: bf16[2,4,64], index: 0, kind: input, shape index: {}]   ;;  %s768_s2 = inlined_call_operand.vmem [shape: bf16[2,4,512], index: 2, kind: input, shape index: {}]   ;;  %s769_s3 = inlined_call_operand.vmem [shape: bf16[2,4,512], index: 3, kind: input, shape index: {}]   ;;  %s770_s4 = inlined_call_operand.<no memory space> [shape: f32[1], index: 4, kind: input, shape index: {}]   ;;  %s771_s5 = inlined_call_operand.vmem [shape: bf16[2,4,512], index: 5, kind: output, shape index: {}]  }
   0x1   :  { %655 = vmatprep.subr.mxu0 %v676_v0  ;;  %v24_v1 = vld [vmem:[%s766_s1] sm:$0x3]  ;;  %v637_v2 = vld [vmem:[%s766_s1 + $0x2] sm:$0x3]  ;;  %657 = vmatprep.mubr.msk.f32.mxu0 %vm677_vm1, %v676_v0  ;;  %vm126_vm3 = vcmask 1043456   ;;  %v638_v30 = vld [vmem:[%s768_s2 + $0x8] sm:$0xff]  ;;  %v277_v43 = vstv %s770_s4  ;;  %v308_v48 = vlaneseq }
   0x2   :  { %v22_v3 = vld [vmem:[%s767_s0] sm:$0x3]  ;;  %v25_v4 = vunpack.c.l.bf16 %v24_v1  ;;  %199 = vmatprep.mubr.f32.mxu1 %v676_v0  ;;  %v327_v6 = vunpack.c.l.bf16 %v637_v2  ;;  %v636_v7 = vld [vmem:[%s767_s0 + $0x2] sm:$0x3]  ;;  %v331_v31 = vunpack.c.h.bf16 %v638_v30  ;;  %v330_v35 = vunpack.c.l.bf16 %v638_v30  ;;  %v647_v44 = vld [vmem:[%s769_s3 + $0x8] sm:$0xff] }
   0x3   :  { %v23_v5 = vunpack.c.l.bf16 %v22_v3  ;;  %v324_v8 = vunpack.c.l.bf16 %v636_v7  ;;  %v26_v25 = vld [vmem:[%s768_s2] sm:$0xff]  ;;  %vm122_vm4 = vcmask 31744   ;;  %v678_v46 = vmov 1983009808  }
   0x4   :  { %656 = vmatpush3.xpose.msk.msra.mxu0 %vm29_vm0, %v25_v4  ;;  %v27_v26 = vunpack.c.l.bf16 %v26_v25  ;;  %v28_v27 = vunpack.c.h.bf16 %v26_v25  ;;  %v422_v32 = vcombine.high %v331_v31, %v331_v31  ;;  %v421_v38 = vcombine.high %v330_v35, %v330_v35  ;;  %v282_v41 = vld [vmem:[%s769_s3] sm:$0xff] }
   0x5   :  { %660 = vmatprep.subr.mxu0 %v676_v0  ;;  %v283_v42 = vunpack.c.l.bf16 %v282_v41  ;;  %v306_v47 = vunpack.c.l.s4 %v678_v46  ;;  %v284_v50 = vunpack.c.h.bf16 %v282_v41  ;;  %v583_v53 = vunpack.c.h.bf16 %v647_v44 }
   0x6   :  { %v120_v28 = vcombine.high %v27_v26, %v27_v26  ;;  %v121_v29 = vcombine.high %v28_v27, %v28_v27  ;;  %v309_v56 = vshrl.u32 %v308_v48, 7  ;;  %v582_v62 = vunpack.c.l.bf16 %v647_v44 }
   0x7   :  { %658 = vmatmul.mubr.msk.f32.vlgmr.msra.gmra.mxu0 %vm29_vm0, %v23_v5  ;;  %v287_v49 = vcombine.high %v283_v42, %v283_v42  ;;  %v307_v55 = vunpack.c.0.s8 %v306_v47  ;;  %v288_v61 = vcombine.high %v284_v50, %v284_v50  ;;  %v587_v2 = vcombine.high %v583_v53, %v583_v53 }
   0x8   :  { %661 = vmatpush3.xpose.msk.msra.mxu0 %vm29_vm0, %v327_v6  ;;  %662 = vmatprep.mubr.msk.f32.mxu0 %vm677_vm1, %v676_v0 }
   0x9   :  { %628 = vmatprep.subr.msk.mxu1 %vm126_vm3, %v120_v28  ;;  %644 = vmatprep.subr.msk.mxu0 %vm126_vm3, %v422_v32  ;;  %v310_v6 = vsub.s32 %v307_v55, %v309_v56 }
   0xa   :  { %629 = vmatpush1.msk.msra.mxu1 %vm126_vm3, %v27_v26 }
   0xb   :  { %663 = vmatmul.mubr.msk.f32.vlgmr.msra.gmra.mxu0 %vm29_vm0, %v324_v8  ;;  %631 = vmatprep.subr.msk.mxu1 %vm126_vm3, %v121_v29 }
   0xc   :  { %569 = vmatprep.mubr.f32.mxu0 %v676_v0  ;;  %645 = vmatpush1.msk.msra.mxu0 %vm126_vm3, %v331_v31 }
  0xc7   :  { %v102_v9 = vpop.f32.mrf.mxu0 }
  0xc8   :  { %v107_v10 = vsel %vm106_vm2, %v102_v9, -inf }
  0xc9   :  { %108 = vmax.xlane.f32.xlu0 %v107_v10  ;;  %v659_v11 = vpop.f32.mrf.mxu0 }
  0xcb   :  { %v404_v12 = vpop.f32.mrf.mxu0 }
  0xcc   :  { %v408_v13 = vsel %vm106_vm2, %v404_v12, -inf }
  0xcd   :  { %409 = vmax.xlane.f32.xlu0 %v408_v13  ;;  %v664_v14 = vpop.f32.mrf.mxu0 }
 0x152   :  { %v109_v15 = vpop.xlane.xlu0 %108 }
 0x153   :  { %v110_v16 = vsub.f32 %v102_v9, %v109_v15 }
 0x155   :  { %v111_v17 = vmul.f32 1.442695, %v110_v16 }
 0x156   :  { %v410_v18 = vpop.xlane.xlu0 %409 }
 0x157   :  { %668 = vpow2.f32 %v111_v17  ;;  %v411_v19 = vsub.f32 %v404_v12, %v410_v18  ;;  %v586_v12 = vcombine.high %v582_v62, %v582_v62 }
 0x159   :  { %v412_v20 = vmul.f32 1.442695, %v411_v19 }
 0x15b   :  { %670 = vpow2.f32 %v412_v20 }
 0x164   :  { %v669_v21 = vpop.eup %668 }
 0x165   :  { %v113_v22 = vsel %vm106_vm2, %v669_v21, 0.0 }
 0x166   :  { %114 = vadd.xlane.f32.xlu1 %v113_v22 }
 0x168   :  { %v671_v23 = vpop.eup %670 }
 0x169   :  { %v414_v24 = vsel %vm106_vm2, %v671_v23, 0.0 }
 0x16a   :  { %415 = vadd.xlane.f32.xlu1 %v414_v24 }
 0x1ef   :  { %v115_v33 = vpop.xlane.xlu1 %114 }
 0x1f0   :  { %672 = vrcp.f32 %v115_v33 }
 0x1f3   :  { %v416_v34 = vpop.xlane.xlu1 %415 }
 0x1f4   :  { %674 = vrcp.f32 %v416_v34 }
 0x1fd   :  { %v673_v36 = vpop.eup %672 }
 0x1fe   :  { %v117_v37 = vmul.f32 %v673_v36, %v669_v21 }
 0x200   :  { %630 = vmatmul.mubr.msk.f32.vlgmr.msra.gmra.mxu1 %vm122_vm4, %v117_v37 }
 0x201   :  { %v675_v39 = vpop.eup %674  ;;  %632 = vmatpush1.msk.msra.mxu1 %vm126_vm3, %v28_v27  ;;  %270 = vmatprep.mubr.f32.mxu1 %v676_v0 }
 0x202   :  { %641 = vmatprep.subr.msk.mxu1 %vm126_vm3, %v421_v38  ;;  %v418_v40 = vmul.f32 %v675_v39, %v671_v23 }
 0x204   :  { %633 = vmatmul.mubr.msk.f32.vlgmr.msra.gmra.mxu1 %vm122_vm4, %v117_v37  ;;  %646 = vmatmul.mubr.msk.f32.vlgmr.msra.gmra.mxu0 %vm122_vm4, %v418_v40 }
 0x205   :  { %642 = vmatpush1.msk.msra.mxu1 %vm126_vm3, %v330_v35  ;;  %498 = vmatprep.mubr.f32.mxu1 %v676_v0 }
 0x208   :  { %643 = vmatmul.mubr.msk.f32.vlgmr.msra.gmra.mxu1 %vm122_vm4, %v418_v40 }
 0x2c0   :  { %v201_v45 = vpop.f32.mrf.mxu1 }
 0x2c1   :  { %v278_v51 = vmul.f32 %v277_v43, %v201_v45 }
 0x2c2   :  { %v203_v52 = vpop.f32.mrf.mxu1 }
 0x2c3   :  { %v279_v54 = vmul.f32 %v277_v43, %v203_v52  ;;  %v291_v63 = vadd.f32 %v283_v42, %v278_v51 }
 0x2c4   :  { %v272_v57 = vpop.f32.mrf.mxu1  ;;  %v571_v58 = vpop.f32.mrf.mxu0 }
 0x2c5   :  { %v292_v59 = vadd.f32 %v287_v49, %v279_v54  ;;  %v280_v60 = vmul.f32 %v277_v43, %v272_v57  ;;  %v578_v3 = vmul.f32 %v571_v58, %v277_v43 }
 0x2c6   :  { %v274_v0 = vpop.f32.mrf.mxu1  ;;  %v573_v1 = vpop.f32.mrf.mxu0 }
 0x2c7   :  { %v281_v4 = vmul.f32 %v277_v43, %v274_v0  ;;  %v634_v5 = vpack.c.bf16 %v292_v59, %v291_v63  ;;  %v579_v7 = vmul.f32 %v573_v1, %v277_v43  ;;  %v293_v9 = vadd.f32 %v284_v50, %v280_v60 }
 0x2c8   :  { %v500_v8 = vpop.f32.mrf.mxu1  ;;  %v592_v15 = vadd.f32 %v583_v53, %v578_v3 }
 0x2c9   :  { %v294_v10 = vadd.f32 %v288_v61, %v281_v4  ;;  %v576_v11 = vmul.f32 %v500_v8, %v277_v43  ;;  %v593_v13 = vadd.f32 %v587_v2, %v579_v7  ;;  %v311_v18 = vrot.slane %v634_v5, %v310_v6 }
 0x2ca   :  { %v502_v14 = vpop.f32.mrf.mxu1 }
 0x2cb   :  { %v635_v16 = vpack.c.bf16 %v294_v10, %v293_v9  ;;  %v577_v17 = vmul.f32 %v502_v14, %v277_v43  ;;  %v649_v20 = vpack.c.bf16 %v593_v13, %v592_v15  ;;  %v590_v21 = vadd.f32 %v582_v62, %v576_v11 }
 0x2cd   :  { %v318_v19 = vrot.slane %v635_v16, %v310_v6  ;;  %v591_v22 = vadd.f32 %v586_v12, %v577_v17  ;;  %v617_v25 = vrot.slane %v649_v20, %v310_v6 }
 0x2cf   :  { %v319_v23 = vcombine.low %v311_v18, %v318_v19  ;;  %v648_v24 = vpack.c.bf16 %v591_v22, %v590_v21 }
 0x2d1   :  { %321 = vst [vmem:[%s771_s5] sm:$0xff] %v319_v23  ;;  %v610_v26 = vrot.slane %v648_v24, %v310_v6 }
 0x2d3   :  { %v618_v27 = vcombine.low %v610_v26, %v617_v25 }
 0x2d5   :  { %650 = vst [vmem:[%s771_s5 + $0x8] sm:$0xff] %v618_v27 }

// kernel: forward.29
= control target key start
LH: loop header
LB: loop body
LE: loop exit
PB: predicated region body
PF: predicated region fallthrough
CT: control target
= control target key end

     0   :  { %s1016_s12 = smov 0   ;;  %s1018_s13 = smov 0   ;;  %s1235_s0 = inlined_call_operand.vmem [shape: bf16[16,640], index: 0, kind: input, shape index: {}]   ;;  %s1236_s1 = inlined_call_operand.vmem [shape: bf16[640,512], index: 1, kind: input, shape index: {}]   ;;  %s1237_s2 = inlined_call_operand.vmem [shape: f32[1,512], index: 2, kind: input, shape index: {}]   ;;  %s1238_s3 = inlined_call_operand.vmem [shape: bf16[16,512], index: 3, kind: output, shape index: {}]  }
   0x1   :  { %s1020_s14 = smov 0   ;;  %s1022_s15 = smov 0  }
   0x2   :  { %s1024_s16 = smov 0   ;;  %s1026_s17 = smov 0  }
   0x3   :  { %s1028_s18 = smov 0   ;;  %s1030_s19 = smov 0  }
   0x4   :  { %s1032_s20 = smov 0   ;;  %s1034_s21 = smov 0  }
   0x5   :  { %s1036_s22 = smov 0  }
   0x6 LB: > { %s745_s23 = sadd.s32 4294967295, %s992_s22   ;;  %s25_s24 = sadd.s32 1, %s984_s20  ;;  %s992_s22 = sphi %s1036_s22, %s13_s22   ;;  %s988_s21 = sphi %s1034_s21, %s1259_s21   ;;  %s984_s20 = sphi %s1032_s20, %s1258_s20   ;;  %s980_s19 = sphi %s1030_s19, %s1257_s19   ;;  %s976_s18 = sphi %s1028_s18, %s1256_s18   ;;  %s972_s17 = sphi %s1026_s17, %s1255_s17   ;;  %s968_s16 = sphi %s1024_s16, %s1254_s16   ;;  %s964_s15 = sphi %s1022_s15, %s1253_s15   ;;  %s960_s14 = sphi %s1020_s14, %s1252_s14   ;;  %s956_s13 = sphi %s1018_s13, %s1251_s13   ;;  %s952_s12 = sphi %s1016_s12, %s1250_s12  }
   0x7   : > { %p26_p0 = scmp.ge.s32.totalorder %s25_s24, 5  ;;  %s28_s25 = sadd.s32 1, %s988_s21 }
   0x8   : > { %s41_s26 = sadd.s32 1, %s972_s17  ;;  %p48_p1 = scmp.ne.s32.totalorder %s972_s17, %s968_s16 }
   0x9   : > { %s1261_s24 = smov (%p26_p0, %s25_s24), 0  ;;  %s1263_s25 = smov (!%p26_p0, %s28_s25), %s988_s21 }
   0xa   : > { %1241 = sst [smem:[#allocation6_spill]] %s1261_s24  ;;  %s37_s27 = ssub.s32 %s984_s20, %s1261_s24 }
   0xb   : > { %p49_p2 = scmp.eq.s32.totalorder %s992_s22, 0  ;;  %p30_p3 = scmp.ge.s32.totalorder %s1263_s25, 2 }
   0xc   : > { %p39_p4 = scmp.eq.s32.totalorder %s37_s27, 0  ;;  %s69_s29 = sadd.s32 1, %s964_s15 }
   0xd   : > { %p1083_p5 = por %p49_p2, %p48_p1  ;;  %s1265_s25 = smov (%p30_p3, %s1263_s25), 0 }
   0xe   : > { %1243 = sst [smem:[#allocation7_spill]] %s1265_s25  ;;  %s65_s4 = ssub.s32 %s988_s21, %s1265_s25 }
   0xf   : > { %s1091_s30 = scalar_select %p39_p4, %s972_s17, %s41_s26  }
  0x10   : > { %p76_p6 = scmp.ne.s32.totalorder %s964_s15, %s960_s14  ;;  %s66_s5 = sor.u32 %s65_s4, %s37_s27 }
  0x11   : > { %1244 = sst [smem:[#allocation8_spill]] %s1091_s30  ;;  %p121_p7 = scmp.eq.s32.totalorder %s65_s4, 0 }
  0x12   : > { %p67_p8 = scmp.eq.s32.totalorder %s66_s5, 0  ;;  %p1097_p9 = por %p76_p6, %p49_p2 }
  0x13   : > { %s123_s7 = sadd.s32 1, %s956_s13  ;;  %p133_p10 = scmp.ne.s32.totalorder %s956_s13, %s952_s12 }
  0x14   : > { %s1105_s8 = scalar_select %p67_p8, %s964_s15, %s69_s29  }
  0x15   : > { %s1108_s9 = scalar_select %p121_p7, %s956_s13, %s123_s7  }
  0x16   : > { %p134_p11 = scmp.eq.s32.totalorder %s745_s23, 9  ;;  %p748_p13 = scmp.ge.s32.totalorder %s992_s22, 10 }
  0x18   : > { %p1110_p12 = por %p134_p11, %p133_p10  ;;  %156 = sbr.rel (%p748_p13) target bundleno = 49 (0x31), region = 16 }
  0x1d   : > { %159 = sbr.rel (!%p1083_p5) target bundleno = 34 (0x22), region = 20  ;;  %s161_s11 = sand.u32 (%p1083_p5), 1, %s972_s17  }
  0x1e   : > { %s750_s26 = sshll.u32 (%p1083_p5), %s984_s20, 2  ;;  %s749_s27 = sshll.u32 (%p1083_p5), %s161_s11, 3 }
  0x1f   : > { %s168_s5 = scalar_lea.vmem (%p1083_p5), %s1235_s0, %s750_s26  ;;  %s163_s23 = scalar_lea.vmem (%p1083_p5), [#allocation3], %s749_s27 }
  0x20   : > { %v185_v0 = vld [vmem:[%s168_s5] sm:$0xf] (%p1083_p5)  ;;  %v187_v1 = vld [vmem:[%s168_s5 + $0x14] sm:$0xf] (%p1083_p5) }
  0x21   : > { %186 = vst [vmem:[%s163_s23] sm:$0xf] (%p1083_p5), %v185_v0  ;;  %188 = vst [vmem:[%s163_s23 + $0x4] sm:$0xf] (%p1083_p5), %v187_v1 }
  0x22 PF: > { %216 = sbr.rel (!%p1097_p9) target bundleno = 49 (0x31), region = 61  ;;  %s218_s28 = sand.u32 (%p1097_p9), 1, %s964_s15  }
  0x23   : > { %s753_s7 = sshll.u32 (%p1097_p9), %s988_s21, 1  ;;  %s751_s25 = sshll.u32 (%p1097_p9), %s218_s28, 7 }
  0x24   : > { %s787_s11 = sshll.u32 (%p1097_p9), %s984_s20, 6  ;;  %s220_s6 = scalar_lea.vmem (%p1097_p9), [#allocation4], %s751_s25 }
  0x25   : > { %s224_s24 = sadd.s32 (%p1097_p9), %s787_s11, %s753_s7 }
  0x26   : > { %s755_s30 = sshll.u32 (%p1097_p9), %s224_s24, 2 }
  0x27   : > { %s1130_s4 = scalar_lea.vmem %s1236_s1, %s755_s30 }
  0x28   : > { %v285_v2 = vld [vmem:[%s1130_s4] sm:$0xff]  ;;  %v287_v3 = vld [vmem:[%s1130_s4 + $0x10] sm:$0xff] }
  0x29   : > { %v289_v4 = vld [vmem:[%s1130_s4 + $0x20] sm:$0xff]  ;;  %286 = vst [vmem:[%s220_s6] sm:$0xff] %v285_v2  ;;  %288 = vst [vmem:[%s220_s6 + $0x8] sm:$0xff] %v287_v3  ;;  %v291_v5 = vld [vmem:[%s1130_s4 + $0x30] sm:$0xff] }
  0x2a   : > { %290 = vst [vmem:[%s220_s6 + $0x10] sm:$0xff] %v289_v4  ;;  %v293_v6 = vld [vmem:[%s1130_s4 + $0x40] sm:$0xff]  ;;  %v295_v7 = vld [vmem:[%s1130_s4 + $0x50] sm:$0xff]  ;;  %292 = vst [vmem:[%s220_s6 + $0x18] sm:$0xff] %v291_v5 }
  0x2b   : > { %294 = vst [vmem:[%s220_s6 + $0x20] sm:$0xff] %v293_v6  ;;  %296 = vst [vmem:[%s220_s6 + $0x28] sm:$0xff] %v295_v7  ;;  %v297_v8 = vld [vmem:[%s1130_s4 + $0x60] sm:$0xff]  ;;  %v299_v9 = vld [vmem:[%s1130_s4 + $0x70] sm:$0xff] }
  0x2c   : > { %v301_v10 = vld [vmem:[%s1130_s4 + $0x80] sm:$0xff]  ;;  %298 = vst [vmem:[%s220_s6 + $0x30] sm:$0xff] %v297_v8  ;;  %300 = vst [vmem:[%s220_s6 + $0x38] sm:$0xff] %v299_v9  ;;  %v303_v11 = vld [vmem:[%s1130_s4 + $0x90] sm:$0xff] }
  0x2d   : > { %302 = vst [vmem:[%s220_s6 + $0x40] sm:$0xff] %v301_v10  ;;  %v305_v12 = vld [vmem:[%s1130_s4 + $0xa0] sm:$0xff]  ;;  %v307_v13 = vld [vmem:[%s1130_s4 + $0xb0] sm:$0xff]  ;;  %304 = vst [vmem:[%s220_s6 + $0x48] sm:$0xff] %v303_v11 }
  0x2e   : > { %306 = vst [vmem:[%s220_s6 + $0x50] sm:$0xff] %v305_v12  ;;  %308 = vst [vmem:[%s220_s6 + $0x58] sm:$0xff] %v307_v13  ;;  %v309_v14 = vld [vmem:[%s1130_s4 + $0xc0] sm:$0xff]  ;;  %v311_v15 = vld [vmem:[%s1130_s4 + $0xd0] sm:$0xff] }
  0x2f   : > { %v313_v16 = vld [vmem:[%s1130_s4 + $0xe0] sm:$0xff]  ;;  %310 = vst [vmem:[%s220_s6 + $0x60] sm:$0xff] %v309_v14  ;;  %312 = vst [vmem:[%s220_s6 + $0x68] sm:$0xff] %v311_v15  ;;  %v315_v17 = vld [vmem:[%s1130_s4 + $0xf0] sm:$0xff] }
  0x30   : > { %314 = vst [vmem:[%s220_s6 + $0x70] sm:$0xff] %v313_v16  ;;  %316 = vst [vmem:[%s220_s6 + $0x78] sm:$0xff] %v315_v17 }
  0x31 PF: > { %p756_p0 = scmp.ge.s32.totalorder %s992_s22, 1  ;;  %p329_p1 = scmp.lt.s32.totalorder %s992_s22, 11 }
  0x33   : > { %p330_p2 = pnand %p756_p0, %p329_p1 }
  0x34   : > { %s336_s24 = sand.u32 (!%p330_p2), 1, %s968_s16   ;;  %s343_s25 = sand.u32 (!%p330_p2), 1, %s960_s14  }
  0x35   : > { %333 = sbr.rel (%p330_p2) target bundleno = 324 (0x144), region = 103  ;;  %s1152_s30 = sshll.u32 (!%p330_p2), %s336_s24, 3 }
  0x36   : > { %s758_s27 = sshll.u32 (!%p330_p2), %s343_s25, 7  ;;  %s370_s5 = sand.u32 (!%p330_p2), 1, %s952_s12  }
  0x37   : > { %s760_s23 = sshll.u32 (!%p330_p2), %s980_s19, 1  ;;  %s759_s28 = sshll.u32 (!%p330_p2), %s370_s5, 4 }
  0x38   : > { %p377_p3 = scmp.lt.s32.totalorder (!%p330_p2), %s760_s23, 3  ;;  %s338_s26 = scalar_lea.vmem (!%p330_p2), [#allocation3], %s1152_s30 }
  0x39   : > { %s1163_s4 = scalar_lea.vmem (!%p330_p2), [#allocation4], %s758_s27  ;;  %s1165_s16 = scalar_lea.vmem (!%p330_p2), [#allocation5], %s759_s28 }
  0x3a   : > { %s1267_s23 = smov (!%p377_p3, %s760_s23), 3  ;;  %p761_p4 = scmp.ne.s32.totalorder %s976_s18, 0 }
  0x3b   : > { %s379_s29 = scalar_lea.vmem %s1237_s2, %s1267_s23 }
  0x3c   : > { %387 = sbr.rel (%p761_p4) target bundleno = 68 (0x44), region = 115 }
  0x41   : > { %v994_v18 = vmov 0.0  }
  0x42   : > { %388 = vst [vmem:[#allocation2 + $0x10] sm:$0xff] %v994_v18  ;;  %389 = vst [vmem:[#allocation2] sm:$0xff] %v994_v18 }
  0x43   : > { %390 = vst [vmem:[#allocation2 + $0x18] sm:$0xff] %v994_v18  ;;  %391 = vst [vmem:[#allocation2 + $0x8] sm:$0xff] %v994_v18 }
  0x44 PF: > { %v881_v19 = vld [vmem:[%s1163_s4 + $0x74] ss:$8 sps:$4 sm:$0xff]   ;;  %v883_v20 = vld [vmem:[%s1163_s4 + $0x70] ss:$8 sps:$4 sm:$0xff]   ;;  %v995_v21 = vmov 0   ;;  %p779_p5 = scmp.ne.s32.totalorder %s976_s18, 4 }
  0x45   : > { %532 = vmatprep.mubr.bf16.mxu0 %v995_v21  ;;  %500 = vmatprep.subr.bf16.mxu0 %v881_v19  ;;  %v884_v22 = vld [vmem:[%s1163_s4 + $0x64] ss:$8 sps:$4 sm:$0xff]   ;;  %v886_v23 = vld [vmem:[%s1163_s4 + $0x60] ss:$8 sps:$4 sm:$0xff]   ;;  %v887_v24 = vld [vmem:[%s1163_s4 + $0x54] ss:$8 sps:$4 sm:$0xff]  }
  0x46   : > { %501 = vmatpush1.bf16.msra.mxu0 %v883_v20  ;;  %v889_v25 = vld [vmem:[%s1163_s4 + $0x50] ss:$8 sps:$4 sm:$0xff]   ;;  %v890_v26 = vld [vmem:[%s1163_s4 + $0x44] ss:$8 sps:$4 sm:$0xff]   ;;  %v892_v27 = vld [vmem:[%s1163_s4 + $0x40] ss:$8 sps:$4 sm:$0xff]  }
  0x47   : > { %502 = vmatprep.subr.bf16.mxu0 %v884_v22  ;;  %v893_v28 = vld [vmem:[%s1163_s4 + $0x34] ss:$8 sps:$4 sm:$0xff]   ;;  %v895_v29 = vld [vmem:[%s1163_s4 + $0x30] ss:$8 sps:$4 sm:$0xff]   ;;  %v896_v30 = vld [vmem:[%s1163_s4 + $0x24] ss:$8 sps:$4 sm:$0xff]  }
  0x48   : > { %v898_v31 = vld [vmem:[%s1163_s4 + $0x20] ss:$8 sps:$4 sm:$0xff]   ;;  %v899_v32 = vld [vmem:[%s1163_s4 + $0x14] ss:$8 sps:$4 sm:$0xff]   ;;  %v901_v33 = vld [vmem:[%s1163_s4 + $0x10] ss:$8 sps:$4 sm:$0xff]  }
  0x49   : > { %v902_v34 = vld [vmem:[%s1163_s4 + $0x4] ss:$8 sps:$4 sm:$0xff]   ;;  %v904_v35 = vld [vmem:[%s1163_s4] ss:$8 sps:$4 sm:$0xff]   ;;  %v905_v36 = vld [vmem:[%s338_s26] sm:$0xff]  }
  0x4a   : > { %503 = vmatpush1.bf16.msra.mxu0 %v886_v23  ;;  %v392_v37 = vld [vmem:[#allocation2 + $0x10] sm:$0xff]  ;;  %v393_v39 = vld [vmem:[#allocation2] sm:$0xff]  ;;  %v394_v42 = vld [vmem:[#allocation2 + $0x18] sm:$0xff] }
  0x4b   : > { %504 = vmatprep.subr.bf16.mxu0 %v887_v24  ;;  %v395_v45 = vld [vmem:[#allocation2 + $0x8] sm:$0xff] }
  0x4e   : > { %505 = vmatpush1.bf16.msra.mxu0 %v889_v25 }
  0x4f   : > { %506 = vmatprep.subr.bf16.mxu0 %v890_v26 }
  0x52   : > { %507 = vmatpush1.bf16.msra.mxu0 %v892_v27 }
  0x53   : > { %508 = vmatprep.subr.bf16.mxu0 %v893_v28 }
  0x56   : > { %509 = vmatpush1.bf16.msra.mxu0 %v895_v29 }
  0x57   : > { %510 = vmatprep.subr.bf16.mxu0 %v896_v30 }
  0x5a   : > { %511 = vmatpush1.bf16.msra.mxu0 %v898_v31 }
  0x5b   : > { %512 = vmatprep.subr.bf16.mxu0 %v899_v32 }
  0x5e   : > { %513 = vmatpush1.bf16.msra.mxu0 %v901_v33 }
  0x5f   : > { %514 = vmatprep.subr.bf16.mxu0 %v902_v34 }
  0x62   : > { %515 = vmatpush1.bf16.msra.mxu0 %v904_v35 }
  0x65   : > { %533 = vmatmul.mubr.bf16.vlgmr.msra.gmra.mxu0 %v905_v36 }
 0x125   : > { %v534_v38 = vpop.f32.mrf.mxu0 }
 0x126   : > { %v543_v40 = vadd.f32 %v534_v38, %v392_v37 }
 0x127   : > { %v536_v41 = vpop.f32.mrf.mxu0 }
 0x128   : > { %547 = vst [vmem:[#allocation2 + $0x10] sm:$0xff] %v543_v40  ;;  %v544_v43 = vadd.f32 %v536_v41, %v393_v39 }
 0x129   : > { %v538_v44 = vpop.f32.mrf.mxu0 }
 0x12a   : > { %548 = vst [vmem:[#allocation2] sm:$0xff] %v544_v43  ;;  %v545_v46 = vadd.f32 %v538_v44, %v394_v42  ;;  %554 = sbr.rel (%p779_p5) target bundleno = 316 (0x13c), region = 119 }
 0x12b   : > { %v540_v47 = vpop.f32.mrf.mxu0 }
 0x12c   : > { %549 = vst [vmem:[#allocation2 + $0x18] sm:$0xff] %v545_v46  ;;  %v546_v48 = vadd.f32 %v540_v47, %v395_v45 }
 0x12e   : > { %550 = vst [vmem:[#allocation2 + $0x8] sm:$0xff] %v546_v48 }
 0x12f   : > { %v561_v49 = vlaneseq  ;;  %v559_v51 = vld [vmem:[%s379_s29] sm:$0x3]  ;;  %v555_v52 = vld [vmem:[#allocation2 + $0x10] sm:$0xff] }
 0x131   : > { %v562_v50 = vshrl.u32 %v561_v49, 7  ;;  %v556_v55 = vld [vmem:[#allocation2] sm:$0xff] }
 0x133   : > { %v563_v53 = vsub.s32 0, %v562_v50  ;;  %v567_v54 = vsub.s32 1, %v562_v50  ;;  %v557_v56 = vld [vmem:[#allocation2 + $0x18] sm:$0xff] }
 0x135   : > { %v558_v57 = vld [vmem:[#allocation2 + $0x8] sm:$0xff]  ;;  %v564_v58 = vrot.slane %v559_v51, %v563_v53  ;;  %v568_v59 = vrot.slane %v559_v51, %v567_v54 }
 0x137   : > { %v571_v60 = vadd.f32 %v564_v58, %v555_v52  ;;  %v572_v61 = vadd.f32 %v568_v59, %v556_v55  ;;  %v573_v62 = vadd.f32 %v564_v58, %v557_v56  ;;  %v574_v63 = vadd.f32 %v568_v59, %v558_v57 }
 0x139   : > { %v788_v0 = vpack.c.bf16 %v572_v61, %v571_v60  ;;  %v789_v1 = vpack.c.bf16 %v574_v63, %v573_v62 }
 0x13b   : > { %587 = vst [vmem:[%s1165_s16] sm:$0xff] %v788_v0  ;;  %588 = vst [vmem:[%s1165_s16 + $0x8] sm:$0xff] %v789_v1 }
 0x13c PF: > { %595 = sbr.rel (!%p1110_p12) target bundleno = 324 (0x144), region = 123  ;;  %s790_s18 = sshll.u32 (%p1110_p12), %s980_s19, 3 }
 0x13d   : > { %s601_s25 = scalar_lea.vmem (%p1110_p12), %s1238_s3, %s790_s18 }
 0x142   : > { %v632_v2 = vld [vmem:[%s1165_s16] sm:$0xff]  ;;  %v634_v3 = vld [vmem:[%s1165_s16 + $0x8] sm:$0xff] }
 0x143   : > { %633 = vst [vmem:[%s601_s25] sm:$0xff] %v632_v2  ;;  %635 = vst [vmem:[%s601_s25 + $0x10] sm:$0xff] %v634_v3 }
 0x144 PF: > { %s13_s22 = sadd.s32 1, %s992_s22   ;;  %s1247_s10 = sld [smem:[#allocation8_spill]] }
 0x145   : > { %p10_p6 = scmp.ge.s32.totalorder %s13_s22, 12   ;;  %s1248_s30 = sld [smem:[#allocation6_spill]] }
 0x146   : > { %s1249_s27 = sld [smem:[#allocation7_spill]]  ;;  %s1250_s12 = smov %s956_s13 }
 0x147   : > { %s1251_s13 = smov %s1108_s9  ;;  %s1252_s14 = smov %s964_s15 }
 0x148   : > { %s1253_s15 = smov %s1105_s8  ;;  %s1254_s16 = smov %s972_s17 }
 0x149   : > { %s1256_s18 = smov %s984_s20  ;;  %s1257_s19 = smov %s988_s21 }
 0x14a   : > { %s1255_s17 = smov %s1247_s10  ;;  %12 = sbr.rel (!%p10_p6) target bundleno = 6 (0x6), region = 203 }
 0x14b   : > { %s1258_s20 = smov %s1248_s30 }
 0x14c   : > { %s1259_s21 = smov %s1249_s27 }

// kernel: forward.30
= control target key start
LH: loop header
LB: loop body
LE: loop exit
PB: predicated region body
PF: predicated region fallthrough
CT: control target
= control target key end

     0   :  { %s1268_s12 = smov 0   ;;  %s1270_s13 = smov 0   ;;  %s1416_s0 = inlined_call_operand.vmem [shape: bf16[16,2048], index: 0, kind: input, shape index: {}]   ;;  %s1417_s1 = inlined_call_operand.vmem [shape: bf16[2048,256], index: 1, kind: input, shape index: {}]   ;;  %s1418_s2 = inlined_call_operand.vmem [shape: f32[1,256], index: 2, kind: input, shape index: {}]   ;;  %s1419_s3 = inlined_call_operand.vmem [shape: bf16[16,256], index: 3, kind: output, shape index: {}]  }
   0x1   :  { %s1272_s14 = smov 0   ;;  %s1274_s15 = smov 0  }
   0x2   :  { %s1276_s16 = smov 0  }
   0x3 LB: > { %s25_s17 = sadd.s32 1, %s1241_s15  ;;  %p48_p1 = scmp.ne.s32.totalorder %s1233_s13, %s1229_s12  ;;  %s1245_s16 = sphi %s1276_s16, %s13_s16   ;;  %s1241_s15 = sphi %s1274_s15, %s1423_s15   ;;  %s1237_s14 = sphi %s1272_s14, %s1422_s14   ;;  %s1233_s13 = sphi %s1270_s13, %s1421_s13   ;;  %s1229_s12 = sphi %s1268_s12, %s1420_s12  }
   0x4   : > { %p26_p0 = scmp.ge.s32.totalorder %s25_s17, 4  ;;  %p49_p2 = scmp.eq.s32.totalorder %s1245_s16, 0 }
   0x5   : > { %s41_s19 = sadd.s32 1, %s1233_s13  ;;  %p975_p5 = scmp.ge.s32.totalorder %s1245_s16, 4 }
   0x6   : > { %s1425_s17 = smov (%p26_p0, %s25_s17), 0  ;;  %p50_p3 = por %p49_p2, %p48_p1 }
   0x7   : > { %s37_s18 = ssub.s32 %s1241_s15, %s1425_s17  ;;  %164 = sbr.rel (%p975_p5) target bundleno = 18 (0x12), region = 20 }
   0x8   : > { %p39_p4 = scmp.eq.s32.totalorder %s37_s18, 0 }
   0xa   : > { %s1303_s20 = scalar_select %p39_p4, %s1233_s13, %s41_s19  }
   0xc   : > { %167 = sbr.rel (!%p50_p3) target bundleno = 18 (0x12), region = 24  ;;  %s169_s21 = sand.u32 (%p50_p3), 1, %s1233_s13  }
   0xd   : > { %s1060_s22 = sshll.u32 (%p50_p3), %s1241_s15, 4  ;;  %s976_s23 = sshll.u32 (%p50_p3), %s169_s21, 5 }
   0xe   : > { %s177_s26 = scalar_lea.vmem (%p50_p3), %s1416_s0, %s1060_s22  ;;  %s171_s27 = scalar_lea.vmem (%p50_p3), [#allocation3], %s976_s23 }
   0xf   : > { %v190_v0 = vld [vmem:[%s177_s26] sm:$0xff] (%p50_p3)  ;;  %v192_v1 = vld [vmem:[%s177_s26 + $0x8] sm:$0xff] (%p50_p3) }
  0x10   : > { %v194_v2 = vld [vmem:[%s177_s26 + $0x40] sm:$0xff] (%p50_p3)  ;;  %191 = vst [vmem:[%s171_s27] sm:$0xff] (%p50_p3), %v190_v0  ;;  %193 = vst [vmem:[%s171_s27 + $0x8] sm:$0xff] (%p50_p3), %v192_v1  ;;  %v196_v3 = vld [vmem:[%s177_s26 + $0x48] sm:$0xff] (%p50_p3) }
  0x11   : > { %195 = vst [vmem:[%s171_s27 + $0x10] sm:$0xff] %v194_v2  ;;  %197 = vst [vmem:[%s171_s27 + $0x18] sm:$0xff] %v196_v3 }
  0x12 PF: > { %p979_p6 = scmp.ge.s32.totalorder %s1245_s16, 1  ;;  %p217_p7 = scmp.lt.s32.totalorder %s1245_s16, 5 }
  0x14   : > { %p218_p8 = pnand %p979_p6, %p217_p7 }
  0x15   : > { %s224_s28 = sand.u32 (!%p218_p8), 1, %s1229_s12   ;;  %s981_s29 = sshll.u32 (!%p218_p8), %s1237_s14, 6 }
  0x16   : > { %221 = sbr.rel (%p218_p8) target bundleno = 318 (0x13e), region = 51  ;;  %s980_s30 = sshll.u32 (!%p218_p8), %s224_s28, 5 }
  0x17   : > { %p270_p9 = scmp.lt.s32.totalorder (!%p218_p8), %s981_s29, 255  ;;  %s1320_s8 = scalar_lea.vmem (!%p218_p8), [#allocation3], %s980_s30 }
  0x18   : > { %p984_p10 = scmp.ne.s32.totalorder (!%p218_p8), %s1237_s14, 0 }
  0x1b   : > { %s1427_s29 = smov (!%p270_p9, %s981_s29), 255  ;;  %300 = sbr.rel (%p984_p10) target bundleno = 35 (0x23), region = 59 }
  0x1c   : > { %s1061_s4 = sshll.u32 %s1427_s29, 3 }
  0x1d   : > { %s1318_s7 = scalar_lea.vmem %s1417_s1, %s1061_s4 }
  0x20   : > { %v1247_v4 = vmov 0.0  }
  0x21   : > { %301 = vst [vmem:[#allocation2 + $0x10] sm:$0xff] %v1247_v4  ;;  %302 = vst [vmem:[#allocation2] sm:$0xff] %v1247_v4 }
  0x22   : > { %303 = vst [vmem:[#allocation2 + $0x18] sm:$0xff] %v1247_v4  ;;  %304 = vst [vmem:[#allocation2 + $0x8] sm:$0xff] %v1247_v4 }
  0x23 PF: > { %v1105_v5 = vld [vmem:[%s1318_s7 + $0x74] ss:$8 sps:$4 sm:$0xff]   ;;  %v1109_v7 = vld [vmem:[%s1318_s7 + $0x70] ss:$8 sps:$4 sm:$0xff]   ;;  %v1111_v9 = vld [vmem:[%s1318_s7 + $0x64] ss:$8 sps:$4 sm:$0xff]  }
  0x24   : > { %v1107_v6 = vld [vmem:[%s1318_s7 + $0x174] ss:$8 sps:$4 sm:$0xff]   ;;  %717 = vmatprep.subr.bf16.mxu0 %v1105_v5  ;;  %v1110_v8 = vld [vmem:[%s1318_s7 + $0x170] ss:$8 sps:$4 sm:$0xff]   ;;  %v1113_v10 = vld [vmem:[%s1318_s7 + $0x164] ss:$8 sps:$4 sm:$0xff]  }
  0x25   : > { %760 = vmatprep.subr.bf16.mxu1 %v1107_v6  ;;  %718 = vmatpush1.bf16.msra.mxu0 %v1109_v7  ;;  %v1115_v11 = vld [vmem:[%s1318_s7 + $0x60] ss:$8 sps:$4 sm:$0xff]   ;;  %v1117_v13 = vld [vmem:[%s1318_s7 + $0x54] ss:$8 sps:$4 sm:$0xff]   ;;  %v1121_v15 = vld [vmem:[%s1318_s7 + $0x50] ss:$8 sps:$4 sm:$0xff]  }
  0x26   : > { %761 = vmatpush1.bf16.msra.mxu1 %v1110_v8  ;;  %719 = vmatprep.subr.bf16.mxu0 %v1111_v9  ;;  %v1116_v12 = vld [vmem:[%s1318_s7 + $0x160] ss:$8 sps:$4 sm:$0xff]   ;;  %v1119_v14 = vld [vmem:[%s1318_s7 + $0x154] ss:$8 sps:$4 sm:$0xff]   ;;  %v1122_v16 = vld [vmem:[%s1318_s7 + $0x150] ss:$8 sps:$4 sm:$0xff]  }
  0x27   : > { %762 = vmatprep.subr.bf16.mxu1 %v1113_v10  ;;  %v1123_v17 = vld [vmem:[%s1318_s7 + $0x44] ss:$8 sps:$4 sm:$0xff]   ;;  %v1127_v19 = vld [vmem:[%s1318_s7 + $0x40] ss:$8 sps:$4 sm:$0xff]   ;;  %v1129_v21 = vld [vmem:[%s1318_s7 + $0x34] ss:$8 sps:$4 sm:$0xff]  }
  0x28   : > { %v1125_v18 = vld [vmem:[%s1318_s7 + $0x144] ss:$8 sps:$4 sm:$0xff]   ;;  %v1128_v20 = vld [vmem:[%s1318_s7 + $0x140] ss:$8 sps:$4 sm:$0xff]   ;;  %v1131_v22 = vld [vmem:[%s1318_s7 + $0x134] ss:$8 sps:$4 sm:$0xff]  }
  0x29   : > { %720 = vmatpush1.bf16.msra.mxu0 %v1115_v11  ;;  %v1133_v23 = vld [vmem:[%s1318_s7 + $0x30] ss:$8 sps:$4 sm:$0xff]   ;;  %v1135_v25 = vld [vmem:[%s1318_s7 + $0x24] ss:$8 sps:$4 sm:$0xff]   ;;  %v1139_v27 = vld [vmem:[%s1318_s7 + $0x20] ss:$8 sps:$4 sm:$0xff]  }
  0x2a   : > { %763 = vmatpush1.bf16.msra.mxu1 %v1116_v12  ;;  %721 = vmatprep.subr.bf16.mxu0 %v1117_v13  ;;  %v1134_v24 = vld [vmem:[%s1318_s7 + $0x130] ss:$8 sps:$4 sm:$0xff]   ;;  %v1137_v26 = vld [vmem:[%s1318_s7 + $0x124] ss:$8 sps:$4 sm:$0xff]   ;;  %v1140_v28 = vld [vmem:[%s1318_s7 + $0x120] ss:$8 sps:$4 sm:$0xff]  }
  0x2b   : > { %764 = vmatprep.subr.bf16.mxu1 %v1119_v14  ;;  %v1141_v29 = vld [vmem:[%s1318_s7 + $0x14] ss:$8 sps:$4 sm:$0xff]   ;;  %v1145_v31 = vld [vmem:[%s1318_s7 + $0x10] ss:$8 sps:$4 sm:$0xff]   ;;  %v1147_v33 = vld [vmem:[%s1318_s7 + $0x4] ss:$8 sps:$4 sm:$0xff]  }
  0x2c   : > { %v1143_v30 = vld [vmem:[%s1318_s7 + $0x114] ss:$8 sps:$4 sm:$0xff]   ;;  %v1146_v32 = vld [vmem:[%s1318_s7 + $0x110] ss:$8 sps:$4 sm:$0xff]   ;;  %v1149_v34 = vld [vmem:[%s1318_s7 + $0x104] ss:$8 sps:$4 sm:$0xff]  }
  0x2d   : > { %722 = vmatpush1.bf16.msra.mxu0 %v1121_v15  ;;  %v1151_v35 = vld [vmem:[%s1318_s7] ss:$8 sps:$4 sm:$0xff]   ;;  %v1153_v37 = vld [vmem:[%s1318_s7 + $0xf4] ss:$8 sps:$4 sm:$0xff]   ;;  %v1157_v39 = vld [vmem:[%s1318_s7 + $0xf0] ss:$8 sps:$4 sm:$0xff]  }
  0x2e   : > { %765 = vmatpush1.bf16.msra.mxu1 %v1122_v16  ;;  %723 = vmatprep.subr.bf16.mxu0 %v1123_v17  ;;  %v1152_v36 = vld [vmem:[%s1318_s7 + $0x100] ss:$8 sps:$4 sm:$0xff]   ;;  %v1155_v38 = vld [vmem:[%s1318_s7 + $0x1f4] ss:$8 sps:$4 sm:$0xff]   ;;  %v1158_v40 = vld [vmem:[%s1318_s7 + $0x1f0] ss:$8 sps:$4 sm:$0xff]  }
  0x2f   : > { %766 = vmatprep.subr.bf16.mxu1 %v1125_v18  ;;  %v1159_v41 = vld [vmem:[%s1318_s7 + $0xe4] ss:$8 sps:$4 sm:$0xff]   ;;  %v1163_v43 = vld [vmem:[%s1318_s7 + $0xe0] ss:$8 sps:$4 sm:$0xff]   ;;  %v1165_v45 = vld [vmem:[%s1318_s7 + $0xd4] ss:$8 sps:$4 sm:$0xff]  }
  0x30   : > { %v1161_v42 = vld [vmem:[%s1318_s7 + $0x1e4] ss:$8 sps:$4 sm:$0xff]   ;;  %v1164_v44 = vld [vmem:[%s1318_s7 + $0x1e0] ss:$8 sps:$4 sm:$0xff]   ;;  %v1167_v46 = vld [vmem:[%s1318_s7 + $0x1d4] ss:$8 sps:$4 sm:$0xff]  }
  0x31   : > { %724 = vmatpush1.bf16.msra.mxu0 %v1127_v19  ;;  %v1169_v47 = vld [vmem:[%s1318_s7 + $0xd0] ss:$8 sps:$4 sm:$0xff]   ;;  %v1171_v49 = vld [vmem:[%s1318_s7 + $0xc4] ss:$8 sps:$4 sm:$0xff]   ;;  %v1175_v51 = vld [vmem:[%s1318_s7 + $0xc0] ss:$8 sps:$4 sm:$0xff]  }
  0x32   : > { %767 = vmatpush1.bf16.msra.mxu1 %v1128_v20  ;;  %725 = vmatprep.subr.bf16.mxu0 %v1129_v21  ;;  %v1170_v48 = vld [vmem:[%s1318_s7 + $0x1d0] ss:$8 sps:$4 sm:$0xff]   ;;  %v1173_v50 = vld [vmem:[%s1318_s7 + $0x1c4] ss:$8 sps:$4 sm:$0xff]   ;;  %v1176_v53 = vld [vmem:[%s1318_s7 + $0x1c0] ss:$8 sps:$4 sm:$0xff]  }
  0x33   : > { %768 = vmatprep.subr.bf16.mxu1 %v1131_v22  ;;  %v1203_v52 = vld [vmem:[%s1320_s8 + $0x4] ss:$16 sps:$4 sm:$0xff]   ;;  %v1206_v56 = vld [vmem:[%s1320_s8 + $0xc] ss:$16 sps:$4 sm:$0xff]   ;;  %v1181_v57 = vld [vmem:[%s1318_s7 + $0xb0] ss:$8 sps:$4 sm:$0xff]  }
  0x34   : > { %v1177_v54 = vld [vmem:[%s1318_s7 + $0xb4] ss:$8 sps:$4 sm:$0xff]   ;;  %749 = vmatprep.mubr.bf16.mxu0 %v1203_v52  ;;  %792 = vmatprep.mubr.bf16.mxu1 %v1206_v56  ;;  %v1182_v58 = vld [vmem:[%s1318_s7 + $0x1b0] ss:$8 sps:$4 sm:$0xff]   ;;  %v1183_v59 = vld [vmem:[%s1318_s7 + $0xa4] ss:$8 sps:$4 sm:$0xff]  }
  0x35   : > { %726 = vmatpush1.bf16.msra.mxu0 %v1133_v23  ;;  %v1179_v55 = vld [vmem:[%s1318_s7 + $0x1b4] ss:$8 sps:$4 sm:$0xff]   ;;  %v1185_v60 = vld [vmem:[%s1318_s7 + $0x1a4] ss:$8 sps:$4 sm:$0xff]   ;;  %v1187_v61 = vld [vmem:[%s1318_s7 + $0xa0] ss:$8 sps:$4 sm:$0xff]  }
  0x36   : > { %769 = vmatpush1.bf16.msra.mxu1 %v1134_v24  ;;  %727 = vmatprep.subr.bf16.mxu0 %v1135_v25  ;;  %v1188_v62 = vld [vmem:[%s1318_s7 + $0x1a0] ss:$8 sps:$4 sm:$0xff]   ;;  %v1189_v63 = vld [vmem:[%s1318_s7 + $0x94] ss:$8 sps:$4 sm:$0xff]   ;;  %v1193_v1 = vld [vmem:[%s1318_s7 + $0x90] ss:$8 sps:$4 sm:$0xff]  }
  0x37   : > { %770 = vmatprep.subr.bf16.mxu1 %v1137_v26  ;;  %v1191_v0 = vld [vmem:[%s1318_s7 + $0x194] ss:$8 sps:$4 sm:$0xff]   ;;  %v1194_v2 = vld [vmem:[%s1318_s7 + $0x190] ss:$8 sps:$4 sm:$0xff]   ;;  %v1195_v3 = vld [vmem:[%s1318_s7 + $0x84] ss:$8 sps:$4 sm:$0xff]  }
  0x38   : > { %v1197_v4 = vld [vmem:[%s1318_s7 + $0x184] ss:$8 sps:$4 sm:$0xff]   ;;  %v1199_v5 = vld [vmem:[%s1318_s7 + $0x80] ss:$8 sps:$4 sm:$0xff]   ;;  %v305_v10 = vld [vmem:[#allocation2 + $0x10] sm:$0xff]  ;;  %p1053_p11 = scmp.ne.s32.totalorder %s1237_s14, 3 }
  0x39   : > { %728 = vmatpush1.bf16.msra.mxu0 %v1139_v27  ;;  %v1200_v6 = vld [vmem:[%s1318_s7 + $0x180] ss:$8 sps:$4 sm:$0xff]   ;;  %v307_v19 = vld [vmem:[#allocation2 + $0x18] sm:$0xff] }
  0x3a   : > { %771 = vmatpush1.bf16.msra.mxu1 %v1140_v28  ;;  %729 = vmatprep.subr.bf16.mxu0 %v1141_v29  ;;  %v1201_v7 = vld [vmem:[%s1320_s8] ss:$16 sps:$4 sm:$0xff]   ;;  %v1204_v8 = vld [vmem:[%s1320_s8 + $0x8] ss:$16 sps:$4 sm:$0xff]  }
  0x3b   : > { %772 = vmatprep.subr.bf16.mxu1 %v1143_v30  ;;  %v306_v14 = vld [vmem:[#allocation2] sm:$0xff]  ;;  %v308_v24 = vld [vmem:[#allocation2 + $0x8] sm:$0xff] }
  0x3d   : > { %730 = vmatpush1.bf16.msra.mxu0 %v1145_v31 }
  0x3e   : > { %773 = vmatpush1.bf16.msra.mxu1 %v1146_v32  ;;  %731 = vmatprep.subr.bf16.mxu0 %v1147_v33 }
  0x3f   : > { %774 = vmatprep.subr.bf16.mxu1 %v1149_v34 }
  0x41   : > { %732 = vmatpush1.bf16.msra.mxu0 %v1151_v35 }
  0x42   : > { %775 = vmatpush1.bf16.msra.mxu1 %v1152_v36  ;;  %733 = vmatprep.subr.bf16.mxu0 %v1153_v37 }
  0x43   : > { %776 = vmatprep.subr.bf16.mxu1 %v1155_v38 }
  0x45   : > { %734 = vmatpush2.bf16.msra.mxu0 %v1157_v39 }
  0x46   : > { %777 = vmatpush2.bf16.msra.mxu1 %v1158_v40  ;;  %735 = vmatprep.subr.bf16.mxu0 %v1159_v41 }
  0x47   : > { %778 = vmatprep.subr.bf16.mxu1 %v1161_v42 }
  0x49   : > { %736 = vmatpush2.bf16.msra.mxu0 %v1163_v43 }
  0x4a   : > { %779 = vmatpush2.bf16.msra.mxu1 %v1164_v44  ;;  %737 = vmatprep.subr.bf16.mxu0 %v1165_v45 }
  0x4b   : > { %780 = vmatprep.subr.bf16.mxu1 %v1167_v46 }
  0x4d   : > { %738 = vmatpush2.bf16.msra.mxu0 %v1169_v47 }
  0x4e   : > { %781 = vmatpush2.bf16.msra.mxu1 %v1170_v48  ;;  %739 = vmatprep.subr.bf16.mxu0 %v1171_v49 }
  0x4f   : > { %782 = vmatprep.subr.bf16.mxu1 %v1173_v50 }
  0x51   : > { %740 = vmatpush2.bf16.msra.mxu0 %v1175_v51 }
  0x52   : > { %783 = vmatpush2.bf16.msra.mxu1 %v1176_v53  ;;  %741 = vmatprep.subr.bf16.mxu0 %v1177_v54 }
  0x53   : > { %784 = vmatprep.subr.bf16.mxu1 %v1179_v55 }
  0x55   : > { %742 = vmatpush2.bf16.msra.mxu0 %v1181_v57 }
  0x56   : > { %785 = vmatpush2.bf16.msra.mxu1 %v1182_v58  ;;  %743 = vmatprep.subr.bf16.mxu0 %v1183_v59 }
  0x57   : > { %786 = vmatprep.subr.bf16.mxu1 %v1185_v60 }
  0x59   : > { %744 = vmatpush2.bf16.msra.mxu0 %v1187_v61 }
  0x5a   : > { %787 = vmatpush2.bf16.msra.mxu1 %v1188_v62  ;;  %745 = vmatprep.subr.bf16.mxu0 %v1189_v63 }
  0x5b   : > { %788 = vmatprep.subr.bf16.mxu1 %v1191_v0 }
  0x5d   : > { %746 = vmatpush2.bf16.msra.mxu0 %v1193_v1 }
  0x5e   : > { %789 = vmatpush2.bf16.msra.mxu1 %v1194_v2  ;;  %747 = vmatprep.subr.bf16.mxu0 %v1195_v3 }
  0x5f   : > { %790 = vmatprep.subr.bf16.mxu1 %v1197_v4 }
  0x61   : > { %748 = vmatpush2.bf16.msra.mxu0 %v1199_v5 }
  0x62   : > { %791 = vmatpush2.bf16.msra.mxu1 %v1200_v6 }
  0x64   : > { %750 = vmatmul.mubr.bf16.vlgmr.msra.gmra.mxu0 %v1201_v7 }
  0x65   : > { %793 = vmatmul.mubr.bf16.vlgmr.msra.gmra.mxu1 %v1204_v8 }
 0x124   : > { %v751_v9 = vpop.f32.mrf.mxu0 }
 0x125   : > { %v794_v11 = vpop.f32.mrf.mxu1 }
 0x126   : > { %v795_v12 = vadd.f32 %v794_v11, %v751_v9  ;;  %v753_v13 = vpop.f32.mrf.mxu0 }
 0x127   : > { %v796_v15 = vpop.f32.mrf.mxu1 }
 0x128   : > { %v803_v16 = vadd.f32 %v795_v12, %v305_v10  ;;  %v797_v17 = vadd.f32 %v796_v15, %v753_v13  ;;  %v755_v18 = vpop.f32.mrf.mxu0 }
 0x129   : > { %v798_v20 = vpop.f32.mrf.mxu1 }
 0x12a   : > { %807 = vst [vmem:[#allocation2 + $0x10] sm:$0xff] %v803_v16  ;;  %v804_v21 = vadd.f32 %v797_v17, %v306_v14  ;;  %v799_v22 = vadd.f32 %v798_v20, %v755_v18  ;;  %v757_v23 = vpop.f32.mrf.mxu0 }
 0x12b   : > { %v800_v25 = vpop.f32.mrf.mxu1 }
 0x12c   : > { %808 = vst [vmem:[#allocation2] sm:$0xff] %v804_v21  ;;  %v805_v26 = vadd.f32 %v799_v22, %v307_v19  ;;  %v801_v27 = vadd.f32 %v800_v25, %v757_v23  ;;  %814 = sbr.rel (%p1053_p11) target bundleno = 318 (0x13e), region = 63 }
 0x12e   : > { %809 = vst [vmem:[#allocation2 + $0x18] sm:$0xff] %v805_v26  ;;  %v806_v28 = vadd.f32 %v801_v27, %v308_v24 }
 0x130   : > { %810 = vst [vmem:[#allocation2 + $0x8] sm:$0xff] %v806_v28 }
 0x131   : > { %v821_v29 = vlaneseq  ;;  %v819_v31 = vld [vmem:[%s1418_s2] sm:$0x3]  ;;  %v815_v32 = vld [vmem:[#allocation2 + $0x10] sm:$0xff] }
 0x133   : > { %v822_v30 = vshrl.u32 %v821_v29, 7  ;;  %v816_v35 = vld [vmem:[#allocation2] sm:$0xff] }
 0x135   : > { %v823_v33 = vsub.s32 0, %v822_v30  ;;  %v827_v34 = vsub.s32 1, %v822_v30  ;;  %v817_v36 = vld [vmem:[#allocation2 + $0x18] sm:$0xff] }
 0x137   : > { %v818_v37 = vld [vmem:[#allocation2 + $0x8] sm:$0xff]  ;;  %v824_v38 = vrot.slane %v819_v31, %v823_v33  ;;  %v828_v39 = vrot.slane %v819_v31, %v827_v34 }
 0x139   : > { %v831_v40 = vadd.f32 %v824_v38, %v815_v32  ;;  %v832_v41 = vadd.f32 %v828_v39, %v816_v35  ;;  %v833_v42 = vadd.f32 %v824_v38, %v817_v36  ;;  %v834_v43 = vadd.f32 %v828_v39, %v818_v37 }
 0x13b   : > { %v1062_v44 = vpack.c.bf16 %v832_v41, %v831_v40  ;;  %v1063_v45 = vpack.c.bf16 %v834_v43, %v833_v42 }
 0x13d   : > { %847 = vst [vmem:[%s1419_s3] sm:$0xff] %v1062_v44  ;;  %848 = vst [vmem:[%s1419_s3 + $0x8] sm:$0xff] %v1063_v45 }
 0x13e PF: > { %s13_s16 = sadd.s32 1, %s1245_s16   ;;  %s1420_s12 = smov %s1233_s13 }
 0x13f   : > { %p10_p12 = scmp.ge.s32.totalorder %s13_s16, 6   ;;  %s1421_s13 = smov %s1303_s20 }
 0x140   : > { %s1422_s14 = smov %s1241_s15  ;;  %s1423_s15 = smov %s1425_s17 }
 0x141   :  { %12 = sbr.rel (!%p10_p12) target bundleno = 3 (0x3), region = 104 }

// kernel: forward.34
= control target key start
LH: loop header
LB: loop body
LE: loop exit
PB: predicated region body
PF: predicated region fallthrough
CT: control target
= control target key end

     0   :  { %s1140_s12 = smov 0   ;;  %s1142_s13 = smov 0   ;;  %s1260_s0 = inlined_call_operand.vmem [shape: bf16[32,1024], index: 0, kind: input, shape index: {}]   ;;  %s1261_s1 = inlined_call_operand.vmem [shape: bf16[1024,128], index: 1, kind: input, shape index: {}]   ;;  %s1262_s2 = inlined_call_operand.vmem [shape: f32[1,128], index: 2, kind: input, shape index: {}]   ;;  %s1263_s3 = inlined_call_operand.vmem [shape: bf16[32,128], index: 3, kind: output, shape index: {}]  }
   0x1   :  { %s1144_s14 = smov 0   ;;  %s1146_s15 = smov 0  }
   0x2   :  { %s1148_s16 = smov 0  }
   0x3 LB: > { %s25_s17 = sadd.s32 1, %s1113_s15  ;;  %p48_p1 = scmp.ne.s32.totalorder %s1105_s13, %s1101_s12  ;;  %s1117_s16 = sphi %s1148_s16, %s13_s16   ;;  %s1113_s15 = sphi %s1146_s15, %s1267_s15   ;;  %s1109_s14 = sphi %s1144_s14, %s1266_s14   ;;  %s1105_s13 = sphi %s1142_s13, %s1265_s13   ;;  %s1101_s12 = sphi %s1140_s12, %s1264_s12  }
   0x4   : > { %p26_p0 = scmp.ge.s32.totalorder %s25_s17, 2  ;;  %p49_p2 = scmp.eq.s32.totalorder %s1117_s16, 0 }
   0x5   : > { %s41_s19 = sadd.s32 1, %s1105_s13  ;;  %p863_p5 = scmp.ge.s32.totalorder %s1117_s16, 2 }
   0x6   : > { %s1269_s17 = smov (%p26_p0, %s25_s17), 0  ;;  %p50_p3 = por %p49_p2, %p48_p1 }
   0x7   : > { %s37_s18 = ssub.s32 %s1113_s15, %s1269_s17  ;;  %162 = sbr.rel (%p863_p5) target bundleno = 20 (0x14), region = 20 }
   0x8   : > { %p39_p4 = scmp.eq.s32.totalorder %s37_s18, 0 }
   0xa   : > { %s1175_s20 = scalar_select %p39_p4, %s1105_s13, %s41_s19  }
   0xc   : > { %165 = sbr.rel (!%p50_p3) target bundleno = 20 (0x14), region = 24  ;;  %s167_s21 = sand.u32 (%p50_p3), 1, %s1105_s13  }
   0xd   : > { %s922_s22 = sshll.u32 (%p50_p3), %s1113_s15, 4  ;;  %s864_s23 = sshll.u32 (%p50_p3), %s167_s21, 6 }
   0xe   : > { %s175_s26 = scalar_lea.vmem (%p50_p3), %s1260_s0, %s922_s22  ;;  %s169_s27 = scalar_lea.vmem (%p50_p3), [#allocation3], %s864_s23 }
   0xf   : > { %v188_v0 = vld [vmem:[%s175_s26] sm:$0xff] (%p50_p3)  ;;  %v190_v1 = vld [vmem:[%s175_s26 + $0x8] sm:$0xff] (%p50_p3) }
  0x10   : > { %v192_v2 = vld [vmem:[%s175_s26 + $0x20] sm:$0xff] (%p50_p3)  ;;  %189 = vst [vmem:[%s169_s27] sm:$0xff] (%p50_p3), %v188_v0  ;;  %191 = vst [vmem:[%s169_s27 + $0x8] sm:$0xff] (%p50_p3), %v190_v1  ;;  %v194_v3 = vld [vmem:[%s175_s26 + $0x28] sm:$0xff] (%p50_p3) }
  0x11   : > { %193 = vst [vmem:[%s169_s27 + $0x10] sm:$0xff] %v192_v2  ;;  %v196_v4 = vld [vmem:[%s175_s26 + $0x40] sm:$0xff]  ;;  %v198_v5 = vld [vmem:[%s175_s26 + $0x48] sm:$0xff]  ;;  %195 = vst [vmem:[%s169_s27 + $0x18] sm:$0xff] %v194_v3 }
  0x12   : > { %197 = vst [vmem:[%s169_s27 + $0x20] sm:$0xff] %v196_v4  ;;  %199 = vst [vmem:[%s169_s27 + $0x28] sm:$0xff] %v198_v5  ;;  %v200_v6 = vld [vmem:[%s175_s26 + $0x60] sm:$0xff]  ;;  %v202_v7 = vld [vmem:[%s175_s26 + $0x68] sm:$0xff] }
  0x13   : > { %201 = vst [vmem:[%s169_s27 + $0x30] sm:$0xff] %v200_v6  ;;  %203 = vst [vmem:[%s169_s27 + $0x38] sm:$0xff] %v202_v7 }
  0x14 PF: > { %p867_p6 = scmp.ge.s32.totalorder %s1117_s16, 1  ;;  %p220_p7 = scmp.lt.s32.totalorder %s1117_s16, 3 }
  0x16   : > { %p221_p8 = pnand %p867_p6, %p220_p7 }
  0x17   : > { %s227_s28 = sand.u32 (!%p221_p8), 1, %s1101_s12   ;;  %s869_s29 = sshll.u32 (!%p221_p8), %s1109_s14, 6 }
  0x18   : > { %224 = sbr.rel (%p221_p8) target bundleno = 298 (0x12a), region = 51  ;;  %s868_s30 = sshll.u32 (!%p221_p8), %s227_s28, 6 }
  0x19   : > { %p267_p9 = scmp.lt.s32.totalorder (!%p221_p8), %s869_s29, 127  ;;  %s1192_s8 = scalar_lea.vmem (!%p221_p8), [#allocation3], %s868_s30 }
  0x1a   : > { %p871_p10 = scmp.ne.s32.totalorder (!%p221_p8), %s1109_s14, 0 }
  0x1d   : > { %s1271_s29 = smov (!%p267_p9, %s869_s29), 127  ;;  %291 = sbr.rel (%p871_p10) target bundleno = 37 (0x25), region = 59 }
  0x1e   : > { %s870_s4 = sshll.u32 %s1271_s29, 2 }
  0x1f   : > { %s1190_s7 = scalar_lea.vmem %s1261_s1, %s870_s4 }
  0x22   : > { %v1119_v8 = vmov 0.0  }
  0x23   : > { %292 = vst [vmem:[#allocation2 + $0x10] sm:$0xff] %v1119_v8  ;;  %293 = vst [vmem:[#allocation2] sm:$0xff] %v1119_v8 }
  0x24   : > { %294 = vst [vmem:[#allocation2 + $0x18] sm:$0xff] %v1119_v8  ;;  %295 = vst [vmem:[#allocation2 + $0x8] sm:$0xff] %v1119_v8 }
  0x25 PF: > { %v1035_v9 = vld [vmem:[%s1190_s7 + $0x78] sm:$0xff]   ;;  %v1039_v13 = vld [vmem:[%s1190_s7 + $0x70] sm:$0xff]   ;;  %v1043_v17 = vld [vmem:[%s1190_s7 + $0x68] sm:$0xff]   ;;  %p912_p11 = scmp.ne.s32.totalorder %s1109_s14, 1 }
  0x26   : > { %v1036_v10 = vld [vmem:[%s1190_s7 + $0xf8] sm:$0xff]   ;;  %938 = vmatprep.subr.bf16.mxu0 %v1035_v9  ;;  %v1040_v14 = vld [vmem:[%s1190_s7 + $0xf0] sm:$0xff]   ;;  %v1044_v18 = vld [vmem:[%s1190_s7 + $0xe8] sm:$0xff]  }
  0x27   : > { %v1037_v11 = vld [vmem:[%s1190_s7 + $0x38] sm:$0xff]   ;;  %966 = vmatprep.subr.bf16.mxu1 %v1036_v10  ;;  %v1041_v15 = vld [vmem:[%s1190_s7 + $0x30] sm:$0xff]   ;;  %v1045_v19 = vld [vmem:[%s1190_s7 + $0x28] sm:$0xff]  }
  0x28   : > { %v1038_v12 = vld [vmem:[%s1190_s7 + $0xb8] sm:$0xff]   ;;  %939 = vmatpush3.bf16.msra.mxu0 %v1037_v11  ;;  %v1042_v16 = vld [vmem:[%s1190_s7 + $0xb0] sm:$0xff]   ;;  %v1046_v20 = vld [vmem:[%s1190_s7 + $0xa8] sm:$0xff]  }
  0x29   : > { %967 = vmatpush3.bf16.msra.mxu1 %v1038_v12  ;;  %940 = vmatprep.subr.bf16.mxu0 %v1039_v13  ;;  %v1047_v21 = vld [vmem:[%s1190_s7 + $0x60] sm:$0xff]   ;;  %v1051_v25 = vld [vmem:[%s1190_s7 + $0x58] sm:$0xff]   ;;  %v1055_v29 = vld [vmem:[%s1190_s7 + $0x50] sm:$0xff]  }
  0x2a   : > { %968 = vmatprep.subr.bf16.mxu1 %v1040_v14  ;;  %v1048_v22 = vld [vmem:[%s1190_s7 + $0xe0] sm:$0xff]   ;;  %v1052_v26 = vld [vmem:[%s1190_s7 + $0xd8] sm:$0xff]   ;;  %v1056_v30 = vld [vmem:[%s1190_s7 + $0xd0] sm:$0xff]  }
  0x2b   : > { %v1049_v23 = vld [vmem:[%s1190_s7 + $0x20] sm:$0xff]   ;;  %v1053_v27 = vld [vmem:[%s1190_s7 + $0x18] sm:$0xff]   ;;  %v1057_v31 = vld [vmem:[%s1190_s7 + $0x10] sm:$0xff]  }
  0x2c   : > { %941 = vmatpush3.bf16.msra.mxu0 %v1041_v15  ;;  %v1050_v24 = vld [vmem:[%s1190_s7 + $0xa0] sm:$0xff]   ;;  %v1054_v28 = vld [vmem:[%s1190_s7 + $0x98] sm:$0xff]   ;;  %v1058_v32 = vld [vmem:[%s1190_s7 + $0x90] sm:$0xff]  }
  0x2d   : > { %969 = vmatpush3.bf16.msra.mxu1 %v1042_v16  ;;  %942 = vmatprep.subr.bf16.mxu0 %v1043_v17  ;;  %v1059_v33 = vld [vmem:[%s1190_s7 + $0x48] sm:$0xff]   ;;  %v1063_v37 = vld [vmem:[%s1190_s7 + $0x40] sm:$0xff]   ;;  %v296_v56 = vld [vmem:[#allocation2 + $0x10] sm:$0xff] }
  0x2e   : > { %970 = vmatprep.subr.bf16.mxu1 %v1044_v18  ;;  %v1060_v34 = vld [vmem:[%s1190_s7 + $0xc8] sm:$0xff]   ;;  %v1064_v38 = vld [vmem:[%s1190_s7 + $0xc0] sm:$0xff]   ;;  %v298_v10 = vld [vmem:[#allocation2 + $0x18] sm:$0xff] }
  0x2f   : > { %v1061_v35 = vld [vmem:[%s1190_s7 + $0x8] sm:$0xff]   ;;  %v1065_v39 = vld [vmem:[%s1190_s7] sm:$0xff]  }
  0x30   : > { %943 = vmatpush3.bf16.msra.mxu0 %v1045_v19  ;;  %v1062_v36 = vld [vmem:[%s1190_s7 + $0x88] sm:$0xff]   ;;  %v1066_v40 = vld [vmem:[%s1190_s7 + $0x80] sm:$0xff]  }
  0x31   : > { %971 = vmatpush3.bf16.msra.mxu1 %v1046_v20  ;;  %944 = vmatprep.subr.bf16.mxu0 %v1047_v21  ;;  %v1067_v41 = vld [vmem:[%s1192_s8] ss:$16 sps:$4 sm:$0xff]   ;;  %v1069_v42 = vld [vmem:[%s1192_s8 + $0x4] ss:$16 sps:$4 sm:$0xff]   ;;  %v1070_v43 = vld [vmem:[%s1192_s8 + $0x8] ss:$16 sps:$4 sm:$0xff]  }
  0x32   : > { %972 = vmatprep.subr.bf16.mxu1 %v1048_v22  ;;  %v1072_v44 = vld [vmem:[%s1192_s8 + $0xc] ss:$16 sps:$4 sm:$0xff]   ;;  %636 = vmatprep.mubr.bf16.mxu0 %v1069_v42  ;;  %v1073_v45 = vld [vmem:[%s1192_s8 + $0x24] ss:$16 sps:$4 sm:$0xff]   ;;  %v1077_v47 = vld [vmem:[%s1192_s8 + $0x20] ss:$16 sps:$4 sm:$0xff]  }
  0x33   : > { %685 = vmatprep.mubr.bf16.mxu1 %v1072_v44  ;;  %v1075_v46 = vld [vmem:[%s1192_s8 + $0x2c] ss:$16 sps:$4 sm:$0xff]   ;;  %v1078_v48 = vld [vmem:[%s1192_s8 + $0x28] ss:$16 sps:$4 sm:$0xff]   ;;  %v297_v1 = vld [vmem:[#allocation2] sm:$0xff] }
  0x34   : > { %945 = vmatpush3.bf16.msra.mxu0 %v1049_v23  ;;  %v299_v18 = vld [vmem:[#allocation2 + $0x8] sm:$0xff] }
  0x35   : > { %973 = vmatpush3.bf16.msra.mxu1 %v1050_v24  ;;  %946 = vmatprep.subr.bf16.mxu0 %v1051_v25 }
  0x36   : > { %974 = vmatprep.subr.bf16.mxu1 %v1052_v26 }
  0x38   : > { %947 = vmatpush3.bf16.msra.mxu0 %v1053_v27 }
  0x39   : > { %975 = vmatpush3.bf16.msra.mxu1 %v1054_v28  ;;  %948 = vmatprep.subr.bf16.mxu0 %v1055_v29 }
  0x3a   : > { %976 = vmatprep.subr.bf16.mxu1 %v1056_v30 }
  0x3c   : > { %949 = vmatpush3.bf16.msra.mxu0 %v1057_v31 }
  0x3d   : > { %977 = vmatpush3.bf16.msra.mxu1 %v1058_v32  ;;  %950 = vmatprep.subr.bf16.mxu0 %v1059_v33 }
  0x3e   : > { %978 = vmatprep.subr.bf16.mxu1 %v1060_v34 }
  0x40   : > { %951 = vmatpush3.bf16.msra.mxu0 %v1061_v35 }
  0x41   : > { %979 = vmatpush3.bf16.msra.mxu1 %v1062_v36  ;;  %952 = vmatprep.subr.bf16.mxu0 %v1063_v37 }
  0x42   : > { %980 = vmatprep.subr.bf16.mxu1 %v1064_v38 }
  0x44   : > { %953 = vmatpush3.bf16.msra.mxu0 %v1065_v39 }
  0x45   : > { %981 = vmatpush3.bf16.msra.mxu1 %v1066_v40 }
  0x47   : > { %637 = vmatmul.mubr.bf16.vlgmr.msra.gmra.mxu0 %v1067_v41 }
  0x48   : > { %686 = vmatmul.mubr.bf16.vlgmr.msra.gmra.mxu1 %v1070_v43  ;;  %644 = vmatprep.mubr.bf16.mxu0 %v1073_v45 }
  0x49   : > { %693 = vmatprep.mubr.bf16.mxu1 %v1075_v46 }
  0x4f   : > { %645 = vmatmul.mubr.bf16.gmra.mxu0 %v1077_v47 }
  0x50   : > { %694 = vmatmul.mubr.bf16.gmra.mxu1 %v1078_v48 }
 0x107   : > { %v954_v49 = vpop.f32.mrf.mxu0 }
 0x108   : > { %v982_v50 = vpop.f32.mrf.mxu1 }
 0x109   : > { %v955_v51 = vpop.f32.mrf.mxu0 }
 0x10a   : > { %v956_v52 = vadd.f32 %v955_v51, %v954_v49  ;;  %v983_v53 = vpop.f32.mrf.mxu1 }
 0x10b   : > { %v984_v54 = vadd.f32 %v983_v53, %v982_v50  ;;  %v957_v55 = vpop.f32.mrf.mxu0 }
 0x10c   : > { %v985_v57 = vpop.f32.mrf.mxu1 }
 0x10d   : > { %v688_v58 = vadd.f32 %v984_v54, %v956_v52  ;;  %v958_v59 = vpop.f32.mrf.mxu0 }
 0x10e   : > { %v959_v60 = vadd.f32 %v958_v59, %v957_v55  ;;  %v986_v61 = vpop.f32.mrf.mxu1 }
 0x10f   : > { %v702_v62 = vadd.f32 %v688_v58, %v296_v56  ;;  %v987_v63 = vadd.f32 %v986_v61, %v985_v57  ;;  %v960_v0 = vpop.f32.mrf.mxu0 }
 0x110   : > { %v988_v2 = vpop.f32.mrf.mxu1 }
 0x111   : > { %706 = vst [vmem:[#allocation2 + $0x10] sm:$0xff] %v702_v62  ;;  %v691_v3 = vadd.f32 %v987_v63, %v959_v60  ;;  %v961_v4 = vpop.f32.mrf.mxu0 }
 0x112   : > { %v962_v5 = vadd.f32 %v961_v4, %v960_v0  ;;  %v989_v6 = vpop.f32.mrf.mxu1 }
 0x113   : > { %v703_v7 = vadd.f32 %v691_v3, %v297_v1  ;;  %v990_v8 = vadd.f32 %v989_v6, %v988_v2  ;;  %v963_v9 = vpop.f32.mrf.mxu0 }
 0x114   : > { %v991_v11 = vpop.f32.mrf.mxu1 }
 0x115   : > { %707 = vst [vmem:[#allocation2] sm:$0xff] %v703_v7  ;;  %v696_v12 = vadd.f32 %v990_v8, %v962_v5  ;;  %v964_v13 = vpop.f32.mrf.mxu0 }
 0x116   : > { %v965_v14 = vadd.f32 %v964_v13, %v963_v9  ;;  %v992_v15 = vpop.f32.mrf.mxu1 }
 0x117   : > { %v704_v16 = vadd.f32 %v696_v12, %v298_v10  ;;  %v993_v17 = vadd.f32 %v992_v15, %v991_v11 }
 0x119   : > { %708 = vst [vmem:[#allocation2 + $0x18] sm:$0xff] %v704_v16  ;;  %v699_v19 = vadd.f32 %v993_v17, %v965_v14  ;;  %713 = sbr.rel (%p912_p11) target bundleno = 298 (0x12a), region = 63 }
 0x11b   : > { %v705_v20 = vadd.f32 %v699_v19, %v299_v18 }
 0x11d   : > { %709 = vst [vmem:[#allocation2 + $0x8] sm:$0xff] %v705_v20 }
 0x11e   : > { %v714_v21 = vld [vmem:[#allocation2 + $0x10] sm:$0xff]  ;;  %v715_v22 = vld [vmem:[#allocation2] sm:$0xff] }
 0x11f   : > { %v913_v23 = vld [vmem:[%s1262_s2] ss:$0 sm:$0xff] }
 0x120   : > { %v725_v24 = vadd.f32 %v913_v23, %v714_v21  ;;  %v726_v25 = vadd.f32 %v913_v23, %v715_v22  ;;  %v716_v26 = vld [vmem:[#allocation2 + $0x18] sm:$0xff] }
 0x121   : > { %v727_v28 = vadd.f32 %v913_v23, %v716_v26 }
 0x122   : > { %v930_v30 = vpack.c.bf16 %v726_v25, %v725_v24 }
 0x124   : > { %v717_v27 = vld [vmem:[#allocation2 + $0x8] sm:$0xff]  ;;  %931 = vst [vmem:[%s1263_s3] sm:$0xff] %v930_v30  }
 0x125   : > { %v728_v29 = vadd.f32 %v913_v23, %v717_v27 }
 0x127   : > { %v935_v31 = vpack.c.bf16 %v728_v29, %v727_v28 }
 0x129   : > { %937 = vst [vmem:[%s1263_s3 + $0x8] sm:$0xff] %v935_v31  }
 0x12a PF: > { %s13_s16 = sadd.s32 1, %s1117_s16   ;;  %s1264_s12 = smov %s1105_s13 }
 0x12b   : > { %p10_p12 = scmp.ge.s32.totalorder %s13_s16, 4   ;;  %s1265_s13 = smov %s1175_s20 }
 0x12c   : > { %s1266_s14 = smov %s1113_s15  ;;  %s1267_s15 = smov %s1269_s17 }
 0x12d   :  { %12 = sbr.rel (!%p10_p12) target bundleno = 3 (0x3), region = 104 }

// kernel: forward.38
= control target key start
LH: loop header
LB: loop body
LE: loop exit
PB: predicated region body
PF: predicated region fallthrough
CT: control target
= control target key end

     0   :  { %s1460_s1 = inlined_call_operand.vmem [shape: bf16[512,128], index: 1, kind: input, shape index: {}]   ;;  %s1461_s0 = inlined_call_operand.vmem [shape: bf16[128,512], index: 0, kind: input, shape index: {}]   ;;  %s1462_s2 = inlined_call_operand.vmem [shape: f32[1,128], index: 2, kind: input, shape index: {}]   ;;  %s1463_s3 = inlined_call_operand.vmem [shape: bf16[128,128], index: 3, kind: output, shape index: {}]  }
   0x1   :  { %v1123_v0 = vld [vmem:[%s1460_s1 + $0x78] sm:$0xff]   ;;  %v1127_v4 = vld [vmem:[%s1460_s1 + $0x70] sm:$0xff]   ;;  %v1131_v8 = vld [vmem:[%s1460_s1 + $0x68] sm:$0xff]  }
   0x2   :  { %v1124_v1 = vld [vmem:[%s1460_s1 + $0xf8] sm:$0xff]   ;;  %995 = vmatprep.subr.bf16.mxu0 %v1123_v0  ;;  %v1128_v5 = vld [vmem:[%s1460_s1 + $0xf0] sm:$0xff]   ;;  %v1132_v9 = vld [vmem:[%s1460_s1 + $0xe8] sm:$0xff]  }
   0x3   :  { %v1125_v2 = vld [vmem:[%s1460_s1 + $0x38] sm:$0xff]   ;;  %1059 = vmatprep.subr.bf16.mxu1 %v1124_v1  ;;  %v1129_v6 = vld [vmem:[%s1460_s1 + $0x30] sm:$0xff]   ;;  %v1133_v10 = vld [vmem:[%s1460_s1 + $0x28] sm:$0xff]  }
   0x4   :  { %v1126_v3 = vld [vmem:[%s1460_s1 + $0xb8] sm:$0xff]   ;;  %996 = vmatpush3.bf16.msra.mxu0 %v1125_v2  ;;  %v1130_v7 = vld [vmem:[%s1460_s1 + $0xb0] sm:$0xff]   ;;  %v1134_v11 = vld [vmem:[%s1460_s1 + $0xa8] sm:$0xff]  }
   0x5   :  { %1060 = vmatpush3.bf16.msra.mxu1 %v1126_v3  ;;  %997 = vmatprep.subr.bf16.mxu0 %v1127_v4  ;;  %v1135_v12 = vld [vmem:[%s1460_s1 + $0x60] sm:$0xff]   ;;  %v1139_v16 = vld [vmem:[%s1460_s1 + $0x58] sm:$0xff]   ;;  %v1143_v20 = vld [vmem:[%s1460_s1 + $0x50] sm:$0xff]  }
   0x6   :  { %1061 = vmatprep.subr.bf16.mxu1 %v1128_v5  ;;  %v1136_v13 = vld [vmem:[%s1460_s1 + $0xe0] sm:$0xff]   ;;  %v1140_v17 = vld [vmem:[%s1460_s1 + $0xd8] sm:$0xff]   ;;  %v1144_v21 = vld [vmem:[%s1460_s1 + $0xd0] sm:$0xff]  }
   0x7   :  { %v1137_v14 = vld [vmem:[%s1460_s1 + $0x20] sm:$0xff]   ;;  %v1141_v18 = vld [vmem:[%s1460_s1 + $0x18] sm:$0xff]   ;;  %v1145_v22 = vld [vmem:[%s1460_s1 + $0x10] sm:$0xff]  }
   0x8   :  { %998 = vmatpush3.bf16.msra.mxu0 %v1129_v6  ;;  %v1138_v15 = vld [vmem:[%s1460_s1 + $0xa0] sm:$0xff]   ;;  %v1142_v19 = vld [vmem:[%s1460_s1 + $0x98] sm:$0xff]   ;;  %v1146_v23 = vld [vmem:[%s1460_s1 + $0x90] sm:$0xff]  }
   0x9   :  { %1062 = vmatpush3.bf16.msra.mxu1 %v1130_v7  ;;  %999 = vmatprep.subr.bf16.mxu0 %v1131_v8  ;;  %v1147_v24 = vld [vmem:[%s1460_s1 + $0x48] sm:$0xff]   ;;  %v1151_v28 = vld [vmem:[%s1460_s1 + $0x40] sm:$0xff]  }
   0xa   :  { %1063 = vmatprep.subr.bf16.mxu1 %v1132_v9  ;;  %v1148_v25 = vld [vmem:[%s1460_s1 + $0xc8] sm:$0xff]   ;;  %v1152_v29 = vld [vmem:[%s1460_s1 + $0xc0] sm:$0xff]  }
   0xb   :  { %v1149_v26 = vld [vmem:[%s1460_s1 + $0x8] sm:$0xff]   ;;  %v1153_v30 = vld [vmem:[%s1460_s1] sm:$0xff]  }
   0xc   :  { %1000 = vmatpush3.bf16.msra.mxu0 %v1133_v10  ;;  %v1150_v27 = vld [vmem:[%s1460_s1 + $0x88] sm:$0xff]   ;;  %v1154_v31 = vld [vmem:[%s1460_s1 + $0x80] sm:$0xff]  }
   0xd   :  { %1064 = vmatpush3.bf16.msra.mxu1 %v1134_v11  ;;  %1001 = vmatprep.subr.bf16.mxu0 %v1135_v12  ;;  %v1155_v32 = vld [vmem:[%s1461_s0] ss:$16 sps:$4 sm:$0xff]   ;;  %v1157_v33 = vld [vmem:[%s1461_s0 + $0x4] ss:$16 sps:$4 sm:$0xff]   ;;  %v1158_v34 = vld [vmem:[%s1461_s0 + $0x8] ss:$16 sps:$4 sm:$0xff]  }
   0xe   :  { %1065 = vmatprep.subr.bf16.mxu1 %v1136_v13  ;;  %v1160_v35 = vld [vmem:[%s1461_s0 + $0xc] ss:$16 sps:$4 sm:$0xff]   ;;  %531 = vmatprep.mubr.bf16.mxu0 %v1157_v33  ;;  %v1161_v36 = vld [vmem:[%s1461_s0 + $0x24] ss:$16 sps:$4 sm:$0xff]   ;;  %v1165_v38 = vld [vmem:[%s1461_s0 + $0x20] ss:$16 sps:$4 sm:$0xff]  }
   0xf   :  { %628 = vmatprep.mubr.bf16.mxu1 %v1160_v35  ;;  %v1163_v37 = vld [vmem:[%s1461_s0 + $0x2c] ss:$16 sps:$4 sm:$0xff]   ;;  %v1166_v39 = vld [vmem:[%s1461_s0 + $0x28] ss:$16 sps:$4 sm:$0xff]   ;;  %v1167_v40 = vld [vmem:[%s1461_s0 + $0x44] ss:$16 sps:$4 sm:$0xff]  }
  0x10   :  { %1002 = vmatpush3.bf16.msra.mxu0 %v1137_v14  ;;  %v1169_v41 = vld [vmem:[%s1461_s0 + $0x4c] ss:$16 sps:$4 sm:$0xff]   ;;  %v1171_v42 = vld [vmem:[%s1461_s0 + $0x40] ss:$16 sps:$4 sm:$0xff]   ;;  %v1172_v43 = vld [vmem:[%s1461_s0 + $0x48] ss:$16 sps:$4 sm:$0xff]  }
  0x11   :  { %1066 = vmatpush3.bf16.msra.mxu1 %v1138_v15  ;;  %1003 = vmatprep.subr.bf16.mxu0 %v1139_v16  ;;  %v1173_v44 = vld [vmem:[%s1461_s0 + $0x64] ss:$16 sps:$4 sm:$0xff]   ;;  %v1175_v45 = vld [vmem:[%s1461_s0 + $0x6c] ss:$16 sps:$4 sm:$0xff]   ;;  %v1177_v46 = vld [vmem:[%s1461_s0 + $0x60] ss:$16 sps:$4 sm:$0xff]  }
  0x12   :  { %1067 = vmatprep.subr.bf16.mxu1 %v1140_v17  ;;  %v1178_v47 = vld [vmem:[%s1461_s0 + $0x68] ss:$16 sps:$4 sm:$0xff]   ;;  %v1179_v48 = vld [vmem:[%s1461_s0 + $0x84] ss:$16 sps:$4 sm:$0xff]   ;;  %v1181_v49 = vld [vmem:[%s1461_s0 + $0x8c] ss:$16 sps:$4 sm:$0xff]  }
  0x13   :  { %v1183_v50 = vld [vmem:[%s1461_s0 + $0x80] ss:$16 sps:$4 sm:$0xff]   ;;  %v1184_v51 = vld [vmem:[%s1461_s0 + $0x88] ss:$16 sps:$4 sm:$0xff]   ;;  %v1185_v52 = vld [vmem:[%s1461_s0 + $0xa4] ss:$16 sps:$4 sm:$0xff]  }
  0x14   :  { %1004 = vmatpush3.bf16.msra.mxu0 %v1141_v18  ;;  %v1187_v53 = vld [vmem:[%s1461_s0 + $0xac] ss:$16 sps:$4 sm:$0xff]   ;;  %v1189_v54 = vld [vmem:[%s1461_s0 + $0xa0] ss:$16 sps:$4 sm:$0xff]   ;;  %v1190_v55 = vld [vmem:[%s1461_s0 + $0xa8] ss:$16 sps:$4 sm:$0xff]  }
  0x15   :  { %1068 = vmatpush3.bf16.msra.mxu1 %v1142_v19  ;;  %1005 = vmatprep.subr.bf16.mxu0 %v1143_v20  ;;  %v1191_v56 = vld [vmem:[%s1461_s0 + $0xc4] ss:$16 sps:$4 sm:$0xff]   ;;  %v1193_v57 = vld [vmem:[%s1461_s0 + $0xcc] ss:$16 sps:$4 sm:$0xff]   ;;  %v1195_v58 = vld [vmem:[%s1461_s0 + $0xc0] ss:$16 sps:$4 sm:$0xff]  }
  0x16   :  { %1069 = vmatprep.subr.bf16.mxu1 %v1144_v21  ;;  %v1196_v59 = vld [vmem:[%s1461_s0 + $0xc8] ss:$16 sps:$4 sm:$0xff]   ;;  %v1197_v60 = vld [vmem:[%s1461_s0 + $0xe4] ss:$16 sps:$4 sm:$0xff]   ;;  %v1199_v61 = vld [vmem:[%s1461_s0 + $0xec] ss:$16 sps:$4 sm:$0xff]  }
  0x17   :  { %v1201_v62 = vld [vmem:[%s1461_s0 + $0xe0] ss:$16 sps:$4 sm:$0xff]   ;;  %v1202_v63 = vld [vmem:[%s1461_s0 + $0xe8] ss:$16 sps:$4 sm:$0xff]  }
  0x18   :  { %1006 = vmatpush3.bf16.msra.mxu0 %v1145_v22  ;;  %v1418_v14 = vld [vmem:[%s1462_s2] ss:$0 sm:$0xff] }
  0x19   :  { %1070 = vmatpush3.bf16.msra.mxu1 %v1146_v23  ;;  %1007 = vmatprep.subr.bf16.mxu0 %v1147_v24 }
  0x1a   :  { %1071 = vmatprep.subr.bf16.mxu1 %v1148_v25 }
  0x1c   :  { %1008 = vmatpush3.bf16.msra.mxu0 %v1149_v26 }
  0x1d   :  { %1072 = vmatpush3.bf16.msra.mxu1 %v1150_v27  ;;  %1009 = vmatprep.subr.bf16.mxu0 %v1151_v28 }
  0x1e   :  { %1073 = vmatprep.subr.bf16.mxu1 %v1152_v29 }
  0x20   :  { %1010 = vmatpush3.bf16.msra.mxu0 %v1153_v30 }
  0x21   :  { %1074 = vmatpush3.bf16.msra.mxu1 %v1154_v31 }
  0x23   :  { %532 = vmatmul.mubr.bf16.vlgmr.msra.gmra.mxu0 %v1155_v32 }
  0x24   :  { %629 = vmatmul.mubr.bf16.vlgmr.msra.gmra.mxu1 %v1158_v34  ;;  %539 = vmatprep.mubr.bf16.mxu0 %v1161_v36 }
  0x25   :  { %636 = vmatprep.mubr.bf16.mxu1 %v1163_v37 }
  0x2b   :  { %540 = vmatmul.mubr.bf16.gmra.mxu0 %v1165_v38 }
  0x2c   :  { %637 = vmatmul.mubr.bf16.gmra.mxu1 %v1166_v39  ;;  %547 = vmatprep.mubr.bf16.mxu0 %v1167_v40 }
  0x2d   :  { %644 = vmatprep.mubr.bf16.mxu1 %v1169_v41 }
  0x33   :  { %548 = vmatmul.mubr.bf16.gmra.mxu0 %v1171_v42 }
  0x34   :  { %645 = vmatmul.mubr.bf16.gmra.mxu1 %v1172_v43  ;;  %555 = vmatprep.mubr.bf16.mxu0 %v1173_v44 }
  0x35   :  { %652 = vmatprep.mubr.bf16.mxu1 %v1175_v45 }
  0x3b   :  { %556 = vmatmul.mubr.bf16.gmra.mxu0 %v1177_v46 }
  0x3c   :  { %653 = vmatmul.mubr.bf16.gmra.mxu1 %v1178_v47  ;;  %563 = vmatprep.mubr.bf16.mxu0 %v1179_v48 }
  0x3d   :  { %660 = vmatprep.mubr.bf16.mxu1 %v1181_v49 }
  0x43   :  { %564 = vmatmul.mubr.bf16.gmra.mxu0 %v1183_v50 }
  0x44   :  { %661 = vmatmul.mubr.bf16.gmra.mxu1 %v1184_v51  ;;  %571 = vmatprep.mubr.bf16.mxu0 %v1185_v52 }
  0x45   :  { %668 = vmatprep.mubr.bf16.mxu1 %v1187_v53 }
  0x4b   :  { %572 = vmatmul.mubr.bf16.gmra.mxu0 %v1189_v54 }
  0x4c   :  { %669 = vmatmul.mubr.bf16.gmra.mxu1 %v1190_v55  ;;  %579 = vmatprep.mubr.bf16.mxu0 %v1191_v56 }
  0x4d   :  { %676 = vmatprep.mubr.bf16.mxu1 %v1193_v57 }
  0x53   :  { %580 = vmatmul.mubr.bf16.gmra.mxu0 %v1195_v58 }
  0x54   :  { %677 = vmatmul.mubr.bf16.gmra.mxu1 %v1196_v59  ;;  %587 = vmatprep.mubr.bf16.mxu0 %v1197_v60 }
  0x55   :  { %684 = vmatprep.mubr.bf16.mxu1 %v1199_v61 }
  0x5b   :  { %588 = vmatmul.mubr.bf16.gmra.mxu0 %v1201_v62 }
  0x5c   :  { %685 = vmatmul.mubr.bf16.gmra.mxu1 %v1202_v63 }
  0xe3   :  { %v1011_v0 = vpop.f32.mrf.mxu0 }
  0xe4   :  { %v1075_v1 = vpop.f32.mrf.mxu1 }
  0xe5   :  { %v1012_v2 = vpop.f32.mrf.mxu0 }
  0xe6   :  { %v1076_v3 = vpop.f32.mrf.mxu1  ;;  %v1013_v4 = vadd.f32 %v1012_v2, %v1011_v0 }
  0xe7   :  { %v1077_v5 = vadd.f32 %v1076_v3, %v1075_v1  ;;  %v1014_v6 = vpop.f32.mrf.mxu0 }
  0xe8   :  { %v1078_v7 = vpop.f32.mrf.mxu1 }
  0xe9   :  { %v1015_v8 = vpop.f32.mrf.mxu0  ;;  %v631_v11 = vadd.f32 %v1077_v5, %v1013_v4 }
  0xea   :  { %v1016_v9 = vadd.f32 %v1015_v8, %v1014_v6  ;;  %v1079_v10 = vpop.f32.mrf.mxu1 }
  0xeb   :  { %v1080_v12 = vadd.f32 %v1079_v10, %v1078_v7  ;;  %v1017_v13 = vpop.f32.mrf.mxu0  ;;  %v751_v19 = vadd.f32 %v1418_v14, %v631_v11 }
  0xec   :  { %v1081_v15 = vpop.f32.mrf.mxu1 }
  0xed   :  { %v634_v16 = vadd.f32 %v1080_v12, %v1016_v9  ;;  %v1018_v17 = vpop.f32.mrf.mxu0 }
  0xee   :  { %v1082_v18 = vpop.f32.mrf.mxu1  ;;  %v1019_v21 = vadd.f32 %v1018_v17, %v1017_v13 }
  0xef   :  { %v752_v20 = vadd.f32 %v1418_v14, %v634_v16  ;;  %v1083_v22 = vadd.f32 %v1082_v18, %v1081_v15  ;;  %v1020_v23 = vpop.f32.mrf.mxu0 }
  0xf0   :  { %v1084_v24 = vpop.f32.mrf.mxu1 }
  0xf1   :  { %v951_v25 = vpack.c.bf16 %v752_v20, %v751_v19  ;;  %v1021_v26 = vpop.f32.mrf.mxu0  ;;  %v639_v29 = vadd.f32 %v1083_v22, %v1019_v21 }
  0xf2   :  { %v1022_v27 = vadd.f32 %v1021_v26, %v1020_v23  ;;  %v1085_v28 = vpop.f32.mrf.mxu1 }
  0xf3   :  { %952 = vst [vmem:[%s1463_s3] sm:$0xff] %v951_v25   ;;  %v1086_v30 = vadd.f32 %v1085_v28, %v1084_v24  ;;  %v1023_v31 = vpop.f32.mrf.mxu0  ;;  %v753_v36 = vadd.f32 %v1418_v14, %v639_v29 }
  0xf4   :  { %v1087_v32 = vpop.f32.mrf.mxu1 }
  0xf5   :  { %v642_v33 = vadd.f32 %v1086_v30, %v1022_v27  ;;  %v1024_v34 = vpop.f32.mrf.mxu0 }
  0xf6   :  { %v1088_v35 = vpop.f32.mrf.mxu1  ;;  %v1025_v38 = vadd.f32 %v1024_v34, %v1023_v31 }
  0xf7   :  { %v754_v37 = vadd.f32 %v1418_v14, %v642_v33  ;;  %v1089_v39 = vadd.f32 %v1088_v35, %v1087_v32  ;;  %v1026_v40 = vpop.f32.mrf.mxu0 }
  0xf8   :  { %v1090_v41 = vpop.f32.mrf.mxu1 }
  0xf9   :  { %v956_v42 = vpack.c.bf16 %v754_v37, %v753_v36  ;;  %v1027_v43 = vpop.f32.mrf.mxu0  ;;  %v647_v46 = vadd.f32 %v1089_v39, %v1025_v38 }
  0xfa   :  { %v1028_v44 = vadd.f32 %v1027_v43, %v1026_v40  ;;  %v1091_v45 = vpop.f32.mrf.mxu1 }
  0xfb   :  { %988 = vst [vmem:[%s1463_s3 + $0x8] sm:$0xff] %v956_v42   ;;  %v1092_v47 = vadd.f32 %v1091_v45, %v1090_v41  ;;  %v1029_v48 = vpop.f32.mrf.mxu0  ;;  %v755_v53 = vadd.f32 %v1418_v14, %v647_v46 }
  0xfc   :  { %v1093_v49 = vpop.f32.mrf.mxu1 }
  0xfd   :  { %v650_v50 = vadd.f32 %v1092_v47, %v1028_v44  ;;  %v1030_v51 = vpop.f32.mrf.mxu0 }
  0xfe   :  { %v1094_v52 = vpop.f32.mrf.mxu1  ;;  %v1031_v55 = vadd.f32 %v1030_v51, %v1029_v48 }
  0xff   :  { %v756_v54 = vadd.f32 %v1418_v14, %v650_v50  ;;  %v1095_v56 = vadd.f32 %v1094_v52, %v1093_v49  ;;  %v1032_v57 = vpop.f32.mrf.mxu0 }
 0x100   :  { %v1096_v58 = vpop.f32.mrf.mxu1 }
 0x101   :  { %v961_v59 = vpack.c.bf16 %v756_v54, %v755_v53  ;;  %v1033_v60 = vpop.f32.mrf.mxu0  ;;  %v655_v63 = vadd.f32 %v1095_v56, %v1031_v55 }
 0x102   :  { %v1034_v61 = vadd.f32 %v1033_v60, %v1032_v57  ;;  %v1097_v62 = vpop.f32.mrf.mxu1 }
 0x103   :  { %989 = vst [vmem:[%s1463_s3 + $0x10] sm:$0xff] %v961_v59   ;;  %v1098_v0 = vadd.f32 %v1097_v62, %v1096_v58  ;;  %v1035_v1 = vpop.f32.mrf.mxu0  ;;  %v757_v6 = vadd.f32 %v1418_v14, %v655_v63 }
 0x104   :  { %v1099_v2 = vpop.f32.mrf.mxu1 }
 0x105   :  { %v658_v3 = vadd.f32 %v1098_v0, %v1034_v61  ;;  %v1036_v4 = vpop.f32.mrf.mxu0 }
 0x106   :  { %v1100_v5 = vpop.f32.mrf.mxu1  ;;  %v1037_v8 = vadd.f32 %v1036_v4, %v1035_v1 }
 0x107   :  { %v758_v7 = vadd.f32 %v1418_v14, %v658_v3  ;;  %v1101_v9 = vadd.f32 %v1100_v5, %v1099_v2  ;;  %v1038_v10 = vpop.f32.mrf.mxu0 }
 0x108   :  { %v1102_v11 = vpop.f32.mrf.mxu1 }
 0x109   :  { %v966_v12 = vpack.c.bf16 %v758_v7, %v757_v6  ;;  %v1039_v13 = vpop.f32.mrf.mxu0  ;;  %v663_v17 = vadd.f32 %v1101_v9, %v1037_v8 }
 0x10a   :  { %v1040_v15 = vadd.f32 %v1039_v13, %v1038_v10  ;;  %v1103_v16 = vpop.f32.mrf.mxu1 }
 0x10b   :  { %990 = vst [vmem:[%s1463_s3 + $0x18] sm:$0xff] %v966_v12   ;;  %v1104_v18 = vadd.f32 %v1103_v16, %v1102_v11  ;;  %v1041_v19 = vpop.f32.mrf.mxu0  ;;  %v759_v24 = vadd.f32 %v1418_v14, %v663_v17 }
 0x10c   :  { %v1105_v20 = vpop.f32.mrf.mxu1 }
 0x10d   :  { %v666_v21 = vadd.f32 %v1104_v18, %v1040_v15  ;;  %v1042_v22 = vpop.f32.mrf.mxu0 }
 0x10e   :  { %v1106_v23 = vpop.f32.mrf.mxu1  ;;  %v1043_v26 = vadd.f32 %v1042_v22, %v1041_v19 }
 0x10f   :  { %v760_v25 = vadd.f32 %v1418_v14, %v666_v21  ;;  %v1107_v27 = vadd.f32 %v1106_v23, %v1105_v20  ;;  %v1044_v28 = vpop.f32.mrf.mxu0 }
 0x110   :  { %v1108_v29 = vpop.f32.mrf.mxu1 }
 0x111   :  { %v971_v30 = vpack.c.bf16 %v760_v25, %v759_v24  ;;  %v1045_v31 = vpop.f32.mrf.mxu0  ;;  %v671_v34 = vadd.f32 %v1107_v27, %v1043_v26 }
 0x112   :  { %v1046_v32 = vadd.f32 %v1045_v31, %v1044_v28  ;;  %v1109_v33 = vpop.f32.mrf.mxu1 }
 0x113   :  { %991 = vst [vmem:[%s1463_s3 + $0x20] sm:$0xff] %v971_v30   ;;  %v1110_v35 = vadd.f32 %v1109_v33, %v1108_v29  ;;  %v1047_v36 = vpop.f32.mrf.mxu0  ;;  %v761_v41 = vadd.f32 %v1418_v14, %v671_v34 }
 0x114   :  { %v1111_v37 = vpop.f32.mrf.mxu1 }
 0x115   :  { %v674_v38 = vadd.f32 %v1110_v35, %v1046_v32  ;;  %v1048_v39 = vpop.f32.mrf.mxu0 }
 0x116   :  { %v1112_v40 = vpop.f32.mrf.mxu1  ;;  %v1049_v43 = vadd.f32 %v1048_v39, %v1047_v36 }
 0x117   :  { %v762_v42 = vadd.f32 %v1418_v14, %v674_v38  ;;  %v1113_v44 = vadd.f32 %v1112_v40, %v1111_v37  ;;  %v1050_v45 = vpop.f32.mrf.mxu0 }
 0x118   :  { %v1114_v46 = vpop.f32.mrf.mxu1 }
 0x119   :  { %v976_v47 = vpack.c.bf16 %v762_v42, %v761_v41  ;;  %v1051_v48 = vpop.f32.mrf.mxu0  ;;  %v679_v51 = vadd.f32 %v1113_v44, %v1049_v43 }
 0x11a   :  { %v1052_v49 = vadd.f32 %v1051_v48, %v1050_v45  ;;  %v1115_v50 = vpop.f32.mrf.mxu1 }
 0x11b   :  { %992 = vst [vmem:[%s1463_s3 + $0x28] sm:$0xff] %v976_v47   ;;  %v1116_v52 = vadd.f32 %v1115_v50, %v1114_v46  ;;  %v1053_v53 = vpop.f32.mrf.mxu0  ;;  %v763_v58 = vadd.f32 %v1418_v14, %v679_v51 }
 0x11c   :  { %v1117_v54 = vpop.f32.mrf.mxu1 }
 0x11d   :  { %v682_v55 = vadd.f32 %v1116_v52, %v1052_v49  ;;  %v1054_v56 = vpop.f32.mrf.mxu0 }
 0x11e   :  { %v1118_v57 = vpop.f32.mrf.mxu1  ;;  %v1055_v60 = vadd.f32 %v1054_v56, %v1053_v53 }
 0x11f   :  { %v764_v59 = vadd.f32 %v1418_v14, %v682_v55  ;;  %v1119_v61 = vadd.f32 %v1118_v57, %v1117_v54  ;;  %v1056_v62 = vpop.f32.mrf.mxu0 }
 0x120   :  { %v1120_v63 = vpop.f32.mrf.mxu1 }
 0x121   :  { %v981_v0 = vpack.c.bf16 %v764_v59, %v763_v58  ;;  %v1057_v1 = vpop.f32.mrf.mxu0  ;;  %v687_v4 = vadd.f32 %v1119_v61, %v1055_v60 }
 0x122   :  { %v1058_v2 = vadd.f32 %v1057_v1, %v1056_v62  ;;  %v1121_v3 = vpop.f32.mrf.mxu1 }
 0x123   :  { %993 = vst [vmem:[%s1463_s3 + $0x30] sm:$0xff] %v981_v0   ;;  %v1122_v5 = vadd.f32 %v1121_v3, %v1120_v63  ;;  %v765_v7 = vadd.f32 %v1418_v14, %v687_v4 }
 0x125   :  { %v690_v6 = vadd.f32 %v1122_v5, %v1058_v2 }
 0x127   :  { %v766_v8 = vadd.f32 %v1418_v14, %v690_v6 }
 0x129   :  { %v986_v9 = vpack.c.bf16 %v766_v8, %v765_v7 }
 0x12b   :  { %994 = vst [vmem:[%s1463_s3 + $0x38] sm:$0xff] %v986_v9  }

</bundles_post_ra>
